<compile_context>
chip_gen: v6e
topology: v6e:2x2x1
jax: 0.10.0
libtpu: 0.0.40
codegen_flags: <defaults>
</compile_context>

<pallas_src>
import functools

import jax
import jax.numpy as jnp
import numpy as np
from jax.experimental import pallas as pl
from jax.experimental.pallas import tpu as pltpu


# ----------------------------------------------------------------------------
# helpers
# ----------------------------------------------------------------------------
def _compiler_params(semantics, est_bytes):
    # 48 MiB ceiling leaves headroom below the smallest per-core VMEM (v7x).
    limit = int(min(max(4 * est_bytes + (8 << 20), 32 << 20), 48 << 20))
    return pltpu.CompilerParams(dimension_semantics=semantics,
                                vmem_limit_bytes=limit)


def _phase_split(x_nhwc, kh, kw, stride, pad):
    """Pad + space-to-depth split by `stride` (a single 1x copy of x).

    Returns xph of shape (stride*stride, N, HPs, WPs, C) with
        xph[a*stride + b, n, r, c] == x_padded[n, r*stride + a, c*stride + b]
    so every conv tap becomes a contiguous (non-strided) slice in-kernel.
    """
    n, h, w, c = x_nhwc.shape
    oh = (h + 2 * pad - kh) // stride + 1
    ow = (w + 2 * pad - kw) // stride + 1
    hp, wp = h + 2 * pad, w + 2 * pad
    hp_r = -(-hp // stride) * stride
    wp_r = -(-wp // stride) * stride
    xp = jnp.pad(x_nhwc, ((0, 0),
                          (pad, pad + (hp_r - hp)),
                          (pad, pad + (wp_r - wp)),
                          (0, 0)))
    hps, wps = hp_r // stride, wp_r // stride
    xph = xp.reshape(n, hps, stride, wps, stride, c)
    xph = xph.transpose(2, 4, 0, 1, 3, 5).reshape(stride * stride, n, hps, wps, c)
    return xph, oh, ow, hps, wps


def _bn_scale_shift(stats, gamma, beta, count, eps=1e-5):
    """Training-mode BN (biased variance) scale/shift from per-image stats."""
    tot = jnp.sum(stats.astype(jnp.float32), axis=0)          # (2, C)
    mean = tot[0] / count
    var = tot[1] / count - mean * mean
    scale = gamma.astype(jnp.float32) * jax.lax.rsqrt(var + eps)
    shift = beta.astype(jnp.float32) - mean * scale
    return scale, shift


# ----------------------------------------------------------------------------
# Pallas kernel: one image's full conv output per grid step
# ----------------------------------------------------------------------------
def _conv_kernel(*refs, kh, kw, stride, pad, h_in, w_in, oh, ow, cin,
                 act, fuse_affine, emit_stats, pack_k):
    """Whole-image conv (+ optional fused input-BN-affine + LeakyReLU,
    optional output activation, optional fused batch statistics).

    refs (in order):
      x_ref : (stride*stride, 1, HPs, WPs, Cin) bf16   phase-split input image
      w_ref : (kh*kw*Cin, Cout_p) or (kh*kw, Cin, Cout_p) bf16 (resident)
      b_ref : (1, Cout_p) f32
      s_ref, t_ref : (1, Cin) f32   [only if fuse_affine]
      o_ref : (1, OH*OW, Cout_p)
      st_ref: (1, 2, Cout_p) f32    [only if emit_stats] per-image sum / sum_sq
    """
    it = iter(refs)
    x_ref = next(it)
    w_ref = next(it)
    b_ref = next(it)
    s_ref = next(it) if fuse_affine else None
    t_ref = next(it) if fuse_affine else None
    o_ref = next(it)
    st_ref = next(it) if emit_stats else None

    # Load per-phase blocks; optionally apply BN affine + LeakyReLU(0.2) to the
    # previous layer's raw output, restoring the conv zero-padding with a
    # static interior mask (padding is applied AFTER the activation).
    xs = []
    for pa in range(stride):
        for pb in range(stride):
            p = pa * stride + pb
            xv = x_ref[p, 0]                                   # (HPs, WPs, Cin)
            if fuse_affine:
                hps, wps = xv.shape[0], xv.shape[1]
                s = s_ref[...].reshape(1, 1, cin)
                t = t_ref[...].reshape(1, 1, cin)
                y = xv.astype(jnp.float32) * s + t
                y = jnp.where(y >= 0.0, y, 0.2 * y)
                rr = jax.lax.broadcasted_iota(jnp.int32, (hps, wps, cin), 0)
                cc = jax.lax.broadcasted_iota(jnp.int32, (hps, wps, cin), 1)
                pr = rr * stride + pa
                pc = cc * stride + pb
                valid = ((pr >= pad) & (pr < pad + h_in)
                         & (pc >= pad) & (pc < pad + w_in))
                y = jnp.where(valid, y, 0.0)
                xv = y.astype(jnp.bfloat16)
            xs.append(xv)

    def tap(i, j):
        p = (i % stride) * stride + (j % stride)
        di, dj = i // stride, j // stride
        return xs[p][di:di + oh, dj:dj + ow, :].reshape(oh * ow, cin)

    cout_p = o_ref.shape[-1]
    if pack_k:
        # In-VMEM im2col slab: (M, kh*kw*Cin) -> one big-K MXU matmul.
        slab = jnp.concatenate(
            [tap(i, j) for i in range(kh) for j in range(kw)], axis=-1)
        acc = jnp.dot(slab, w_ref[...], preferred_element_type=jnp.float32)
    else:
        acc = jnp.zeros((oh * ow, cout_p), jnp.float32)
        for i in range(kh):
            for j in range(kw):
                acc = acc + jnp.dot(tap(i, j), w_ref[i * kw + j, :, :],
                                    preferred_element_type=jnp.float32)

    acc = acc + b_ref[...]

    if act == "leaky":
        yv = jnp.where(acc >= 0.0, acc, 0.2 * acc)
    elif act == "sigmoid":
        yv = 1.0 / (1.0 + jnp.exp(-acc))
    else:
        yv = acc

    yo = yv.astype(o_ref.dtype)
    o_ref[0, :, :] = yo

    if emit_stats:
        # Stats from the rounded/stored values -> consistent with the data the
        # consuming layer will normalize.
        yf = yo.astype(jnp.float32)
        st_ref[0, 0:1, :] = jnp.sum(yf, axis=0, keepdims=True)
        st_ref[0, 1:2, :] = jnp.sum(yf * yf, axis=0, keepdims=True)


# ----------------------------------------------------------------------------
# Layer wrapper
# ----------------------------------------------------------------------------
def conv2d_pallas(x_nhwc, w_oihw, bias, *, stride, pad, act="linear",
                  emit_stats=False, in_scale=None, in_shift=None,
                  out_dtype=jnp.bfloat16):
    n, h, w, cin = x_nhwc.shape
    cout, cin_w, kh, kw = w_oihw.shape
    assert cin_w <= cin, (cin_w, cin)
    fuse_affine = in_scale is not None

    xph, oh, ow, hps, wps = _phase_split(x_nhwc, kh, kw, stride, pad)
    xph = xph.astype(jnp.bfloat16)

    # Lane-dense output channels; zero-padded weight Cin consumes a previous
    # layer's channel-padded output directly (no inter-layer slice).
    cout_p = cout if cout % 128 == 0 else (-(-cout // 128) * 128)
    w_t = jnp.transpose(w_oihw, (2, 3, 1, 0))               # (kh, kw, Cin_w, Cout)
    w_t = jnp.pad(w_t, ((0, 0), (0, 0), (0, cin - cin_w), (0, cout_p - cout)))

    pack_k = (cin % 128 == 0)
    if pack_k:
        w_arg = w_t.reshape(kh * kw * cin, cout_p).astype(jnp.bfloat16)
        w_spec = pl.BlockSpec((kh * kw * cin, cout_p), lambda ni: (0, 0))
    else:
        w_arg = w_t.reshape(kh * kw, cin, cout_p).astype(jnp.bfloat16)
        w_spec = pl.BlockSpec((kh * kw, cin, cout_p), lambda ni: (0, 0, 0))

    if bias is None:
        b_row = jnp.zeros((1, cout_p), jnp.float32)
    else:
        b_row = jnp.pad(bias.astype(jnp.float32).reshape(1, cout),
                        ((0, 0), (0, cout_p - cout)))

    m = oh * ow
    in_specs = [
        pl.BlockSpec((stride * stride, 1, hps, wps, cin),
                     lambda ni: (0, ni, 0, 0, 0)),
        w_spec,
        pl.BlockSpec((1, cout_p), lambda ni: (0, 0)),
    ]
    args = [xph, w_arg, b_row]
    if fuse_affine:
        in_specs += [pl.BlockSpec((1, cin), lambda ni: (0, 0)),
                     pl.BlockSpec((1, cin), lambda ni: (0, 0))]
        args += [in_scale.reshape(1, cin).astype(jnp.float32),
                 in_shift.reshape(1, cin).astype(jnp.float32)]

    out_shapes = [jax.ShapeDtypeStruct((n, m, cout_p), out_dtype)]
    out_specs = [pl.BlockSpec((1, m, cout_p), lambda ni: (ni, 0, 0))]
    if emit_stats:
        out_shapes.append(jax.ShapeDtypeStruct((n, 2, cout_p), jnp.float32))
        out_specs.append(pl.BlockSpec((1, 2, cout_p), lambda ni: (ni, 0, 0)))

    est = (2 * stride * stride * hps * wps * cin * 2        # input (x2 buffered)
           + 2 * kh * kw * cin * cout_p * 2                 # weights
           + 2 * m * cout_p * jnp.dtype(out_dtype).itemsize # output
           + m * kh * kw * cin * 2                          # in-VMEM slab
           + 4 * 2 * cout_p * 4)

    kernel = functools.partial(_conv_kernel, kh=kh, kw=kw, stride=stride,
                               pad=pad, h_in=h, w_in=w, oh=oh, ow=ow, cin=cin,
                               act=act, fuse_affine=fuse_affine,
                               emit_stats=emit_stats, pack_k=pack_k)
    res = pl.pallas_call(
        kernel,
        out_shape=tuple(out_shapes) if emit_stats else out_shapes[0],
        grid=(n,),
        in_specs=in_specs,
        out_specs=tuple(out_specs) if emit_stats else out_specs[0],
        compiler_params=_compiler_params(("parallel",), est),
    )(*args)

    if emit_stats:
        out, stats = res
        if cout_p != cout:
            stats = stats[..., :cout]
    else:
        out, stats = res, None
    out = out.reshape(n, oh, ow, cout_p)
    return (out, stats) if emit_stats else out


# ----------------------------------------------------------------------------
# Model: parameters + forward
# ----------------------------------------------------------------------------
def init_params(key):
    ks = jax.random.split(key, 12)

    def conv_w(k, cout, cin, khw):
        return (0.02 * jax.random.normal(k, (cout, cin, khw, khw))).astype(jnp.float32)

    def vec(k, nn_, scale=0.1, base=0.0):
        return (base + scale * jax.random.normal(k, (nn_,))).astype(jnp.float32)

    return {
        "w1": conv_w(ks[0], 64, 3, 4),    "b1": vec(ks[1], 64),
        "w2": conv_w(ks[2], 128, 64, 4),  "b2": vec(ks[3], 128),
        "g2": vec(ks[4], 128, base=1.0),  "beta2": vec(ks[5], 128),
        "w3": conv_w(ks[6], 256, 128, 4), "b3": vec(ks[7], 256),
        "g3": vec(ks[8], 256, base=1.0),  "beta3": vec(ks[9], 256),
        "w4": conv_w(ks[10], 1, 256, 4),  "b4": vec(ks[11], 1),
    }


@jax.jit
def discriminator_forward(x_nchw, params):
    x = jnp.transpose(x_nchw, (0, 2, 3, 1)).astype(jnp.float32)   # NCHW -> NHWC
    n = x.shape[0]

    # conv1 + LeakyReLU(0.2); Cout zero-padded 64 -> 128 (lane-dense, consumed
    # directly by conv2 whose weight Cin is zero-padded to 128).
    y1 = conv2d_pallas(x, params["w1"], params["b1"], stride=2, pad=1,
                       act="leaky")                                # (N, 8, 8, 128)

    # conv2 (bias is a no-op under training-mode BN -> folded) + fused stats.
    y2, st2 = conv2d_pallas(y1, params["w2"], None, stride=2, pad=1,
                            act="linear", emit_stats=True)         # (N, 4, 4, 128)
    cnt2 = float(n * y2.shape[1] * y2.shape[2])
    s2, t2 = _bn_scale_shift(st2, params["g2"], params["beta2"], cnt2)

    # conv3 with BN2 affine + LeakyReLU fused at its input, + fused stats.
    y3, st3 = conv2d_pallas(y2, params["w3"], None, stride=2, pad=1,
                            act="linear", emit_stats=True,
                            in_scale=s2, in_shift=t2)              # (N, 2, 2, 256)
    cnt3 = float(n * y3.shape[1] * y3.shape[2])
    s3, t3 = _bn_scale_shift(st3, params["g3"], params["beta3"], cnt3)

    # conv4 with BN3 affine + LeakyReLU fused at input, + bias + Sigmoid.
    y4 = conv2d_pallas(y3, params["w4"], params["b4"], stride=1, pad=1,
                       act="sigmoid", in_scale=s3, in_shift=t3,
                       out_dtype=jnp.float32)                      # (N, 1, 1, 128)
    out = y4[..., :1]                                              # (N, 1, 1, 1)
    return jnp.transpose(out, (0, 3, 1, 2))                        # NHWC -> NCHW


# ----------------------------------------------------------------------------
# Pure-JAX reference (full f32, faithful to the PyTorch module)
# ----------------------------------------------------------------------------
def _ref_conv(x, w, b, stride, pad):
    y = jax.lax.conv_general_dilated(
        x, w, window_strides=(stride, stride), padding=[(pad, pad), (pad, pad)],
        dimension_numbers=("NCHW", "OIHW", "NCHW"))
    return y + b.reshape(1, -1, 1, 1)


def _ref_bn_leaky(x, g, beta):
    mean = jnp.mean(x, axis=(0, 2, 3), keepdims=True)
    var = jnp.mean((x - mean) ** 2, axis=(0, 2, 3), keepdims=True)
    y = (x - mean) * jax.lax.rsqrt(var + 1e-5)
    y = y * g.reshape(1, -1, 1, 1) + beta.reshape(1, -1, 1, 1)
    return jnp.where(y >= 0.0, y, 0.2 * y)


def ref_forward(x, p):
    y = _ref_conv(x, p["w1"], p["b1"], 2, 1)
    y = jnp.where(y >= 0.0, y, 0.2 * y)
    y = _ref_conv(y, p["w2"], p["b2"], 2, 1)
    y = _ref_bn_leaky(y, p["g2"], p["beta2"])
    y = _ref_conv(y, p["w3"], p["b3"], 2, 1)
    y = _ref_bn_leaky(y, p["g3"], p["beta3"])
    y = _ref_conv(y, p["w4"], p["b4"], 1, 1)
    return 1.0 / (1.0 + jnp.exp(-y))


# ----------------------------------------------------------------------------
if __name__ == "__main__":
    key = jax.random.PRNGKey(0)
    k_x, k_p = jax.random.split(key)
    x = jax.random.normal(k_x, (2, 3, 16, 16), dtype=jnp.float32)
    params = init_params(k_p)

    out = jax.block_until_ready(discriminator_forward(x, params))
    assert out.shape == (2, 1, 1, 1), out.shape

    ref = jax.block_until_ready(ref_forward(x, params))
    # bf16 MXU operands + bf16 intermediate activations introduce ~1e-3-level
    # error; allow a modest tolerance.
    np.testing.assert_allclose(np.asarray(out), np.asarray(ref),
                               rtol=2e-2, atol=2e-2)

    print("KERNEL_OK")
</pallas_src>

<mosaic_0001>
module attributes {stable_mosaic.version = 11 : i64} {
  func.func @_conv_kernel(%arg0: i32, %arg1: memref<4x1x9x9x3xbf16, #tpu.memory_space<vmem>>, %arg2: memref<16x3x128xbf16, #tpu.memory_space<vmem>>, %arg3: memref<1x128xf32, #tpu.memory_space<vmem>>, %arg4: memref<1x64x128xbf16, #tpu.memory_space<vmem>>) attributes {dimension_semantics = [#tpu.dimension_semantics<parallel>], iteration_bounds = array<i64: 2>, scalar_prefetch = 0 : i64, scratch_operands = 0 : i64, tpu.core_type = #tpu.core_type<tc>, window_params = [{transform_indices = @transform_0, window_bounds = array<i64: 4, 1, 9, 9, 3>}, {pipeline_mode = #tpu.pipeline_mode<synchronous>, transform_indices = @transform_1, window_bounds = array<i64: 16, 3, 128>}, {pipeline_mode = #tpu.pipeline_mode<synchronous>, transform_indices = @transform_2, window_bounds = array<i64: 1, 128>}, {transform_indices = @transform_3, window_bounds = array<i64: 1, 64, 128>}]} {
    %c0 = arith.constant 0 : index
    %c0_0 = arith.constant 0 : index
    %c0_1 = arith.constant 0 : index
    %c0_2 = arith.constant 0 : index
    %c0_3 = arith.constant 0 : index
    %0 = vector.load %arg1[%c0, %c0_0, %c0_1, %c0_2, %c0_3] : memref<4x1x9x9x3xbf16, #tpu.memory_space<vmem>>, vector<1x1x9x9x3xbf16>
    %1 = vector.shape_cast %0 : vector<1x1x9x9x3xbf16> to vector<9x9x3xbf16>
    %c1 = arith.constant 1 : index
    %c0_4 = arith.constant 0 : index
    %c0_5 = arith.constant 0 : index
    %c0_6 = arith.constant 0 : index
    %c0_7 = arith.constant 0 : index
    %2 = vector.load %arg1[%c1, %c0_4, %c0_5, %c0_6, %c0_7] : memref<4x1x9x9x3xbf16, #tpu.memory_space<vmem>>, vector<1x1x9x9x3xbf16>
    %3 = vector.shape_cast %2 : vector<1x1x9x9x3xbf16> to vector<9x9x3xbf16>
    %c2 = arith.constant 2 : index
    %c0_8 = arith.constant 0 : index
    %c0_9 = arith.constant 0 : index
    %c0_10 = arith.constant 0 : index
    %c0_11 = arith.constant 0 : index
    %4 = vector.load %arg1[%c2, %c0_8, %c0_9, %c0_10, %c0_11] : memref<4x1x9x9x3xbf16, #tpu.memory_space<vmem>>, vector<1x1x9x9x3xbf16>
    %5 = vector.shape_cast %4 : vector<1x1x9x9x3xbf16> to vector<9x9x3xbf16>
    %c3 = arith.constant 3 : index
    %c0_12 = arith.constant 0 : index
    %c0_13 = arith.constant 0 : index
    %c0_14 = arith.constant 0 : index
    %c0_15 = arith.constant 0 : index
    %6 = vector.load %arg1[%c3, %c0_12, %c0_13, %c0_14, %c0_15] : memref<4x1x9x9x3xbf16, #tpu.memory_space<vmem>>, vector<1x1x9x9x3xbf16>
    %7 = vector.shape_cast %6 : vector<1x1x9x9x3xbf16> to vector<9x9x3xbf16>
    %cst = arith.constant 0.000000e+00 : f32
    %8 = vector.broadcast %cst : f32 to vector<64x128xf32>
    %9 = vector.extract_strided_slice %1 {offsets = [0, 0, 0], sizes = [8, 8, 3], strides = [1, 1, 1]} : vector<9x9x3xbf16> to vector<8x8x3xbf16>
    %10 = vector.shape_cast %9 : vector<8x8x3xbf16> to vector<64x3xbf16>
    %c0_16 = arith.constant 0 : index
    %c0_17 = arith.constant 0 : index
    %c0_18 = arith.constant 0 : index
    %11 = vector.load %arg2[%c0_16, %c0_17, %c0_18] : memref<16x3x128xbf16, #tpu.memory_space<vmem>>, vector<1x3x128xbf16>
    %12 = vector.shape_cast %11 : vector<1x3x128xbf16> to vector<3x128xbf16>
    %cst_19 = arith.constant dense<0.000000e+00> : vector<64x128xf32>
    %13 = tpu.matmul %10, %12, %cst_19 {dimension_numbers = #tpu.dot_dimension_numbers<[1], [0], [0], [1], [0, 0, 1, 1], [], []>} : vector<64x3xbf16>, vector<3x128xbf16>, vector<64x128xf32> -> vector<64x128xf32>
    %14 = arith.addf %8, %13 : vector<64x128xf32>
    %15 = vector.extract_strided_slice %3 {offsets = [0, 0, 0], sizes = [8, 8, 3], strides = [1, 1, 1]} : vector<9x9x3xbf16> to vector<8x8x3xbf16>
    %16 = vector.shape_cast %15 : vector<8x8x3xbf16> to vector<64x3xbf16>
    %c1_20 = arith.constant 1 : index
    %c0_21 = arith.constant 0 : index
    %c0_22 = arith.constant 0 : index
    %17 = vector.load %arg2[%c1_20, %c0_21, %c0_22] : memref<16x3x128xbf16, #tpu.memory_space<vmem>>, vector<1x3x128xbf16>
    %18 = vector.shape_cast %17 : vector<1x3x128xbf16> to vector<3x128xbf16>
    %cst_23 = arith.constant dense<0.000000e+00> : vector<64x128xf32>
    %19 = tpu.matmul %16, %18, %cst_23 {dimension_numbers = #tpu.dot_dimension_numbers<[1], [0], [0], [1], [0, 0, 1, 1], [], []>} : vector<64x3xbf16>, vector<3x128xbf16>, vector<64x128xf32> -> vector<64x128xf32>
    %20 = arith.addf %14, %19 : vector<64x128xf32>
    %21 = vector.extract_strided_slice %1 {offsets = [0, 1, 0], sizes = [8, 8, 3], strides = [1, 1, 1]} : vector<9x9x3xbf16> to vector<8x8x3xbf16>
    %22 = vector.shape_cast %21 : vector<8x8x3xbf16> to vector<64x3xbf16>
    %c2_24 = arith.constant 2 : index
    %c0_25 = arith.constant 0 : index
    %c0_26 = arith.constant 0 : index
    %23 = vector.load %arg2[%c2_24, %c0_25, %c0_26] : memref<16x3x128xbf16, #tpu.memory_space<vmem>>, vector<1x3x128xbf16>
    %24 = vector.shape_cast %23 : vector<1x3x128xbf16> to vector<3x128xbf16>
    %cst_27 = arith.constant dense<0.000000e+00> : vector<64x128xf32>
    %25 = tpu.matmul %22, %24, %cst_27 {dimension_numbers = #tpu.dot_dimension_numbers<[1], [0], [0], [1], [0, 0, 1, 1], [], []>} : vector<64x3xbf16>, vector<3x128xbf16>, vector<64x128xf32> -> vector<64x128xf32>
    %26 = arith.addf %20, %25 : vector<64x128xf32>
    %27 = vector.extract_strided_slice %3 {offsets = [0, 1, 0], sizes = [8, 8, 3], strides = [1, 1, 1]} : vector<9x9x3xbf16> to vector<8x8x3xbf16>
    %28 = vector.shape_cast %27 : vector<8x8x3xbf16> to vector<64x3xbf16>
    %c3_28 = arith.constant 3 : index
    %c0_29 = arith.constant 0 : index
    %c0_30 = arith.constant 0 : index
    %29 = vector.load %arg2[%c3_28, %c0_29, %c0_30] : memref<16x3x128xbf16, #tpu.memory_space<vmem>>, vector<1x3x128xbf16>
    %30 = vector.shape_cast %29 : vector<1x3x128xbf16> to vector<3x128xbf16>
    %cst_31 = arith.constant dense<0.000000e+00> : vector<64x128xf32>
    %31 = tpu.matmul %28, %30, %cst_31 {dimension_numbers = #tpu.dot_dimension_numbers<[1], [0], [0], [1], [0, 0, 1, 1], [], []>} : vector<64x3xbf16>, vector<3x128xbf16>, vector<64x128xf32> -> vector<64x128xf32>
    %32 = arith.addf %26, %31 : vector<64x128xf32>
    %33 = vector.extract_strided_slice %5 {offsets = [0, 0, 0], sizes = [8, 8, 3], strides = [1, 1, 1]} : vector<9x9x3xbf16> to vector<8x8x3xbf16>
    %34 = vector.shape_cast %33 : vector<8x8x3xbf16> to vector<64x3xbf16>
    %c4 = arith.constant 4 : index
    %c0_32 = arith.constant 0 : index
    %c0_33 = arith.constant 0 : index
    %35 = vector.load %arg2[%c4, %c0_32, %c0_33] : memref<16x3x128xbf16, #tpu.memory_space<vmem>>, vector<1x3x128xbf16>
    %36 = vector.shape_cast %35 : vector<1x3x128xbf16> to vector<3x128xbf16>
    %cst_34 = arith.constant dense<0.000000e+00> : vector<64x128xf32>
    %37 = tpu.matmul %34, %36, %cst_34 {dimension_numbers = #tpu.dot_dimension_numbers<[1], [0], [0], [1], [0, 0, 1, 1], [], []>} : vector<64x3xbf16>, vector<3x128xbf16>, vector<64x128xf32> -> vector<64x128xf32>
    %38 = arith.addf %32, %37 : vector<64x128xf32>
    %39 = vector.extract_strided_slice %7 {offsets = [0, 0, 0], sizes = [8, 8, 3], strides = [1, 1, 1]} : vector<9x9x3xbf16> to vector<8x8x3xbf16>
    %40 = vector.shape_cast %39 : vector<8x8x3xbf16> to vector<64x3xbf16>
    %c5 = arith.constant 5 : index
    %c0_35 = arith.constant 0 : index
    %c0_36 = arith.constant 0 : index
    %41 = vector.load %arg2[%c5, %c0_35, %c0_36] : memref<16x3x128xbf16, #tpu.memory_space<vmem>>, vector<1x3x128xbf16>
    %42 = vector.shape_cast %41 : vector<1x3x128xbf16> to vector<3x128xbf16>
    %cst_37 = arith.constant dense<0.000000e+00> : vector<64x128xf32>
    %43 = tpu.matmul %40, %42, %cst_37 {dimension_numbers = #tpu.dot_dimension_numbers<[1], [0], [0], [1], [0, 0, 1, 1], [], []>} : vector<64x3xbf16>, vector<3x128xbf16>, vector<64x128xf32> -> vector<64x128xf32>
    %44 = arith.addf %38, %43 : vector<64x128xf32>
    %45 = vector.extract_strided_slice %5 {offsets = [0, 1, 0], sizes = [8, 8, 3], strides = [1, 1, 1]} : vector<9x9x3xbf16> to vector<8x8x3xbf16>
    %46 = vector.shape_cast %45 : vector<8x8x3xbf16> to vector<64x3xbf16>
    %c6 = arith.constant 6 : index
    %c0_38 = arith.constant 0 : index
    %c0_39 = arith.constant 0 : index
    %47 = vector.load %arg2[%c6, %c0_38, %c0_39] : memref<16x3x128xbf16, #tpu.memory_space<vmem>>, vector<1x3x128xbf16>
    %48 = vector.shape_cast %47 : vector<1x3x128xbf16> to vector<3x128xbf16>
    %cst_40 = arith.constant dense<0.000000e+00> : vector<64x128xf32>
    %49 = tpu.matmul %46, %48, %cst_40 {dimension_numbers = #tpu.dot_dimension_numbers<[1], [0], [0], [1], [0, 0, 1, 1], [], []>} : vector<64x3xbf16>, vector<3x128xbf16>, vector<64x128xf32> -> vector<64x128xf32>
    %50 = arith.addf %44, %49 : vector<64x128xf32>
    %51 = vector.extract_strided_slice %7 {offsets = [0, 1, 0], sizes = [8, 8, 3], strides = [1, 1, 1]} : vector<9x9x3xbf16> to vector<8x8x3xbf16>
    %52 = vector.shape_cast %51 : vector<8x8x3xbf16> to vector<64x3xbf16>
    %c7 = arith.constant 7 : index
    %c0_41 = arith.constant 0 : index
    %c0_42 = arith.constant 0 : index
    %53 = vector.load %arg2[%c7, %c0_41, %c0_42] : memref<16x3x128xbf16, #tpu.memory_space<vmem>>, vector<1x3x128xbf16>
    %54 = vector.shape_cast %53 : vector<1x3x128xbf16> to vector<3x128xbf16>
    %cst_43 = arith.constant dense<0.000000e+00> : vector<64x128xf32>
    %55 = tpu.matmul %52, %54, %cst_43 {dimension_numbers = #tpu.dot_dimension_numbers<[1], [0], [0], [1], [0, 0, 1, 1], [], []>} : vector<64x3xbf16>, vector<3x128xbf16>, vector<64x128xf32> -> vector<64x128xf32>
    %56 = arith.addf %50, %55 : vector<64x128xf32>
    %57 = vector.extract_strided_slice %1 {offsets = [1, 0, 0], sizes = [8, 8, 3], strides = [1, 1, 1]} : vector<9x9x3xbf16> to vector<8x8x3xbf16>
    %58 = vector.shape_cast %57 : vector<8x8x3xbf16> to vector<64x3xbf16>
    %c8 = arith.constant 8 : index
    %c0_44 = arith.constant 0 : index
    %c0_45 = arith.constant 0 : index
    %59 = vector.load %arg2[%c8, %c0_44, %c0_45] : memref<16x3x128xbf16, #tpu.memory_space<vmem>>, vector<1x3x128xbf16>
    %60 = vector.shape_cast %59 : vector<1x3x128xbf16> to vector<3x128xbf16>
    %cst_46 = arith.constant dense<0.000000e+00> : vector<64x128xf32>
    %61 = tpu.matmul %58, %60, %cst_46 {dimension_numbers = #tpu.dot_dimension_numbers<[1], [0], [0], [1], [0, 0, 1, 1], [], []>} : vector<64x3xbf16>, vector<3x128xbf16>, vector<64x128xf32> -> vector<64x128xf32>
    %62 = arith.addf %56, %61 : vector<64x128xf32>
    %63 = vector.extract_strided_slice %3 {offsets = [1, 0, 0], sizes = [8, 8, 3], strides = [1, 1, 1]} : vector<9x9x3xbf16> to vector<8x8x3xbf16>
    %64 = vector.shape_cast %63 : vector<8x8x3xbf16> to vector<64x3xbf16>
    %c9 = arith.constant 9 : index
    %c0_47 = arith.constant 0 : index
    %c0_48 = arith.constant 0 : index
    %65 = vector.load %arg2[%c9, %c0_47, %c0_48] : memref<16x3x128xbf16, #tpu.memory_space<vmem>>, vector<1x3x128xbf16>
    %66 = vector.shape_cast %65 : vector<1x3x128xbf16> to vector<3x128xbf16>
    %cst_49 = arith.constant dense<0.000000e+00> : vector<64x128xf32>
    %67 = tpu.matmul %64, %66, %cst_49 {dimension_numbers = #tpu.dot_dimension_numbers<[1], [0], [0], [1], [0, 0, 1, 1], [], []>} : vector<64x3xbf16>, vector<3x128xbf16>, vector<64x128xf32> -> vector<64x128xf32>
    %68 = arith.addf %62, %67 : vector<64x128xf32>
    %69 = vector.extract_strided_slice %1 {offsets = [1, 1, 0], sizes = [8, 8, 3], strides = [1, 1, 1]} : vector<9x9x3xbf16> to vector<8x8x3xbf16>
    %70 = vector.shape_cast %69 : vector<8x8x3xbf16> to vector<64x3xbf16>
    %c10 = arith.constant 10 : index
    %c0_50 = arith.constant 0 : index
    %c0_51 = arith.constant 0 : index
    %71 = vector.load %arg2[%c10, %c0_50, %c0_51] : memref<16x3x128xbf16, #tpu.memory_space<vmem>>, vector<1x3x128xbf16>
    %72 = vector.shape_cast %71 : vector<1x3x128xbf16> to vector<3x128xbf16>
    %cst_52 = arith.constant dense<0.000000e+00> : vector<64x128xf32>
    %73 = tpu.matmul %70, %72, %cst_52 {dimension_numbers = #tpu.dot_dimension_numbers<[1], [0], [0], [1], [0, 0, 1, 1], [], []>} : vector<64x3xbf16>, vector<3x128xbf16>, vector<64x128xf32> -> vector<64x128xf32>
    %74 = arith.addf %68, %73 : vector<64x128xf32>
    %75 = vector.extract_strided_slice %3 {offsets = [1, 1, 0], sizes = [8, 8, 3], strides = [1, 1, 1]} : vector<9x9x3xbf16> to vector<8x8x3xbf16>
    %76 = vector.shape_cast %75 : vector<8x8x3xbf16> to vector<64x3xbf16>
    %c11 = arith.constant 11 : index
    %c0_53 = arith.constant 0 : index
    %c0_54 = arith.constant 0 : index
    %77 = vector.load %arg2[%c11, %c0_53, %c0_54] : memref<16x3x128xbf16, #tpu.memory_space<vmem>>, vector<1x3x128xbf16>
    %78 = vector.shape_cast %77 : vector<1x3x128xbf16> to vector<3x128xbf16>
    %cst_55 = arith.constant dense<0.000000e+00> : vector<64x128xf32>
    %79 = tpu.matmul %76, %78, %cst_55 {dimension_numbers = #tpu.dot_dimension_numbers<[1], [0], [0], [1], [0, 0, 1, 1], [], []>} : vector<64x3xbf16>, vector<3x128xbf16>, vector<64x128xf32> -> vector<64x128xf32>
    %80 = arith.addf %74, %79 : vector<64x128xf32>
    %81 = vector.extract_strided_slice %5 {offsets = [1, 0, 0], sizes = [8, 8, 3], strides = [1, 1, 1]} : vector<9x9x3xbf16> to vector<8x8x3xbf16>
    %82 = vector.shape_cast %81 : vector<8x8x3xbf16> to vector<64x3xbf16>
    %c12 = arith.constant 12 : index
    %c0_56 = arith.constant 0 : index
    %c0_57 = arith.constant 0 : index
    %83 = vector.load %arg2[%c12, %c0_56, %c0_57] : memref<16x3x128xbf16, #tpu.memory_space<vmem>>, vector<1x3x128xbf16>
    %84 = vector.shape_cast %83 : vector<1x3x128xbf16> to vector<3x128xbf16>
    %cst_58 = arith.constant dense<0.000000e+00> : vector<64x128xf32>
    %85 = tpu.matmul %82, %84, %cst_58 {dimension_numbers = #tpu.dot_dimension_numbers<[1], [0], [0], [1], [0, 0, 1, 1], [], []>} : vector<64x3xbf16>, vector<3x128xbf16>, vector<64x128xf32> -> vector<64x128xf32>
    %86 = arith.addf %80, %85 : vector<64x128xf32>
    %87 = vector.extract_strided_slice %7 {offsets = [1, 0, 0], sizes = [8, 8, 3], strides = [1, 1, 1]} : vector<9x9x3xbf16> to vector<8x8x3xbf16>
    %88 = vector.shape_cast %87 : vector<8x8x3xbf16> to vector<64x3xbf16>
    %c13 = arith.constant 13 : index
    %c0_59 = arith.constant 0 : index
    %c0_60 = arith.constant 0 : index
    %89 = vector.load %arg2[%c13, %c0_59, %c0_60] : memref<16x3x128xbf16, #tpu.memory_space<vmem>>, vector<1x3x128xbf16>
    %90 = vector.shape_cast %89 : vector<1x3x128xbf16> to vector<3x128xbf16>
    %cst_61 = arith.constant dense<0.000000e+00> : vector<64x128xf32>
    %91 = tpu.matmul %88, %90, %cst_61 {dimension_numbers = #tpu.dot_dimension_numbers<[1], [0], [0], [1], [0, 0, 1, 1], [], []>} : vector<64x3xbf16>, vector<3x128xbf16>, vector<64x128xf32> -> vector<64x128xf32>
    %92 = arith.addf %86, %91 : vector<64x128xf32>
    %93 = vector.extract_strided_slice %5 {offsets = [1, 1, 0], sizes = [8, 8, 3], strides = [1, 1, 1]} : vector<9x9x3xbf16> to vector<8x8x3xbf16>
    %94 = vector.shape_cast %93 : vector<8x8x3xbf16> to vector<64x3xbf16>
    %c14 = arith.constant 14 : index
    %c0_62 = arith.constant 0 : index
    %c0_63 = arith.constant 0 : index
    %95 = vector.load %arg2[%c14, %c0_62, %c0_63] : memref<16x3x128xbf16, #tpu.memory_space<vmem>>, vector<1x3x128xbf16>
    %96 = vector.shape_cast %95 : vector<1x3x128xbf16> to vector<3x128xbf16>
    %cst_64 = arith.constant dense<0.000000e+00> : vector<64x128xf32>
    %97 = tpu.matmul %94, %96, %cst_64 {dimension_numbers = #tpu.dot_dimension_numbers<[1], [0], [0], [1], [0, 0, 1, 1], [], []>} : vector<64x3xbf16>, vector<3x128xbf16>, vector<64x128xf32> -> vector<64x128xf32>
    %98 = arith.addf %92, %97 : vector<64x128xf32>
    %99 = vector.extract_strided_slice %7 {offsets = [1, 1, 0], sizes = [8, 8, 3], strides = [1, 1, 1]} : vector<9x9x3xbf16> to vector<8x8x3xbf16>
    %100 = vector.shape_cast %99 : vector<8x8x3xbf16> to vector<64x3xbf16>
    %c15 = arith.constant 15 : index
    %c0_65 = arith.constant 0 : index
    %c0_66 = arith.constant 0 : index
    %101 = vector.load %arg2[%c15, %c0_65, %c0_66] : memref<16x3x128xbf16, #tpu.memory_space<vmem>>, vector<1x3x128xbf16>
    %102 = vector.shape_cast %101 : vector<1x3x128xbf16> to vector<3x128xbf16>
    %cst_67 = arith.constant dense<0.000000e+00> : vector<64x128xf32>
    %103 = tpu.matmul %100, %102, %cst_67 {dimension_numbers = #tpu.dot_dimension_numbers<[1], [0], [0], [1], [0, 0, 1, 1], [], []>} : vector<64x3xbf16>, vector<3x128xbf16>, vector<64x128xf32> -> vector<64x128xf32>
    %104 = arith.addf %98, %103 : vector<64x128xf32>
    %c0_68 = arith.constant 0 : index
    %c0_69 = arith.constant 0 : index
    %105 = vector.load %arg3[%c0_68, %c0_69] : memref<1x128xf32, #tpu.memory_space<vmem>>, vector<1x128xf32>
    %106 = vector.broadcast %105 : vector<1x128xf32> to vector<64x128xf32>
    %107 = arith.addf %104, %106 : vector<64x128xf32>
    %cst_70 = arith.constant 0.000000e+00 : f32
    %108 = vector.broadcast %cst_70 : f32 to vector<64x128xf32>
    %109 = arith.cmpf oge, %107, %108 : vector<64x128xf32>
    %cst_71 = arith.constant 2.000000e-01 : f32
    %110 = vector.broadcast %cst_71 : f32 to vector<64x128xf32>
    %111 = arith.mulf %110, %107 : vector<64x128xf32>
    %112 = arith.select %109, %107, %111 : vector<64x128xi1>, vector<64x128xf32>
    %113 = arith.truncf %112 : vector<64x128xf32> to vector<64x128xbf16>
    %c0_72 = arith.constant 0 : index
    %c0_73 = arith.constant 0 : index
    %c0_74 = arith.constant 0 : index
    %114 = vector.load %arg4[%c0_72, %c0_73, %c0_74] : memref<1x64x128xbf16, #tpu.memory_space<vmem>>, vector<1x64x128xbf16>
    %115 = vector.shape_cast %114 : vector<1x64x128xbf16> to vector<64x128xbf16>
    %116 = vector.shape_cast %113 : vector<64x128xbf16> to vector<1x64x128xbf16>
    tpu.vector_store %arg4[%c0_72, %c0_73, %c0_74], %116 {strides = array<i32>} : memref<1x64x128xbf16, #tpu.memory_space<vmem>>, vector<1x64x128xbf16>,
    return
  }
  func.func @transform_0(%arg0: i32) -> (i32, i32, i32, i32, i32) {
    %c0_i32 = arith.constant 0 : i32
    %c0_i32_0 = arith.constant 0 : i32
    %c0_i32_1 = arith.constant 0 : i32
    %c0_i32_2 = arith.constant 0 : i32
    %c0_i32_3 = arith.constant 0 : i32
    return %c0_i32, %arg0, %c0_i32_0, %c0_i32_1, %c0_i32_2 : i32, i32, i32, i32, i32
  }
  func.func @transform_1(%arg0: i32) -> (i32, i32, i32) {
    %c0_i32 = arith.constant 0 : i32
    %c0_i32_0 = arith.constant 0 : i32
    %c0_i32_1 = arith.constant 0 : i32
    %c0_i32_2 = arith.constant 0 : i32
    return %c0_i32, %c0_i32_0, %c0_i32_1 : i32, i32, i32
  }
  func.func @transform_2(%arg0: i32) -> (i32, i32) {
    %c0_i32 = arith.constant 0 : i32
    %c0_i32_0 = arith.constant 0 : i32
    %c0_i32_1 = arith.constant 0 : i32
    return %c0_i32, %c0_i32_0 : i32, i32
  }
  func.func @transform_3(%arg0: i32) -> (i32, i32, i32) {
    %c0_i32 = arith.constant 0 : i32
    %c0_i32_0 = arith.constant 0 : i32
    %c0_i32_1 = arith.constant 0 : i32
    return %arg0, %c0_i32, %c0_i32_0 : i32, i32, i32
  }
}

module attributes {stable_mosaic.version = 11 : i64} {
  func.func @_conv_kernel(%arg0: i32, %arg1: memref<4x1x5x5x128xbf16, #tpu.memory_space<vmem>>, %arg2: memref<2048x128xbf16, #tpu.memory_space<vmem>>, %arg3: memref<1x128xf32, #tpu.memory_space<vmem>>, %arg4: memref<1x16x128xbf16, #tpu.memory_space<vmem>>, %arg5: memref<1x2x128xf32, #tpu.memory_space<vmem>>) attributes {dimension_semantics = [#tpu.dimension_semantics<parallel>], iteration_bounds = array<i64: 2>, scalar_prefetch = 0 : i64, scratch_operands = 0 : i64, tpu.core_type = #tpu.core_type<tc>, window_params = [{transform_indices = @transform_0, window_bounds = array<i64: 4, 1, 5, 5, 128>}, {pipeline_mode = #tpu.pipeline_mode<synchronous>, transform_indices = @transform_1, window_bounds = array<i64: 2048, 128>}, {pipeline_mode = #tpu.pipeline_mode<synchronous>, transform_indices = @transform_2, window_bounds = array<i64: 1, 128>}, {transform_indices = @transform_3, window_bounds = array<i64: 1, 16, 128>}, {transform_indices = @transform_4, window_bounds = array<i64: 1, 2, 128>}]} {
    %c0 = arith.constant 0 : index
    %c0_0 = arith.constant 0 : index
    %c0_1 = arith.constant 0 : index
    %c0_2 = arith.constant 0 : index
    %c0_3 = arith.constant 0 : index
    %0 = vector.load %arg1[%c0, %c0_0, %c0_1, %c0_2, %c0_3] : memref<4x1x5x5x128xbf16, #tpu.memory_space<vmem>>, vector<1x1x5x5x128xbf16>
    %1 = vector.shape_cast %0 : vector<1x1x5x5x128xbf16> to vector<5x5x128xbf16>
    %c1 = arith.constant 1 : index
    %c0_4 = arith.constant 0 : index
    %c0_5 = arith.constant 0 : index
    %c0_6 = arith.constant 0 : index
    %c0_7 = arith.constant 0 : index
    %2 = vector.load %arg1[%c1, %c0_4, %c0_5, %c0_6, %c0_7] : memref<4x1x5x5x128xbf16, #tpu.memory_space<vmem>>, vector<1x1x5x5x128xbf16>
    %3 = vector.shape_cast %2 : vector<1x1x5x5x128xbf16> to vector<5x5x128xbf16>
    %c2 = arith.constant 2 : index
    %c0_8 = arith.constant 0 : index
    %c0_9 = arith.constant 0 : index
    %c0_10 = arith.constant 0 : index
    %c0_11 = arith.constant 0 : index
    %4 = vector.load %arg1[%c2, %c0_8, %c0_9, %c0_10, %c0_11] : memref<4x1x5x5x128xbf16, #tpu.memory_space<vmem>>, vector<1x1x5x5x128xbf16>
    %5 = vector.shape_cast %4 : vector<1x1x5x5x128xbf16> to vector<5x5x128xbf16>
    %c3 = arith.constant 3 : index
    %c0_12 = arith.constant 0 : index
    %c0_13 = arith.constant 0 : index
    %c0_14 = arith.constant 0 : index
    %c0_15 = arith.constant 0 : index
    %6 = vector.load %arg1[%c3, %c0_12, %c0_13, %c0_14, %c0_15] : memref<4x1x5x5x128xbf16, #tpu.memory_space<vmem>>, vector<1x1x5x5x128xbf16>
    %7 = vector.shape_cast %6 : vector<1x1x5x5x128xbf16> to vector<5x5x128xbf16>
    %8 = vector.extract_strided_slice %1 {offsets = [0, 0, 0], sizes = [4, 4, 128], strides = [1, 1, 1]} : vector<5x5x128xbf16> to vector<4x4x128xbf16>
    %9 = vector.shape_cast %8 : vector<4x4x128xbf16> to vector<16x128xbf16>
    %10 = vector.extract_strided_slice %3 {offsets = [0, 0, 0], sizes = [4, 4, 128], strides = [1, 1, 1]} : vector<5x5x128xbf16> to vector<4x4x128xbf16>
    %11 = vector.shape_cast %10 : vector<4x4x128xbf16> to vector<16x128xbf16>
    %12 = vector.extract_strided_slice %1 {offsets = [0, 1, 0], sizes = [4, 4, 128], strides = [1, 1, 1]} : vector<5x5x128xbf16> to vector<4x4x128xbf16>
    %13 = vector.shape_cast %12 : vector<4x4x128xbf16> to vector<16x128xbf16>
    %14 = vector.extract_strided_slice %3 {offsets = [0, 1, 0], sizes = [4, 4, 128], strides = [1, 1, 1]} : vector<5x5x128xbf16> to vector<4x4x128xbf16>
    %15 = vector.shape_cast %14 : vector<4x4x128xbf16> to vector<16x128xbf16>
    %16 = vector.extract_strided_slice %5 {offsets = [0, 0, 0], sizes = [4, 4, 128], strides = [1, 1, 1]} : vector<5x5x128xbf16> to vector<4x4x128xbf16>
    %17 = vector.shape_cast %16 : vector<4x4x128xbf16> to vector<16x128xbf16>
    %18 = vector.extract_strided_slice %7 {offsets = [0, 0, 0], sizes = [4, 4, 128], strides = [1, 1, 1]} : vector<5x5x128xbf16> to vector<4x4x128xbf16>
    %19 = vector.shape_cast %18 : vector<4x4x128xbf16> to vector<16x128xbf16>
    %20 = vector.extract_strided_slice %5 {offsets = [0, 1, 0], sizes = [4, 4, 128], strides = [1, 1, 1]} : vector<5x5x128xbf16> to vector<4x4x128xbf16>
    %21 = vector.shape_cast %20 : vector<4x4x128xbf16> to vector<16x128xbf16>
    %22 = vector.extract_strided_slice %7 {offsets = [0, 1, 0], sizes = [4, 4, 128], strides = [1, 1, 1]} : vector<5x5x128xbf16> to vector<4x4x128xbf16>
    %23 = vector.shape_cast %22 : vector<4x4x128xbf16> to vector<16x128xbf16>
    %24 = vector.extract_strided_slice %1 {offsets = [1, 0, 0], sizes = [4, 4, 128], strides = [1, 1, 1]} : vector<5x5x128xbf16> to vector<4x4x128xbf16>
    %25 = vector.shape_cast %24 : vector<4x4x128xbf16> to vector<16x128xbf16>
    %26 = vector.extract_strided_slice %3 {offsets = [1, 0, 0], sizes = [4, 4, 128], strides = [1, 1, 1]} : vector<5x5x128xbf16> to vector<4x4x128xbf16>
    %27 = vector.shape_cast %26 : vector<4x4x128xbf16> to vector<16x128xbf16>
    %28 = vector.extract_strided_slice %1 {offsets = [1, 1, 0], sizes = [4, 4, 128], strides = [1, 1, 1]} : vector<5x5x128xbf16> to vector<4x4x128xbf16>
    %29 = vector.shape_cast %28 : vector<4x4x128xbf16> to vector<16x128xbf16>
    %30 = vector.extract_strided_slice %3 {offsets = [1, 1, 0], sizes = [4, 4, 128], strides = [1, 1, 1]} : vector<5x5x128xbf16> to vector<4x4x128xbf16>
    %31 = vector.shape_cast %30 : vector<4x4x128xbf16> to vector<16x128xbf16>
    %32 = vector.extract_strided_slice %5 {offsets = [1, 0, 0], sizes = [4, 4, 128], strides = [1, 1, 1]} : vector<5x5x128xbf16> to vector<4x4x128xbf16>
    %33 = vector.shape_cast %32 : vector<4x4x128xbf16> to vector<16x128xbf16>
    %34 = vector.extract_strided_slice %7 {offsets = [1, 0, 0], sizes = [4, 4, 128], strides = [1, 1, 1]} : vector<5x5x128xbf16> to vector<4x4x128xbf16>
    %35 = vector.shape_cast %34 : vector<4x4x128xbf16> to vector<16x128xbf16>
    %36 = vector.extract_strided_slice %5 {offsets = [1, 1, 0], sizes = [4, 4, 128], strides = [1, 1, 1]} : vector<5x5x128xbf16> to vector<4x4x128xbf16>
    %37 = vector.shape_cast %36 : vector<4x4x128xbf16> to vector<16x128xbf16>
    %38 = vector.extract_strided_slice %7 {offsets = [1, 1, 0], sizes = [4, 4, 128], strides = [1, 1, 1]} : vector<5x5x128xbf16> to vector<4x4x128xbf16>
    %39 = vector.shape_cast %38 : vector<4x4x128xbf16> to vector<16x128xbf16>
    %40 = tpu.concatenate %9, %11, %13, %15, %17, %19, %21, %23, %25, %27, %29, %31, %33, %35, %37, %39 in 1 : vector<16x128xbf16>, vector<16x128xbf16>, vector<16x128xbf16>, vector<16x128xbf16>, vector<16x128xbf16>, vector<16x128xbf16>, vector<16x128xbf16>, vector<16x128xbf16>, vector<16x128xbf16>, vector<16x128xbf16>, vector<16x128xbf16>, vector<16x128xbf16>, vector<16x128xbf16>, vector<16x128xbf16>, vector<16x128xbf16>, vector<16x128xbf16> -> vector<16x2048xbf16>
    %c0_16 = arith.constant 0 : index
    %c0_17 = arith.constant 0 : index
    %41 = vector.load %arg2[%c0_16, %c0_17] : memref<2048x128xbf16, #tpu.memory_space<vmem>>, vector<2048x128xbf16>
    %cst = arith.constant dense<0.000000e+00> : vector<16x128xf32>
    %42 = tpu.matmul %40, %41, %cst {dimension_numbers = #tpu.dot_dimension_numbers<[1], [0], [0], [1], [0, 0, 1, 1], [], []>} : vector<16x2048xbf16>, vector<2048x128xbf16>, vector<16x128xf32> -> vector<16x128xf32>
    %c0_18 = arith.constant 0 : index
    %c0_19 = arith.constant 0 : index
    %43 = vector.load %arg3[%c0_18, %c0_19] : memref<1x128xf32, #tpu.memory_space<vmem>>, vector<1x128xf32>
    %44 = vector.broadcast %43 : vector<1x128xf32> to vector<16x128xf32>
    %45 = arith.addf %42, %44 : vector<16x128xf32>
    %46 = arith.truncf %45 : vector<16x128xf32> to vector<16x128xbf16>
    %c0_20 = arith.constant 0 : index
    %c0_21 = arith.constant 0 : index
    %c0_22 = arith.constant 0 : index
    %47 = vector.load %arg4[%c0_20, %c0_21, %c0_22] : memref<1x16x128xbf16, #tpu.memory_space<vmem>>, vector<1x16x128xbf16>
    %48 = vector.shape_cast %47 : vector<1x16x128xbf16> to vector<16x128xbf16>
    %49 = vector.shape_cast %46 : vector<16x128xbf16> to vector<1x16x128xbf16>
    tpu.vector_store %arg4[%c0_20, %c0_21, %c0_22], %49 {strides = array<i32>} : memref<1x16x128xbf16, #tpu.memory_space<vmem>>, vector<1x16x128xbf16>,
    %50 = arith.extf %46 : vector<16x128xbf16> to vector<16x128xf32>
    %cst_23 = arith.constant dense<0.000000e+00> : vector<128xf32>
    %51 = vector.multi_reduction <add>, %50, %cst_23 [0] : vector<16x128xf32> to vector<128xf32>
    %52 = vector.shape_cast %51 : vector<128xf32> to vector<1x128xf32>
    %c0_24 = arith.constant 0 : index
    %c0_25 = arith.constant 0 : index
    %c0_26 = arith.constant 0 : index
    %53 = vector.load %arg5[%c0_24, %c0_25, %c0_26] : memref<1x2x128xf32, #tpu.memory_space<vmem>>, vector<1x1x128xf32>
    %54 = vector.shape_cast %53 : vector<1x1x128xf32> to vector<1x128xf32>
    %55 = vector.shape_cast %52 : vector<1x128xf32> to vector<1x1x128xf32>
    tpu.vector_store %arg5[%c0_24, %c0_25, %c0_26], %55 {strides = array<i32>} : memref<1x2x128xf32, #tpu.memory_space<vmem>>, vector<1x1x128xf32>,
    %56 = arith.mulf %50, %50 : vector<16x128xf32>
    %cst_27 = arith.constant dense<0.000000e+00> : vector<128xf32>
    %57 = vector.multi_reduction <add>, %56, %cst_27 [0] : vector<16x128xf32> to vector<128xf32>
    %58 = vector.shape_cast %57 : vector<128xf32> to vector<1x128xf32>
    %c0_28 = arith.constant 0 : index
    %c1_29 = arith.constant 1 : index
    %c0_30 = arith.constant 0 : index
    %59 = vector.load %arg5[%c0_28, %c1_29, %c0_30] : memref<1x2x128xf32, #tpu.memory_space<vmem>>, vector<1x1x128xf32>
    %60 = vector.shape_cast %59 : vector<1x1x128xf32> to vector<1x128xf32>
    %61 = vector.shape_cast %58 : vector<1x128xf32> to vector<1x1x128xf32>
    tpu.vector_store %arg5[%c0_28, %c1_29, %c0_30], %61 {strides = array<i32>} : memref<1x2x128xf32, #tpu.memory_space<vmem>>, vector<1x1x128xf32>,
    return
  }
  func.func @transform_0(%arg0: i32) -> (i32, i32, i32, i32, i32) {
    %c0_i32 = arith.constant 0 : i32
    %c0_i32_0 = arith.constant 0 : i32
    %c0_i32_1 = arith.constant 0 : i32
    %c0_i32_2 = arith.constant 0 : i32
    %c0_i32_3 = arith.constant 0 : i32
    return %c0_i32, %arg0, %c0_i32_0, %c0_i32_1, %c0_i32_2 : i32, i32, i32, i32, i32
  }
  func.func @transform_1(%arg0: i32) -> (i32, i32) {
    %c0_i32 = arith.constant 0 : i32
    %c0_i32_0 = arith.constant 0 : i32
    %c0_i32_1 = arith.constant 0 : i32
    return %c0_i32, %c0_i32_0 : i32, i32
  }
  func.func @transform_2(%arg0: i32) -> (i32, i32) {
    %c0_i32 = arith.constant 0 : i32
    %c0_i32_0 = arith.constant 0 : i32
    %c0_i32_1 = arith.constant 0 : i32
    return %c0_i32, %c0_i32_0 : i32, i32
  }
  func.func @transform_3(%arg0: i32) -> (i32, i32, i32) {
    %c0_i32 = arith.constant 0 : i32
    %c0_i32_0 = arith.constant 0 : i32
    %c0_i32_1 = arith.constant 0 : i32
    return %arg0, %c0_i32, %c0_i32_0 : i32, i32, i32
  }
  func.func @transform_4(%arg0: i32) -> (i32, i32, i32) {
    %c0_i32 = arith.constant 0 : i32
    %c0_i32_0 = arith.constant 0 : i32
    %c0_i32_1 = arith.constant 0 : i32
    return %arg0, %c0_i32, %c0_i32_0 : i32, i32, i32
  }
}

module attributes {stable_mosaic.version = 11 : i64} {
  func.func @_conv_kernel(%arg0: i32, %arg1: memref<4x1x3x3x128xbf16, #tpu.memory_space<vmem>>, %arg2: memref<2048x256xbf16, #tpu.memory_space<vmem>>, %arg3: memref<1x256xf32, #tpu.memory_space<vmem>>, %arg4: memref<1x128xf32, #tpu.memory_space<vmem>>, %arg5: memref<1x128xf32, #tpu.memory_space<vmem>>, %arg6: memref<1x4x256xbf16, #tpu.memory_space<vmem>>, %arg7: memref<1x2x256xf32, #tpu.memory_space<vmem>>) attributes {dimension_semantics = [#tpu.dimension_semantics<parallel>], iteration_bounds = array<i64: 2>, scalar_prefetch = 0 : i64, scratch_operands = 0 : i64, tpu.core_type = #tpu.core_type<tc>, window_params = [{transform_indices = @transform_0, window_bounds = array<i64: 4, 1, 3, 3, 128>}, {pipeline_mode = #tpu.pipeline_mode<synchronous>, transform_indices = @transform_1, window_bounds = array<i64: 2048, 256>}, {pipeline_mode = #tpu.pipeline_mode<synchronous>, transform_indices = @transform_2, window_bounds = array<i64: 1, 256>}, {pipeline_mode = #tpu.pipeline_mode<synchronous>, transform_indices = @transform_3, window_bounds = array<i64: 1, 128>}, {pipeline_mode = #tpu.pipeline_mode<synchronous>, transform_indices = @transform_4, window_bounds = array<i64: 1, 128>}, {transform_indices = @transform_5, window_bounds = array<i64: 1, 4, 256>}, {transform_indices = @transform_6, window_bounds = array<i64: 1, 2, 256>}]} {
    %c0 = arith.constant 0 : index
    %c0_0 = arith.constant 0 : index
    %c0_1 = arith.constant 0 : index
    %c0_2 = arith.constant 0 : index
    %c0_3 = arith.constant 0 : index
    %0 = vector.load %arg1[%c0, %c0_0, %c0_1, %c0_2, %c0_3] : memref<4x1x3x3x128xbf16, #tpu.memory_space<vmem>>, vector<1x1x3x3x128xbf16>
    %1 = vector.shape_cast %0 : vector<1x1x3x3x128xbf16> to vector<3x3x128xbf16>
    %c0_4 = arith.constant 0 : index
    %c0_5 = arith.constant 0 : index
    %2 = vector.load %arg4[%c0_4, %c0_5] : memref<1x128xf32, #tpu.memory_space<vmem>>, vector<1x128xf32>
    %3 = vector.shape_cast %2 : vector<1x128xf32> to vector<1x1x128xf32>
    %c0_6 = arith.constant 0 : index
    %c0_7 = arith.constant 0 : index
    %4 = vector.load %arg5[%c0_6, %c0_7] : memref<1x128xf32, #tpu.memory_space<vmem>>, vector<1x128xf32>
    %5 = vector.shape_cast %4 : vector<1x128xf32> to vector<1x1x128xf32>
    %6 = arith.extf %1 : vector<3x3x128xbf16> to vector<3x3x128xf32>
    %7 = vector.broadcast %3 : vector<1x1x128xf32> to vector<3x3x128xf32>
    %8 = arith.mulf %6, %7 : vector<3x3x128xf32>
    %9 = vector.broadcast %5 : vector<1x1x128xf32> to vector<3x3x128xf32>
    %10 = arith.addf %8, %9 : vector<3x3x128xf32>
    %cst = arith.constant 0.000000e+00 : f32
    %11 = vector.broadcast %cst : f32 to vector<3x3x128xf32>
    %12 = arith.cmpf oge, %10, %11 : vector<3x3x128xf32>
    %cst_8 = arith.constant 2.000000e-01 : f32
    %13 = vector.broadcast %cst_8 : f32 to vector<3x3x128xf32>
    %14 = arith.mulf %13, %10 : vector<3x3x128xf32>
    %15 = arith.select %12, %10, %14 : vector<3x3x128xi1>, vector<3x3x128xf32>
    %16 = tpu.iota {dimensions = array<i32: 0>} : vector<3x3x128xi32>
    %17 = tpu.iota {dimensions = array<i32: 1>} : vector<3x3x128xi32>
    %c2_i32 = arith.constant 2 : i32
    %18 = vector.broadcast %c2_i32 : i32 to vector<3x3x128xi32>
    %19 = arith.muli %16, %18 : vector<3x3x128xi32>
    %c0_i32 = arith.constant 0 : i32
    %20 = vector.broadcast %c0_i32 : i32 to vector<3x3x128xi32>
    %21 = arith.addi %19, %20 : vector<3x3x128xi32>
    %c2_i32_9 = arith.constant 2 : i32
    %22 = vector.broadcast %c2_i32_9 : i32 to vector<3x3x128xi32>
    %23 = arith.muli %17, %22 : vector<3x3x128xi32>
    %c0_i32_10 = arith.constant 0 : i32
    %24 = vector.broadcast %c0_i32_10 : i32 to vector<3x3x128xi32>
    %25 = arith.addi %23, %24 : vector<3x3x128xi32>
    %c1_i32 = arith.constant 1 : i32
    %26 = vector.broadcast %c1_i32 : i32 to vector<3x3x128xi32>
    %27 = arith.cmpi sge, %21, %26 : vector<3x3x128xi32>
    %c5_i32 = arith.constant 5 : i32
    %28 = vector.broadcast %c5_i32 : i32 to vector<3x3x128xi32>
    %29 = arith.cmpi slt, %21, %28 : vector<3x3x128xi32>
    %30 = arith.andi %27, %29 : vector<3x3x128xi1>
    %c1_i32_11 = arith.constant 1 : i32
    %31 = vector.broadcast %c1_i32_11 : i32 to vector<3x3x128xi32>
    %32 = arith.cmpi sge, %25, %31 : vector<3x3x128xi32>
    %33 = arith.andi %30, %32 : vector<3x3x128xi1>
    %c5_i32_12 = arith.constant 5 : i32
    %34 = vector.broadcast %c5_i32_12 : i32 to vector<3x3x128xi32>
    %35 = arith.cmpi slt, %25, %34 : vector<3x3x128xi32>
    %36 = arith.andi %33, %35 : vector<3x3x128xi1>
    %cst_13 = arith.constant 0.000000e+00 : f32
    %37 = vector.broadcast %cst_13 : f32 to vector<3x3x128xf32>
    %38 = arith.select %36, %15, %37 : vector<3x3x128xi1>, vector<3x3x128xf32>
    %39 = arith.truncf %38 : vector<3x3x128xf32> to vector<3x3x128xbf16>
    %c1 = arith.constant 1 : index
    %c0_14 = arith.constant 0 : index
    %c0_15 = arith.constant 0 : index
    %c0_16 = arith.constant 0 : index
    %c0_17 = arith.constant 0 : index
    %40 = vector.load %arg1[%c1, %c0_14, %c0_15, %c0_16, %c0_17] : memref<4x1x3x3x128xbf16, #tpu.memory_space<vmem>>, vector<1x1x3x3x128xbf16>
    %41 = vector.shape_cast %40 : vector<1x1x3x3x128xbf16> to vector<3x3x128xbf16>
    %c0_18 = arith.constant 0 : index
    %c0_19 = arith.constant 0 : index
    %42 = vector.load %arg4[%c0_18, %c0_19] : memref<1x128xf32, #tpu.memory_space<vmem>>, vector<1x128xf32>
    %43 = vector.shape_cast %42 : vector<1x128xf32> to vector<1x1x128xf32>
    %c0_20 = arith.constant 0 : index
    %c0_21 = arith.constant 0 : index
    %44 = vector.load %arg5[%c0_20, %c0_21] : memref<1x128xf32, #tpu.memory_space<vmem>>, vector<1x128xf32>
    %45 = vector.shape_cast %44 : vector<1x128xf32> to vector<1x1x128xf32>
    %46 = arith.extf %41 : vector<3x3x128xbf16> to vector<3x3x128xf32>
    %47 = vector.broadcast %43 : vector<1x1x128xf32> to vector<3x3x128xf32>
    %48 = arith.mulf %46, %47 : vector<3x3x128xf32>
    %49 = vector.broadcast %45 : vector<1x1x128xf32> to vector<3x3x128xf32>
    %50 = arith.addf %48, %49 : vector<3x3x128xf32>
    %cst_22 = arith.constant 0.000000e+00 : f32
    %51 = vector.broadcast %cst_22 : f32 to vector<3x3x128xf32>
    %52 = arith.cmpf oge, %50, %51 : vector<3x3x128xf32>
    %cst_23 = arith.constant 2.000000e-01 : f32
    %53 = vector.broadcast %cst_23 : f32 to vector<3x3x128xf32>
    %54 = arith.mulf %53, %50 : vector<3x3x128xf32>
    %55 = arith.select %52, %50, %54 : vector<3x3x128xi1>, vector<3x3x128xf32>
    %56 = tpu.iota {dimensions = array<i32: 0>} : vector<3x3x128xi32>
    %57 = tpu.iota {dimensions = array<i32: 1>} : vector<3x3x128xi32>
    %c2_i32_24 = arith.constant 2 : i32
    %58 = vector.broadcast %c2_i32_24 : i32 to vector<3x3x128xi32>
    %59 = arith.muli %56, %58 : vector<3x3x128xi32>
    %c0_i32_25 = arith.constant 0 : i32
    %60 = vector.broadcast %c0_i32_25 : i32 to vector<3x3x128xi32>
    %61 = arith.addi %59, %60 : vector<3x3x128xi32>
    %c2_i32_26 = arith.constant 2 : i32
    %62 = vector.broadcast %c2_i32_26 : i32 to vector<3x3x128xi32>
    %63 = arith.muli %57, %62 : vector<3x3x128xi32>
    %c1_i32_27 = arith.constant 1 : i32
    %64 = vector.broadcast %c1_i32_27 : i32 to vector<3x3x128xi32>
    %65 = arith.addi %63, %64 : vector<3x3x128xi32>
    %c1_i32_28 = arith.constant 1 : i32
    %66 = vector.broadcast %c1_i32_28 : i32 to vector<3x3x128xi32>
    %67 = arith.cmpi sge, %61, %66 : vector<3x3x128xi32>
    %c5_i32_29 = arith.constant 5 : i32
    %68 = vector.broadcast %c5_i32_29 : i32 to vector<3x3x128xi32>
    %69 = arith.cmpi slt, %61, %68 : vector<3x3x128xi32>
    %70 = arith.andi %67, %69 : vector<3x3x128xi1>
    %c1_i32_30 = arith.constant 1 : i32
    %71 = vector.broadcast %c1_i32_30 : i32 to vector<3x3x128xi32>
    %72 = arith.cmpi sge, %65, %71 : vector<3x3x128xi32>
    %73 = arith.andi %70, %72 : vector<3x3x128xi1>
    %c5_i32_31 = arith.constant 5 : i32
    %74 = vector.broadcast %c5_i32_31 : i32 to vector<3x3x128xi32>
    %75 = arith.cmpi slt, %65, %74 : vector<3x3x128xi32>
    %76 = arith.andi %73, %75 : vector<3x3x128xi1>
    %cst_32 = arith.constant 0.000000e+00 : f32
    %77 = vector.broadcast %cst_32 : f32 to vector<3x3x128xf32>
    %78 = arith.select %76, %55, %77 : vector<3x3x128xi1>, vector<3x3x128xf32>
    %79 = arith.truncf %78 : vector<3x3x128xf32> to vector<3x3x128xbf16>
    %c2 = arith.constant 2 : index
    %c0_33 = arith.constant 0 : index
    %c0_34 = arith.constant 0 : index
    %c0_35 = arith.constant 0 : index
    %c0_36 = arith.constant 0 : index
    %80 = vector.load %arg1[%c2, %c0_33, %c0_34, %c0_35, %c0_36] : memref<4x1x3x3x128xbf16, #tpu.memory_space<vmem>>, vector<1x1x3x3x128xbf16>
    %81 = vector.shape_cast %80 : vector<1x1x3x3x128xbf16> to vector<3x3x128xbf16>
    %c0_37 = arith.constant 0 : index
    %c0_38 = arith.constant 0 : index
    %82 = vector.load %arg4[%c0_37, %c0_38] : memref<1x128xf32, #tpu.memory_space<vmem>>, vector<1x128xf32>
    %83 = vector.shape_cast %82 : vector<1x128xf32> to vector<1x1x128xf32>
    %c0_39 = arith.constant 0 : index
    %c0_40 = arith.constant 0 : index
    %84 = vector.load %arg5[%c0_39, %c0_40] : memref<1x128xf32, #tpu.memory_space<vmem>>, vector<1x128xf32>
    %85 = vector.shape_cast %84 : vector<1x128xf32> to vector<1x1x128xf32>
    %86 = arith.extf %81 : vector<3x3x128xbf16> to vector<3x3x128xf32>
    %87 = vector.broadcast %83 : vector<1x1x128xf32> to vector<3x3x128xf32>
    %88 = arith.mulf %86, %87 : vector<3x3x128xf32>
    %89 = vector.broadcast %85 : vector<1x1x128xf32> to vector<3x3x128xf32>
    %90 = arith.addf %88, %89 : vector<3x3x128xf32>
    %cst_41 = arith.constant 0.000000e+00 : f32
    %91 = vector.broadcast %cst_41 : f32 to vector<3x3x128xf32>
    %92 = arith.cmpf oge, %90, %91 : vector<3x3x128xf32>
    %cst_42 = arith.constant 2.000000e-01 : f32
    %93 = vector.broadcast %cst_42 : f32 to vector<3x3x128xf32>
    %94 = arith.mulf %93, %90 : vector<3x3x128xf32>
    %95 = arith.select %92, %90, %94 : vector<3x3x128xi1>, vector<3x3x128xf32>
    %96 = tpu.iota {dimensions = array<i32: 0>} : vector<3x3x128xi32>
    %97 = tpu.iota {dimensions = array<i32: 1>} : vector<3x3x128xi32>
    %c2_i32_43 = arith.constant 2 : i32
    %98 = vector.broadcast %c2_i32_43 : i32 to vector<3x3x128xi32>
    %99 = arith.muli %96, %98 : vector<3x3x128xi32>
    %c1_i32_44 = arith.constant 1 : i32
    %100 = vector.broadcast %c1_i32_44 : i32 to vector<3x3x128xi32>
    %101 = arith.addi %99, %100 : vector<3x3x128xi32>
    %c2_i32_45 = arith.constant 2 : i32
    %102 = vector.broadcast %c2_i32_45 : i32 to vector<3x3x128xi32>
    %103 = arith.muli %97, %102 : vector<3x3x128xi32>
    %c0_i32_46 = arith.constant 0 : i32
    %104 = vector.broadcast %c0_i32_46 : i32 to vector<3x3x128xi32>
    %105 = arith.addi %103, %104 : vector<3x3x128xi32>
    %c1_i32_47 = arith.constant 1 : i32
    %106 = vector.broadcast %c1_i32_47 : i32 to vector<3x3x128xi32>
    %107 = arith.cmpi sge, %101, %106 : vector<3x3x128xi32>
    %c5_i32_48 = arith.constant 5 : i32
    %108 = vector.broadcast %c5_i32_48 : i32 to vector<3x3x128xi32>
    %109 = arith.cmpi slt, %101, %108 : vector<3x3x128xi32>
    %110 = arith.andi %107, %109 : vector<3x3x128xi1>
    %c1_i32_49 = arith.constant 1 : i32
    %111 = vector.broadcast %c1_i32_49 : i32 to vector<3x3x128xi32>
    %112 = arith.cmpi sge, %105, %111 : vector<3x3x128xi32>
    %113 = arith.andi %110, %112 : vector<3x3x128xi1>
    %c5_i32_50 = arith.constant 5 : i32
    %114 = vector.broadcast %c5_i32_50 : i32 to vector<3x3x128xi32>
    %115 = arith.cmpi slt, %105, %114 : vector<3x3x128xi32>
    %116 = arith.andi %113, %115 : vector<3x3x128xi1>
    %cst_51 = arith.constant 0.000000e+00 : f32
    %117 = vector.broadcast %cst_51 : f32 to vector<3x3x128xf32>
    %118 = arith.select %116, %95, %117 : vector<3x3x128xi1>, vector<3x3x128xf32>
    %119 = arith.truncf %118 : vector<3x3x128xf32> to vector<3x3x128xbf16>
    %c3 = arith.constant 3 : index
    %c0_52 = arith.constant 0 : index
    %c0_53 = arith.constant 0 : index
    %c0_54 = arith.constant 0 : index
    %c0_55 = arith.constant 0 : index
    %120 = vector.load %arg1[%c3, %c0_52, %c0_53, %c0_54, %c0_55] : memref<4x1x3x3x128xbf16, #tpu.memory_space<vmem>>, vector<1x1x3x3x128xbf16>
    %121 = vector.shape_cast %120 : vector<1x1x3x3x128xbf16> to vector<3x3x128xbf16>
    %c0_56 = arith.constant 0 : index
    %c0_57 = arith.constant 0 : index
    %122 = vector.load %arg4[%c0_56, %c0_57] : memref<1x128xf32, #tpu.memory_space<vmem>>, vector<1x128xf32>
    %123 = vector.shape_cast %122 : vector<1x128xf32> to vector<1x1x128xf32>
    %c0_58 = arith.constant 0 : index
    %c0_59 = arith.constant 0 : index
    %124 = vector.load %arg5[%c0_58, %c0_59] : memref<1x128xf32, #tpu.memory_space<vmem>>, vector<1x128xf32>
    %125 = vector.shape_cast %124 : vector<1x128xf32> to vector<1x1x128xf32>
    %126 = arith.extf %121 : vector<3x3x128xbf16> to vector<3x3x128xf32>
    %127 = vector.broadcast %123 : vector<1x1x128xf32> to vector<3x3x128xf32>
    %128 = arith.mulf %126, %127 : vector<3x3x128xf32>
    %129 = vector.broadcast %125 : vector<1x1x128xf32> to vector<3x3x128xf32>
    %130 = arith.addf %128, %129 : vector<3x3x128xf32>
    %cst_60 = arith.constant 0.000000e+00 : f32
    %131 = vector.broadcast %cst_60 : f32 to vector<3x3x128xf32>
    %132 = arith.cmpf oge, %130, %131 : vector<3x3x128xf32>
    %cst_61 = arith.constant 2.000000e-01 : f32
    %133 = vector.broadcast %cst_61 : f32 to vector<3x3x128xf32>
    %134 = arith.mulf %133, %130 : vector<3x3x128xf32>
    %135 = arith.select %132, %130, %134 : vector<3x3x128xi1>, vector<3x3x128xf32>
    %136 = tpu.iota {dimensions = array<i32: 0>} : vector<3x3x128xi32>
    %137 = tpu.iota {dimensions = array<i32: 1>} : vector<3x3x128xi32>
    %c2_i32_62 = arith.constant 2 : i32
    %138 = vector.broadcast %c2_i32_62 : i32 to vector<3x3x128xi32>
    %139 = arith.muli %136, %138 : vector<3x3x128xi32>
    %c1_i32_63 = arith.constant 1 : i32
    %140 = vector.broadcast %c1_i32_63 : i32 to vector<3x3x128xi32>
    %141 = arith.addi %139, %140 : vector<3x3x128xi32>
    %c2_i32_64 = arith.constant 2 : i32
    %142 = vector.broadcast %c2_i32_64 : i32 to vector<3x3x128xi32>
    %143 = arith.muli %137, %142 : vector<3x3x128xi32>
    %c1_i32_65 = arith.constant 1 : i32
    %144 = vector.broadcast %c1_i32_65 : i32 to vector<3x3x128xi32>
    %145 = arith.addi %143, %144 : vector<3x3x128xi32>
    %c1_i32_66 = arith.constant 1 : i32
    %146 = vector.broadcast %c1_i32_66 : i32 to vector<3x3x128xi32>
    %147 = arith.cmpi sge, %141, %146 : vector<3x3x128xi32>
    %c5_i32_67 = arith.constant 5 : i32
    %148 = vector.broadcast %c5_i32_67 : i32 to vector<3x3x128xi32>
    %149 = arith.cmpi slt, %141, %148 : vector<3x3x128xi32>
    %150 = arith.andi %147, %149 : vector<3x3x128xi1>
    %c1_i32_68 = arith.constant 1 : i32
    %151 = vector.broadcast %c1_i32_68 : i32 to vector<3x3x128xi32>
    %152 = arith.cmpi sge, %145, %151 : vector<3x3x128xi32>
    %153 = arith.andi %150, %152 : vector<3x3x128xi1>
    %c5_i32_69 = arith.constant 5 : i32
    %154 = vector.broadcast %c5_i32_69 : i32 to vector<3x3x128xi32>
    %155 = arith.cmpi slt, %145, %154 : vector<3x3x128xi32>
    %156 = arith.andi %153, %155 : vector<3x3x128xi1>
    %cst_70 = arith.constant 0.000000e+00 : f32
    %157 = vector.broadcast %cst_70 : f32 to vector<3x3x128xf32>
    %158 = arith.select %156, %135, %157 : vector<3x3x128xi1>, vector<3x3x128xf32>
    %159 = arith.truncf %158 : vector<3x3x128xf32> to vector<3x3x128xbf16>
    %160 = vector.extract_strided_slice %39 {offsets = [0, 0, 0], sizes = [2, 2, 128], strides = [1, 1, 1]} : vector<3x3x128xbf16> to vector<2x2x128xbf16>
    %161 = vector.shape_cast %160 : vector<2x2x128xbf16> to vector<4x128xbf16>
    %162 = vector.extract_strided_slice %79 {offsets = [0, 0, 0], sizes = [2, 2, 128], strides = [1, 1, 1]} : vector<3x3x128xbf16> to vector<2x2x128xbf16>
    %163 = vector.shape_cast %162 : vector<2x2x128xbf16> to vector<4x128xbf16>
    %164 = vector.extract_strided_slice %39 {offsets = [0, 1, 0], sizes = [2, 2, 128], strides = [1, 1, 1]} : vector<3x3x128xbf16> to vector<2x2x128xbf16>
    %165 = vector.shape_cast %164 : vector<2x2x128xbf16> to vector<4x128xbf16>
    %166 = vector.extract_strided_slice %79 {offsets = [0, 1, 0], sizes = [2, 2, 128], strides = [1, 1, 1]} : vector<3x3x128xbf16> to vector<2x2x128xbf16>
    %167 = vector.shape_cast %166 : vector<2x2x128xbf16> to vector<4x128xbf16>
    %168 = vector.extract_strided_slice %119 {offsets = [0, 0, 0], sizes = [2, 2, 128], strides = [1, 1, 1]} : vector<3x3x128xbf16> to vector<2x2x128xbf16>
    %169 = vector.shape_cast %168 : vector<2x2x128xbf16> to vector<4x128xbf16>
    %170 = vector.extract_strided_slice %159 {offsets = [0, 0, 0], sizes = [2, 2, 128], strides = [1, 1, 1]} : vector<3x3x128xbf16> to vector<2x2x128xbf16>
    %171 = vector.shape_cast %170 : vector<2x2x128xbf16> to vector<4x128xbf16>
    %172 = vector.extract_strided_slice %119 {offsets = [0, 1, 0], sizes = [2, 2, 128], strides = [1, 1, 1]} : vector<3x3x128xbf16> to vector<2x2x128xbf16>
    %173 = vector.shape_cast %172 : vector<2x2x128xbf16> to vector<4x128xbf16>
    %174 = vector.extract_strided_slice %159 {offsets = [0, 1, 0], sizes = [2, 2, 128], strides = [1, 1, 1]} : vector<3x3x128xbf16> to vector<2x2x128xbf16>
    %175 = vector.shape_cast %174 : vector<2x2x128xbf16> to vector<4x128xbf16>
    %176 = vector.extract_strided_slice %39 {offsets = [1, 0, 0], sizes = [2, 2, 128], strides = [1, 1, 1]} : vector<3x3x128xbf16> to vector<2x2x128xbf16>
    %177 = vector.shape_cast %176 : vector<2x2x128xbf16> to vector<4x128xbf16>
    %178 = vector.extract_strided_slice %79 {offsets = [1, 0, 0], sizes = [2, 2, 128], strides = [1, 1, 1]} : vector<3x3x128xbf16> to vector<2x2x128xbf16>
    %179 = vector.shape_cast %178 : vector<2x2x128xbf16> to vector<4x128xbf16>
    %180 = vector.extract_strided_slice %39 {offsets = [1, 1, 0], sizes = [2, 2, 128], strides = [1, 1, 1]} : vector<3x3x128xbf16> to vector<2x2x128xbf16>
    %181 = vector.shape_cast %180 : vector<2x2x128xbf16> to vector<4x128xbf16>
    %182 = vector.extract_strided_slice %79 {offsets = [1, 1, 0], sizes = [2, 2, 128], strides = [1, 1, 1]} : vector<3x3x128xbf16> to vector<2x2x128xbf16>
    %183 = vector.shape_cast %182 : vector<2x2x128xbf16> to vector<4x128xbf16>
    %184 = vector.extract_strided_slice %119 {offsets = [1, 0, 0], sizes = [2, 2, 128], strides = [1, 1, 1]} : vector<3x3x128xbf16> to vector<2x2x128xbf16>
    %185 = vector.shape_cast %184 : vector<2x2x128xbf16> to vector<4x128xbf16>
    %186 = vector.extract_strided_slice %159 {offsets = [1, 0, 0], sizes = [2, 2, 128], strides = [1, 1, 1]} : vector<3x3x128xbf16> to vector<2x2x128xbf16>
    %187 = vector.shape_cast %186 : vector<2x2x128xbf16> to vector<4x128xbf16>
    %188 = vector.extract_strided_slice %119 {offsets = [1, 1, 0], sizes = [2, 2, 128], strides = [1, 1, 1]} : vector<3x3x128xbf16> to vector<2x2x128xbf16>
    %189 = vector.shape_cast %188 : vector<2x2x128xbf16> to vector<4x128xbf16>
    %190 = vector.extract_strided_slice %159 {offsets = [1, 1, 0], sizes = [2, 2, 128], strides = [1, 1, 1]} : vector<3x3x128xbf16> to vector<2x2x128xbf16>
    %191 = vector.shape_cast %190 : vector<2x2x128xbf16> to vector<4x128xbf16>
    %192 = tpu.concatenate %161, %163, %165, %167, %169, %171, %173, %175, %177, %179, %181, %183, %185, %187, %189, %191 in 1 : vector<4x128xbf16>, vector<4x128xbf16>, vector<4x128xbf16>, vector<4x128xbf16>, vector<4x128xbf16>, vector<4x128xbf16>, vector<4x128xbf16>, vector<4x128xbf16>, vector<4x128xbf16>, vector<4x128xbf16>, vector<4x128xbf16>, vector<4x128xbf16>, vector<4x128xbf16>, vector<4x128xbf16>, vector<4x128xbf16>, vector<4x128xbf16> -> vector<4x2048xbf16>
    %c0_71 = arith.constant 0 : index
    %c0_72 = arith.constant 0 : index
    %193 = vector.load %arg2[%c0_71, %c0_72] : memref<2048x256xbf16, #tpu.memory_space<vmem>>, vector<2048x256xbf16>
    %cst_73 = arith.constant dense<0.000000e+00> : vector<4x256xf32>
    %194 = tpu.matmul %192, %193, %cst_73 {dimension_numbers = #tpu.dot_dimension_numbers<[1], [0], [0], [1], [0, 0, 1, 1], [], []>} : vector<4x2048xbf16>, vector<2048x256xbf16>, vector<4x256xf32> -> vector<4x256xf32>
    %c0_74 = arith.constant 0 : index
    %c0_75 = arith.constant 0 : index
    %195 = vector.load %arg3[%c0_74, %c0_75] : memref<1x256xf32, #tpu.memory_space<vmem>>, vector<1x256xf32>
    %196 = vector.broadcast %195 : vector<1x256xf32> to vector<4x256xf32>
    %197 = arith.addf %194, %196 : vector<4x256xf32>
    %198 = arith.truncf %197 : vector<4x256xf32> to vector<4x256xbf16>
    %c0_76 = arith.constant 0 : index
    %c0_77 = arith.constant 0 : index
    %c0_78 = arith.constant 0 : index
    %199 = vector.load %arg6[%c0_76, %c0_77, %c0_78] : memref<1x4x256xbf16, #tpu.memory_space<vmem>>, vector<1x4x256xbf16>
    %200 = vector.shape_cast %199 : vector<1x4x256xbf16> to vector<4x256xbf16>
    %201 = vector.shape_cast %198 : vector<4x256xbf16> to vector<1x4x256xbf16>
    tpu.vector_store %arg6[%c0_76, %c0_77, %c0_78], %201 {strides = array<i32>} : memref<1x4x256xbf16, #tpu.memory_space<vmem>>, vector<1x4x256xbf16>,
    %202 = arith.extf %198 : vector<4x256xbf16> to vector<4x256xf32>
    %cst_79 = arith.constant dense<0.000000e+00> : vector<256xf32>
    %203 = vector.multi_reduction <add>, %202, %cst_79 [0] : vector<4x256xf32> to vector<256xf32>
    %204 = vector.shape_cast %203 : vector<256xf32> to vector<1x256xf32>
    %c0_80 = arith.constant 0 : index
    %c0_81 = arith.constant 0 : index
    %c0_82 = arith.constant 0 : index
    %205 = vector.load %arg7[%c0_80, %c0_81, %c0_82] : memref<1x2x256xf32, #tpu.memory_space<vmem>>, vector<1x1x256xf32>
    %206 = vector.shape_cast %205 : vector<1x1x256xf32> to vector<1x256xf32>
    %207 = vector.shape_cast %204 : vector<1x256xf32> to vector<1x1x256xf32>
    tpu.vector_store %arg7[%c0_80, %c0_81, %c0_82], %207 {strides = array<i32>} : memref<1x2x256xf32, #tpu.memory_space<vmem>>, vector<1x1x256xf32>,
    %208 = arith.mulf %202, %202 : vector<4x256xf32>
    %cst_83 = arith.constant dense<0.000000e+00> : vector<256xf32>
    %209 = vector.multi_reduction <add>, %208, %cst_83 [0] : vector<4x256xf32> to vector<256xf32>
    %210 = vector.shape_cast %209 : vector<256xf32> to vector<1x256xf32>
    %c0_84 = arith.constant 0 : index
    %c1_85 = arith.constant 1 : index
    %c0_86 = arith.constant 0 : index
    %211 = vector.load %arg7[%c0_84, %c1_85, %c0_86] : memref<1x2x256xf32, #tpu.memory_space<vmem>>, vector<1x1x256xf32>
    %212 = vector.shape_cast %211 : vector<1x1x256xf32> to vector<1x256xf32>
    %213 = vector.shape_cast %210 : vector<1x256xf32> to vector<1x1x256xf32>
    tpu.vector_store %arg7[%c0_84, %c1_85, %c0_86], %213 {strides = array<i32>} : memref<1x2x256xf32, #tpu.memory_space<vmem>>, vector<1x1x256xf32>,
    return
  }
  func.func @transform_0(%arg0: i32) -> (i32, i32, i32, i32, i32) {
    %c0_i32 = arith.constant 0 : i32
    %c0_i32_0 = arith.constant 0 : i32
    %c0_i32_1 = arith.constant 0 : i32
    %c0_i32_2 = arith.constant 0 : i32
    %c0_i32_3 = arith.constant 0 : i32
    return %c0_i32, %arg0, %c0_i32_0, %c0_i32_1, %c0_i32_2 : i32, i32, i32, i32, i32
  }
  func.func @transform_1(%arg0: i32) -> (i32, i32) {
    %c0_i32 = arith.constant 0 : i32
    %c0_i32_0 = arith.constant 0 : i32
    %c0_i32_1 = arith.constant 0 : i32
    return %c0_i32, %c0_i32_0 : i32, i32
  }
  func.func @transform_2(%arg0: i32) -> (i32, i32) {
    %c0_i32 = arith.constant 0 : i32
    %c0_i32_0 = arith.constant 0 : i32
    %c0_i32_1 = arith.constant 0 : i32
    return %c0_i32, %c0_i32_0 : i32, i32
  }
  func.func @transform_3(%arg0: i32) -> (i32, i32) {
    %c0_i32 = arith.constant 0 : i32
    %c0_i32_0 = arith.constant 0 : i32
    %c0_i32_1 = arith.constant 0 : i32
    return %c0_i32, %c0_i32_0 : i32, i32
  }
  func.func @transform_4(%arg0: i32) -> (i32, i32) {
    %c0_i32 = arith.constant 0 : i32
    %c0_i32_0 = arith.constant 0 : i32
    %c0_i32_1 = arith.constant 0 : i32
    return %c0_i32, %c0_i32_0 : i32, i32
  }
  func.func @transform_5(%arg0: i32) -> (i32, i32, i32) {
    %c0_i32 = arith.constant 0 : i32
    %c0_i32_0 = arith.constant 0 : i32
    %c0_i32_1 = arith.constant 0 : i32
    return %arg0, %c0_i32, %c0_i32_0 : i32, i32, i32
  }
  func.func @transform_6(%arg0: i32) -> (i32, i32, i32) {
    %c0_i32 = arith.constant 0 : i32
    %c0_i32_0 = arith.constant 0 : i32
    %c0_i32_1 = arith.constant 0 : i32
    return %arg0, %c0_i32, %c0_i32_0 : i32, i32, i32
  }
}

module attributes {stable_mosaic.version = 11 : i64} {
  func.func @_conv_kernel(%arg0: i32, %arg1: memref<1x1x4x4x256xbf16, #tpu.memory_space<vmem>>, %arg2: memref<4096x128xbf16, #tpu.memory_space<vmem>>, %arg3: memref<1x128xf32, #tpu.memory_space<vmem>>, %arg4: memref<1x256xf32, #tpu.memory_space<vmem>>, %arg5: memref<1x256xf32, #tpu.memory_space<vmem>>, %arg6: memref<1x1x128xf32, #tpu.memory_space<vmem>>) attributes {dimension_semantics = [#tpu.dimension_semantics<parallel>], iteration_bounds = array<i64: 2>, scalar_prefetch = 0 : i64, scratch_operands = 0 : i64, tpu.core_type = #tpu.core_type<tc>, window_params = [{transform_indices = @transform_0, window_bounds = array<i64: 1, 1, 4, 4, 256>}, {pipeline_mode = #tpu.pipeline_mode<synchronous>, transform_indices = @transform_1, window_bounds = array<i64: 4096, 128>}, {pipeline_mode = #tpu.pipeline_mode<synchronous>, transform_indices = @transform_2, window_bounds = array<i64: 1, 128>}, {pipeline_mode = #tpu.pipeline_mode<synchronous>, transform_indices = @transform_3, window_bounds = array<i64: 1, 256>}, {pipeline_mode = #tpu.pipeline_mode<synchronous>, transform_indices = @transform_4, window_bounds = array<i64: 1, 256>}, {transform_indices = @transform_5, window_bounds = array<i64: 1, 1, 128>}]} {
    %c0 = arith.constant 0 : index
    %c0_0 = arith.constant 0 : index
    %c0_1 = arith.constant 0 : index
    %c0_2 = arith.constant 0 : index
    %c0_3 = arith.constant 0 : index
    %0 = vector.load %arg1[%c0, %c0_0, %c0_1, %c0_2, %c0_3] : memref<1x1x4x4x256xbf16, #tpu.memory_space<vmem>>, vector<1x1x4x4x256xbf16>
    %1 = vector.shape_cast %0 : vector<1x1x4x4x256xbf16> to vector<4x4x256xbf16>
    %c0_4 = arith.constant 0 : index
    %c0_5 = arith.constant 0 : index
    %2 = vector.load %arg4[%c0_4, %c0_5] : memref<1x256xf32, #tpu.memory_space<vmem>>, vector<1x256xf32>
    %3 = vector.shape_cast %2 : vector<1x256xf32> to vector<1x1x256xf32>
    %c0_6 = arith.constant 0 : index
    %c0_7 = arith.constant 0 : index
    %4 = vector.load %arg5[%c0_6, %c0_7] : memref<1x256xf32, #tpu.memory_space<vmem>>, vector<1x256xf32>
    %5 = vector.shape_cast %4 : vector<1x256xf32> to vector<1x1x256xf32>
    %6 = arith.extf %1 : vector<4x4x256xbf16> to vector<4x4x256xf32>
    %7 = vector.broadcast %3 : vector<1x1x256xf32> to vector<4x4x256xf32>
    %8 = arith.mulf %6, %7 : vector<4x4x256xf32>
    %9 = vector.broadcast %5 : vector<1x1x256xf32> to vector<4x4x256xf32>
    %10 = arith.addf %8, %9 : vector<4x4x256xf32>
    %cst = arith.constant 0.000000e+00 : f32
    %11 = vector.broadcast %cst : f32 to vector<4x4x256xf32>
    %12 = arith.cmpf oge, %10, %11 : vector<4x4x256xf32>
    %cst_8 = arith.constant 2.000000e-01 : f32
    %13 = vector.broadcast %cst_8 : f32 to vector<4x4x256xf32>
    %14 = arith.mulf %13, %10 : vector<4x4x256xf32>
    %15 = arith.select %12, %10, %14 : vector<4x4x256xi1>, vector<4x4x256xf32>
    %16 = tpu.iota {dimensions = array<i32: 0>} : vector<4x4x256xi32>
    %17 = tpu.iota {dimensions = array<i32: 1>} : vector<4x4x256xi32>
    %c1_i32 = arith.constant 1 : i32
    %18 = vector.broadcast %c1_i32 : i32 to vector<4x4x256xi32>
    %19 = arith.muli %16, %18 : vector<4x4x256xi32>
    %c0_i32 = arith.constant 0 : i32
    %20 = vector.broadcast %c0_i32 : i32 to vector<4x4x256xi32>
    %21 = arith.addi %19, %20 : vector<4x4x256xi32>
    %c1_i32_9 = arith.constant 1 : i32
    %22 = vector.broadcast %c1_i32_9 : i32 to vector<4x4x256xi32>
    %23 = arith.muli %17, %22 : vector<4x4x256xi32>
    %c0_i32_10 = arith.constant 0 : i32
    %24 = vector.broadcast %c0_i32_10 : i32 to vector<4x4x256xi32>
    %25 = arith.addi %23, %24 : vector<4x4x256xi32>
    %c1_i32_11 = arith.constant 1 : i32
    %26 = vector.broadcast %c1_i32_11 : i32 to vector<4x4x256xi32>
    %27 = arith.cmpi sge, %21, %26 : vector<4x4x256xi32>
    %c3_i32 = arith.constant 3 : i32
    %28 = vector.broadcast %c3_i32 : i32 to vector<4x4x256xi32>
    %29 = arith.cmpi slt, %21, %28 : vector<4x4x256xi32>
    %30 = arith.andi %27, %29 : vector<4x4x256xi1>
    %c1_i32_12 = arith.constant 1 : i32
    %31 = vector.broadcast %c1_i32_12 : i32 to vector<4x4x256xi32>
    %32 = arith.cmpi sge, %25, %31 : vector<4x4x256xi32>
    %33 = arith.andi %30, %32 : vector<4x4x256xi1>
    %c3_i32_13 = arith.constant 3 : i32
    %34 = vector.broadcast %c3_i32_13 : i32 to vector<4x4x256xi32>
    %35 = arith.cmpi slt, %25, %34 : vector<4x4x256xi32>
    %36 = arith.andi %33, %35 : vector<4x4x256xi1>
    %cst_14 = arith.constant 0.000000e+00 : f32
    %37 = vector.broadcast %cst_14 : f32 to vector<4x4x256xf32>
    %38 = arith.select %36, %15, %37 : vector<4x4x256xi1>, vector<4x4x256xf32>
    %39 = arith.truncf %38 : vector<4x4x256xf32> to vector<4x4x256xbf16>
    %40 = vector.extract_strided_slice %39 {offsets = [0, 0, 0], sizes = [1, 1, 256], strides = [1, 1, 1]} : vector<4x4x256xbf16> to vector<1x1x256xbf16>
    %41 = vector.shape_cast %40 : vector<1x1x256xbf16> to vector<1x256xbf16>
    %42 = vector.extract_strided_slice %39 {offsets = [0, 1, 0], sizes = [1, 1, 256], strides = [1, 1, 1]} : vector<4x4x256xbf16> to vector<1x1x256xbf16>
    %43 = vector.shape_cast %42 : vector<1x1x256xbf16> to vector<1x256xbf16>
    %44 = vector.extract_strided_slice %39 {offsets = [0, 2, 0], sizes = [1, 1, 256], strides = [1, 1, 1]} : vector<4x4x256xbf16> to vector<1x1x256xbf16>
    %45 = vector.shape_cast %44 : vector<1x1x256xbf16> to vector<1x256xbf16>
    %46 = vector.extract_strided_slice %39 {offsets = [0, 3, 0], sizes = [1, 1, 256], strides = [1, 1, 1]} : vector<4x4x256xbf16> to vector<1x1x256xbf16>
    %47 = vector.shape_cast %46 : vector<1x1x256xbf16> to vector<1x256xbf16>
    %48 = vector.extract_strided_slice %39 {offsets = [1, 0, 0], sizes = [1, 1, 256], strides = [1, 1, 1]} : vector<4x4x256xbf16> to vector<1x1x256xbf16>
    %49 = vector.shape_cast %48 : vector<1x1x256xbf16> to vector<1x256xbf16>
    %50 = vector.extract_strided_slice %39 {offsets = [1, 1, 0], sizes = [1, 1, 256], strides = [1, 1, 1]} : vector<4x4x256xbf16> to vector<1x1x256xbf16>
    %51 = vector.shape_cast %50 : vector<1x1x256xbf16> to vector<1x256xbf16>
    %52 = vector.extract_strided_slice %39 {offsets = [1, 2, 0], sizes = [1, 1, 256], strides = [1, 1, 1]} : vector<4x4x256xbf16> to vector<1x1x256xbf16>
    %53 = vector.shape_cast %52 : vector<1x1x256xbf16> to vector<1x256xbf16>
    %54 = vector.extract_strided_slice %39 {offsets = [1, 3, 0], sizes = [1, 1, 256], strides = [1, 1, 1]} : vector<4x4x256xbf16> to vector<1x1x256xbf16>
    %55 = vector.shape_cast %54 : vector<1x1x256xbf16> to vector<1x256xbf16>
    %56 = vector.extract_strided_slice %39 {offsets = [2, 0, 0], sizes = [1, 1, 256], strides = [1, 1, 1]} : vector<4x4x256xbf16> to vector<1x1x256xbf16>
    %57 = vector.shape_cast %56 : vector<1x1x256xbf16> to vector<1x256xbf16>
    %58 = vector.extract_strided_slice %39 {offsets = [2, 1, 0], sizes = [1, 1, 256], strides = [1, 1, 1]} : vector<4x4x256xbf16> to vector<1x1x256xbf16>
    %59 = vector.shape_cast %58 : vector<1x1x256xbf16> to vector<1x256xbf16>
    %60 = vector.extract_strided_slice %39 {offsets = [2, 2, 0], sizes = [1, 1, 256], strides = [1, 1, 1]} : vector<4x4x256xbf16> to vector<1x1x256xbf16>
    %61 = vector.shape_cast %60 : vector<1x1x256xbf16> to vector<1x256xbf16>
    %62 = vector.extract_strided_slice %39 {offsets = [2, 3, 0], sizes = [1, 1, 256], strides = [1, 1, 1]} : vector<4x4x256xbf16> to vector<1x1x256xbf16>
    %63 = vector.shape_cast %62 : vector<1x1x256xbf16> to vector<1x256xbf16>
    %64 = vector.extract_strided_slice %39 {offsets = [3, 0, 0], sizes = [1, 1, 256], strides = [1, 1, 1]} : vector<4x4x256xbf16> to vector<1x1x256xbf16>
    %65 = vector.shape_cast %64 : vector<1x1x256xbf16> to vector<1x256xbf16>
    %66 = vector.extract_strided_slice %39 {offsets = [3, 1, 0], sizes = [1, 1, 256], strides = [1, 1, 1]} : vector<4x4x256xbf16> to vector<1x1x256xbf16>
    %67 = vector.shape_cast %66 : vector<1x1x256xbf16> to vector<1x256xbf16>
    %68 = vector.extract_strided_slice %39 {offsets = [3, 2, 0], sizes = [1, 1, 256], strides = [1, 1, 1]} : vector<4x4x256xbf16> to vector<1x1x256xbf16>
    %69 = vector.shape_cast %68 : vector<1x1x256xbf16> to vector<1x256xbf16>
    %70 = vector.extract_strided_slice %39 {offsets = [3, 3, 0], sizes = [1, 1, 256], strides = [1, 1, 1]} : vector<4x4x256xbf16> to vector<1x1x256xbf16>
    %71 = vector.shape_cast %70 : vector<1x1x256xbf16> to vector<1x256xbf16>
    %72 = tpu.concatenate %41, %43, %45, %47, %49, %51, %53, %55, %57, %59, %61, %63, %65, %67, %69, %71 in 1 : vector<1x256xbf16>, vector<1x256xbf16>, vector<1x256xbf16>, vector<1x256xbf16>, vector<1x256xbf16>, vector<1x256xbf16>, vector<1x256xbf16>, vector<1x256xbf16>, vector<1x256xbf16>, vector<1x256xbf16>, vector<1x256xbf16>, vector<1x256xbf16>, vector<1x256xbf16>, vector<1x256xbf16>, vector<1x256xbf16>, vector<1x256xbf16> -> vector<1x4096xbf16>
    %c0_15 = arith.constant 0 : index
    %c0_16 = arith.constant 0 : index
    %73 = vector.load %arg2[%c0_15, %c0_16] : memref<4096x128xbf16, #tpu.memory_space<vmem>>, vector<4096x128xbf16>
    %cst_17 = arith.constant dense<0.000000e+00> : vector<1x128xf32>
    %74 = tpu.matmul %72, %73, %cst_17 {dimension_numbers = #tpu.dot_dimension_numbers<[1], [0], [0], [1], [0, 0, 1, 1], [], []>} : vector<1x4096xbf16>, vector<4096x128xbf16>, vector<1x128xf32> -> vector<1x128xf32>
    %c0_18 = arith.constant 0 : index
    %c0_19 = arith.constant 0 : index
    %75 = vector.load %arg3[%c0_18, %c0_19] : memref<1x128xf32, #tpu.memory_space<vmem>>, vector<1x128xf32>
    %76 = arith.addf %74, %75 : vector<1x128xf32>
    %cst_20 = arith.constant 0.000000e+00 : f32
    %77 = vector.broadcast %cst_20 : f32 to vector<1x128xf32>
    %78 = arith.subf %77, %76 : vector<1x128xf32>
    %79 = math.exp %78 : vector<1x128xf32>
    %cst_21 = arith.constant 1.000000e+00 : f32
    %80 = vector.broadcast %cst_21 : f32 to vector<1x128xf32>
    %81 = arith.addf %80, %79 : vector<1x128xf32>
    %cst_22 = arith.constant 1.000000e+00 : f32
    %82 = vector.broadcast %cst_22 : f32 to vector<1x128xf32>
    %83 = arith.divf %82, %81 : vector<1x128xf32>
    %c0_23 = arith.constant 0 : index
    %c0_24 = arith.constant 0 : index
    %c0_25 = arith.constant 0 : index
    %84 = vector.load %arg6[%c0_23, %c0_24, %c0_25] : memref<1x1x128xf32, #tpu.memory_space<vmem>>, vector<1x1x128xf32>
    %85 = vector.shape_cast %84 : vector<1x1x128xf32> to vector<1x128xf32>
    %86 = vector.shape_cast %83 : vector<1x128xf32> to vector<1x1x128xf32>
    tpu.vector_store %arg6[%c0_23, %c0_24, %c0_25], %86 {strides = array<i32>} : memref<1x1x128xf32, #tpu.memory_space<vmem>>, vector<1x1x128xf32>,
    return
  }
  func.func @transform_0(%arg0: i32) -> (i32, i32, i32, i32, i32) {
    %c0_i32 = arith.constant 0 : i32
    %c0_i32_0 = arith.constant 0 : i32
    %c0_i32_1 = arith.constant 0 : i32
    %c0_i32_2 = arith.constant 0 : i32
    %c0_i32_3 = arith.constant 0 : i32
    return %c0_i32, %arg0, %c0_i32_0, %c0_i32_1, %c0_i32_2 : i32, i32, i32, i32, i32
  }
  func.func @transform_1(%arg0: i32) -> (i32, i32) {
    %c0_i32 = arith.constant 0 : i32
    %c0_i32_0 = arith.constant 0 : i32
    %c0_i32_1 = arith.constant 0 : i32
    return %c0_i32, %c0_i32_0 : i32, i32
  }
  func.func @transform_2(%arg0: i32) -> (i32, i32) {
    %c0_i32 = arith.constant 0 : i32
    %c0_i32_0 = arith.constant 0 : i32
    %c0_i32_1 = arith.constant 0 : i32
    return %c0_i32, %c0_i32_0 : i32, i32
  }
  func.func @transform_3(%arg0: i32) -> (i32, i32) {
    %c0_i32 = arith.constant 0 : i32
    %c0_i32_0 = arith.constant 0 : i32
    %c0_i32_1 = arith.constant 0 : i32
    return %c0_i32, %c0_i32_0 : i32, i32
  }
  func.func @transform_4(%arg0: i32) -> (i32, i32) {
    %c0_i32 = arith.constant 0 : i32
    %c0_i32_0 = arith.constant 0 : i32
    %c0_i32_1 = arith.constant 0 : i32
    return %c0_i32, %c0_i32_0 : i32, i32
  }
  func.func @transform_5(%arg0: i32) -> (i32, i32, i32) {
    %c0_i32 = arith.constant 0 : i32
    %c0_i32_0 = arith.constant 0 : i32
    %c0_i32_1 = arith.constant 0 : i32
    return %arg0, %c0_i32, %c0_i32_0 : i32, i32, i32
  }
}

</mosaic_0001>

<bundles_post_ra>
// kernel: discriminator_forward.4
= control target key start
LH: loop header
LB: loop body
LE: loop exit
PB: predicated region body
PF: predicated region fallthrough
CT: control target
= control target key end

     0   :  { %s3415_s12 = smov 0   ;;  %s3417_s13 = smov 0   ;;  %s4437_s0 = inlined_call_operand.vmem [shape: bf16[4,2,9,9,3], index: 0, kind: input, shape index: {}]   ;;  %s4438_s1 = inlined_call_operand.vmem [shape: bf16[16,3,128], index: 1, kind: input, shape index: {}]   ;;  %s4439_s2 = inlined_call_operand.vmem [shape: f32[1,128], index: 2, kind: input, shape index: {}]   ;;  %s4440_s3 = inlined_call_operand.vmem [shape: bf16[2,64,128], index: 3, kind: output, shape index: {}]  }
   0x1   :  { %s3419_s14 = smov 0  }
   0x2 LB: > { %s2822_s15 = sadd.s32 4294967295, %s3392_s14   ;;  %s3432_s16 = sadd.s32 1, %s3392_s14   ;;  %s3392_s14 = sphi %s3419_s14, %s4536_s14   ;;  %s3388_s13 = sphi %s3417_s13, %s4535_s13   ;;  %s3384_s12 = sphi %s3415_s12, %s4534_s12  }
   0x3   : > { %s17_s17 = ssub.s32 %s3392_s14, %s3432_s16  ;;  %s20_s18 = sadd.s32 1, %s3388_s13 }
   0x4   : > { %p18_p0 = scmp.eq.s32.totalorder %s17_s17, 0  ;;  %p27_p1 = scmp.ne.s32.totalorder %s3388_s13, %s3384_s12 }
   0x5   : > { %p28_p2 = scmp.eq.s32.totalorder %s3392_s14, 0  ;;  %p2825_p4 = scmp.ge.s32.totalorder %s3392_s14, 2 }
   0x6   : > { %s3441_s19 = scalar_select %p18_p0, %s3388_s13, %s20_s18  }
   0x7   : > { %p29_p3 = por %p28_p2, %p27_p1  ;;  %127 = sbr.rel (%p2825_p4) target bundleno = 35 (0x23), region = 24 }
   0xc   : > { %130 = sbr.rel (!%p29_p3) target bundleno = 35 (0x23), region = 28  ;;  %s132_s20 = sand.u32 (%p29_p3), 1, %s3388_s13  }
   0xd   : > { %s3311_s21 = smul.u32 (%p29_p3), 72, %s3392_s14 }
   0xe   : > { %s3310_s22 = smul.u32 (%p29_p3), 288, %s132_s20 }
   0xf   : > { %s3449_s25 = scalar_lea.vmem (%p29_p3), %s4437_s0, %s3311_s21 }
  0x10   : > { %v154_v0 = vld [vmem:[%s3449_s25] sm:$0xff] (%p29_p3)   ;;  %v158_v1 = vld [vmem:[%s3449_s25 + $0x8] sm:$0xff] (%p29_p3)   ;;  %v162_v2 = vld [vmem:[%s3449_s25 + $0x10] sm:$0xff] (%p29_p3)   ;;  %s3454_s26 = scalar_lea.vmem (%p29_p3), [#allocation2], %s3310_s22 }
  0x11   : > { %155 = vst [vmem:[%s3454_s26] sm:$0xff] %v154_v0   ;;  %159 = vst [vmem:[%s3454_s26 + $0x8] sm:$0xff] %v158_v1   ;;  %v166_v3 = vld [vmem:[%s3449_s25 + $0x18] sm:$0xff]   ;;  %v170_v4 = vld [vmem:[%s3449_s25 + $0x20] sm:$0xff]  }
  0x12   : > { %163 = vst [vmem:[%s3454_s26 + $0x10] sm:$0xff] %v162_v2   ;;  %v174_v5 = vld [vmem:[%s3449_s25 + $0x28] sm:$0xff]   ;;  %167 = vst [vmem:[%s3454_s26 + $0x18] sm:$0xff] %v166_v3   ;;  %v178_v6 = vld [vmem:[%s3449_s25 + $0x30] sm:$0xff]  }
  0x13   : > { %171 = vst [vmem:[%s3454_s26 + $0x20] sm:$0xff] %v170_v4   ;;  %175 = vst [vmem:[%s3454_s26 + $0x28] sm:$0xff] %v174_v5   ;;  %v182_v7 = vld [vmem:[%s3449_s25 + $0x38] sm:$0xff]   ;;  %v186_v8 = vld [vmem:[%s3449_s25 + $0x40] sm:$0xff]  }
  0x14   : > { %179 = vst [vmem:[%s3454_s26 + $0x30] sm:$0xff] %v178_v6   ;;  %183 = vst [vmem:[%s3454_s26 + $0x38] sm:$0xff] %v182_v7   ;;  %v190_v9 = vld [vmem:[%s3449_s25 + $0x90] sm:$0xff]   ;;  %v194_v10 = vld [vmem:[%s3449_s25 + $0x98] sm:$0xff]  }
  0x15   : > { %187 = vst [vmem:[%s3454_s26 + $0x40] sm:$0xff] %v186_v8   ;;  %v198_v11 = vld [vmem:[%s3449_s25 + $0xa0] sm:$0xff]   ;;  %191 = vst [vmem:[%s3454_s26 + $0x48] sm:$0xff] %v190_v9   ;;  %v202_v12 = vld [vmem:[%s3449_s25 + $0xa8] sm:$0xff]  }
  0x16   : > { %195 = vst [vmem:[%s3454_s26 + $0x50] sm:$0xff] %v194_v10   ;;  %199 = vst [vmem:[%s3454_s26 + $0x58] sm:$0xff] %v198_v11   ;;  %v206_v13 = vld [vmem:[%s3449_s25 + $0xb0] sm:$0xff]   ;;  %v210_v14 = vld [vmem:[%s3449_s25 + $0xb8] sm:$0xff]  }
  0x17   : > { %203 = vst [vmem:[%s3454_s26 + $0x60] sm:$0xff] %v202_v12   ;;  %207 = vst [vmem:[%s3454_s26 + $0x68] sm:$0xff] %v206_v13   ;;  %v214_v15 = vld [vmem:[%s3449_s25 + $0xc0] sm:$0xff]   ;;  %v218_v16 = vld [vmem:[%s3449_s25 + $0xc8] sm:$0xff]  }
  0x18   : > { %211 = vst [vmem:[%s3454_s26 + $0x70] sm:$0xff] %v210_v14   ;;  %v222_v17 = vld [vmem:[%s3449_s25 + $0xd0] sm:$0xff]   ;;  %215 = vst [vmem:[%s3454_s26 + $0x78] sm:$0xff] %v214_v15   ;;  %v226_v18 = vld [vmem:[%s3449_s25 + $0x120] sm:$0xff]  }
  0x19   : > { %219 = vst [vmem:[%s3454_s26 + $0x80] sm:$0xff] %v218_v16   ;;  %223 = vst [vmem:[%s3454_s26 + $0x88] sm:$0xff] %v222_v17   ;;  %v230_v19 = vld [vmem:[%s3449_s25 + $0x128] sm:$0xff]   ;;  %v234_v20 = vld [vmem:[%s3449_s25 + $0x130] sm:$0xff]  }
  0x1a   : > { %227 = vst [vmem:[%s3454_s26 + $0x90] sm:$0xff] %v226_v18   ;;  %231 = vst [vmem:[%s3454_s26 + $0x98] sm:$0xff] %v230_v19   ;;  %v238_v21 = vld [vmem:[%s3449_s25 + $0x138] sm:$0xff]   ;;  %v242_v22 = vld [vmem:[%s3449_s25 + $0x140] sm:$0xff]  }
  0x1b   : > { %235 = vst [vmem:[%s3454_s26 + $0xa0] sm:$0xff] %v234_v20   ;;  %v246_v23 = vld [vmem:[%s3449_s25 + $0x148] sm:$0xff]   ;;  %239 = vst [vmem:[%s3454_s26 + $0xa8] sm:$0xff] %v238_v21   ;;  %v250_v24 = vld [vmem:[%s3449_s25 + $0x150] sm:$0xff]  }
  0x1c   : > { %243 = vst [vmem:[%s3454_s26 + $0xb0] sm:$0xff] %v242_v22   ;;  %247 = vst [vmem:[%s3454_s26 + $0xb8] sm:$0xff] %v246_v23   ;;  %v254_v25 = vld [vmem:[%s3449_s25 + $0x158] sm:$0xff]   ;;  %v258_v26 = vld [vmem:[%s3449_s25 + $0x160] sm:$0xff]  }
  0x1d   : > { %251 = vst [vmem:[%s3454_s26 + $0xc0] sm:$0xff] %v250_v24   ;;  %255 = vst [vmem:[%s3454_s26 + $0xc8] sm:$0xff] %v254_v25   ;;  %v262_v27 = vld [vmem:[%s3449_s25 + $0x1b0] sm:$0xff]   ;;  %v266_v28 = vld [vmem:[%s3449_s25 + $0x1b8] sm:$0xff]  }
  0x1e   : > { %259 = vst [vmem:[%s3454_s26 + $0xd0] sm:$0xff] %v258_v26   ;;  %v270_v29 = vld [vmem:[%s3449_s25 + $0x1c0] sm:$0xff]   ;;  %263 = vst [vmem:[%s3454_s26 + $0xd8] sm:$0xff] %v262_v27   ;;  %v274_v30 = vld [vmem:[%s3449_s25 + $0x1c8] sm:$0xff]  }
  0x1f   : > { %267 = vst [vmem:[%s3454_s26 + $0xe0] sm:$0xff] %v266_v28   ;;  %271 = vst [vmem:[%s3454_s26 + $0xe8] sm:$0xff] %v270_v29   ;;  %v278_v31 = vld [vmem:[%s3449_s25 + $0x1d0] sm:$0xff]   ;;  %v282_v32 = vld [vmem:[%s3449_s25 + $0x1d8] sm:$0xff]  }
  0x20   : > { %275 = vst [vmem:[%s3454_s26 + $0xf0] sm:$0xff] %v274_v30   ;;  %279 = vst [vmem:[%s3454_s26 + $0xf8] sm:$0xff] %v278_v31   ;;  %v286_v33 = vld [vmem:[%s3449_s25 + $0x1e0] sm:$0xff]   ;;  %v290_v34 = vld [vmem:[%s3449_s25 + $0x1e8] sm:$0xff]  }
  0x21   : > { %283 = vst [vmem:[%s3454_s26 + $0x100] sm:$0xff] %v282_v32   ;;  %v294_v35 = vld [vmem:[%s3449_s25 + $0x1f0] sm:$0xff]   ;;  %287 = vst [vmem:[%s3454_s26 + $0x108] sm:$0xff] %v286_v33  }
  0x22   : > { %291 = vst [vmem:[%s3454_s26 + $0x110] sm:$0xff] %v290_v34   ;;  %295 = vst [vmem:[%s3454_s26 + $0x118] sm:$0xff] %v294_v35  }
  0x23 PF: > { %p2827_p5 = scmp.ge.s32.totalorder %s3392_s14, 1  ;;  %p464_p6 = scmp.lt.s32.totalorder %s3392_s14, 3 }
  0x25   : > { %p465_p7 = pnand %p2827_p5, %p464_p6 }
  0x27   : > { %468 = sbr.rel (%p465_p7) target bundleno = 415 (0x19f), region = 69 }
  0x2c   : > { %v2884_v36 = vld [vmem:[%s4438_s1 + $0x2] sm:$0x3]  ;;  %vm611_vm0 = vcmask 1040384   ;;  %vm612_vm1 = vcmask 1041408   ;;  %s471_s29 = sand.u32 1, %s3384_s12   ;;  %v3394_v37 = vmov 65535  }
  0x2d   : > { %v613_v38 = vsel %vm611_vm0, 4294967295, %v3394_v37  ;;  %v575_v39 = vld [vmem:[%s4438_s1] sm:$0x3]  ;;  %s3312_s5 = smul.u32 288, %s471_s29  ;;  %v2901_v41 = vld [vmem:[%s4438_s1 + $0x4] sm:$0x3] }
  0x2e   : > { %v3534_v40 = vsel %vm612_vm1, %v613_v38, 0  ;;  %v2910_v42 = vld [vmem:[%s4438_s1 + $0x6] sm:$0x3]  ;;  %vm598_vm2 = vcmask 23552   ;;  %v2919_v46 = vld [vmem:[%s4438_s1 + $0x8] sm:$0x3] }
  0x2f   : > { %v616_v43 = vand.u32 %v2884_v36, %v3534_v40  ;;  %v716_v44 = vand.u32 %v3534_v40, %v575_v39  ;;  %v925_v45 = vand.u32 %v2901_v41, %v3534_v40  ;;  %v2928_v47 = vld [vmem:[%s4438_s1 + $0xa] sm:$0x3]  ;;  %s3551_s18 = scalar_lea.vmem [#allocation2], %s3312_s5  ;;  %v3559_v51 = vand.u32 %v2910_v42, %v3534_v40  ;;  %p494_p8 = scmp.lt.s32.totalorder %s2822_s15, 1 }
  0x30   : > { %v2830_v48 = vld [vmem:[%s3551_s18 + $0x48] sm:$0xf]  ;;  %v3555_v49 = vld [vmem:[%s3551_s18 + $0x50] sm:$0xf]  ;;  %v500_v50 = vld [vmem:[%s3551_s18] sm:$0xf]  ;;  %v3562_v52 = vand.u32 %v2919_v46, %v3534_v40  ;;  %v3565_v53 = vand.u32 %v2928_v47, %v3534_v40 }
  0x31   : > { %3150 = vmatprep.subr.bf16.mxu0 %v616_v43  ;;  %3160 = vmatprep.subr.bf16.mxu1 %v716_v44  ;;  %v2885_v54 = vcombine.low %v2830_v48, %v3555_v49  ;;  %v1001_v55 = vshrl.u32 %v2830_v48, 16  ;;  %v1004_v56 = vshll.u32 %v2830_v48, 16  ;;  %v1015_v57 = vshrl.u32 %v3555_v49, 16  ;;  %v3570_v58 = vld [vmem:[%s3551_s18 + $0x8] sm:$0xf]  ;;  %s4538_s15 = smov (!%p494_p8, %s2822_s15), 1 }
  0x32   : > { %3151 = vmatpush3.bf16.msra.mxu0 %v616_v43  ;;  %3161 = vmatpush3.bf16.msra.mxu1 %v716_v44  ;;  %v1018_v59 = vshll.u32 %v3555_v49, 16  ;;  %v2893_v60 = vcombine.low %v500_v50, %v3570_v58  ;;  %v787_v61 = vshrl.u32 %v500_v50, 16  ;;  %v790_v62 = vshll.u32 %v500_v50, 16  ;;  %v3575_v63 = vld [vmem:[%s3551_s18 + $0x58] sm:$0xf]  ;;  %s3038_s14 = sshll.u32 %s4538_s15, 5 }
  0x33   : > { %3152 = vmatprep.mubr.msk.bf16.mxu0 %vm598_vm2, %v2885_v54  ;;  %v1003_v0 = vrot.slane %v1001_v55, 4  ;;  %v1006_v1 = vrot.slane %v1004_v56, 5  ;;  %v1017_v2 = vrot.slane %v1015_v57, 4  ;;  %v801_v3 = vshrl.u32 %v3570_v58, 16  ;;  %v3580_v4 = vld [vmem:[%s3551_s18 + $0x60] sm:$0xf]  ;;  %3170 = vmatprep.subr.bf16.mxu0 %v925_v45  ;;  %s4417_s15 = scalar_lea.vmem %s4440_s3, %s3038_s14 }
  0x34   : > { %v1020_v5 = vrot.slane %v1018_v59, 5  ;;  %3162 = vmatprep.mubr.msk.bf16.mxu1 %vm598_vm2, %v2893_v60  ;;  %v789_v6 = vrot.slane %v787_v61, 4  ;;  %v792_v7 = vrot.slane %v790_v62, 5  ;;  %v804_v8 = vshll.u32 %v3570_v58, 16  ;;  %3180 = vmatprep.subr.bf16.mxu1 %v3559_v51  ;;  %v3590_v17 = vld [vmem:[%s3551_s18 + $0x10] sm:$0xf] }
  0x35   : > { %v1007_v9 = vor.u32 %v1006_v1, %v1003_v0  ;;  %v803_v10 = vrot.slane %v801_v3, 4  ;;  %v2886_v11 = vcombine.low %v3575_v63, %v3580_v4  ;;  %v1029_v12 = vshrl.u32 %v3575_v63, 16  ;;  %v3593_v18 = vld [vmem:[%s3551_s18 + $0x18] sm:$0xf]  ;;  %v3601_v23 = vld [vmem:[%s3551_s18 + $0x68] sm:$0xf] }
  0x36   : > { %v1021_v13 = vor.u32 %v1020_v5, %v1017_v2  ;;  %v793_v14 = vor.u32 %v792_v7, %v789_v6  ;;  %v806_v15 = vrot.slane %v804_v8, 5  ;;  %v1032_v16 = vshll.u32 %v3575_v63, 16  ;;  %4454 = vst [vmem:[#allocation3_spill] sm:$0xff] %v3601_v23  ;;  %v3608_v28 = vld [vmem:[%s3551_s18 + $0x70] sm:$0xf] }
  0x37   : > { %v3595_v19 = vrot.slane %v1007_v9, 4  ;;  %3153 = vmatmul.mubr.msk.bf16.vlgmr.msra.gmra.mxu0 %vm598_vm2, %v2886_v11  ;;  %v1031_v20 = vrot.slane %v1029_v12, 4  ;;  %v1043_v21 = vshrl.u32 %v3580_v4, 16  ;;  %v1046_v22 = vshll.u32 %v3580_v4, 16  ;;  %v3623_v42 = vld [vmem:[%s3551_s18 + $0x20] sm:$0xf] }
  0x38   : > { %v3603_v24 = vrot.slane %v1021_v13, 4  ;;  %v3605_v25 = vrot.slane %v793_v14, 4  ;;  %v807_v26 = vor.u32 %v806_v15, %v803_v10  ;;  %v1034_v27 = vrot.slane %v1032_v16, 5  ;;  %3171 = vmatpush3.bf16.msra.mxu0 %v925_v45  ;;  %v3626_v43 = vld [vmem:[%s3551_s18 + $0x28] sm:$0xf] }
  0x39   : > { %v1045_v29 = vrot.slane %v1043_v21, 4  ;;  %v1048_v30 = vrot.slane %v1046_v22, 5  ;;  %v2894_v31 = vcombine.low %v3590_v17, %v3593_v18  ;;  %v815_v32 = vshrl.u32 %v3590_v17, 16  ;;  %3190 = vmatprep.subr.bf16.mxu0 %v3562_v52  ;;  %v3633_v48 = vld [vmem:[%s3551_s18 + $0x78] sm:$0xf] }
  0x3a   : > { %v3614_v33 = vrot.slane %v807_v26, 4  ;;  %v1035_v34 = vor.u32 %v1034_v27, %v1031_v20  ;;  %v818_v35 = vshll.u32 %v3590_v17, 16  ;;  %v829_v36 = vshrl.u32 %v3593_v18, 16  ;;  %v3641_v57 = vld [vmem:[%s3551_s18 + $0x80] sm:$0xf] }
  0x3b   : > { %v1049_v37 = vor.u32 %v1048_v30, %v1045_v29  ;;  %3163 = vmatmul.mubr.msk.bf16.vlgmr.msra.gmra.mxu1 %vm598_vm2, %v2894_v31  ;;  %v817_v38 = vrot.slane %v815_v32, 4  ;;  %v832_v39 = vshll.u32 %v3593_v18, 16  ;;  %v2887_v41 = vcombine.low %v3601_v23, %v3608_v28  ;;  %4455 = vst [vmem:[#allocation4_spill] sm:$0xff] %v3641_v57  ;;  %v3650_v62 = vld [vmem:[%s3551_s18 + $0x30] sm:$0xf] }
  0x3c   : > { %v3628_v44 = vrot.slane %v1035_v34, 4  ;;  %v820_v45 = vrot.slane %v818_v35, 5  ;;  %v831_v46 = vrot.slane %v829_v36, 4  ;;  %3181 = vmatpush3.bf16.msra.mxu1 %v3559_v51  ;;  %v1057_v47 = vshrl.u32 %v3601_v23, 16  ;;  %v3653_v0 = vld [vmem:[%s3551_s18 + $0x38] sm:$0xf] }
  0x3d   : > { %v3635_v50 = vrot.slane %v1049_v37, 4  ;;  %v834_v54 = vrot.slane %v832_v39, 5  ;;  %3156 = vmatprep.mubr.msk.bf16.mxu0 %vm598_vm2, %v2887_v41  ;;  %v1060_v55 = vshll.u32 %v3601_v23, 16  ;;  %v1071_v56 = vshrl.u32 %v3608_v28, 16  ;;  %3200 = vmatprep.subr.bf16.mxu1 %v3565_v53  ;;  %4456 = vst [vmem:[#allocation5_spill] sm:$0xff] %v3653_v0 }
  0x3e   : > { %v821_v51 = vor.u32 %v820_v45, %v817_v38  ;;  %v1074_v59 = vshll.u32 %v3608_v28, 16  ;;  %v2895_v61 = vcombine.low %v3623_v42, %v3626_v43  ;;  %v843_v2 = vshrl.u32 %v3623_v42, 16  ;;  %v501_v6 = vld [vmem:[%s3551_s18 + $0x4] sm:$0x1]  ;;  %v503_v7 = vld [vmem:[%s3551_s18 + $0xc] sm:$0x1] }
  0x3f   : > { %v835_v1 = vor.u32 %v834_v54, %v831_v46  ;;  %v846_v3 = vshll.u32 %v3623_v42, 16  ;;  %v857_v5 = vshrl.u32 %v3626_v43, 16  ;;  %v2831_v8 = vld [vmem:[%s3551_s18 + $0x4c] sm:$0x1]  ;;  %v2833_v9 = vld [vmem:[%s3551_s18 + $0x54] sm:$0x1]  ;;  %v2888_v13 = vcombine.low %v3633_v48, %v3641_v57 }
  0x40   : > { %v822_v10 = vrot.slane %v821_v51, 4  ;;  %3166 = vmatprep.mubr.msk.bf16.mxu1 %vm598_vm2, %v2895_v61  ;;  %v860_v11 = vshll.u32 %v3626_v43, 16  ;;  %v505_v14 = vld [vmem:[%s3551_s18 + $0x14] sm:$0x1]  ;;  %v507_v15 = vld [vmem:[%s3551_s18 + $0x1c] sm:$0x1]  ;;  %v2896_v29 = vcombine.low %v3650_v62, %v3653_v0 }
  0x41   : > { %v836_v16 = vrot.slane %v835_v1, 4  ;;  %v1085_v20 = vshrl.u32 %v3633_v48, 16  ;;  %v1088_v21 = vshll.u32 %v3633_v48, 16  ;;  %v1099_v22 = vshrl.u32 %v3641_v57, 16  ;;  %v2835_v26 = vld [vmem:[%s3551_s18 + $0x5c] sm:$0x1]  ;;  %3157 = vmatmul.mubr.msk.bf16.gmra.mxu0 %vm598_vm2, %v2888_v13 }
  0x42   : > { %v1102_v27 = vshll.u32 %v3641_v57, 16  ;;  %v871_v30 = vshrl.u32 %v3650_v62, 16  ;;  %v874_v31 = vshll.u32 %v3650_v62, 16  ;;  %v2837_v32 = vld [vmem:[%s3551_s18 + $0x64] sm:$0x1]  ;;  %v885_v34 = vshrl.u32 %v3653_v0, 16 }
  0x43   : > { %v888_v35 = vshll.u32 %v3653_v0, 16  ;;  %vm783_vm3 = vsmask.f32 3328  ;;  %vm784_vm4 = vsmask.f32 7440  ;;  %3167 = vmatmul.mubr.msk.bf16.gmra.mxu1 %vm598_vm2, %v2896_v29  ;;  %v796_v36 = vshll.u32 %v501_v6, 16 }
  0x44   : > { %v810_v37 = vshll.u32 %v503_v7, 16  ;;  %v1010_v38 = vshll.u32 %v2831_v8, 16  ;;  %v1024_v39 = vshll.u32 %v2833_v9, 16  ;;  %vm3684_vm5 = vmor %vm783_vm3, %vm784_vm4  ;;  %v824_v45 = vshll.u32 %v505_v14, 16  ;;  %v2855_v0 = vld [vmem:[%s3551_s18 + $0xac] sm:$0x1] }
  0x45   : > { %v838_v46 = vshll.u32 %v507_v15, 16  ;;  %v1038_v54 = vshll.u32 %v2835_v26, 16  ;;  %v1052_v51 = vshll.u32 %v2837_v32, 16  ;;  %v798_v61 = vrot.slane %v796_v36, 5  ;;  %v509_v26 = vld [vmem:[%s3551_s18 + $0x24] sm:$0x1] }
  0x46   : > { %v812_v1 = vrot.slane %v810_v37, 5  ;;  %v1012_v13 = vrot.slane %v1010_v38, 5  ;;  %v1026_v60 = vrot.slane %v1024_v39, 5  ;;  %v826_v12 = vrot.slane %v824_v45, 5  ;;  %v2841_v45 = vld [vmem:[%s3551_s18 + $0x74] sm:$0x1] }
  0x47   : > { %v840_v29 = vrot.slane %v838_v46, 5  ;;  %v1040_v6 = vrot.slane %v1038_v54, 5  ;;  %v1054_v7 = vrot.slane %v1052_v51, 5  ;;  %v799_v8 = vsel %vm3684_vm5, %v3605_v25, %v798_v61  ;;  %v3018_v41 = vld [vmem:[%s4438_s1 + $0x1e] sm:$0x3] }
  0x48   : > { %v3694_v9 = vsel %vm3684_vm5, %v3614_v33, %v812_v1  ;;  %v1013_v14 = vsel %vm3684_vm5, %v3595_v19, %v1012_v13  ;;  %v3702_v15 = vsel %vm3684_vm5, %v3603_v24, %v1026_v60  ;;  %v3709_v25 = vsel %vm3684_vm5, %v822_v10, %v826_v12  ;;  %v511_v19 = vld [vmem:[%s3551_s18 + $0x2c] sm:$0x1] }
  0x49   : > { %v2902_v32 = vcombine.low %v799_v8, %v3694_v9  ;;  %v2911_v36 = vcombine.low %v1013_v14, %v3702_v15  ;;  %v3713_v33 = vsel %vm3684_vm5, %v836_v16, %v840_v29  ;;  %v3721_v24 = vsel %vm3684_vm5, %v3628_v44, %v1040_v6  ;;  %v2839_v12 = vld [vmem:[%s3551_s18 + $0x6c] sm:$0x1] }
  0x4a   : > { %4459 = vst [vmem:[#allocation6_spill] sm:$0xff] %v3713_v33  ;;  %v2903_v37 = vcombine.low %v3709_v25, %v3713_v33  ;;  %v3726_v60 = vsel %vm3684_vm5, %v3635_v50, %v1054_v7  ;;  %v845_v10 = vrot.slane %v843_v2, 4  ;;  %v848_v38 = vrot.slane %v846_v3, 5 }
  0x4b   : > { %4460 = vst [vmem:[#allocation7_spill] sm:$0xff] %v3726_v60  ;;  %3172 = vmatprep.mubr.msk.bf16.mxu0 %vm598_vm2, %v2902_v32  ;;  %3182 = vmatprep.mubr.msk.bf16.mxu1 %vm598_vm2, %v2911_v36  ;;  %v2912_v16 = vcombine.low %v3721_v24, %v3726_v60  ;;  %v852_v39 = vshll.u32 %v509_v26, 16  ;;  %v859_v44 = vrot.slane %v857_v5, 4  ;;  %v862_v50 = vrot.slane %v860_v11, 5  ;;  %v515_v32 = vld [vmem:[%s3551_s18 + $0x3c] sm:$0x1] }
  0x4c   : > { %3173 = vmatmul.mubr.msk.bf16.vlgmr.msra.gmra.mxu0 %vm598_vm2, %v2903_v37  ;;  %v866_v2 = vshll.u32 %v511_v19, 16  ;;  %v1059_v46 = vrot.slane %v1057_v47, 4  ;;  %v1062_v54 = vrot.slane %v1060_v55, 5  ;;  %v849_v3 = vor.u32 %v848_v38, %v845_v10  ;;  %v513_v55 = vld [vmem:[%s3551_s18 + $0x34] sm:$0x1] }
  0x4d   : > { %3183 = vmatmul.mubr.msk.bf16.vlgmr.msra.gmra.mxu1 %vm598_vm2, %v2912_v16  ;;  %3191 = vmatpush3.bf16.msra.mxu0 %v3562_v52  ;;  %v854_v51 = vrot.slane %v852_v39, 5  ;;  %v1066_v61 = vshll.u32 %v2839_v12, 16  ;;  %v1073_v5 = vrot.slane %v1071_v56, 4  ;;  %v863_v11 = vor.u32 %v862_v50, %v859_v44  ;;  %v2843_v12 = vld [vmem:[%s3551_s18 + $0x7c] sm:$0x1] }
  0x4e   : > { %3201 = vmatpush3.bf16.msra.mxu1 %v3565_v53  ;;  %v868_v1 = vrot.slane %v866_v2, 5  ;;  %v1063_v13 = vor.u32 %v1062_v54, %v1059_v46  ;;  %v1076_v47 = vrot.slane %v1074_v59, 5  ;;  %v850_v29 = vrot.slane %v849_v3, 4  ;;  %v2845_v44 = vld [vmem:[%s3551_s18 + $0x84] sm:$0x1] }
  0x4f   : > { %v1068_v6 = vrot.slane %v1066_v61, 5  ;;  %v1080_v52 = vshll.u32 %v2841_v45, 16  ;;  %v873_v7 = vrot.slane %v871_v30, 4  ;;  %v864_v8 = vrot.slane %v863_v11, 4  ;;  %v2848_v54 = vld [vmem:[%s3551_s18 + $0x90] sm:$0xf] }
  0x50   : > { %v1064_v14 = vrot.slane %v1063_v13, 4  ;;  %v1077_v56 = vor.u32 %v1076_v47, %v1073_v5  ;;  %v876_v53 = vrot.slane %v874_v31, 5  ;;  %v3757_v26 = vsel %vm3684_vm5, %v850_v29, %v854_v51  ;;  %v3793_v11 = vld [vmem:[%s3551_s18 + $0x98] sm:$0xf]  ;;  %v3887_v37 = vld [vmem:[%s3551_s18 + $0xc0] sm:$0xf] }
  0x51   : > { %4461 = vst [vmem:[#allocation8_spill] sm:$0xff] %v3757_v26  ;;  %v1082_v59 = vrot.slane %v1080_v52, 5  ;;  %v880_v36 = vshll.u32 %v513_v55, 16  ;;  %v887_v19 = vrot.slane %v885_v34, 4  ;;  %v3764_v30 = vsel %vm3684_vm5, %v864_v8, %v868_v1 }
  0x52   : > { %v3770_v31 = vsel %vm3684_vm5, %v1064_v14, %v1068_v6  ;;  %v1078_v10 = vrot.slane %v1077_v56, 4  ;;  %v2904_v16 = vcombine.low %v3757_v26, %v3764_v30  ;;  %v877_v38 = vor.u32 %v876_v53, %v873_v7  ;;  %v2866_v6 = vld [vmem:[%s3551_s18 + $0xd8] sm:$0xf]  ;;  %v3807_v14 = vld [vmem:[%s3551_s18 + $0xe0] sm:$0xf] }
  0x53   : > { %4462 = vst [vmem:[#allocation9_spill] sm:$0xff] %v3770_v31  ;;  %v882_v39 = vrot.slane %v880_v36, 5  ;;  %v890_v2 = vrot.slane %v888_v35, 5  ;;  %v894_v45 = vshll.u32 %v515_v32, 16  ;;  %v1087_v46 = vrot.slane %v1085_v20, 4 }
  0x54   : > { %v3780_v50 = vsel %vm3684_vm5, %v1078_v10, %v1082_v59  ;;  %3176 = vmatprep.mubr.msk.bf16.mxu0 %vm598_vm2, %v2904_v16  ;;  %v878_v51 = vrot.slane %v877_v38, 4  ;;  %v1090_v61 = vrot.slane %v1088_v21, 5  ;;  %v1094_v5 = vshll.u32 %v2843_v12, 16  ;;  %v3814_v36 = vld [vmem:[%s3551_s18 + $0xa8] sm:$0xf] }
  0x55   : > { %v2913_v3 = vcombine.low %v3770_v31, %v3780_v50  ;;  %v891_v35 = vor.u32 %v890_v2, %v887_v19  ;;  %v896_v1 = vrot.slane %v894_v45, 5  ;;  %v1101_v20 = vrot.slane %v1099_v22, 4  ;;  %4463 = vst [vmem:[#allocation10_spill] sm:$0xff] %v3814_v36  ;;  %v3824_v38 = vld [vmem:[%s3551_s18 + $0xe8] sm:$0xf] }
  0x56   : > { %v1104_v13 = vrot.slane %v1102_v27, 5  ;;  %v3802_v47 = vsel %vm3684_vm5, %v878_v51, %v882_v39  ;;  %v1091_v21 = vor.u32 %v1090_v61, %v1087_v46  ;;  %v1096_v55 = vrot.slane %v1094_v5, 5  ;;  %v3810_v27 = vld [vmem:[%s3551_s18 + $0xa0] sm:$0xf]  ;;  %v3836_v46 = vld [vmem:[%s3551_s18 + $0xf0] sm:$0xf] }
  0x57   : > { %3186 = vmatprep.mubr.msk.bf16.mxu1 %vm598_vm2, %v2913_v3  ;;  %v1108_v29 = vshll.u32 %v2845_v44, 16  ;;  %v892_v52 = vrot.slane %v891_v35, 4  ;;  %v2920_v8 = vcombine.low %v2848_v54, %v3793_v11  ;;  %v1435_v22 = vshrl.u32 %v2848_v54, 16  ;;  %4464 = vst [vmem:[#allocation11_spill] sm:$0xff] %v3836_v46  ;;  %v2946_v35 = vld [vmem:[%s4438_s1 + $0xe] sm:$0x3] }
  0x58   : > { %v1105_v7 = vor.u32 %v1104_v13, %v1101_v20  ;;  %v1092_v56 = vrot.slane %v1091_v21, 4  ;;  %v1438_v59 = vshll.u32 %v2848_v54, 16  ;;  %v2929_v45 = vcombine.low %v2866_v6, %v3807_v14  ;;  %v2937_v54 = vld [vmem:[%s4438_s1 + $0xc] sm:$0x3]  ;;  %v2851_v32 = vld [vmem:[%s3551_s18 + $0x9c] sm:$0x1] }
  0x59   : > { %v1110_v53 = vrot.slane %v1108_v29, 5  ;;  %v3818_v19 = vsel %vm3684_vm5, %v892_v52, %v896_v1  ;;  %v3820_v12 = vrot.slane %v1435_v22, 4  ;;  %v1649_v51 = vshrl.u32 %v2866_v6, 16  ;;  %v3860_v29 = vld [vmem:[%s3551_s18 + $0xb8] sm:$0xf] }
  0x5a   : > { %v1106_v10 = vrot.slane %v1105_v7, 4  ;;  %v2905_v39 = vcombine.low %v3802_v47, %v3818_v19  ;;  %v3830_v44 = vsel %vm3684_vm5, %v1092_v56, %v1096_v55  ;;  %v3832_v2 = vrot.slane %v1438_v59, 5  ;;  %v3857_v55 = vld [vmem:[%s3551_s18 + $0xb0] sm:$0xf]  ;;  %v3870_v56 = vld [vmem:[%s3551_s18 + $0xf8] sm:$0xf] }
  0x5b   : > { %v1652_v61 = vshll.u32 %v2866_v6, 16  ;;  %v2921_v13 = vcombine.low %v3810_v27, %v3814_v36  ;;  %4465 = vst [vmem:[#allocation12_spill] sm:$0xff] %v3857_v55  ;;  %v3863_v6 = vrot.slane %v1649_v51, 4  ;;  %4466 = vst [vmem:[#allocation13_spill] sm:$0xff] %v3870_v56  ;;  %v2930_v59 = vcombine.low %v3824_v38, %v3836_v46  ;;  %v3904_v22 = vld [vmem:[%s3551_s18 + $0x108] sm:$0xf] }
  0x5c   : > { %v3843_v3 = vsel %vm3684_vm5, %v1106_v10, %v1110_v53  ;;  %3177 = vmatmul.mubr.msk.bf16.gmra.mxu0 %vm598_vm2, %v2905_v39  ;;  %v3879_v39 = vld [vmem:[%s3551_s18 + $0x100] sm:$0xf]  ;;  %v1787_v34 = vand.u32 %v2946_v35, %v3534_v40  ;;  %v3895_v53 = vld [vmem:[%s3551_s18 + $0xc8] sm:$0xf]  ;;  %v2849_v35 = vld [vmem:[%s3551_s18 + $0x94] sm:$0x1] }
  0x5d   : > { %v2914_v1 = vcombine.low %v3830_v44, %v3843_v3  ;;  %3192 = vmatprep.mubr.msk.bf16.mxu0 %vm598_vm2, %v2920_v8  ;;  %v3865_v52 = vrot.slane %v1652_v61, 5  ;;  %v2922_v8 = vcombine.low %v3857_v55, %v3860_v29  ;;  %v2931_v61 = vcombine.low %v3870_v56, %v3879_v39  ;;  %v2867_v31 = vld [vmem:[%s3551_s18 + $0xdc] sm:$0x1]  ;;  %v2869_v26 = vld [vmem:[%s3551_s18 + $0xe4] sm:$0x1] }
  0x5e   : > { %3220 = vmatprep.subr.bf16.mxu1 %v1787_v34  ;;  %v2923_v20 = vcombine.low %v3887_v37, %v3895_v53  ;;  %v1444_v7 = vshll.u32 %v2849_v35, 16  ;;  %v4467_v10 = vshrl.u32 %v3793_v11, 16  ;;  %v4468_v51 = vshll.u32 %v3793_v11, 16  ;;  %v2853_v5 = vld [vmem:[%s3551_s18 + $0xa4] sm:$0x1] }
  0x5f   : > { %3187 = vmatmul.mubr.msk.bf16.gmra.mxu1 %vm598_vm2, %v2914_v1  ;;  %v1573_v1 = vand.u32 %v2937_v54, %v3534_v40 }
  0x60   : > { %3202 = vmatprep.mubr.msk.bf16.mxu1 %vm598_vm2, %v2929_v45  ;;  %v3907_v45 = vld [vmem:[%s3551_s18 + $0x110] sm:$0xf]  ;;  %v1451_v54 = vrot.slane %v4467_v10, 4  ;;  %v1454_v60 = vrot.slane %v4468_v51, 5 }
  0x61   : > { %3210 = vmatprep.subr.bf16.mxu0 %v1573_v1  ;;  %v2932_v21 = vcombine.low %v3904_v22, %v3907_v45 }
  0x62   : > { %v1455_v10 = vor.u32 %v1454_v60, %v1451_v54  ;;  %v1472_v54 = vshll.u32 %v2853_v5, 16 }
  0x64   : > { %3193 = vmatmul.mubr.msk.bf16.vlgmr.msra.gmra.mxu0 %vm598_vm2, %v2921_v13  ;;  %v1441_v13 = vor.u32 %v3832_v2, %v3820_v12  ;;  %v1446_v12 = vrot.slane %v1444_v7, 5  ;;  %v1658_v2 = vshll.u32 %v2867_v31, 16  ;;  %v1456_v31 = vrot.slane %v1455_v10, 4 }
  0x65   : > { %3211 = vmatpush3.bf16.msra.mxu0 %v1573_v1  ;;  %3196 = vmatprep.mubr.msk.bf16.mxu0 %vm598_vm2, %v2922_v8  ;;  %v1458_v1 = vshll.u32 %v2851_v32, 16  ;;  %v1655_v8 = vor.u32 %v3865_v52, %v3863_v6  ;;  %v4470_v32 = vshll.u32 %v3807_v14, 16  ;;  %v1672_v52 = vshll.u32 %v2869_v26, 16 }
  0x66   : > { %v1442_v16 = vrot.slane %v1441_v13, 4  ;;  %v1660_v6 = vrot.slane %v1658_v2, 5  ;;  %v4474_v26 = vshll.u32 %v3814_v36, 16  ;;  %v2871_v2 = vld [vmem:[%s3551_s18 + $0xec] sm:$0x1]  ;;  %v1474_v5 = vrot.slane %v1472_v54, 5 }
  0x67   : > { %3203 = vmatmul.mubr.msk.bf16.vlgmr.msra.gmra.mxu1 %vm598_vm2, %v2930_v59  ;;  %v4469_v59 = vshrl.u32 %v3807_v14, 16  ;;  %v1460_v33 = vrot.slane %v1458_v1, 5  ;;  %v1656_v51 = vrot.slane %v1655_v8, 4  ;;  %v1668_v57 = vrot.slane %v4470_v32, 5 }
  0x68   : > { %3221 = vmatpush3.bf16.msra.mxu1 %v1787_v34  ;;  %3206 = vmatprep.mubr.msk.bf16.mxu1 %vm598_vm2, %v2931_v61  ;;  %v1447_v34 = vsel %vm3684_vm5, %v1442_v16, %v1446_v12  ;;  %v4471_v61 = vshrl.u32 %v3810_v27, 16  ;;  %v1674_v8 = vrot.slane %v1672_v52, 5  ;;  %v4473_v32 = vshrl.u32 %v3814_v36, 16  ;;  %v2873_v52 = vld [vmem:[%s3551_s18 + $0xf4] sm:$0x1] }
  0x69   : > { %v1665_v35 = vrot.slane %v4469_v59, 4  ;;  %v4472_v59 = vshll.u32 %v3810_v27, 16  ;;  %v1661_v1 = vsel %vm3684_vm5, %v1656_v51, %v1660_v6  ;;  %v1482_v12 = vrot.slane %v4474_v26, 5  ;;  %v2955_v26 = vld [vmem:[%s4438_s1 + $0x10] sm:$0x3] }
  0x6a   : > { %v1465_v7 = vrot.slane %v4471_v61, 4  ;;  %v1479_v16 = vrot.slane %v4473_v32, 4  ;;  %v1486_v6 = vshll.u32 %v2855_v0, 16  ;;  %v1686_v0 = vshll.u32 %v2871_v2, 16 }
  0x6b   : > { %v1669_v13 = vor.u32 %v1668_v57, %v1665_v35  ;;  %v1468_v60 = vrot.slane %v4472_v59, 5  ;;  %v3964_v57 = vsel %vm3684_vm5, %v1456_v31, %v1460_v33  ;;  %v4475_v59 = vshrl.u32 %v3824_v38, 16  ;;  %v2964_v31 = vld [vmem:[%s4438_s1 + $0x12] sm:$0x3] }
  0x6c   : > { %3197 = vmatmul.mubr.msk.bf16.gmra.mxu0 %vm598_vm2, %v2923_v20  ;;  %v2938_v61 = vcombine.low %v1447_v34, %v3964_v57  ;;  %v1483_v51 = vor.u32 %v1482_v12, %v1479_v16  ;;  %v4476_v34 = vshll.u32 %v3824_v38, 16  ;;  %v4477_v54 = vshrl.u32 %v3836_v46, 16 }
  0x6d   : > { %v1670_v35 = vrot.slane %v1669_v13, 4  ;;  %v1469_v10 = vor.u32 %v1468_v60, %v1465_v7  ;;  %v1679_v32 = vrot.slane %v4475_v59, 4  ;;  %v1688_v2 = vrot.slane %v1686_v0, 5  ;;  %v2857_v59 = vld [vmem:[%s3551_s18 + $0xb4] sm:$0x1] }
  0x6e   : > { %v1682_v7 = vrot.slane %v4476_v34, 5  ;;  %3212 = vmatprep.mubr.msk.bf16.mxu0 %vm598_vm2, %v2938_v61  ;;  %v1484_v60 = vrot.slane %v1483_v51, 4  ;;  %v1700_v61 = vshll.u32 %v2873_v52, 16  ;;  %v1883_v51 = vand.u32 %v2955_v26, %v3534_v40 }
  0x6f   : > { %3207 = vmatmul.mubr.msk.bf16.gmra.mxu1 %vm598_vm2, %v2932_v21  ;;  %v3976_v33 = vsel %vm3684_vm5, %v1670_v35, %v1674_v8  ;;  %v1470_v20 = vrot.slane %v1469_v10, 4  ;;  %v1488_v21 = vrot.slane %v1486_v6, 5  ;;  %v1693_v8 = vrot.slane %v4477_v54, 4  ;;  %v2875_v54 = vld [vmem:[%s3551_s18 + $0xfc] sm:$0x1] }
  0x70   : > { %v2947_v13 = vcombine.low %v1661_v1, %v3976_v33  ;;  %v1683_v12 = vor.u32 %v1682_v7, %v1679_v32  ;;  %v4478_v35 = vshll.u32 %v3836_v46, 16  ;;  %v1979_v6 = vand.u32 %v2964_v31, %v3534_v40  ;;  %3230 = vmatprep.subr.bf16.mxu0 %v1883_v51 }
  0x71   : > { %v3989_v16 = vsel %vm3684_vm5, %v1470_v20, %v1474_v5  ;;  %v3997_v1 = vsel %vm3684_vm5, %v1484_v60, %v1488_v21  ;;  %v2859_v5 = vld [vmem:[%s3551_s18 + $0xbc] sm:$0x1]  ;;  %v4479_v7 = vshrl.u32 %v3857_v55, 16  ;;  %v4480_v60 = vshll.u32 %v3857_v55, 16 }
  0x72   : > { %v1696_v10 = vrot.slane %v4478_v35, 5  ;;  %3222 = vmatprep.mubr.msk.bf16.mxu1 %vm598_vm2, %v2947_v13  ;;  %v2939_v32 = vcombine.low %v3989_v16, %v3997_v1  ;;  %v1684_v20 = vrot.slane %v1683_v12, 4  ;;  %v1702_v13 = vrot.slane %v1700_v61, 5  ;;  %3240 = vmatprep.subr.bf16.mxu1 %v1979_v6 }
  0x73   : > { %v1493_v0 = vrot.slane %v4479_v7, 4  ;;  %v1496_v52 = vrot.slane %v4480_v60, 5  ;;  %v1500_v21 = vshll.u32 %v2857_v59, 16  ;;  %v4481_v26 = vshrl.u32 %v3860_v29, 16  ;;  %v2877_v59 = vld [vmem:[%s3551_s18 + $0x104] sm:$0x1] }
  0x74   : > { %v1697_v34 = vor.u32 %v1696_v10, %v1693_v8  ;;  %3213 = vmatmul.mubr.msk.bf16.vlgmr.msra.gmra.mxu0 %vm598_vm2, %v2939_v32  ;;  %v4014_v8 = vsel %vm3684_vm5, %v1684_v20, %v1688_v2  ;;  %v4482_v35 = vshll.u32 %v3860_v29, 16  ;;  %v1514_v61 = vshll.u32 %v2859_v5, 16 }
  0x75   : > { %v1507_v31 = vrot.slane %v4481_v26, 4  ;;  %3231 = vmatpush3.bf16.msra.mxu0 %v1883_v51  ;;  %v1497_v7 = vor.u32 %v1496_v52, %v1493_v0  ;;  %v1502_v46 = vrot.slane %v1500_v21, 5  ;;  %v4483_v60 = vshrl.u32 %v3870_v56, 16 }
  0x76   : > { %v1698_v12 = vrot.slane %v1697_v34, 4  ;;  %v1510_v10 = vrot.slane %v4482_v35, 5  ;;  %v4484_v55 = vshll.u32 %v3870_v56, 16  ;;  %v1516_v34 = vrot.slane %v1514_v61, 5 }
  0x77   : > { %v1707_v26 = vrot.slane %v4483_v60, 4  ;;  %v1714_v36 = vshll.u32 %v2875_v54, 16  ;;  %v1498_v5 = vrot.slane %v1497_v7, 4  ;;  %v4486_v52 = vshrl.u32 %v3879_v39, 16 }
  0x78   : > { %v1710_v32 = vrot.slane %v4484_v55, 5  ;;  %v4025_v2 = vsel %vm3684_vm5, %v1698_v12, %v1702_v13  ;;  %v1511_v20 = vor.u32 %v1510_v10, %v1507_v31  ;;  %v4487_v55 = vshll.u32 %v3879_v39, 16  ;;  %v2861_v13 = vld [vmem:[%s3551_s18 + $0xc4] sm:$0x1] }
  0x79   : > { %4485 = vst [vmem:[#allocation14_spill] sm:$0xff] %v4025_v2  ;;  %v2948_v51 = vcombine.low %v4014_v8, %v4025_v2  ;;  %v1721_v21 = vrot.slane %v4486_v52, 4  ;;  %v1716_v60 = vrot.slane %v1714_v36, 5  ;;  %v1728_v23 = vshll.u32 %v2877_v59, 16  ;;  %v4149_v2 = vld [vmem:[%s3551_s18 + $0xd0] sm:$0xf] }
  0x7a   : > { %v1711_v0 = vor.u32 %v1710_v32, %v1707_v26  ;;  %v1512_v35 = vrot.slane %v1511_v20, 4  ;;  %v1724_v56 = vrot.slane %v4487_v55, 5  ;;  %v4037_v31 = vsel %vm3684_vm5, %v1498_v5, %v1502_v46  ;;  %v2863_v20 = vld [vmem:[%s3551_s18 + $0xcc] sm:$0x1] }
  0x7b   : > { %3223 = vmatmul.mubr.msk.bf16.vlgmr.msra.gmra.mxu1 %vm598_vm2, %v2948_v51  ;;  %v4488_v12 = vshrl.u32 %v3887_v37, 16  ;;  %v4489_v61 = vshll.u32 %v3887_v37, 16  ;;  %v1730_v32 = vrot.slane %v1728_v23, 5  ;;  %v4492_v23 = vshll.u32 %v3895_v53, 16 }
  0x7c   : > { %v1712_v54 = vrot.slane %v1711_v0, 4  ;;  %3241 = vmatpush3.bf16.msra.mxu1 %v1979_v6  ;;  %v4045_v36 = vsel %vm3684_vm5, %v1512_v35, %v1516_v34  ;;  %v1725_v26 = vor.u32 %v1724_v56, %v1721_v21  ;;  %v1528_v6 = vshll.u32 %v2861_v13, 16  ;;  %v2879_v0 = vld [vmem:[%s3551_s18 + $0x10c] sm:$0x1] }
  0x7d   : > { %v1521_v10 = vrot.slane %v4488_v12, 4  ;;  %v1524_v7 = vrot.slane %v4489_v61, 5  ;;  %v2940_v46 = vcombine.low %v4037_v31, %v4045_v36  ;;  %v4491_v35 = vshrl.u32 %v3895_v53, 16 }
  0x7e   : > { %v4054_v51 = vsel %vm3684_vm5, %v1712_v54, %v1716_v60  ;;  %v1726_v52 = vrot.slane %v1725_v26, 4  ;;  %v1538_v21 = vrot.slane %v4492_v23, 5  ;;  %v1530_v12 = vrot.slane %v1528_v6, 5 }
  0x7f   : > { %4490 = vst [vmem:[#allocation15_spill] sm:$0xff] %v4054_v51  ;;  %v1525_v5 = vor.u32 %v1524_v7, %v1521_v10  ;;  %v1535_v56 = vrot.slane %v4491_v35, 4  ;;  %3216 = vmatprep.mubr.msk.bf16.mxu0 %vm598_vm2, %v2940_v46  ;;  %v1542_v61 = vshll.u32 %v2863_v20, 16  ;;  %v4493_v60 = vshrl.u32 %v3904_v22, 16  ;;  %v2881_v7 = vld [vmem:[%s3551_s18 + $0x114] sm:$0x1] }
  0x80   : > { %v4068_v13 = vsel %vm3684_vm5, %v1726_v52, %v1730_v32  ;;  %v4494_v26 = vshll.u32 %v3904_v22, 16  ;;  %v1742_v34 = vshll.u32 %v2879_v0, 16  ;;  %v2973_v46 = vld [vmem:[%s4438_s1 + $0x14] sm:$0x3]  ;;  %v4495_v32 = vshrl.u32 %v3907_v45, 16 }
  0x81   : > { %v1526_v55 = vrot.slane %v1525_v5, 4  ;;  %v1735_v54 = vrot.slane %v4493_v60, 4  ;;  %v1539_v10 = vor.u32 %v1538_v21, %v1535_v56  ;;  %v2949_v20 = vcombine.low %v4054_v51, %v4068_v13  ;;  %v2982_v56 = vld [vmem:[%s4438_s1 + $0x16] sm:$0x3] }
  0x82   : > { %v1738_v35 = vrot.slane %v4494_v26, 5  ;;  %v1544_v6 = vrot.slane %v1542_v61, 5  ;;  %v1749_v52 = vrot.slane %v4495_v32, 4  ;;  %v1744_v21 = vrot.slane %v1742_v34, 5 }
  0x83   : > { %v4080_v5 = vsel %vm3684_vm5, %v1526_v55, %v1530_v12  ;;  %v1540_v0 = vrot.slane %v1539_v10, 4  ;;  %v4496_v60 = vshll.u32 %v3907_v45, 16  ;;  %3226 = vmatprep.mubr.msk.bf16.mxu1 %vm598_vm2, %v2949_v20  ;;  %v1756_v55 = vshll.u32 %v2881_v7, 16  ;;  %v4103_v7 = vld [vmem:[%s3551_s18 + $0x40] sm:$0xf] }
  0x84   : > { %v1739_v23 = vor.u32 %v1738_v35, %v1735_v54  ;;  %v2956_v12 = vcombine.low %v3570_v58, %v3590_v17  ;;  %v2088_v61 = vand.u32 %v2973_v46, %v3534_v40  ;;  %v4098_v34 = vand.u32 %v2982_v56, %v3534_v40  ;;  %v4112_v20 = vld [vmem:[%s3551_s18 + $0x88] sm:$0xf] }
  0x85   : > { %v1752_v26 = vrot.slane %v4496_v60, 5  ;;  %v4095_v32 = vsel %vm3684_vm5, %v1540_v0, %v1544_v6  ;;  %v1758_v35 = vrot.slane %v1756_v55, 5  ;;  %v2055_v46 = vshrl.u32 %v4103_v7, 16  ;;  %v2991_v0 = vld [vmem:[%s4438_s1 + $0x18] sm:$0x3] }
  0x86   : > { %v1740_v59 = vrot.slane %v1739_v23, 4  ;;  %v2941_v54 = vcombine.low %v4080_v5, %v4095_v32  ;;  %3250 = vmatprep.subr.bf16.mxu0 %v2088_v61  ;;  %3260 = vmatprep.subr.bf16.mxu1 %v4098_v34  ;;  %v2965_v6 = vcombine.low %v3555_v49, %v3575_v63  ;;  %v2164_v56 = vshrl.u32 %v4112_v20, 16  ;;  %v517_v60 = vld [vmem:[%s3551_s18 + $0x44] sm:$0x1] }
  0x87   : > { %v1753_v10 = vor.u32 %v1752_v26, %v1749_v52  ;;  %v2058_v52 = vshll.u32 %v4103_v7, 16  ;;  %v2847_v26 = vld [vmem:[%s3551_s18 + $0x8c] sm:$0x1]  ;;  %v2985_v63 = vcombine.low %v3780_v50, %v3830_v44 }
  0x88   : > { %v4107_v58 = vsel %vm3684_vm5, %v1740_v59, %v1744_v21  ;;  %3217 = vmatmul.mubr.msk.bf16.gmra.mxu0 %vm598_vm2, %v2941_v54  ;;  %v2167_v59 = vshll.u32 %v4112_v20, 16  ;;  %v2057_v21 = vrot.slane %v2055_v46, 4  ;;  %v2166_v54 = vrot.slane %v2164_v56, 4 }
  0x89   : > { %v1754_v17 = vrot.slane %v1753_v10, 4  ;;  %3232 = vmatprep.mubr.msk.bf16.mxu0 %vm598_vm2, %v2956_v12  ;;  %v2060_v10 = vrot.slane %v2058_v52, 5  ;;  %v3000_v12 = vld [vmem:[%s4438_s1 + $0x1a] sm:$0x3]  ;;  %v2976_v46 = vcombine.low %v3764_v30, %v3802_v47  ;;  %v2064_v56 = vshll.u32 %v517_v60, 16  ;;  %v4511_v30 = vld [vmem:[#allocation12_spill] sm:$0xff] }
  0x8a   : > { %v2169_v51 = vrot.slane %v2167_v59, 5  ;;  %v2173_v49 = vshll.u32 %v2847_v26, 16  ;;  %v4513_v47 = vcombine.low %v3860_v29, %v3887_v37  ;;  %v4520_v29 = vcombine.low %v3997_v1, %v4037_v31 }
  0x8b   : > { %v4125_v23 = vsel %vm3684_vm5, %v1754_v17, %v1758_v35  ;;  %v2958_v35 = vcombine.low %v3626_v43, %v3650_v62  ;;  %v2967_v17 = vcombine.low %v3608_v28, %v3633_v48  ;;  %v2061_v52 = vor.u32 %v2060_v10, %v2057_v21  ;;  %v4161_v21 = vld [vmem:[%s3551_s18 + $0x118] sm:$0xf] }
  0x8c   : > { %v2950_v55 = vcombine.low %v4107_v58, %v4125_v23  ;;  %v2170_v59 = vor.u32 %v2169_v51, %v2166_v54  ;;  %v2293_v43 = vand.u32 %v2991_v0, %v3534_v40  ;;  %v4154_v28 = vand.u32 %v3000_v12, %v3534_v40  ;;  %v2865_v0 = vld [vmem:[%s3551_s18 + $0xd4] sm:$0x1] }
  0x8d   : > { %v2992_v48 = vcombine.low %v3793_v11, %v3810_v27  ;;  %v3001_v62 = vcombine.low %v3807_v14, %v3824_v38  ;;  %v2062_v51 = vrot.slane %v2061_v52, 4  ;;  %v2066_v60 = vrot.slane %v2064_v56, 5  ;;  %v4514_v11 = vld [vmem:[#allocation11_spill] sm:$0xff]  ;;  %v4515_v27 = vld [vmem:[#allocation13_spill] sm:$0xff] }
  0x8e   : > { %3227 = vmatmul.mubr.msk.bf16.gmra.mxu1 %vm598_vm2, %v2950_v55  ;;  %v2171_v26 = vrot.slane %v2170_v59, 4  ;;  %v2175_v55 = vrot.slane %v2173_v49, 5  ;;  %v2465_v54 = vshrl.u32 %v4149_v2, 16  ;;  %v4497_v12 = vcombine.low %v3593_v18, %v3623_v42 }
  0x8f   : > { %3242 = vmatprep.mubr.msk.bf16.mxu1 %vm598_vm2, %v2965_v6  ;;  %v2067_v49 = vsel %vm3684_vm5, %v2062_v51, %v2066_v60  ;;  %v2468_v56 = vshll.u32 %v4149_v2, 16  ;;  %v2883_v51 = vld [vmem:[%s3551_s18 + $0x11c] sm:$0x1]  ;;  %v4516_v44 = vcombine.low %v4514_v11, %v4515_v27  ;;  %v4517_v14 = vcombine.low %v3879_v39, %v3904_v22 }
  0x90   : > { %3233 = vmatmul.mubr.msk.bf16.vlgmr.msra.gmra.mxu0 %vm598_vm2, %v4497_v12  ;;  %v2176_v52 = vsel %vm3684_vm5, %v2171_v26, %v2175_v55  ;;  %v2977_v10 = vcombine.low %v3818_v19, %v2067_v49  ;;  %v2467_v42 = vrot.slane %v2465_v54, 4  ;;  %v2574_v12 = vshrl.u32 %v4161_v21, 16  ;;  %v4498_v54 = vld [vmem:[#allocation3_spill] sm:$0xff]  ;;  %v4521_v22 = vld [vmem:[#allocation14_spill] sm:$0xff] }
  0x91   : > { %3251 = vmatpush3.bf16.msra.mxu0 %v2088_v61  ;;  %3236 = vmatprep.mubr.msk.bf16.mxu0 %vm598_vm2, %v2958_v35  ;;  %v2986_v18 = vcombine.low %v3843_v3, %v2176_v52  ;;  %v2470_v60 = vrot.slane %v2468_v56, 5  ;;  %v2577_v26 = vshll.u32 %v4161_v21, 16  ;;  %v3010_v55 = vcombine.low %v3964_v57, %v3989_v16  ;;  %v4500_v52 = vld [vmem:[#allocation5_spill] sm:$0xff] }
  0x92   : > { %3270 = vmatprep.subr.bf16.mxu0 %v2293_v43  ;;  %v3019_v61 = vcombine.low %v3976_v33, %v4014_v8  ;;  %v2576_v59 = vrot.slane %v2574_v12, 4  ;;  %v3012_v19 = vcombine.low %v4045_v36, %v4080_v5  ;;  %v3021_v3 = vcombine.low %v4068_v13, %v4107_v58 }
  0x93   : > { %v2474_v35 = vshll.u32 %v2865_v0, 16  ;;  %v4499_v49 = vcombine.low %v3580_v4, %v4498_v54  ;;  %v2959_v56 = vcombine.low %v4500_v52, %v4103_v7  ;;  %v2579_v57 = vrot.slane %v2577_v26, 5  ;;  %v4501_v4 = vld [vmem:[#allocation4_spill] sm:$0xff] }
  0x94   : > { %v2471_v16 = vor.u32 %v2470_v60, %v2467_v42  ;;  %v2583_v6 = vshll.u32 %v2883_v51, 16  ;;  %v2968_v5 = vcombine.low %v4501_v4, %v4112_v20  ;;  %v4518_v38 = vcombine.low %v3895_v53, %v4149_v2  ;;  %v4522_v53 = vld [vmem:[#allocation15_spill] sm:$0xff] }
  0x95   : > { %v2476_v33 = vrot.slane %v2474_v35, 5  ;;  %v2580_v36 = vor.u32 %v2579_v57, %v2576_v59  ;;  %v4503_v59 = vcombine.low %v3702_v15, %v3721_v24  ;;  %v2607_v15 = vand.u32 %v3018_v41, %v3534_v40  ;;  %v4507_v24 = vld [vmem:[#allocation7_spill] sm:$0xff] }
  0x96   : > { %3243 = vmatmul.mubr.msk.bf16.vlgmr.msra.gmra.mxu1 %vm598_vm2, %v4499_v49  ;;  %v2472_v8 = vrot.slane %v2471_v16, 4  ;;  %v2585_v13 = vrot.slane %v2583_v6, 5  ;;  %v3009_v6 = vld [vmem:[%s4438_s1 + $0x1c] sm:$0x3]  ;;  %v4519_v37 = vcombine.low %v3907_v45, %v4161_v21  ;;  %v4523_v39 = vcombine.low %v4521_v22, %v4522_v53 }
  0x97   : > { %3261 = vmatpush3.bf16.msra.mxu1 %v4098_v34  ;;  %3246 = vmatprep.mubr.msk.bf16.mxu1 %vm598_vm2, %v2967_v17  ;;  %v2581_v58 = vrot.slane %v2580_v36, 4  ;;  %v4502_v34 = vcombine.low %v3694_v9, %v3709_v25  ;;  %v2498_v9 = vand.u32 %v3009_v6, %v3534_v40  ;;  %v4504_v25 = vld [vmem:[#allocation6_spill] sm:$0xff] }
  0x98   : > { %3280 = vmatprep.subr.bf16.mxu1 %v4154_v28  ;;  %3237 = vmatmul.mubr.msk.bf16.gmra.mxu0 %vm598_vm2, %v2959_v56  ;;  %v2477_v7 = vsel %vm3684_vm5, %v2472_v8, %v2476_v33  ;;  %v4510_v40 = vld [vmem:[#allocation10_spill] sm:$0xff] }
  0x99   : > { %3252 = vmatprep.mubr.msk.bf16.mxu0 %vm598_vm2, %v4502_v34  ;;  %v3013_v17 = vcombine.low %v4095_v32, %v2477_v7  ;;  %v2586_v0 = vsel %vm3684_vm5, %v2581_v58, %v2585_v13  ;;  %v4505_v32 = vld [vmem:[#allocation8_spill] sm:$0xff]  ;;  %v4512_v50 = vcombine.low %v4510_v40, %v4511_v30 }
  0x9a   : > { %v3022_v20 = vcombine.low %v4125_v23, %v2586_v0  ;;  %v4506_v42 = vcombine.low %v4504_v25, %v4505_v32  ;;  %v4508_v23 = vld [vmem:[#allocation9_spill] sm:$0xff] }
  0x9b   : > { %v4509_v12 = vcombine.low %v4507_v24, %v4508_v23 }
  0x9e   : > { %3247 = vmatmul.mubr.msk.bf16.gmra.mxu1 %vm598_vm2, %v2968_v5 }
  0x9f   : > { %3262 = vmatprep.mubr.msk.bf16.mxu1 %vm598_vm2, %v4503_v59 }
  0xa0   : > { %3253 = vmatmul.mubr.msk.bf16.vlgmr.msra.gmra.mxu0 %vm598_vm2, %v4506_v42 }
  0xa1   : > { %3271 = vmatpush3.bf16.msra.mxu0 %v2293_v43  ;;  %3256 = vmatprep.mubr.msk.bf16.mxu0 %vm598_vm2, %v2976_v46 }
  0xa2   : > { %3290 = vmatprep.subr.bf16.mxu0 %v2498_v9 }
  0xa6   : > { %3263 = vmatmul.mubr.msk.bf16.vlgmr.msra.gmra.mxu1 %vm598_vm2, %v4509_v12 }
  0xa7   : > { %3281 = vmatpush3.bf16.msra.mxu1 %v4154_v28  ;;  %3266 = vmatprep.mubr.msk.bf16.mxu1 %vm598_vm2, %v2985_v63 }
  0xa8   : > { %3300 = vmatprep.subr.bf16.mxu1 %v2607_v15  ;;  %3257 = vmatmul.mubr.msk.bf16.gmra.mxu0 %vm598_vm2, %v2977_v10 }
  0xa9   : > { %3272 = vmatprep.mubr.msk.bf16.mxu0 %vm598_vm2, %v2992_v48 }
  0xae   : > { %3267 = vmatmul.mubr.msk.bf16.gmra.mxu1 %vm598_vm2, %v2986_v18 }
  0xaf   : > { %3282 = vmatprep.mubr.msk.bf16.mxu1 %vm598_vm2, %v3001_v62 }
  0xb0   : > { %3273 = vmatmul.mubr.msk.bf16.vlgmr.msra.gmra.mxu0 %vm598_vm2, %v4512_v50 }
  0xb1   : > { %3291 = vmatpush3.bf16.msra.mxu0 %v2498_v9  ;;  %3276 = vmatprep.mubr.msk.bf16.mxu0 %vm598_vm2, %v4513_v47 }
  0xb6   : > { %3283 = vmatmul.mubr.msk.bf16.vlgmr.msra.gmra.mxu1 %vm598_vm2, %v4516_v44 }
  0xb7   : > { %3301 = vmatpush3.bf16.msra.mxu1 %v2607_v15  ;;  %3286 = vmatprep.mubr.msk.bf16.mxu1 %vm598_vm2, %v4517_v14 }
  0xb8   : > { %3277 = vmatmul.mubr.msk.bf16.gmra.mxu0 %vm598_vm2, %v4518_v38 }
  0xb9   : > { %3292 = vmatprep.mubr.msk.bf16.mxu0 %vm598_vm2, %v3010_v55 }
  0xbe   : > { %3287 = vmatmul.mubr.msk.bf16.gmra.mxu1 %vm598_vm2, %v4519_v37 }
  0xbf   : > { %3302 = vmatprep.mubr.msk.bf16.mxu1 %vm598_vm2, %v3019_v61 }
  0xc0   : > { %3293 = vmatmul.mubr.msk.bf16.vlgmr.msra.gmra.mxu0 %vm598_vm2, %v4520_v29 }
  0xc1   : > { %3296 = vmatprep.mubr.msk.bf16.mxu0 %vm598_vm2, %v3012_v19 }
  0xc6   : > { %3303 = vmatmul.mubr.msk.bf16.vlgmr.msra.gmra.mxu1 %vm598_vm2, %v4523_v39 }
  0xc7   : > { %3306 = vmatprep.mubr.msk.bf16.mxu1 %vm598_vm2, %v3021_v3 }
  0xc8   : > { %3297 = vmatmul.mubr.msk.bf16.gmra.mxu0 %vm598_vm2, %v3013_v17 }
  0xce   : > { %3307 = vmatmul.mubr.msk.bf16.gmra.mxu1 %vm598_vm2, %v3022_v20 }
  0xf7   : > { %v3154_v45 = vpop.f32.mrf.mxu0 }
  0xf9   : > { %v652_v2 = vpop.f32.mrf.mxu0 }
  0xfb   : > { %v3164_v63 = vpop.f32.mrf.mxu1  ;;  %v3155_v46 = vpop.f32.mrf.mxu0 }
  0xfc   : > { %v761_v1 = vadd.f32 %v3164_v63, %v3154_v45 }
  0xfd   : > { %v752_v31 = vpop.f32.mrf.mxu1  ;;  %v655_v28 = vpop.f32.mrf.mxu0 }
  0xfe   : > { %v753_v43 = vadd.f32 %v752_v31, %v652_v2 }
  0xff   : > { %v3165_v48 = vpop.f32.mrf.mxu1 }
 0x100   : > { %v764_v62 = vadd.f32 %v3165_v48, %v3155_v46 }
 0x101   : > { %v755_v21 = vpop.f32.mrf.mxu1  ;;  %v3158_v18 = vpop.f32.mrf.mxu0 }
 0x102   : > { %v756_v10 = vadd.f32 %v755_v21, %v655_v28 }
 0x103   : > { %v3168_v51 = vpop.f32.mrf.mxu1  ;;  %v668_v60 = vpop.f32.mrf.mxu0 }
 0x104   : > { %v777_v26 = vadd.f32 %v3168_v51, %v3158_v18 }
 0x105   : > { %v768_v55 = vpop.f32.mrf.mxu1  ;;  %v3159_v61 = vpop.f32.mrf.mxu0 }
 0x106   : > { %v769_v19 = vadd.f32 %v768_v55, %v668_v60 }
 0x107   : > { %v3169_v3 = vpop.f32.mrf.mxu1  ;;  %v671_v35 = vpop.f32.mrf.mxu0 }
 0x108   : > { %v780_v54 = vadd.f32 %v3169_v3, %v3159_v61 }
 0x109   : > { %v771_v49 = vpop.f32.mrf.mxu1 }
 0x10a   : > { %v772_v52 = vadd.f32 %v771_v49, %v671_v35 }
 0x10c   : > { %v3174_v56 = vpop.f32.mrf.mxu0 }
 0x10d   : > { %v994_v57 = vadd.f32 %v3174_v56, %v761_v1  ;;  %v3184_v16 = vpop.f32.mrf.mxu1 }
 0x10e   : > { %v961_v33 = vpop.f32.mrf.mxu0 }
 0x10f   : > { %v1208_v8 = vadd.f32 %v3184_v16, %v994_v57  ;;  %v992_v36 = vadd.f32 %v961_v33, %v753_v43  ;;  %v1175_v13 = vpop.f32.mrf.mxu1 }
 0x110   : > { %v3175_v4 = vpop.f32.mrf.mxu0 }
 0x111   : > { %v1206_v5 = vadd.f32 %v1175_v13, %v992_v36  ;;  %v995_v7 = vadd.f32 %v3175_v4, %v764_v62  ;;  %v3185_v58 = vpop.f32.mrf.mxu1 }
 0x112   : > { %v964_v34 = vpop.f32.mrf.mxu0 }
 0x113   : > { %v4296_v17 = vadd.f32 %v3185_v58, %v995_v7  ;;  %v993_v0 = vadd.f32 %v964_v34, %v756_v10  ;;  %v1178_v6 = vpop.f32.mrf.mxu1 }
 0x115   : > { %v4298_v20 = vadd.f32 %v1178_v6, %v993_v0 }
 0x11c   : > { %v3178_v59 = vpop.f32.mrf.mxu0 }
 0x11d   : > { %v998_v9 = vadd.f32 %v3178_v59, %v777_v26 }
 0x11e   : > { %v977_v25 = vpop.f32.mrf.mxu0 }
 0x11f   : > { %v3188_v41 = vpop.f32.mrf.mxu1  ;;  %v996_v42 = vadd.f32 %v977_v25, %v769_v19 }
 0x120   : > { %v1212_v32 = vadd.f32 %v3188_v41, %v998_v9  ;;  %v3179_v24 = vpop.f32.mrf.mxu0 }
 0x121   : > { %v1191_v15 = vpop.f32.mrf.mxu1  ;;  %v999_v12 = vadd.f32 %v3179_v24, %v780_v54 }
 0x122   : > { %v1210_v23 = vadd.f32 %v1191_v15, %v996_v42  ;;  %v980_v30 = vpop.f32.mrf.mxu0 }
 0x123   : > { %v3189_v40 = vpop.f32.mrf.mxu1  ;;  %v997_v47 = vadd.f32 %v980_v30, %v772_v52 }
 0x124   : > { %v4300_v50 = vadd.f32 %v3189_v40, %v999_v12  ;;  %v3194_v27 = vpop.f32.mrf.mxu0 }
 0x125   : > { %v1194_v11 = vpop.f32.mrf.mxu1  ;;  %v1318_v14 = vadd.f32 %v3194_v27, %v1208_v8 }
 0x126   : > { %v4302_v44 = vadd.f32 %v1194_v11, %v997_v47  ;;  %v1285_v37 = vpop.f32.mrf.mxu0 }
 0x127   : > { %v3204_v38 = vpop.f32.mrf.mxu1  ;;  %v1316_v22 = vadd.f32 %v1285_v37, %v1206_v5 }
 0x128   : > { %v1428_v29 = vadd.f32 %v3204_v38, %v1318_v14  ;;  %v3195_v39 = vpop.f32.mrf.mxu0 }
 0x129   : > { %v1395_v53 = vpop.f32.mrf.mxu1  ;;  %v1319_v38 = vadd.f32 %v3195_v39, %v4296_v17 }
 0x12a   : > { %v1426_v45 = vadd.f32 %v1395_v53, %v1316_v22  ;;  %v1288_v63 = vpop.f32.mrf.mxu0 }
 0x12b   : > { %v3205_v2 = vpop.f32.mrf.mxu1 }
 0x12c   : > { %v3198_v1 = vpop.f32.mrf.mxu0 }
 0x12d   : > { %v4304_v46 = vpop.f32.mrf.mxu1  ;;  %v1322_v31 = vadd.f32 %v3198_v1, %v1212_v32  ;;  %v1317_v1 = vadd.f32 %v1288_v63, %v4298_v20 }
 0x12e   : > { %v1301_v28 = vpop.f32.mrf.mxu0 }
 0x12f   : > { %v3208_v43 = vpop.f32.mrf.mxu1  ;;  %v1320_v62 = vadd.f32 %v1301_v28, %v1210_v23  ;;  %v1429_v28 = vadd.f32 %v3205_v2, %v1319_v38  ;;  %v1427_v17 = vadd.f32 %v4304_v46, %v1317_v1 }
 0x130   : > { %v4306_v48 = vadd.f32 %v3208_v43, %v1322_v31  ;;  %v3199_v10 = vpop.f32.mrf.mxu0 }
 0x131   : > { %v1411_v21 = vpop.f32.mrf.mxu1  ;;  %v1323_v63 = vadd.f32 %v3199_v10, %v4300_v50 }
 0x132   : > { %v4308_v18 = vadd.f32 %v1411_v21, %v1320_v62  ;;  %v1304_v60 = vpop.f32.mrf.mxu0 }
 0x133   : > { %v4310_v51 = vpop.f32.mrf.mxu1  ;;  %v1321_v2 = vadd.f32 %v1304_v60, %v4302_v44 }
 0x134   : > { %v3214_v55 = vpop.f32.mrf.mxu0 }
 0x135   : > { %v4312_v26 = vpop.f32.mrf.mxu1  ;;  %v1642_v53 = vadd.f32 %v3214_v55, %v1428_v29 }
 0x136   : > { %v1609_v19 = vpop.f32.mrf.mxu0 }
 0x137   : > { %v1640_v62 = vadd.f32 %v1609_v19, %v1426_v45 }
 0x138   : > { %v3215_v35 = vpop.f32.mrf.mxu0 }
 0x13a   : > { %v1612_v49 = vpop.f32.mrf.mxu0 }
 0x13b   : > { %v3224_v61 = vpop.f32.mrf.mxu1  ;;  %v1641_v55 = vadd.f32 %v1612_v49, %v1427_v17 }
 0x13d   : > { %v1823_v3 = vpop.f32.mrf.mxu1 }
 0x13e   : > { %v1854_v29 = vadd.f32 %v1823_v3, %v1640_v62  ;;  %v1433_v3 = vadd.f32 %v4310_v51, %v1323_v63 }
 0x13f   : > { %v3225_v54 = vpop.f32.mrf.mxu1 }
 0x141   : > { %v1826_v52 = vpop.f32.mrf.mxu1 }
 0x148   : > { %v3218_v56 = vpop.f32.mrf.mxu0 }
 0x14a   : > { %v1625_v57 = vpop.f32.mrf.mxu0 }
 0x14b   : > { %v1644_v50 = vadd.f32 %v1625_v57, %v4308_v18 }
 0x14c   : > { %v4316_v33 = vpop.f32.mrf.mxu0 }
 0x14e   : > { %v4314_v16 = vpop.f32.mrf.mxu1  ;;  %v4320_v36 = vpop.f32.mrf.mxu0 }
 0x150   : > { %v4318_v8 = vpop.f32.mrf.mxu1  ;;  %v3234_v4 = vpop.f32.mrf.mxu0 }
 0x152   : > { %v4322_v13 = vpop.f32.mrf.mxu1  ;;  %v1919_v7 = vpop.f32.mrf.mxu0 }
 0x153   : > { %v1950_v38 = vadd.f32 %v1919_v7, %v1854_v29 }
 0x154   : > { %v4324_v5 = vpop.f32.mrf.mxu1  ;;  %v3235_v34 = vpop.f32.mrf.mxu0 }
 0x156   : > { %v3244_v58 = vpop.f32.mrf.mxu1  ;;  %v1922_v6 = vpop.f32.mrf.mxu0 }
 0x158   : > { %v2015_v0 = vpop.f32.mrf.mxu1  ;;  %v3238_v9 = vpop.f32.mrf.mxu0 }
 0x15a   : > { %v3245_v59 = vpop.f32.mrf.mxu1  ;;  %v4328_v25 = vpop.f32.mrf.mxu0 }
 0x15c   : > { %v4326_v41 = vpop.f32.mrf.mxu1  ;;  %v4332_v42 = vpop.f32.mrf.mxu0 }
 0x15e   : > { %v4330_v32 = vpop.f32.mrf.mxu1  ;;  %v4336_v24 = vpop.f32.mrf.mxu0 }
 0x160   : > { %v4334_v15 = vpop.f32.mrf.mxu1  ;;  %v3254_v12 = vpop.f32.mrf.mxu0 }
 0x161   : > { %4524 = vst [vmem:[#allocation3_spill] sm:$0xff] %v4334_v15  ;;  %v1643_v15 = vadd.f32 %v3215_v35, %v1429_v28  ;;  %v2046_v28 = vadd.f32 %v2015_v0, %v1950_v38 }
 0x162   : > { %v4338_v23 = vpop.f32.mrf.mxu1  ;;  %v2124_v30 = vpop.f32.mrf.mxu0 }
 0x163   : > { %4525 = vst [vmem:[#allocation5_spill] sm:$0xff] %v4338_v23  ;;  %v1856_v23 = vadd.f32 %v3224_v61, %v1642_v53  ;;  %v1857_v19 = vadd.f32 %v3225_v54, %v1643_v15  ;;  %v1646_v61 = vadd.f32 %v3218_v56, %v4306_v48  ;;  %v1647_v48 = vadd.f32 %v4316_v33, %v1433_v3 }
 0x164   : > { %v4340_v40 = vpop.f32.mrf.mxu1  ;;  %v3255_v11 = vpop.f32.mrf.mxu0  ;;  %v2155_v51 = vadd.f32 %v2124_v30, %v2046_v28 }
 0x165   : > { %4526 = vst [vmem:[#allocation4_spill] sm:$0xff] %v4340_v40  ;;  %v1952_v20 = vadd.f32 %v3234_v4, %v1856_v23  ;;  %v1953_v1 = vadd.f32 %v3235_v34, %v1857_v19  ;;  %v1855_v4 = vadd.f32 %v1826_v52, %v1641_v55  ;;  %v1431_v23 = vadd.f32 %v4312_v26, %v1321_v2 }
 0x166   : > { %v3264_v47 = vpop.f32.mrf.mxu1  ;;  %v4342_v14 = vpop.f32.mrf.mxu0  ;;  %v1860_v60 = vadd.f32 %v4314_v16, %v1646_v61  ;;  %v1858_v52 = vadd.f32 %v4318_v8, %v1644_v50  ;;  %v1861_v0 = vadd.f32 %v4322_v13, %v1647_v48 }
 0x167   : > { %v2048_v53 = vadd.f32 %v3244_v58, %v1952_v20  ;;  %v1951_v54 = vadd.f32 %v1922_v6, %v1855_v4  ;;  %v1645_v58 = vadd.f32 %v4320_v36, %v1431_v23  ;;  %v2049_v34 = vadd.f32 %v3245_v59, %v1953_v1 }
 0x168   : > { %v2233_v27 = vpop.f32.mrf.mxu1  ;;  %v4347_v22 = vpop.f32.mrf.mxu0  ;;  %v1956_v18 = vadd.f32 %v3238_v9, %v1860_v60  ;;  %v1954_v33 = vadd.f32 %v4328_v25, %v1858_v52  ;;  %v1957_v8 = vadd.f32 %v4332_v42, %v1861_v0  ;;  %v4529_v25 = vld [vmem:[#allocation3_spill] sm:$0xff] }
 0x169   : > { %4527 = vst [vmem:[#allocation6_spill] sm:$0xff] %v4347_v22  ;;  %v2157_v44 = vadd.f32 %v3254_v12, %v2048_v53  ;;  %v2158_v26 = vadd.f32 %v3255_v11, %v2049_v34  ;;  %v2047_v16 = vadd.f32 %v4326_v41, %v1951_v54  ;;  %v1859_v17 = vadd.f32 %v4324_v5, %v1645_v58  ;;  %v4399_v54 = vld [vmem:[%s4439_s2] ss:$0 sm:$0xff] }
 0x16a   : > { %v4345_v37 = vpop.f32.mrf.mxu1  ;;  %v4352_v43 = vpop.f32.mrf.mxu0  ;;  %v2264_v36 = vadd.f32 %v2233_v27, %v2155_v51  ;;  %v2052_v30 = vadd.f32 %v4330_v32, %v1956_v18  ;;  %v2050_v20 = vadd.f32 %v4529_v25, %v1954_v33  ;;  %v4531_v32 = vld [vmem:[#allocation5_spill] sm:$0xff] }
 0x16b   : > { %4528 = vst [vmem:[#allocation8_spill] sm:$0xff] %v4352_v43  ;;  %v2266_v62 = vadd.f32 %v3264_v47, %v2157_v44  ;;  %v2156_v9 = vadd.f32 %v4342_v14, %v2047_v16  ;;  %v1955_v13 = vadd.f32 %v4336_v24, %v1859_v17  ;;  %v2267_v41 = vadd.f32 %v4345_v37, %v2158_v26 }
 0x16c   : > { %v4350_v31 = vpop.f32.mrf.mxu1  ;;  %v4356_v40 = vpop.f32.mrf.mxu0  ;;  %v2053_v19 = vadd.f32 %v4531_v32, %v1957_v8  ;;  %v4533_v24 = vld [vmem:[#allocation4_spill] sm:$0xff] }
 0x16d   : > { %v2265_v42 = vadd.f32 %v4350_v31, %v2156_v9  ;;  %v2051_v1 = vadd.f32 %v4533_v24, %v1955_v13 }
 0x16e   : > { %v4354_v21 = vpop.f32.mrf.mxu1  ;;  %v4361_v22 = vpop.f32.mrf.mxu0  ;;  %v2162_v4 = vadd.f32 %v4356_v40, %v2053_v19 }
 0x16f   : > { %v2160_v23 = vadd.f32 %v4361_v22, %v2051_v1 }
 0x170   : > { %v4359_v39 = vpop.f32.mrf.mxu1  ;;  %v3274_v45 = vpop.f32.mrf.mxu0  ;;  %v4530_v63 = vld [vmem:[#allocation6_spill] sm:$0xff] }
 0x171   : > { %v2362_v59 = vadd.f32 %v3274_v45, %v2266_v62  ;;  %v2161_v55 = vadd.f32 %v4530_v63, %v2052_v30 }
 0x172   : > { %v4364_v43 = vpop.f32.mrf.mxu1  ;;  %v2329_v46 = vpop.f32.mrf.mxu0  ;;  %v4532_v14 = vld [vmem:[#allocation8_spill] sm:$0xff] }
 0x173   : > { %v2360_v29 = vadd.f32 %v2329_v46, %v2264_v36  ;;  %v2159_v38 = vadd.f32 %v4532_v14, %v2050_v20  ;;  %v2270_v3 = vadd.f32 %v4354_v21, %v2161_v55 }
 0x174   : > { %v4368_v35 = vpop.f32.mrf.mxu1  ;;  %v3275_v49 = vpop.f32.mrf.mxu0 }
 0x175   : > { %v2363_v2 = vadd.f32 %v3275_v49, %v2267_v41  ;;  %v2268_v44 = vadd.f32 %v4359_v39, %v2159_v38  ;;  %v2269_v39 = vadd.f32 %v4368_v35, %v2160_v23 }
 0x176   : > { %v3284_v10 = vpop.f32.mrf.mxu1  ;;  %v2332_v7 = vpop.f32.mrf.mxu0 }
 0x177   : > { %v2458_v45 = vadd.f32 %v3284_v10, %v2362_v59  ;;  %v2361_v50 = vadd.f32 %v2332_v7, %v2265_v42  ;;  %v2271_v7 = vadd.f32 %v4364_v43, %v2162_v4 }
 0x178   : > { %v2425_v56 = vpop.f32.mrf.mxu1  ;;  %v3278_v15 = vpop.f32.mrf.mxu0 }
 0x179   : > { %v2456_v37 = vadd.f32 %v2425_v56, %v2360_v29  ;;  %v2366_v60 = vadd.f32 %v3278_v15, %v2270_v3 }
 0x17a   : > { %v3285_v57 = vpop.f32.mrf.mxu1  ;;  %v2345_v12 = vpop.f32.mrf.mxu0 }
 0x17b   : > { %v2459_v28 = vadd.f32 %v3285_v57, %v2363_v2  ;;  %v2364_v58 = vadd.f32 %v2345_v12, %v2268_v44 }
 0x17c   : > { %v2428_v6 = vpop.f32.mrf.mxu1  ;;  %v3279_v11 = vpop.f32.mrf.mxu0 }
 0x17d   : > { %v2457_v22 = vadd.f32 %v2428_v6, %v2361_v50  ;;  %v2367_v15 = vadd.f32 %v3279_v11, %v2271_v7 }
 0x17e   : > { %v3288_v47 = vpop.f32.mrf.mxu1  ;;  %v2348_v27 = vpop.f32.mrf.mxu0 }
 0x17f   : > { %v2462_v57 = vadd.f32 %v3288_v47, %v2366_v60  ;;  %v2365_v16 = vadd.f32 %v2348_v27, %v2269_v39 }
 0x180   : > { %v2441_v5 = vpop.f32.mrf.mxu1  ;;  %v3294_v53 = vpop.f32.mrf.mxu0 }
 0x181   : > { %v2567_v46 = vadd.f32 %v3294_v53, %v2458_v45  ;;  %v2460_v33 = vadd.f32 %v2441_v5, %v2364_v58 }
 0x182   : > { %v3289_v61 = vpop.f32.mrf.mxu1  ;;  %v2534_v49 = vpop.f32.mrf.mxu0 }
 0x183   : > { %v2565_v31 = vadd.f32 %v2534_v49, %v2456_v37  ;;  %v2463_v30 = vadd.f32 %v3289_v61, %v2367_v15 }
 0x184   : > { %v2444_v10 = vpop.f32.mrf.mxu1  ;;  %v3295_v21 = vpop.f32.mrf.mxu0 }
 0x185   : > { %v2568_v56 = vadd.f32 %v3295_v21, %v2459_v28  ;;  %v2461_v13 = vadd.f32 %v2444_v10, %v2365_v16 }
 0x186   : > { %v3304_v48 = vpop.f32.mrf.mxu1  ;;  %v2537_v51 = vpop.f32.mrf.mxu0 }
 0x187   : > { %v2676_v40 = vadd.f32 %v3304_v48, %v2567_v46  ;;  %v2566_v26 = vadd.f32 %v2537_v51, %v2457_v22 }
 0x188   : > { %v2643_v34 = vpop.f32.mrf.mxu1  ;;  %v3298_v0 = vpop.f32.mrf.mxu0 }
 0x189   : > { %v2691_v52 = vadd.f32 %v4399_v54, %v2676_v40  ;;  %v2674_v18 = vadd.f32 %v2643_v34, %v2565_v31  ;;  %v2571_v35 = vadd.f32 %v3298_v0, %v2462_v57 }
 0x18a   : > { %v3305_v62 = vpop.f32.mrf.mxu1  ;;  %v2550_v36 = vpop.f32.mrf.mxu0 }
 0x18b   : > { %v2677_v43 = vadd.f32 %v3305_v62, %v2568_v56  ;;  %v2707_v6 = vmul.f32 0.2, %v2691_v52  ;;  %v2689_v12 = vadd.f32 %v4399_v54, %v2674_v18  ;;  %vm2699_vm6 = vcmp.ge.f32.partialorder %v2691_v52, 0.0 }
 0x18c   : > { %v2646_v17 = vpop.f32.mrf.mxu1  ;;  %v2569_v47 = vadd.f32 %v2550_v36, %v2460_v33  ;;  %v3299_v11 = vpop.f32.mrf.mxu0 }
 0x18d   : > { %v2692_v59 = vadd.f32 %v4399_v54, %v2677_v43  ;;  %v2675_v8 = vadd.f32 %v2646_v17, %v2566_v26  ;;  %v2715_v25 = vsel %vm2699_vm6, %v2691_v52, %v2707_v6  ;;  %v2705_v20 = vmul.f32 0.2, %v2689_v12 }
 0x18e   : > { %v3308_v9 = vpop.f32.mrf.mxu1  ;;  %v2572_v5 = vadd.f32 %v3299_v11, %v2463_v30  ;;  %v2553_v27 = vpop.f32.mrf.mxu0  ;;  %vm2697_vm8 = vcmp.ge.f32.partialorder %v2689_v12, 0.0 }
 0x18f   : > { %vm2700_vm7 = vcmp.ge.f32.partialorder %v2692_v59, 0.0  ;;  %v2708_v41 = vmul.f32 0.2, %v2692_v59  ;;  %v2680_v29 = vadd.f32 %v3308_v9, %v2571_v35  ;;  %v2690_v63 = vadd.f32 %v4399_v54, %v2675_v8 }
 0x190   : > { %v2659_v55 = vpop.f32.mrf.mxu1  ;;  %v2570_v38 = vadd.f32 %v2553_v27, %v2461_v13  ;;  %v2713_v53 = vsel %vm2697_vm8, %v2689_v12, %v2705_v20 }
 0x191   : > { %v2716_v45 = vsel %vm2700_vm7, %v2692_v59, %v2708_v41  ;;  %v2695_v2 = vadd.f32 %v4399_v54, %v2680_v29  ;;  %v2678_v32 = vadd.f32 %v2659_v55, %v2569_v47  ;;  %vm2698_vm9 = vcmp.ge.f32.partialorder %v2690_v63, 0.0 }
 0x192   : > { %v3055_v19 = vpack.c.bf16 %v2716_v45, %v2715_v25  ;;  %v2706_v42 = vmul.f32 0.2, %v2690_v63  ;;  %v3309_v14 = vpop.f32.mrf.mxu1 }
 0x193   : > { %v2681_v61 = vadd.f32 %v3309_v14, %v2572_v5  ;;  %v2693_v1 = vadd.f32 %v4399_v54, %v2678_v32  ;;  %v2711_v3 = vmul.f32 0.2, %v2695_v2  ;;  %vm2703_vm10 = vcmp.ge.f32.partialorder %v2695_v2, 0.0 }
 0x194   : > { %3067 = vst [vmem:[%s4417_s15 + $0x8] sm:$0xff] %v3055_v19   ;;  %v2714_v24 = vsel %vm2698_vm9, %v2690_v63, %v2706_v42  ;;  %v2662_v46 = vpop.f32.mrf.mxu1 }
 0x195   : > { %v3050_v37 = vpack.c.bf16 %v2714_v24, %v2713_v53  ;;  %v2696_v4 = vadd.f32 %v4399_v54, %v2681_v61  ;;  %v2679_v50 = vadd.f32 %v2662_v46, %v2570_v38  ;;  %v2709_v10 = vmul.f32 0.2, %v2693_v1 }
 0x196   : > { %vm2701_vm12 = vcmp.ge.f32.partialorder %v2693_v1, 0.0  ;;  %v2719_v28 = vsel %vm2703_vm10, %v2695_v2, %v2711_v3 }
 0x197   : > { %3051 = vst [vmem:[%s4417_s15] sm:$0xff] %v3050_v37   ;;  %vm2704_vm11 = vcmp.ge.f32.partialorder %v2696_v4, 0.0  ;;  %v2712_v49 = vmul.f32 0.2, %v2696_v4  ;;  %v2694_v23 = vadd.f32 %v4399_v54, %v2679_v50  ;;  %v2717_v48 = vsel %vm2701_vm12, %v2693_v1, %v2709_v10 }
 0x199   : > { %v2720_v31 = vsel %vm2704_vm11, %v2696_v4, %v2712_v49  ;;  %vm2702_vm13 = vcmp.ge.f32.partialorder %v2694_v23, 0.0  ;;  %v2710_v44 = vmul.f32 0.2, %v2694_v23 }
 0x19a   : > { %v3065_v60 = vpack.c.bf16 %v2720_v31, %v2719_v28 }
 0x19b   : > { %v2718_v21 = vsel %vm2702_vm13, %v2694_v23, %v2710_v44 }
 0x19c   : > { %3069 = vst [vmem:[%s4417_s15 + $0x18] sm:$0xff] %v3065_v60   ;;  %v3060_v40 = vpack.c.bf16 %v2718_v21, %v2717_v48 }
 0x19e   : > { %3068 = vst [vmem:[%s4417_s15 + $0x10] sm:$0xff] %v3060_v40  }
 0x19f PF: > { %p10_p9 = scmp.ge.s32.totalorder %s3432_s16, 4   ;;  %s4534_s12 = smov %s3388_s13 }
 0x1a0   : > { %s4535_s13 = smov %s3441_s19  ;;  %s4536_s14 = smov %s3432_s16 }
 0x1a1   :  { %12 = sbr.rel (!%p10_p9) target bundleno = 2 (0x2), region = 126 }

// kernel: discriminator_forward.5
= control target key start
LH: loop header
LB: loop body
LE: loop exit
PB: predicated region body
PF: predicated region fallthrough
CT: control target
= control target key end

     0   :  { %s3152_s15 = smov 0   ;;  %s3154_s16 = smov 0   ;;  %s3897_s0 = inlined_call_operand.vmem [shape: bf16[4,2,5,5,128], index: 0, kind: input, shape index: {}]   ;;  %s3898_s1 = inlined_call_operand.vmem [shape: bf16[2048,128], index: 1, kind: input, shape index: {}]   ;;  %s3899_s2 = inlined_call_operand.vmem [shape: f32[1,128], index: 2, kind: input, shape index: {}]   ;;  %s3900_s3 = inlined_call_operand.vmem [shape: bf16[2,16,128], index: 3, kind: output, shape index: {0}]   ;;  %s3901_s4 = inlined_call_operand.vmem [shape: f32[2,2,128], index: 4, kind: output, shape index: {1}]  }
   0x1   :  { %s3156_s17 = smov 0  }
   0x2 LB: > { %s2589_s18 = sadd.s32 4294967295, %s3124_s17   ;;  %s3169_s19 = sadd.s32 1, %s3124_s17   ;;  %s3124_s17 = sphi %s3156_s17, %s3906_s17   ;;  %s3120_s16 = sphi %s3154_s16, %s3905_s16   ;;  %s3116_s15 = sphi %s3152_s15, %s3904_s15  }
   0x3   : > { %s19_s20 = ssub.s32 %s3124_s17, %s3169_s19  ;;  %s22_s21 = sadd.s32 1, %s3120_s16 }
   0x4   : > { %p20_p0 = scmp.eq.s32.totalorder %s19_s20, 0  ;;  %p29_p1 = scmp.ne.s32.totalorder %s3120_s16, %s3116_s15 }
   0x5   : > { %p30_p2 = scmp.eq.s32.totalorder %s3124_s17, 0  ;;  %p2592_p4 = scmp.ge.s32.totalorder %s3124_s17, 2 }
   0x6   : > { %s3178_s22 = scalar_select %p20_p0, %s3120_s16, %s22_s21  }
   0x7   : > { %p31_p3 = por %p30_p2, %p29_p1  ;;  %155 = sbr.rel (%p2592_p4) target bundleno = 23 (0x17), region = 24 }
   0xc   : > { %158 = sbr.rel (!%p31_p3) target bundleno = 23 (0x17), region = 28  ;;  %s160_s23 = sand.u32 (%p31_p3), 1, %s3120_s16  }
   0xd   : > { %s2931_s24 = smul.u32 (%p31_p3), 20, %s3124_s17 }
   0xe   : > { %s2930_s25 = smul.u32 (%p31_p3), 80, %s160_s23 }
   0xf   : > { %s165_s28 = scalar_lea.vmem (%p31_p3), %s3897_s0, %s2931_s24 }
  0x10   : > { %v182_v0 = vld [vmem:[%s165_s28] sm:$0xff] (%p31_p3)   ;;  %v186_v1 = vld [vmem:[%s165_s28 + $0x8] sm:$0xff] (%p31_p3)   ;;  %v190_v2 = vld [vmem:[%s165_s28 + $0x10] sm:$0xf] (%p31_p3)  ;;  %s162_s29 = scalar_lea.vmem (%p31_p3), [#allocation2], %s2930_s25 }
  0x11   : > { %183 = vst [vmem:[%s162_s29] sm:$0xff] %v182_v0   ;;  %187 = vst [vmem:[%s162_s29 + $0x8] sm:$0xff] %v186_v1   ;;  %v192_v3 = vld [vmem:[%s165_s28 + $0x28] sm:$0xff]   ;;  %v196_v4 = vld [vmem:[%s165_s28 + $0x30] sm:$0xff]  }
  0x12   : > { %191 = vst [vmem:[%s162_s29 + $0x10] sm:$0xf] %v190_v2  ;;  %v200_v5 = vld [vmem:[%s165_s28 + $0x38] sm:$0xf]  ;;  %193 = vst [vmem:[%s162_s29 + $0x14] sm:$0xff] %v192_v3   ;;  %v202_v6 = vld [vmem:[%s165_s28 + $0x50] sm:$0xff]  }
  0x13   : > { %197 = vst [vmem:[%s162_s29 + $0x1c] sm:$0xff] %v196_v4   ;;  %201 = vst [vmem:[%s162_s29 + $0x24] sm:$0xf] %v200_v5  ;;  %v206_v7 = vld [vmem:[%s165_s28 + $0x58] sm:$0xff]   ;;  %v210_v8 = vld [vmem:[%s165_s28 + $0x60] sm:$0xf] }
  0x14   : > { %203 = vst [vmem:[%s162_s29 + $0x28] sm:$0xff] %v202_v6   ;;  %207 = vst [vmem:[%s162_s29 + $0x30] sm:$0xff] %v206_v7   ;;  %v212_v9 = vld [vmem:[%s165_s28 + $0x78] sm:$0xff]   ;;  %v216_v10 = vld [vmem:[%s165_s28 + $0x80] sm:$0xff]  }
  0x15   : > { %211 = vst [vmem:[%s162_s29 + $0x38] sm:$0xf] %v210_v8  ;;  %v220_v11 = vld [vmem:[%s165_s28 + $0x88] sm:$0xf]  ;;  %213 = vst [vmem:[%s162_s29 + $0x3c] sm:$0xff] %v212_v9  }
  0x16   : > { %217 = vst [vmem:[%s162_s29 + $0x44] sm:$0xff] %v216_v10   ;;  %221 = vst [vmem:[%s162_s29 + $0x4c] sm:$0xf] %v220_v11 }
  0x17 PF: > { %p2594_p5 = scmp.ge.s32.totalorder %s3124_s17, 1  ;;  %p284_p6 = scmp.lt.s32.totalorder %s3124_s17, 3 }
  0x19   : > { %p285_p7 = pnand %p2594_p5, %p284_p6 }
  0x1a   : > { %s291_s14 = sand.u32 (!%p285_p7), 1, %s3116_s15   ;;  %p320_p8 = scmp.lt.s32.totalorder (!%p285_p7), %s2589_s18, 1 }
  0x1b   : > { %288 = sbr.rel (%p285_p7) target bundleno = 407 (0x197), region = 69 }
  0x1c   : > { %s2932_s27 = smul.u32 (!%p285_p7), 80, %s291_s14 }
  0x1e   : > { %s3285_s9 = scalar_lea.vmem (!%p285_p7), [#allocation2], %s2932_s27 }
  0x20   : > { %v2958_v12 = vld [vmem:[%s3898_s1 + $0x78] sm:$0xff]   ;;  %v2962_v16 = vld [vmem:[%s3898_s1 + $0x70] sm:$0xff]   ;;  %v2966_v20 = vld [vmem:[%s3898_s1 + $0x68] sm:$0xff]   ;;  %v360_v43 = vlaneseq  ;;  %v3126_v46 = vmov 1983009808   ;;  %s3908_s18 = smov (!%p320_p8, %s2589_s18), 1 }
  0x21   : > { %v2959_v13 = vld [vmem:[%s3898_s1 + $0xf8] sm:$0xff]   ;;  %2754 = vmatprep.subr.bf16.mxu0 %v2958_v12  ;;  %v2963_v17 = vld [vmem:[%s3898_s1 + $0xf0] sm:$0xff]   ;;  %v2967_v21 = vld [vmem:[%s3898_s1 + $0xe8] sm:$0xff]   ;;  %v358_v47 = vunpack.c.l.s4 %v3126_v46  ;;  %vm389_vm0 = vsmask.f32 1280  ;;  %s2746_s28 = sshll.u32 %s3908_s18, 3 }
  0x22   : > { %v2960_v14 = vld [vmem:[%s3898_s1 + $0x38] sm:$0xff]   ;;  %2776 = vmatprep.subr.bf16.mxu1 %v2959_v13  ;;  %v2964_v18 = vld [vmem:[%s3898_s1 + $0x30] sm:$0xff]   ;;  %v2968_v22 = vld [vmem:[%s3898_s1 + $0x28] sm:$0xff]   ;;  %v361_v48 = vshrl.u32 %v360_v43, 7  ;;  %vm390_vm1 = vsmask.f32 3336  ;;  %s324_s30 = scalar_lea.vmem %s3900_s3, %s2746_s28 }
  0x23   : > { %v2961_v15 = vld [vmem:[%s3898_s1 + $0xb8] sm:$0xff]   ;;  %2755 = vmatpush3.bf16.msra.mxu0 %v2960_v14  ;;  %v2965_v19 = vld [vmem:[%s3898_s1 + $0xb0] sm:$0xff]   ;;  %v2969_v23 = vld [vmem:[%s3898_s1 + $0xa8] sm:$0xff]   ;;  %v359_v52 = vunpack.c.0.s8 %v358_v47  ;;  %vm392_vm2 = vsmask.f32 5392  ;;  %s2597_s17 = sshll.u32 %s3908_s18, 1 }
  0x24   : > { %2777 = vmatpush3.bf16.msra.mxu1 %v2961_v15  ;;  %2756 = vmatprep.subr.bf16.mxu0 %v2962_v16  ;;  %v2970_v24 = vld [vmem:[%s3898_s1 + $0x60] sm:$0xff]   ;;  %v2974_v28 = vld [vmem:[%s3898_s1 + $0x58] sm:$0xff]   ;;  %v2978_v32 = vld [vmem:[%s3898_s1 + $0x50] sm:$0xff]   ;;  %vm394_vm3 = vsmask.f32 7448  ;;  %s328_s7 = scalar_lea.vmem %s3901_s4, %s2597_s17 }
  0x25   : > { %2778 = vmatprep.subr.bf16.mxu1 %v2963_v17  ;;  %v2971_v25 = vld [vmem:[%s3898_s1 + $0xe0] sm:$0xff]   ;;  %v2975_v29 = vld [vmem:[%s3898_s1 + $0xd8] sm:$0xff]   ;;  %v2979_v33 = vld [vmem:[%s3898_s1 + $0xd0] sm:$0xff]   ;;  %v3311_v59 = vsub.s32 %v359_v52, %v361_v48 }
  0x26   : > { %v2972_v26 = vld [vmem:[%s3898_s1 + $0x20] sm:$0xff]   ;;  %v2976_v30 = vld [vmem:[%s3898_s1 + $0x18] sm:$0xff]   ;;  %v2980_v34 = vld [vmem:[%s3898_s1 + $0x10] sm:$0xff]  }
  0x27   : > { %2757 = vmatpush3.bf16.msra.mxu0 %v2964_v18  ;;  %v2973_v27 = vld [vmem:[%s3898_s1 + $0xa0] sm:$0xff]   ;;  %v2977_v31 = vld [vmem:[%s3898_s1 + $0x98] sm:$0xff]   ;;  %v2981_v35 = vld [vmem:[%s3898_s1 + $0x90] sm:$0xff]  }
  0x28   : > { %2779 = vmatpush3.bf16.msra.mxu1 %v2965_v19  ;;  %2758 = vmatprep.subr.bf16.mxu0 %v2966_v20  ;;  %v2982_v36 = vld [vmem:[%s3898_s1 + $0x48] sm:$0xff]   ;;  %v2986_v40 = vld [vmem:[%s3898_s1 + $0x40] sm:$0xff]   ;;  %v2994_v60 = vld [vmem:[%s3898_s1 + $0x178] sm:$0xff]  }
  0x29   : > { %2780 = vmatprep.subr.bf16.mxu1 %v2967_v21  ;;  %v2983_v37 = vld [vmem:[%s3898_s1 + $0xc8] sm:$0xff]   ;;  %v2987_v41 = vld [vmem:[%s3898_s1 + $0xc0] sm:$0xff]   ;;  %v2995_v61 = vld [vmem:[%s3898_s1 + $0x1f8] sm:$0xff]  }
  0x2a   : > { %v2984_v38 = vld [vmem:[%s3898_s1 + $0x8] sm:$0xff]   ;;  %v2988_v42 = vld [vmem:[%s3898_s1] sm:$0xff]   ;;  %vm391_vm4 = vmor %vm389_vm0, %vm390_vm1 }
  0x2b   : > { %2759 = vmatpush3.bf16.msra.mxu0 %v2968_v22  ;;  %v2985_v39 = vld [vmem:[%s3898_s1 + $0x88] sm:$0xff]   ;;  %v2989_v44 = vld [vmem:[%s3898_s1 + $0x80] sm:$0xff]   ;;  %vm393_vm5 = vmor %vm391_vm4, %vm392_vm2 }
  0x2c   : > { %2781 = vmatpush3.bf16.msra.mxu1 %v2969_v23  ;;  %2760 = vmatprep.subr.bf16.mxu0 %v2970_v24  ;;  %v2598_v45 = vld [vmem:[%s3285_s9 + $0x14] sm:$0x7]  ;;  %v3289_v49 = vld [vmem:[%s3285_s9 + $0x18] sm:$0x7]  ;;  %v3292_v50 = vld [vmem:[%s3285_s9 + $0x1c] sm:$0x7] }
  0x2d   : > { %2782 = vmatprep.subr.bf16.mxu1 %v2971_v25  ;;  %v3295_v51 = vld [vmem:[%s3285_s9 + $0x20] sm:$0x7]  ;;  %v838_v53 = vcombine.low %v2598_v45, %v3289_v49  ;;  %v3299_v54 = vld [vmem:[%s3285_s9 + $0x24] sm:$0x7]  ;;  %v3305_v56 = vld [vmem:[%s3285_s9 + $0x8] sm:$0x7]  ;;  %v462_v62 = vrot.slane %v2598_v45, %v3311_v59  ;;  %v470_v63 = vrot.slane %v3289_v49, %v3311_v59  ;;  %v478_v0 = vrot.slane %v3292_v50, %v3311_v59 }
  0x2e   : > { %v3302_v55 = vld [vmem:[%s3285_s9 + $0x4] sm:$0x7]  ;;  %v839_v57 = vcombine.low %v3292_v50, %v3295_v51  ;;  %v486_v1 = vrot.slane %v3295_v51, %v3311_v59  ;;  %v3331_v4 = vrot.slane %v3299_v54, %v3311_v59  ;;  %v330_v25 = vld [vmem:[%s3285_s9] sm:$0x7]  ;;  %vm3336_vm6 = vmor %vm393_vm5, %vm394_vm3 }
  0x2f   : > { %2761 = vmatpush3.bf16.msra.mxu0 %v2972_v26  ;;  %v964_v58 = vcombine.low %v3302_v55, %v3305_v56  ;;  %v846_v2 = vrot.slane %v838_v53, %v3311_v59  ;;  %v489_v5 = vshrl.u32 %v462_v62, 16  ;;  %v492_v6 = vshll.u32 %v462_v62, 16  ;;  %v3091_v26 = vld [vmem:[%s3898_s1 + $0x3c8] sm:$0xff]  }
  0x30   : > { %2783 = vmatpush3.bf16.msra.mxu1 %v2973_v27  ;;  %2762 = vmatprep.subr.bf16.mxu0 %v2974_v28  ;;  %v853_v3 = vrot.slane %v839_v57, %v3311_v59  ;;  %v463_v7 = vcombine.high %v462_v62, %v462_v62  ;;  %v471_v8 = vcombine.high %v470_v63, %v470_v63  ;;  %v503_v12 = vshrl.u32 %v470_v63, 16 }
  0x31   : > { %2784 = vmatprep.subr.bf16.mxu1 %v2975_v29  ;;  %v479_v10 = vcombine.high %v478_v0, %v478_v0  ;;  %v487_v11 = vcombine.high %v486_v1, %v486_v1  ;;  %v491_v13 = vrot.slane %v489_v5, 6  ;;  %v494_v14 = vrot.slane %v492_v6, 7 }
  0x32   : > { %v854_v9 = vcombine.low %v846_v2, %v853_v3  ;;  %v498_v15 = vshll.u32 %v463_v7, 16  ;;  %v506_v16 = vshll.u32 %v470_v63, 16  ;;  %v505_v17 = vrot.slane %v503_v12, 6 }
  0x33   : > { %2763 = vmatpush3.bf16.msra.mxu0 %v2976_v30  ;;  %v512_v18 = vshll.u32 %v471_v8, 16  ;;  %v517_v19 = vshrl.u32 %v478_v0, 16  ;;  %v520_v20 = vshll.u32 %v478_v0, 16  ;;  %v495_v21 = vor.u32 %v494_v14, %v491_v13  ;;  %v2996_v13 = vld [vmem:[%s3898_s1 + $0x138] sm:$0xff]   ;;  %v2998_v14 = vld [vmem:[%s3898_s1 + $0x170] sm:$0xff]  }
  0x34   : > { %2785 = vmatpush3.bf16.msra.mxu1 %v2977_v31  ;;  %2764 = vmatprep.subr.bf16.mxu0 %v2978_v32  ;;  %v500_v22 = vrot.slane %v498_v15, 7  ;;  %v508_v23 = vrot.slane %v506_v16, 7  ;;  %v526_v24 = vshll.u32 %v479_v10, 16  ;;  %v531_v30 = vshrl.u32 %v486_v1, 16 }
  0x35   : > { %2786 = vmatprep.subr.bf16.mxu1 %v2979_v33  ;;  %2171 = vmatprep.mubr.bf16.mxu0 %v854_v9  ;;  %v514_v27 = vrot.slane %v512_v18, 7  ;;  %v519_v28 = vrot.slane %v517_v19, 6  ;;  %v522_v29 = vrot.slane %v520_v20, 7  ;;  %v496_v31 = vrot.slane %v495_v21, 2 }
  0x36   : > { %v509_v32 = vor.u32 %v508_v23, %v505_v17  ;;  %v528_v33 = vrot.slane %v526_v24, 7  ;;  %v363_v45 = vrot.slane %v330_v25, %v3311_v59  ;;  %v820_v46 = vcombine.low %v330_v25, %v3302_v55 }
  0x37   : > { %2765 = vmatpush3.bf16.msra.mxu0 %v2980_v34  ;;  %v534_v34 = vshll.u32 %v486_v1, 16  ;;  %v764_v57 = vshll.u32 %v3331_v4, 16  ;;  %v371_v1 = vrot.slane %v3302_v55, %v3311_v59  ;;  %v379_v2 = vrot.slane %v3305_v56, %v3311_v59  ;;  %v2997_v55 = vld [vmem:[%s3898_s1 + $0x1b8] sm:$0xff]  }
  0x38   : > { %2787 = vmatpush3.bf16.msra.mxu1 %v2981_v35  ;;  %2766 = vmatprep.subr.bf16.mxu0 %v2982_v36  ;;  %v523_v35 = vor.u32 %v522_v29, %v519_v28  ;;  %v533_v36 = vrot.slane %v531_v30, 6  ;;  %v397_v3 = vshrl.u32 %v363_v45, 16  ;;  %v400_v5 = vshll.u32 %v363_v45, 16  ;;  %v3000_v28 = vld [vmem:[%s3898_s1 + $0x130] sm:$0xff]  }
  0x39   : > { %2788 = vmatprep.subr.bf16.mxu1 %v2983_v37  ;;  %v540_v37 = vshll.u32 %v487_v11, 16  ;;  %v828_v6 = vrot.slane %v820_v46, %v3311_v59  ;;  %v364_v8 = vcombine.high %v363_v45, %v363_v45  ;;  %v372_v17 = vcombine.high %v371_v1, %v371_v1 }
  0x3a   : > { %v524_v43 = vrot.slane %v523_v35, 2  ;;  %v399_v11 = vrot.slane %v397_v3, 6  ;;  %v402_v12 = vrot.slane %v400_v5, 7  ;;  %v380_v19 = vcombine.high %v379_v2, %v379_v2  ;;  %v3006_v5 = vld [vmem:[%s3898_s1 + $0x160] sm:$0xff]  }
  0x3b   : > { %2767 = vmatpush3.bf16.msra.mxu0 %v2984_v38  ;;  %v759_v38 = vcombine.high %v3331_v4, %v3331_v4  ;;  %v542_v52 = vrot.slane %v540_v37, 7  ;;  %v406_v21 = vshll.u32 %v364_v8, 16  ;;  %v411_v24 = vshrl.u32 %v371_v1, 16 }
  0x3c   : > { %2789 = vmatpush3.bf16.msra.mxu1 %v2985_v39  ;;  %2768 = vmatprep.subr.bf16.mxu0 %v2986_v40  ;;  %v501_v39 = vsel %vm3336_vm6, %v496_v31, %v500_v22  ;;  %v510_v40 = vrot.slane %v509_v32, 2  ;;  %v3362_v62 = vsel %vm3336_vm6, %v524_v43, %v528_v33  ;;  %v403_v20 = vor.u32 %v402_v12, %v399_v11  ;;  %v3389_v22 = vld [vmem:[%s3285_s9 + $0x10] sm:$0x7]  ;;  %v3002_v33 = vld [vmem:[%s3898_s1 + $0x168] sm:$0xff]  }
  0x3d   : > { %2790 = vmatprep.subr.bf16.mxu1 %v2987_v41  ;;  %v536_v41 = vrot.slane %v534_v34, 7  ;;  %v414_v25 = vshll.u32 %v371_v1, 16  ;;  %v408_v31 = vrot.slane %v406_v21, 7  ;;  %v425_v32 = vshrl.u32 %v379_v2, 16 }
  0x3e   : > { %v3352_v47 = vsel %vm3336_vm6, %v510_v40, %v514_v27  ;;  %v420_v27 = vshll.u32 %v372_v17, 16  ;;  %v404_v30 = vrot.slane %v403_v20, 2  ;;  %v766_v34 = vrot.slane %v764_v57, 7  ;;  %v3004_v57 = vld [vmem:[%s3898_s1 + $0x128] sm:$0xff]   ;;  %v3008_v17 = vld [vmem:[%s3898_s1 + $0x120] sm:$0xff]  }
  0x3f   : > { %2769 = vmatpush3.bf16.msra.mxu0 %v2988_v42  ;;  %v761_v42 = vshrl.u32 %v3331_v4, 16  ;;  %v537_v48 = vor.u32 %v536_v41, %v533_v36  ;;  %v413_v35 = vrot.slane %v411_v24, 6  ;;  %v416_v36 = vrot.slane %v414_v25, 7 }
  0x40   : > { %2791 = vmatpush3.bf16.msra.mxu1 %v2989_v44  ;;  %2798 = vmatprep.subr.bf16.mxu0 %v2994_v60  ;;  %v3346_v44 = vld [vmem:[%s3285_s9 + $0xc] sm:$0x7]  ;;  %v3357_v60 = vshll.u32 %v759_v38, 16  ;;  %v428_v37 = vshll.u32 %v379_v2, 16  ;;  %v422_v38 = vrot.slane %v420_v27, 7  ;;  %v434_v40 = vshll.u32 %v380_v19, 16 }
  0x41   : > { %2820 = vmatprep.subr.bf16.mxu1 %v2995_v61  ;;  %v821_v53 = vcombine.low %v3305_v56, %v3346_v44  ;;  %v874_v61 = vcombine.low %v501_v39, %v3352_v47  ;;  %v538_v63 = vrot.slane %v537_v48, 2  ;;  %v3364_v0 = vrot.slane %v761_v42, 6  ;;  %v3010_v19 = vld [vmem:[%s3898_s1 + $0x158] sm:$0xff]   ;;  %v3014_v56 = vld [vmem:[%s3898_s1 + $0x150] sm:$0xff]  }
  0x42   : > { %v387_v15 = vrot.slane %v3346_v44, %v3311_v59  ;;  %v427_v39 = vrot.slane %v425_v32, 6  ;;  %v417_v42 = vor.u32 %v416_v36, %v413_v35  ;;  %v430_v43 = vrot.slane %v428_v37, 7  ;;  %v3016_v35 = vld [vmem:[%s3898_s1 + $0x110] sm:$0xff]  }
  0x43   : > { %v3372_v4 = vsel %vm3336_vm6, %v538_v63, %v542_v52  ;;  %v835_v7 = vrot.slane %v821_v53, %v3311_v59  ;;  %v882_v10 = vrot.slane %v874_v61, %v3311_v59  ;;  %v409_v48 = vsel %vm3336_vm6, %v404_v30, %v408_v31 }
  0x44   : > { %v875_v9 = vcombine.low %v3362_v62, %v3372_v4  ;;  %v388_v23 = vcombine.high %v387_v15, %v387_v15  ;;  %v439_v41 = vshrl.u32 %v387_v15, 16  ;;  %v442_v45 = vshll.u32 %v387_v15, 16 }
  0x45   : > { %v836_v16 = vcombine.low %v828_v6, %v835_v7  ;;  %v735_v53 = vrot.slane %v3389_v22, %v3311_v59  ;;  %v965_v61 = vcombine.low %v3346_v44, %v3389_v22  ;;  %v418_v63 = vrot.slane %v417_v42, 2  ;;  %v3482_v42 = vld [vmem:[%s3285_s9 + $0x44] sm:$0x7] }
  0x46   : > { %v889_v18 = vrot.slane %v875_v9, %v3311_v59  ;;  %v448_v46 = vshll.u32 %v388_v23, 16  ;;  %v441_v52 = vrot.slane %v439_v41, 6  ;;  %v431_v1 = vor.u32 %v430_v43, %v427_v39  ;;  %v2608_v39 = vld [vmem:[%s3285_s9 + $0x3c] sm:$0x7]  ;;  %v3479_v41 = vld [vmem:[%s3285_s9 + $0x40] sm:$0x7] }
  0x47   : > { %2172 = vmatmul.mubr.bf16.vlgmr.msra.gmra.mxu0 %v836_v16  ;;  %v436_v2 = vrot.slane %v434_v40, 7  ;;  %v444_v3 = vrot.slane %v442_v45, 7  ;;  %v767_v6 = vor.u32 %v766_v34, %v3364_v0  ;;  %v736_v7 = vcombine.high %v735_v53, %v735_v53  ;;  %v2999_v34 = vld [vmem:[%s3898_s1 + $0x1f0] sm:$0xff]   ;;  %v3485_v43 = vld [vmem:[%s3285_s9 + $0x48] sm:$0x7] }
  0x48   : > { %v890_v29 = vcombine.low %v882_v10, %v889_v18  ;;  %2799 = vmatpush3.bf16.msra.mxu0 %v2996_v13  ;;  %v738_v8 = vshrl.u32 %v735_v53, 16  ;;  %v741_v9 = vshll.u32 %v735_v53, 16  ;;  %v423_v10 = vsel %vm3336_vm6, %v418_v63, %v422_v38  ;;  %v3018_v38 = vld [vmem:[%s3898_s1 + $0x148] sm:$0xff]   ;;  %v3001_v63 = vld [vmem:[%s3898_s1 + $0x1b0] sm:$0xff]  }
  0x49   : > { %2800 = vmatprep.subr.bf16.mxu0 %v2998_v14  ;;  %v432_v11 = vrot.slane %v431_v1, 2  ;;  %v445_v12 = vor.u32 %v444_v3, %v441_v52  ;;  %v450_v44 = vrot.slane %v448_v46, 7  ;;  %v747_v15 = vshll.u32 %v736_v7, 16  ;;  %v3003_v1 = vld [vmem:[%s3898_s1 + $0x1e8] sm:$0xff]  }
  0x4a   : > { %2212 = vmatprep.mubr.bf16.mxu1 %v890_v29  ;;  %v740_v13 = vrot.slane %v738_v8, 6  ;;  %v743_v14 = vrot.slane %v741_v9, 7  ;;  %v856_v16 = vcombine.low %v409_v48, %v423_v10  ;;  %v982_v20 = vcombine.low %v3289_v49, %v3292_v50  ;;  %v3020_v7 = vld [vmem:[%s3898_s1 + $0x108] sm:$0xff]  }
  0x4b   : > { %v437_v0 = vsel %vm3336_vm6, %v432_v11, %v436_v2  ;;  %v446_v18 = vrot.slane %v445_v12, 2  ;;  %v983_v21 = vcombine.low %v3295_v51, %v3299_v54  ;;  %v772_v22 = vrot.slane %v3357_v60, 7  ;;  %v3012_v60 = vld [vmem:[%s3898_s1 + $0x118] sm:$0xff]   ;;  %v3005_v12 = vld [vmem:[%s3898_s1 + $0x1a8] sm:$0xff]  }
  0x4c   : > { %2801 = vmatpush3.bf16.msra.mxu0 %v3000_v28  ;;  %v744_v23 = vor.u32 %v743_v14, %v740_v13  ;;  %v749_v24 = vrot.slane %v747_v15, 7  ;;  %v1000_v25 = vcombine.low %v423_v10, %v437_v0  ;;  %v768_v27 = vrot.slane %v767_v6, 2 }
  0x4d   : > { %2802 = vmatprep.subr.bf16.mxu0 %v3002_v33  ;;  %v3427_v28 = vsel %vm3336_vm6, %v446_v18, %v450_v44  ;;  %v3433_v29 = vrot.slane %v964_v58, %v3311_v59  ;;  %v3436_v49 = vrot.slane %v965_v61, %v3311_v59  ;;  %v864_v54 = vrot.slane %v856_v16, %v3311_v59  ;;  %v3022_v44 = vld [vmem:[%s3898_s1 + $0x140] sm:$0xff]  }
  0x4e   : > { %v745_v50 = vrot.slane %v744_v23, 2  ;;  %v857_v51 = vcombine.low %v437_v0, %v3427_v28  ;;  %v3450_v58 = vrot.slane %v982_v20, %v3311_v59  ;;  %v3453_v30 = vrot.slane %v983_v21, %v3311_v59  ;;  %v2603_v21 = vld [vmem:[%s3285_s9 + $0x28] sm:$0x7] }
  0x4f   : > { %v980_v31 = vcombine.low %v3433_v29, %v3436_v49  ;;  %v3470_v36 = vsel %vm3336_vm6, %v768_v27, %v772_v22  ;;  %v646_v45 = vrot.slane %v2608_v39, %v3311_v59  ;;  %v3491_v48 = vrot.slane %v1000_v25, %v3311_v59  ;;  %v3024_v27 = vld [vmem:[%s3898_s1 + $0x100] sm:$0xff]   ;;  %v3055_v29 = vld [vmem:[%s3898_s1 + $0x2c8] sm:$0xff]  }
  0x50   : > { %2803 = vmatpush3.bf16.msra.mxu0 %v3004_v57  ;;  %v3459_v32 = vsel %vm3336_vm6, %v745_v50, %v749_v24  ;;  %v871_v33 = vrot.slane %v857_v51, %v3311_v59  ;;  %v998_v46 = vcombine.low %v3450_v58, %v3453_v30  ;;  %v654_v52 = vrot.slane %v3479_v41, %v3311_v59  ;;  %v3025_v58 = vld [vmem:[%s3898_s1 + $0x180] sm:$0xff]   ;;  %v3076_v49 = vld [vmem:[%s3898_s1 + $0x328] sm:$0xff]  }
  0x51   : > { %2804 = vmatprep.subr.bf16.mxu0 %v3006_v5  ;;  %v1001_v40 = vcombine.low %v3427_v28, %v3459_v32  ;;  %v662_v53 = vrot.slane %v3482_v42, %v3311_v59  ;;  %v3499_v57 = vrot.slane %v3485_v43, %v3311_v59  ;;  %v910_v61 = vcombine.low %v2608_v39, %v3479_v41 }
  0x52   : > { %v872_v37 = vcombine.low %v864_v54, %v871_v33  ;;  %v673_v2 = vshrl.u32 %v646_v45, 16  ;;  %v676_v3 = vshll.u32 %v646_v45, 16  ;;  %v911_v5 = vcombine.low %v3482_v42, %v3485_v43  ;;  %v3531_v54 = vld [vmem:[%s3285_s9 + $0x2c] sm:$0x7] }
  0x53   : > { %v647_v6 = vcombine.high %v646_v45, %v646_v45  ;;  %v918_v8 = vrot.slane %v910_v61, %v3311_v59  ;;  %v655_v9 = vcombine.high %v654_v52, %v654_v52  ;;  %v663_v10 = vcombine.high %v662_v53, %v662_v53 }
  0x54   : > { %2805 = vmatpush3.bf16.msra.mxu0 %v3008_v17  ;;  %2213 = vmatmul.mubr.bf16.vlgmr.msra.gmra.mxu1 %v872_v37  ;;  %v687_v11 = vshrl.u32 %v654_v52, 16  ;;  %v675_v13 = vrot.slane %v673_v2, 6  ;;  %v678_v14 = vrot.slane %v676_v3, 7  ;;  %v925_v15 = vrot.slane %v911_v5, %v3311_v59  ;;  %v3007_v17 = vld [vmem:[%s3898_s1 + $0x1e0] sm:$0xff]  }
  0x55   : > { %2806 = vmatprep.subr.bf16.mxu0 %v3010_v19  ;;  %2821 = vmatpush3.bf16.msra.mxu1 %v2997_v55  ;;  %v671_v16 = vcombine.high %v3499_v57, %v3499_v57  ;;  %v682_v0 = vshll.u32 %v647_v6, 16  ;;  %v690_v19 = vshll.u32 %v654_v52, 16  ;;  %v696_v20 = vshll.u32 %v655_v9, 16  ;;  %v3009_v37 = vld [vmem:[%s3898_s1 + $0x1a0] sm:$0xff]  }
  0x56   : > { %2822 = vmatprep.subr.bf16.mxu1 %v2999_v34  ;;  %v689_v18 = vrot.slane %v687_v11, 6  ;;  %v926_v22 = vcombine.low %v918_v8, %v925_v15  ;;  %v679_v23 = vor.u32 %v678_v14, %v675_v13  ;;  %v701_v24 = vshrl.u32 %v662_v53, 16  ;;  %v3013_v11 = vld [vmem:[%s3898_s1 + $0x198] sm:$0xff]   ;;  %v3015_v15 = vld [vmem:[%s3898_s1 + $0x1d0] sm:$0xff]  }
  0x57   : > { %v704_v25 = vshll.u32 %v662_v53, 16  ;;  %v684_v28 = vrot.slane %v682_v0, 7  ;;  %v692_v50 = vrot.slane %v690_v19, 7  ;;  %v710_v51 = vshll.u32 %v663_v10, 16 }
  0x58   : > { %2807 = vmatpush3.bf16.msra.mxu0 %v3012_v60  ;;  %v3534_v60 = vld [vmem:[%s3285_s9 + $0x30] sm:$0x7]  ;;  %v3537_v55 = vrot.slane %v1001_v40, %v3311_v59  ;;  %2253 = vmatprep.mubr.bf16.mxu0 %v926_v22  ;;  %v703_v32 = vrot.slane %v701_v24, 6  ;;  %v715_v34 = vshrl.u32 %v3499_v57, 16  ;;  %v698_v39 = vrot.slane %v696_v20, 7 }
  0x59   : > { %2808 = vmatprep.subr.bf16.mxu0 %v3014_v56  ;;  %2823 = vmatpush3.bf16.msra.mxu1 %v3001_v63  ;;  %v680_v56 = vrot.slane %v679_v23, 2  ;;  %v706_v33 = vrot.slane %v704_v25, 7  ;;  %v718_v40 = vshll.u32 %v3499_v57, 16  ;;  %v724_v45 = vshll.u32 %v671_v16, 16  ;;  %v3554_v57 = vld [vmem:[%s3285_s9 + $0x34] sm:$0x7] }
  0x5a   : > { %2824 = vmatprep.subr.bf16.mxu1 %v3003_v1  ;;  %v712_v53 = vrot.slane %v710_v51, 7  ;;  %v717_v61 = vrot.slane %v715_v34, 6  ;;  %v554_v63 = vrot.slane %v2603_v21, %v3311_v59  ;;  %v3011_v1 = vld [vmem:[%s3898_s1 + $0x1d8] sm:$0xff]   ;;  %v562_v8 = vrot.slane %v3531_v54, %v3311_v59  ;;  %v3017_v23 = vld [vmem:[%s3898_s1 + $0x190] sm:$0xff]  }
  0x5b   : > { %v707_v52 = vor.u32 %v706_v33, %v703_v32  ;;  %v685_v2 = vsel %vm3336_vm6, %v680_v56, %v684_v28  ;;  %v720_v5 = vrot.slane %v718_v40, 7  ;;  %v726_v6 = vrot.slane %v724_v45, 7  ;;  %v3034_v34 = vld [vmem:[%s3898_s1 + $0x270] sm:$0xff]   ;;  %v3019_v40 = vld [vmem:[%s3898_s1 + $0x1c8] sm:$0xff]  }
  0x5c   : > { %2809 = vmatpush3.bf16.msra.mxu0 %v3016_v35  ;;  %v3030_v35 = vld [vmem:[%s3898_s1 + $0x278] sm:$0xff]   ;;  %v570_v9 = vrot.slane %v3534_v60, %v3311_v59  ;;  %v581_v10 = vshrl.u32 %v554_v63, 16  ;;  %v584_v13 = vshll.u32 %v554_v63, 16  ;;  %v892_v14 = vcombine.low %v2603_v21, %v3531_v54 }
  0x5d   : > { %2810 = vmatprep.subr.bf16.mxu0 %v3018_v38  ;;  %v693_v38 = vor.u32 %v692_v50, %v689_v18  ;;  %2825 = vmatpush3.bf16.msra.mxu1 %v3005_v12  ;;  %v893_v18 = vcombine.low %v3534_v60, %v3554_v57  ;;  %v555_v22 = vcombine.high %v554_v63, %v554_v63  ;;  %v3032_v50 = vld [vmem:[%s3898_s1 + $0x238] sm:$0xff]   ;;  %v3036_v63 = vld [vmem:[%s3898_s1 + $0x230] sm:$0xff]  }
  0x5e   : > { %2826 = vmatprep.subr.bf16.mxu1 %v3007_v17  ;;  %v583_v0 = vrot.slane %v581_v10, 6  ;;  %v586_v20 = vrot.slane %v584_v13, 7  ;;  %v900_v21 = vrot.slane %v892_v14, %v3311_v59  ;;  %v578_v25 = vrot.slane %v3554_v57, %v3311_v59 }
  0x5f   : > { %v694_v3 = vrot.slane %v693_v38, 2  ;;  %v563_v28 = vcombine.high %v562_v8, %v562_v8  ;;  %v571_v56 = vcombine.high %v570_v9, %v570_v9  ;;  %v590_v33 = vshll.u32 %v555_v22, 16 }
  0x60   : > { %2811 = vmatpush3.bf16.msra.mxu0 %v3020_v7  ;;  %v708_v7 = vrot.slane %v707_v52, 2  ;;  %v587_v32 = vor.u32 %v586_v20, %v583_v0  ;;  %v595_v38 = vshrl.u32 %v562_v8, 16  ;;  %v579_v45 = vcombine.high %v578_v25, %v578_v25 }
  0x61   : > { %2812 = vmatprep.subr.bf16.mxu0 %v3022_v44  ;;  %v3565_v12 = vsel %vm3336_vm6, %v694_v3, %v698_v39  ;;  %v721_v44 = vor.u32 %v720_v5, %v717_v61  ;;  %2827 = vmatpush3.bf16.msra.mxu1 %v3009_v37  ;;  %v598_v39 = vshll.u32 %v562_v8, 16  ;;  %v609_v61 = vshrl.u32 %v570_v9, 16 }
  0x62   : > { %v3573_v16 = vsel %vm3336_vm6, %v708_v7, %v712_v53  ;;  %v946_v17 = vcombine.low %v685_v2, %v3565_v12  ;;  %2828 = vmatprep.subr.bf16.mxu1 %v3011_v1  ;;  %v588_v52 = vrot.slane %v587_v32, 2  ;;  %v604_v53 = vshll.u32 %v563_v28, 16  ;;  %v3021_v1 = vld [vmem:[%s3898_s1 + $0x188] sm:$0xff]   ;;  %v3042_v32 = vld [vmem:[%s3898_s1 + $0x260] sm:$0xff]  }
  0x63   : > { %v722_v19 = vrot.slane %v721_v44, 2  ;;  %v597_v3 = vrot.slane %v595_v38, 6  ;;  %v600_v5 = vrot.slane %v598_v39, 7  ;;  %v3038_v7 = vld [vmem:[%s3898_s1 + $0x268] sm:$0xff]   ;;  %v592_v8 = vrot.slane %v590_v33, 7  ;;  %v3031_v38 = vld [vmem:[%s3898_s1 + $0x2f8] sm:$0xff]  }
  0x64   : > { %2813 = vmatpush3.bf16.msra.mxu0 %v3024_v27  ;;  %v954_v24 = vrot.slane %v946_v17, %v3311_v59  ;;  %v907_v27 = vrot.slane %v893_v18, %v3311_v59  ;;  %v606_v10 = vrot.slane %v604_v53, 7  ;;  %v618_v44 = vshll.u32 %v571_v56, 16 }
  0x65   : > { %2842 = vmatprep.subr.bf16.mxu0 %v3030_v35  ;;  %v3591_v51 = vsel %vm3336_vm6, %v722_v19, %v726_v6  ;;  %2829 = vmatpush3.bf16.msra.mxu1 %v3013_v11  ;;  %v612_v6 = vshll.u32 %v570_v9, 16  ;;  %v611_v11 = vrot.slane %v609_v61, 6  ;;  %v601_v14 = vor.u32 %v600_v5, %v597_v3  ;;  %v3023_v9 = vld [vmem:[%s3898_s1 + $0x1c0] sm:$0xff]   ;;  %v3050_v3 = vld [vmem:[%s3898_s1 + $0x250] sm:$0xff]   ;;  %v3033_v5 = vld [vmem:[%s3898_s1 + $0x2b8] sm:$0xff]  }
  0x66   : > { %v947_v35 = vcombine.low %v3573_v16, %v3591_v51  ;;  %v908_v37 = vcombine.low %v900_v21, %v907_v27  ;;  %2830 = vmatprep.subr.bf16.mxu1 %v3015_v15  ;;  %v623_v17 = vshrl.u32 %v578_v25, 16  ;;  %v620_v0 = vrot.slane %v618_v44, 7  ;;  %v3037_v44 = vld [vmem:[%s3898_s1 + $0x2b0] sm:$0xff]  }
  0x67   : > { %v614_v15 = vrot.slane %v612_v6, 7  ;;  %v626_v18 = vshll.u32 %v578_v25, 16  ;;  %v632_v19 = vshll.u32 %v579_v45, 16  ;;  %v1016_v20 = vcombine.low %v3491_v48, %v3537_v55  ;;  %v3040_v25 = vld [vmem:[%s3898_s1 + $0x228] sm:$0xff]  }
  0x68   : > { %v961_v2 = vrot.slane %v947_v35, %v3311_v59  ;;  %2254 = vmatmul.mubr.bf16.vlgmr.msra.gmra.mxu0 %v908_v37  ;;  %v602_v30 = vrot.slane %v601_v14, 2  ;;  %v625_v21 = vrot.slane %v623_v17, 6  ;;  %v1054_v22 = vcombine.low %v3479_v41, %v3482_v42  ;;  %v3056_v14 = vld [vmem:[%s3898_s1 + $0x208] sm:$0xff]  }
  0x69   : > { %2843 = vmatpush3.bf16.msra.mxu0 %v3032_v50  ;;  %2335 = vmatprep.mubr.bf16.mxu0 %v998_v46  ;;  %v615_v46 = vor.u32 %v614_v15, %v611_v11  ;;  %v1090_v27 = vcombine.low %v3565_v12, %v3573_v16  ;;  %v1036_v28 = vcombine.low %v3531_v54, %v3534_v60  ;;  %v634_v37 = vrot.slane %v632_v19, 7  ;;  %v3054_v11 = vld [vmem:[%s3898_s1 + $0x248] sm:$0xff]   ;;  %v3058_v15 = vld [vmem:[%s3898_s1 + $0x240] sm:$0xff]  }
  0x6a   : > { %2831 = vmatpush3.bf16.msra.mxu1 %v3017_v23  ;;  %v962_v13 = vcombine.low %v954_v24, %v961_v2  ;;  %2844 = vmatprep.subr.bf16.mxu0 %v3034_v34  ;;  %v593_v23 = vsel %vm3336_vm6, %v588_v52, %v592_v8  ;;  %v628_v24 = vrot.slane %v626_v18, 7  ;;  %v3635_v50 = vsel %vm3336_vm6, %v602_v30, %v606_v10  ;;  %v3035_v8 = vld [vmem:[%s3898_s1 + $0x2f0] sm:$0xff]   ;;  %v3041_v17 = vld [vmem:[%s3898_s1 + $0x2a8] sm:$0xff]   ;;  %v3066_v18 = vld [vmem:[%s3898_s1 + $0x378] sm:$0xff]  }
  0x6b   : > { %2832 = vmatprep.subr.bf16.mxu1 %v3019_v40  ;;  %v616_v56 = vrot.slane %v615_v46, 2  ;;  %v1018_v33 = vcombine.low %v3352_v47, %v3362_v62  ;;  %v1019_v34 = vcombine.low %v3372_v4, %v3470_v36  ;;  %v928_v40 = vcombine.low %v593_v23, %v3635_v50  ;;  %v3044_v47 = vld [vmem:[%s3898_s1 + $0x220] sm:$0xff]   ;;  %v3046_v4 = vld [vmem:[%s3898_s1 + $0x258] sm:$0xff]   ;;  %v3052_v10 = vld [vmem:[%s3898_s1 + $0x210] sm:$0xff]  }
  0x6c   : > { %2294 = vmatprep.mubr.bf16.mxu1 %v962_v13  ;;  %v629_v35 = vor.u32 %v628_v24, %v625_v21  ;;  %v3039_v13 = vld [vmem:[%s3898_s1 + $0x2e8] sm:$0xff]   ;;  %v3045_v19 = vld [vmem:[%s3898_s1 + $0x2a0] sm:$0xff]   ;;  %v3068_v30 = vld [vmem:[%s3898_s1 + $0x338] sm:$0xff]  }
  0x6d   : > { %2845 = vmatpush3.bf16.msra.mxu0 %v3036_v63  ;;  %v3649_v39 = vsel %vm3336_vm6, %v616_v56, %v620_v0  ;;  %v1026_v52 = vrot.slane %v1018_v33, %v3311_v59  ;;  %v1033_v53 = vrot.slane %v1019_v34, %v3311_v59  ;;  %v936_v63 = vrot.slane %v928_v40, %v3311_v59  ;;  %v3060_v0 = vld [vmem:[%s3898_s1 + $0x200] sm:$0xff]   ;;  %v3070_v46 = vld [vmem:[%s3898_s1 + $0x370] sm:$0xff]   ;;  %v3049_v21 = vld [vmem:[%s3898_s1 + $0x298] sm:$0xff]  }
  0x6e   : > { %2833 = vmatpush3.bf16.msra.mxu1 %v3021_v1  ;;  %2846 = vmatprep.subr.bf16.mxu0 %v3038_v7  ;;  %v630_v45 = vrot.slane %v629_v35, 2  ;;  %v1072_v62 = vcombine.low %v3635_v50, %v3649_v39  ;;  %v3048_v1 = vld [vmem:[%s3898_s1 + $0x218] sm:$0xff]   ;;  %v3051_v23 = vld [vmem:[%s3898_s1 + $0x2d0] sm:$0xff]   ;;  %v3059_v33 = vld [vmem:[%s3898_s1 + $0x2c0] sm:$0xff]  }
  0x6f   : > { %2834 = vmatprep.subr.bf16.mxu1 %v3023_v9  ;;  %v1034_v6 = vcombine.low %v1026_v52, %v1033_v53  ;;  %v3043_v9 = vld [vmem:[%s3898_s1 + $0x2e0] sm:$0xff]   ;;  %v3072_v24 = vld [vmem:[%s3898_s1 + $0x330] sm:$0xff]   ;;  %v3082_v35 = vld [vmem:[%s3898_s1 + $0x358] sm:$0xff]  }
  0x70   : > { %v3662_v36 = vsel %vm3336_vm6, %v630_v45, %v634_v37  ;;  %v3053_v56 = vld [vmem:[%s3898_s1 + $0x290] sm:$0xff]   ;;  %v3080_v34 = vld [vmem:[%s3898_s1 + $0x320] sm:$0xff]   ;;  %v3084_v40 = vld [vmem:[%s3898_s1 + $0x318] sm:$0xff]  }
  0x71   : > { %2847 = vmatpush3.bf16.msra.mxu0 %v3040_v25  ;;  %v929_v61 = vcombine.low %v3649_v39, %v3662_v36  ;;  %v3074_v25 = vld [vmem:[%s3898_s1 + $0x368] sm:$0xff]   ;;  %v3061_v37 = vld [vmem:[%s3898_s1 + $0x280] sm:$0xff]   ;;  %v3086_v45 = vld [vmem:[%s3898_s1 + $0x350] sm:$0xff]  }
  0x72   : > { %2835 = vmatpush3.bf16.msra.mxu1 %v3025_v58  ;;  %2848 = vmatprep.subr.bf16.mxu0 %v3042_v32  ;;  %v3047_v58 = vld [vmem:[%s3898_s1 + $0x2d8] sm:$0xff]   ;;  %v3057_v32 = vld [vmem:[%s3898_s1 + $0x288] sm:$0xff]   ;;  %v3088_v52 = vld [vmem:[%s3898_s1 + $0x310] sm:$0xff]  }
  0x73   : > { %2864 = vmatprep.subr.bf16.mxu1 %v3031_v38  ;;  %v943_v2 = vrot.slane %v929_v61, %v3311_v59  ;;  %v3067_v38 = vld [vmem:[%s3898_s1 + $0x3f8] sm:$0xff]   ;;  %v3090_v53 = vld [vmem:[%s3898_s1 + $0x348] sm:$0xff]   ;;  %v3073_v61 = vld [vmem:[%s3898_s1 + $0x3b0] sm:$0xff]  }
  0x74   : > { %v3092_v48 = vld [vmem:[%s3898_s1 + $0x308] sm:$0xff]   ;;  %v3095_v39 = vld [vmem:[%s3898_s1 + $0x3c0] sm:$0xff]  }
  0x75   : > { %2849 = vmatpush3.bf16.msra.mxu0 %v3044_v47  ;;  %v944_v7 = vcombine.low %v936_v63, %v943_v2  ;;  %v3069_v47 = vld [vmem:[%s3898_s1 + $0x3b8] sm:$0xff]   ;;  %v3075_v63 = vld [vmem:[%s3898_s1 + $0x3e8] sm:$0xff]   ;;  %v1062_v2 = vrot.slane %v1054_v22, %v3311_v59 }
  0x76   : > { %2850 = vmatprep.subr.bf16.mxu0 %v3046_v4  ;;  %v3071_v4 = vld [vmem:[%s3898_s1 + $0x3f0] sm:$0xff]   ;;  %v3077_v41 = vld [vmem:[%s3898_s1 + $0x3a8] sm:$0xff]  }
  0x77   : > { %2295 = vmatmul.mubr.bf16.vlgmr.msra.gmra.mxu1 %v944_v7  ;;  %v3093_v50 = vld [vmem:[%s3898_s1 + $0x388] sm:$0xff]  }
  0x78   : > { %2865 = vmatpush3.bf16.msra.mxu1 %v3033_v5  ;;  %2376 = vmatprep.mubr.bf16.mxu1 %v1034_v6  ;;  %v3094_v5 = vld [vmem:[%s3898_s1 + $0x340] sm:$0xff]  }
  0x79   : > { %2851 = vmatpush3.bf16.msra.mxu0 %v3048_v1  ;;  %2866 = vmatprep.subr.bf16.mxu1 %v3035_v8  ;;  %v2612_v1 = vld [vmem:[%s3285_s9 + $0x4c] sm:$0x7] }
  0x7a   : > { %2852 = vmatprep.subr.bf16.mxu0 %v3050_v3  ;;  %v804_v55 = vrot.slane %v2612_v1, %v3311_v59  ;;  %v2607_v3 = vld [vmem:[%s3285_s9 + $0x38] sm:$0x7] }
  0x7b   : > { %v781_v6 = vrot.slane %v2607_v3, %v3311_v59  ;;  %v1037_v7 = vcombine.low %v3554_v57, %v2607_v3  ;;  %v3079_v57 = vld [vmem:[%s3898_s1 + $0x3e0] sm:$0xff]  }
  0x7c   : > { %2867 = vmatpush3.bf16.msra.mxu1 %v3037_v44  ;;  %v807_v42 = vshrl.u32 %v804_v55, 16  ;;  %v810_v22 = vshll.u32 %v804_v55, 16 }
  0x7d   : > { %2853 = vmatpush3.bf16.msra.mxu0 %v3052_v10  ;;  %2868 = vmatprep.subr.bf16.mxu1 %v3039_v13  ;;  %v805_v10 = vcombine.high %v804_v55, %v804_v55  ;;  %v787_v44 = vshll.u32 %v781_v6, 16  ;;  %v1051_v54 = vrot.slane %v1037_v7, %v3311_v59  ;;  %v782_v60 = vcombine.high %v781_v6, %v781_v6 }
  0x7e   : > { %2854 = vmatprep.subr.bf16.mxu0 %v3054_v11  ;;  %v784_v11 = vshrl.u32 %v781_v6, 16  ;;  %v809_v13 = vrot.slane %v807_v42, 6 }
  0x80   : > { %2869 = vmatpush3.bf16.msra.mxu1 %v3041_v17  ;;  %v816_v17 = vshll.u32 %v805_v10, 16 }
  0x81   : > { %2855 = vmatpush3.bf16.msra.mxu0 %v3056_v14  ;;  %2870 = vmatprep.subr.bf16.mxu1 %v3043_v9  ;;  %v812_v14 = vrot.slane %v810_v22, 7  ;;  %v786_v9 = vrot.slane %v784_v11, 6 }
  0x82   : > { %2856 = vmatprep.subr.bf16.mxu0 %v3058_v15 }
  0x84   : > { %2871 = vmatpush3.bf16.msra.mxu1 %v3045_v19  ;;  %v793_v19 = vshll.u32 %v782_v60, 16 }
  0x85   : > { %2857 = vmatpush3.bf16.msra.mxu0 %v3060_v0  ;;  %2872 = vmatprep.subr.bf16.mxu1 %v3047_v58  ;;  %v789_v0 = vrot.slane %v787_v44, 7  ;;  %v3081_v58 = vld [vmem:[%s3898_s1 + $0x3a0] sm:$0xff]  }
  0x86   : > { %2886 = vmatprep.subr.bf16.mxu0 %v3066_v18 }
  0x88   : > { %2336 = vmatmul.mubr.bf16.vlgmr.msra.gmra.mxu0 %v980_v31  ;;  %2873 = vmatpush3.bf16.msra.mxu1 %v3049_v21  ;;  %v3078_v31 = vld [vmem:[%s3898_s1 + $0x360] sm:$0xff]   ;;  %v3083_v21 = vld [vmem:[%s3898_s1 + $0x3d8] sm:$0xff]  }
  0x89   : > { %2887 = vmatpush3.bf16.msra.mxu0 %v3068_v30  ;;  %2874 = vmatprep.subr.bf16.mxu1 %v3051_v23  ;;  %v813_v30 = vor.u32 %v812_v14, %v809_v13  ;;  %v790_v23 = vor.u32 %v789_v0, %v786_v9 }
  0x8a   : > { %2888 = vmatprep.subr.bf16.mxu0 %v3070_v46  ;;  %v818_v46 = vrot.slane %v816_v17, 7 }
  0x8c   : > { %2875 = vmatpush3.bf16.msra.mxu1 %v3053_v56  ;;  %v791_v56 = vrot.slane %v790_v23, 2 }
  0x8d   : > { %2889 = vmatpush3.bf16.msra.mxu0 %v3072_v24  ;;  %2876 = vmatprep.subr.bf16.mxu1 %v3055_v29  ;;  %v795_v24 = vrot.slane %v793_v19, 7  ;;  %v3085_v29 = vld [vmem:[%s3898_s1 + $0x398] sm:$0xff]  }
  0x8e   : > { %2890 = vmatprep.subr.bf16.mxu0 %v3074_v25  ;;  %v814_v25 = vrot.slane %v813_v30, 2 }
  0x90   : > { %2877 = vmatpush3.bf16.msra.mxu1 %v3057_v32 }
  0x91   : > { %2891 = vmatpush3.bf16.msra.mxu0 %v3076_v49  ;;  %2878 = vmatprep.subr.bf16.mxu1 %v3059_v33  ;;  %v819_v49 = vsel %vm3336_vm6, %v814_v25, %v818_v46  ;;  %v1098_v33 = vrot.slane %v1090_v27, %v3311_v59 }
  0x92   : > { %2892 = vmatprep.subr.bf16.mxu0 %v3078_v31  ;;  %v3087_v31 = vld [vmem:[%s3898_s1 + $0x3d0] sm:$0xff]   ;;  %v1091_v32 = vcombine.low %v3591_v51, %v819_v49 }
  0x93   : > { %v3089_v51 = vld [vmem:[%s3898_s1 + $0x390] sm:$0xff]  }
  0x94   : > { %2879 = vmatpush3.bf16.msra.mxu1 %v3061_v37  ;;  %v1080_v37 = vrot.slane %v1072_v62, %v3311_v59 }
  0x95   : > { %2893 = vmatpush3.bf16.msra.mxu0 %v3080_v34  ;;  %2908 = vmatprep.subr.bf16.mxu1 %v3067_v38  ;;  %v796_v34 = vsel %vm3336_vm6, %v791_v56, %v795_v24  ;;  %v1105_v38 = vrot.slane %v1091_v32, %v3311_v59 }
  0x96   : > { %2894 = vmatprep.subr.bf16.mxu0 %v3082_v35  ;;  %v1073_v35 = vcombine.low %v3662_v36, %v796_v34 }
  0x97   : > { %2377 = vmatmul.mubr.bf16.vlgmr.msra.gmra.mxu1 %v1016_v20  ;;  %v1055_v20 = vcombine.low %v3485_v43, %v2612_v1  ;;  %v1044_v43 = vrot.slane %v1036_v28, %v3311_v59  ;;  %v3096_v28 = vld [vmem:[%s3898_s1 + $0x300] sm:$0xff]   ;;  %v1106_v16 = vcombine.low %v1098_v33, %v1105_v38 }
  0x98   : > { %2909 = vmatpush3.bf16.msra.mxu1 %v3069_v47  ;;  %v1087_v12 = vrot.slane %v1073_v35, %v3311_v59 }
  0x99   : > { %2895 = vmatpush3.bf16.msra.mxu0 %v3084_v40  ;;  %2910 = vmatprep.subr.bf16.mxu1 %v3071_v4  ;;  %v1069_v8 = vrot.slane %v1055_v20, %v3311_v59  ;;  %v1052_v18 = vcombine.low %v1044_v43, %v1051_v54  ;;  %v3097_v59 = vld [vmem:[%s3898_s1 + $0x380] sm:$0xff]  }
  0x9a   : > { %2896 = vmatprep.subr.bf16.mxu0 %v3086_v45  ;;  %v1088_v27 = vcombine.low %v1080_v37, %v1087_v12  ;;  %2458 = vmatprep.mubr.bf16.mxu1 %v1106_v16 }
  0x9b   : > { %v1070_v15 = vcombine.low %v1062_v2, %v1069_v8 }
  0x9c   : > { %2911 = vmatpush3.bf16.msra.mxu1 %v3073_v61 }
  0x9d   : > { %2897 = vmatpush3.bf16.msra.mxu0 %v3088_v52  ;;  %2912 = vmatprep.subr.bf16.mxu1 %v3075_v63 }
  0x9e   : > { %2898 = vmatprep.subr.bf16.mxu0 %v3090_v53  ;;  %2417 = vmatprep.mubr.bf16.mxu0 %v1070_v15 }
  0xa0   : > { %2913 = vmatpush3.bf16.msra.mxu1 %v3077_v41  ;;  %v2613_v41 = vld [vmem:[%s3899_s2] ss:$0 sm:$0xff] }
  0xa1   : > { %2899 = vmatpush3.bf16.msra.mxu0 %v3092_v48  ;;  %2914 = vmatprep.subr.bf16.mxu1 %v3079_v57 }
  0xa2   : > { %2900 = vmatprep.subr.bf16.mxu0 %v3094_v5 }
  0xa4   : > { %2915 = vmatpush3.bf16.msra.mxu1 %v3081_v58 }
  0xa5   : > { %2901 = vmatpush3.bf16.msra.mxu0 %v3096_v28  ;;  %2916 = vmatprep.subr.bf16.mxu1 %v3083_v21 }
  0xa8   : > { %2418 = vmatmul.mubr.bf16.vlgmr.msra.gmra.mxu0 %v1052_v18  ;;  %2917 = vmatpush3.bf16.msra.mxu1 %v3085_v29 }
  0xa9   : > { %2918 = vmatprep.subr.bf16.mxu1 %v3087_v31 }
  0xac   : > { %2919 = vmatpush3.bf16.msra.mxu1 %v3089_v51 }
  0xad   : > { %2920 = vmatprep.subr.bf16.mxu1 %v3091_v26 }
  0xb0   : > { %2921 = vmatpush3.bf16.msra.mxu1 %v3093_v50 }
  0xb1   : > { %2922 = vmatprep.subr.bf16.mxu1 %v3095_v39 }
  0xb4   : > { %2923 = vmatpush3.bf16.msra.mxu1 %v3097_v59 }
  0xb7   : > { %2459 = vmatmul.mubr.bf16.vlgmr.msra.gmra.mxu1 %v1088_v27 }
 0x107   : > { %v2770_v62 = vpop.f32.mrf.mxu0 }
 0x109   : > { %v2771_v36 = vpop.f32.mrf.mxu0 }
 0x10a   : > { %v2772_v7 = vadd.f32 %v2771_v36, %v2770_v62 }
 0x10b   : > { %v2773_v40 = vpop.f32.mrf.mxu0 }
 0x10c   : > { %v2174_v57 = vadd.f32 %v2772_v7, %v2613_v41 }
 0x10d   : > { %v2774_v45 = vpop.f32.mrf.mxu0 }
 0x10e   : > { %v2775_v43 = vadd.f32 %v2774_v45, %v2773_v40 }
 0x110   : > { %v2177_v44 = vadd.f32 %v2775_v43, %v2613_v41 }
 0x114   : > { %v2792_v47 = vpop.f32.mrf.mxu1 }
 0x116   : > { %v2793_v52 = vpop.f32.mrf.mxu1 }
 0x117   : > { %v2794_v11 = vadd.f32 %v2793_v52, %v2792_v47 }
 0x118   : > { %v2795_v61 = vpop.f32.mrf.mxu1 }
 0x119   : > { %v2215_v15 = vadd.f32 %v2794_v11, %v2174_v57 }
 0x11a   : > { %v2796_v1 = vpop.f32.mrf.mxu1 }
 0x11b   : > { %v2797_v54 = vadd.f32 %v2796_v1, %v2795_v61 }
 0x11d   : > { %v2218_v17 = vadd.f32 %v2797_v54, %v2177_v44 }
 0x128   : > { %v2814_v4 = vpop.f32.mrf.mxu0 }
 0x12a   : > { %v2815_v53 = vpop.f32.mrf.mxu0 }
 0x12b   : > { %v2816_v60 = vadd.f32 %v2815_v53, %v2814_v4 }
 0x12c   : > { %v2817_v63 = vpop.f32.mrf.mxu0 }
 0x12d   : > { %v2256_v9 = vadd.f32 %v2816_v60, %v2215_v15 }
 0x12e   : > { %v2818_v48 = vpop.f32.mrf.mxu0 }
 0x12f   : > { %v2819_v28 = vadd.f32 %v2818_v48, %v2817_v63 }
 0x131   : > { %v2259_v18 = vadd.f32 %v2819_v28, %v2218_v17 }
 0x137   : > { %v2836_v55 = vpop.f32.mrf.mxu1 }
 0x139   : > { %v2837_v2 = vpop.f32.mrf.mxu1 }
 0x13a   : > { %v2838_v0 = vadd.f32 %v2837_v2, %v2836_v55 }
 0x13b   : > { %v2839_v5 = vpop.f32.mrf.mxu1 }
 0x13c   : > { %v2297_v23 = vadd.f32 %v2838_v0, %v2256_v9 }
 0x13d   : > { %v2840_v42 = vpop.f32.mrf.mxu1 }
 0x13e   : > { %v2841_v30 = vadd.f32 %v2840_v42, %v2839_v5 }
 0x140   : > { %v2300_v24 = vadd.f32 %v2841_v30, %v2259_v18 }
 0x148   : > { %v2858_v20 = vpop.f32.mrf.mxu0 }
 0x14a   : > { %v2859_v3 = vpop.f32.mrf.mxu0 }
 0x14b   : > { %v2860_v46 = vadd.f32 %v2859_v3, %v2858_v20 }
 0x14c   : > { %v2861_v6 = vpop.f32.mrf.mxu0 }
 0x14d   : > { %v2338_v29 = vadd.f32 %v2860_v46, %v2297_v23 }
 0x14e   : > { %v2862_v22 = vpop.f32.mrf.mxu0 }
 0x14f   : > { %v2863_v21 = vadd.f32 %v2862_v22, %v2861_v6 }
 0x151   : > { %v2341_v31 = vadd.f32 %v2863_v21, %v2300_v24 }
 0x157   : > { %v2880_v8 = vpop.f32.mrf.mxu1 }
 0x159   : > { %v2881_v13 = vpop.f32.mrf.mxu1 }
 0x15a   : > { %v2882_v49 = vadd.f32 %v2881_v13, %v2880_v8 }
 0x15b   : > { %v2883_v19 = vpop.f32.mrf.mxu1 }
 0x15c   : > { %v2379_v38 = vadd.f32 %v2882_v49, %v2338_v29 }
 0x15d   : > { %v2884_v25 = vpop.f32.mrf.mxu1 }
 0x15e   : > { %v2885_v33 = vadd.f32 %v2884_v25, %v2883_v19 }
 0x160   : > { %v2382_v51 = vadd.f32 %v2885_v33, %v2341_v31 }
 0x168   : > { %v2902_v10 = vpop.f32.mrf.mxu0 }
 0x16a   : > { %v2903_v14 = vpop.f32.mrf.mxu0 }
 0x16b   : > { %v2904_v34 = vadd.f32 %v2903_v14, %v2902_v10 }
 0x16c   : > { %v2905_v58 = vpop.f32.mrf.mxu0 }
 0x16d   : > { %v2420_v26 = vadd.f32 %v2904_v34, %v2379_v38 }
 0x16e   : > { %v2906_v56 = vpop.f32.mrf.mxu0 }
 0x16f   : > { %v2907_v35 = vadd.f32 %v2906_v56, %v2905_v58 }
 0x171   : > { %v2423_v16 = vadd.f32 %v2907_v35, %v2382_v51 }
 0x177   : > { %v2924_v32 = vpop.f32.mrf.mxu1 }
 0x179   : > { %v2925_v37 = vpop.f32.mrf.mxu1 }
 0x17a   : > { %v2926_v50 = vadd.f32 %v2925_v37, %v2924_v32 }
 0x17b   : > { %v2927_v12 = vpop.f32.mrf.mxu1 }
 0x17c   : > { %v2461_v59 = vadd.f32 %v2926_v50, %v2420_v26 }
 0x17d   : > { %v2928_v27 = vpop.f32.mrf.mxu1 }
 0x17e   : > { %v2929_v39 = vadd.f32 %v2928_v27, %v2927_v12 }
 0x180   : > { %v2464_v62 = vadd.f32 %v2929_v39, %v2423_v16 }
 0x182   : > { %v2467_v36 = vpack.c.bf16 %v2464_v62, %v2461_v59 }
 0x184   : > { %2753 = vst [vmem:[%s324_s30] sm:$0xff] %v2467_v36   ;;  %v2477_v40 = vunpack.c.l.bf16 %v2467_v36  ;;  %v2478_v45 = vunpack.c.h.bf16 %v2467_v36 }
 0x186   : > { %v2479_v47 = vadd.f32 %v2478_v45, %v2477_v40  ;;  %v2487_v4 = vmul.f32 %v2477_v40, %v2477_v40  ;;  %v2488_v52 = vmul.f32 %v2478_v45, %v2478_v45 }
 0x188   : > { %v2480_v53 = vrot.slane %v2479_v47, 4  ;;  %v2489_v61 = vadd.f32 %v2488_v52, %v2487_v4 }
 0x18a   : > { %v2481_v63 = vadd.f32 %v2480_v53, %v2479_v47  ;;  %v2490_v1 = vrot.slane %v2489_v61, 4 }
 0x18c   : > { %v2482_v48 = vrot.slane %v2481_v63, 2  ;;  %v2491_v55 = vadd.f32 %v2490_v1, %v2489_v61 }
 0x18e   : > { %v2483_v20 = vadd.f32 %v2482_v48, %v2481_v63  ;;  %v2492_v2 = vrot.slane %v2491_v55, 2 }
 0x190   : > { %v2484_v3 = vrot.slane %v2483_v20, 1  ;;  %v2493_v5 = vadd.f32 %v2492_v2, %v2491_v55 }
 0x192   : > { %v2485_v6 = vadd.f32 %v2484_v3, %v2483_v20  ;;  %v2494_v7 = vrot.slane %v2493_v5, 1 }
 0x194   : > { %2486 = vst [vmem:[%s328_s7] sm:$0x1] %v2485_v6  ;;  %v2495_v43 = vadd.f32 %v2494_v7, %v2493_v5 }
 0x196   : > { %2496 = vst [vmem:[%s328_s7 + $0x1] sm:$0x1] %v2495_v43 }
 0x197 PF: > { %p12_p9 = scmp.ge.s32.totalorder %s3169_s19, 4   ;;  %s3904_s15 = smov %s3120_s16 }
 0x198   : > { %s3905_s16 = smov %s3178_s22  ;;  %s3906_s17 = smov %s3169_s19 }
 0x199   :  { %14 = sbr.rel (!%p12_p9) target bundleno = 2 (0x2), region = 123 }

// kernel: discriminator_forward.6
= control target key start
LH: loop header
LB: loop body
LE: loop exit
PB: predicated region body
PF: predicated region fallthrough
CT: control target
= control target key end

     0   :  { %s3983_s21 = smov 0   ;;  %s3985_s22 = smov 0   ;;  %s5108_s0 = inlined_call_operand.vmem [shape: bf16[4,2,3,3,128], index: 0, kind: input, shape index: {}]   ;;  %s5109_s1 = inlined_call_operand.vmem [shape: bf16[2048,256], index: 1, kind: input, shape index: {}]   ;;  %s5110_s2 = inlined_call_operand.vmem [shape: f32[1,256], index: 2, kind: input, shape index: {}]   ;;  %s5111_s3 = inlined_call_operand.vmem [shape: f32[1,128], index: 3, kind: input, shape index: {}]   ;;  %s5112_s4 = inlined_call_operand.vmem [shape: f32[1,128], index: 4, kind: input, shape index: {}]   ;;  %s5113_s5 = inlined_call_operand.vmem [shape: bf16[2,4,256], index: 5, kind: output, shape index: {0}]   ;;  %s5114_s6 = inlined_call_operand.vmem [shape: f32[2,2,256], index: 6, kind: output, shape index: {1}]  }
   0x1   :  { %s3987_s23 = smov 0  }
   0x2 LB: > { %s3209_s24 = sadd.s32 4294967295, %s3944_s23   ;;  %s4000_s25 = sadd.s32 1, %s3944_s23   ;;  %s3944_s23 = sphi %s3987_s23, %s5127_s23   ;;  %s3940_s22 = sphi %s3985_s22, %s5126_s22   ;;  %s3936_s21 = sphi %s3983_s21, %s5125_s21  }
   0x3   : > { %s21_s26 = ssub.s32 %s3944_s23, %s4000_s25  ;;  %s24_s27 = sadd.s32 1, %s3940_s22 }
   0x4   : > { %p22_p0 = scmp.eq.s32.totalorder %s21_s26, 0  ;;  %p31_p1 = scmp.ne.s32.totalorder %s3940_s22, %s3936_s21 }
   0x5   : > { %p32_p2 = scmp.eq.s32.totalorder %s3944_s23, 0  ;;  %p3212_p4 = scmp.ge.s32.totalorder %s3944_s23, 2 }
   0x6   : > { %s4009_s28 = scalar_select %p22_p0, %s3940_s22, %s24_s27  }
   0x7   : > { %p33_p3 = por %p32_p2, %p31_p1  ;;  %205 = sbr.rel (%p3212_p4) target bundleno = 22 (0x16), region = 32 }
   0xc   : > { %208 = sbr.rel (!%p33_p3) target bundleno = 22 (0x16), region = 36  ;;  %s210_s29 = sand.u32 (%p33_p3), 1, %s3940_s22  }
   0xd   : > { %s3510_s30 = smul.u32 (%p33_p3), 6, %s3944_s23 }
   0xe   : > { %s3509_s7 = smul.u32 (%p33_p3), 24, %s210_s29 }
   0xf   : > { %s215_s10 = scalar_lea.vmem (%p33_p3), %s5108_s0, %s3510_s30 }
  0x10   : > { %v232_v0 = vld [vmem:[%s215_s10] sm:$0xf] (%p33_p3)   ;;  %v236_v1 = vld [vmem:[%s215_s10 + $0x4] sm:$0x3] (%p33_p3)  ;;  %s212_s11 = scalar_lea.vmem (%p33_p3), [#allocation2], %s3509_s7 }
  0x11   : > { %233 = vst [vmem:[%s212_s11] sm:$0xf] %v232_v0   ;;  %237 = vst [vmem:[%s212_s11 + $0x4] sm:$0x3] %v236_v1  ;;  %v238_v2 = vld [vmem:[%s215_s10 + $0xc] sm:$0xf]  }
  0x12   : > { %v242_v3 = vld [vmem:[%s215_s10 + $0x10] sm:$0x3]  ;;  %v244_v4 = vld [vmem:[%s215_s10 + $0x18] sm:$0xf]   ;;  %239 = vst [vmem:[%s212_s11 + $0x6] sm:$0xf] %v238_v2  }
  0x13   : > { %243 = vst [vmem:[%s212_s11 + $0xa] sm:$0x3] %v242_v3  ;;  %245 = vst [vmem:[%s212_s11 + $0xc] sm:$0xf] %v244_v4   ;;  %v248_v5 = vld [vmem:[%s215_s10 + $0x1c] sm:$0x3] }
  0x14   : > { %v250_v6 = vld [vmem:[%s215_s10 + $0x24] sm:$0xf]   ;;  %v254_v7 = vld [vmem:[%s215_s10 + $0x28] sm:$0x3]  ;;  %249 = vst [vmem:[%s212_s11 + $0x10] sm:$0x3] %v248_v5 }
  0x15   : > { %251 = vst [vmem:[%s212_s11 + $0x12] sm:$0xf] %v250_v6   ;;  %255 = vst [vmem:[%s212_s11 + $0x16] sm:$0x3] %v254_v7 }
  0x16 PF: > { %p3214_p5 = scmp.ge.s32.totalorder %s3944_s23, 1  ;;  %p302_p6 = scmp.lt.s32.totalorder %s3944_s23, 3 }
  0x18   : > { %p303_p7 = pnand %p3214_p5, %p302_p6 }
  0x19   : > { %s309_s12 = sand.u32 (!%p303_p7), 1, %s3936_s21   ;;  %p343_p8 = scmp.lt.s32.totalorder (!%p303_p7), %s3209_s24, 1 }
  0x1a   : > { %306 = sbr.rel (%p303_p7) target bundleno = 513 (0x201), region = 77 }
  0x1b   : > { %s4140_s17 = smul.u32 (!%p303_p7), 24, %s309_s12 }
  0x1d   : > { %s4198_s9 = scalar_lea.vmem (!%p303_p7), [#allocation2], %s4140_s17 }
  0x1f   : > { %v3538_v8 = vld [vmem:[%s5109_s1 + $0x74] ss:$8 sps:$4 sm:$0xff]   ;;  %v3542_v10 = vld [vmem:[%s5109_s1 + $0x70] ss:$8 sps:$4 sm:$0xff]   ;;  %v3544_v12 = vld [vmem:[%s5109_s1 + $0x64] ss:$8 sps:$4 sm:$0xff]   ;;  %v388_v40 = vlaneseq }
  0x20   : > { %v3540_v9 = vld [vmem:[%s5109_s1 + $0x174] ss:$8 sps:$4 sm:$0xff]   ;;  %2697 = vmatprep.subr.bf16.mxu0 %v3538_v8  ;;  %v3543_v11 = vld [vmem:[%s5109_s1 + $0x170] ss:$8 sps:$4 sm:$0xff]   ;;  %v3546_v13 = vld [vmem:[%s5109_s1 + $0x164] ss:$8 sps:$4 sm:$0xff]  }
  0x21   : > { %2738 = vmatprep.subr.bf16.mxu1 %v3540_v9  ;;  %2698 = vmatpush1.bf16.msra.mxu0 %v3542_v10  ;;  %v3548_v14 = vld [vmem:[%s5109_s1 + $0x60] ss:$8 sps:$4 sm:$0xff]   ;;  %v3550_v16 = vld [vmem:[%s5109_s1 + $0x54] ss:$8 sps:$4 sm:$0xff]   ;;  %v3554_v18 = vld [vmem:[%s5109_s1 + $0x50] ss:$8 sps:$4 sm:$0xff]  }
  0x22   : > { %2739 = vmatpush1.bf16.msra.mxu1 %v3543_v11  ;;  %2699 = vmatprep.subr.bf16.mxu0 %v3544_v12  ;;  %v3549_v15 = vld [vmem:[%s5109_s1 + $0x160] ss:$8 sps:$4 sm:$0xff]   ;;  %v3552_v17 = vld [vmem:[%s5109_s1 + $0x154] ss:$8 sps:$4 sm:$0xff]   ;;  %v3555_v19 = vld [vmem:[%s5109_s1 + $0x150] ss:$8 sps:$4 sm:$0xff]  }
  0x23   : > { %2740 = vmatprep.subr.bf16.mxu1 %v3546_v13  ;;  %v3556_v20 = vld [vmem:[%s5109_s1 + $0x44] ss:$8 sps:$4 sm:$0xff]   ;;  %v3560_v22 = vld [vmem:[%s5109_s1 + $0x40] ss:$8 sps:$4 sm:$0xff]   ;;  %v3562_v24 = vld [vmem:[%s5109_s1 + $0x34] ss:$8 sps:$4 sm:$0xff]  }
  0x24   : > { %v3558_v21 = vld [vmem:[%s5109_s1 + $0x144] ss:$8 sps:$4 sm:$0xff]   ;;  %v3561_v23 = vld [vmem:[%s5109_s1 + $0x140] ss:$8 sps:$4 sm:$0xff]   ;;  %v3564_v25 = vld [vmem:[%s5109_s1 + $0x134] ss:$8 sps:$4 sm:$0xff]  }
  0x25   : > { %2700 = vmatpush1.bf16.msra.mxu0 %v3548_v14  ;;  %v3566_v26 = vld [vmem:[%s5109_s1 + $0x30] ss:$8 sps:$4 sm:$0xff]   ;;  %v3568_v28 = vld [vmem:[%s5109_s1 + $0x24] ss:$8 sps:$4 sm:$0xff]   ;;  %v3572_v30 = vld [vmem:[%s5109_s1 + $0x20] ss:$8 sps:$4 sm:$0xff]  }
  0x26   : > { %2741 = vmatpush1.bf16.msra.mxu1 %v3549_v15  ;;  %2701 = vmatprep.subr.bf16.mxu0 %v3550_v16  ;;  %v3567_v27 = vld [vmem:[%s5109_s1 + $0x130] ss:$8 sps:$4 sm:$0xff]   ;;  %v3570_v29 = vld [vmem:[%s5109_s1 + $0x124] ss:$8 sps:$4 sm:$0xff]   ;;  %v3573_v31 = vld [vmem:[%s5109_s1 + $0x120] ss:$8 sps:$4 sm:$0xff]  }
  0x27   : > { %2742 = vmatprep.subr.bf16.mxu1 %v3552_v17  ;;  %v3574_v32 = vld [vmem:[%s5109_s1 + $0x14] ss:$8 sps:$4 sm:$0xff]   ;;  %v3578_v34 = vld [vmem:[%s5109_s1 + $0x10] ss:$8 sps:$4 sm:$0xff]   ;;  %v3580_v36 = vld [vmem:[%s5109_s1 + $0x4] ss:$8 sps:$4 sm:$0xff]  }
  0x28   : > { %v3576_v33 = vld [vmem:[%s5109_s1 + $0x114] ss:$8 sps:$4 sm:$0xff]   ;;  %v3579_v35 = vld [vmem:[%s5109_s1 + $0x110] ss:$8 sps:$4 sm:$0xff]   ;;  %v3582_v37 = vld [vmem:[%s5109_s1 + $0x104] ss:$8 sps:$4 sm:$0xff]  }
  0x29   : > { %2702 = vmatpush1.bf16.msra.mxu0 %v3554_v18  ;;  %v3946_v38 = vmov 1966171168   ;;  %v3584_v41 = vld [vmem:[%s5109_s1] ss:$8 sps:$4 sm:$0xff]   ;;  %v3586_v43 = vld [vmem:[%s5109_s1 + $0xf4] ss:$8 sps:$4 sm:$0xff]  }
  0x2a   : > { %2743 = vmatpush1.bf16.msra.mxu1 %v3555_v19  ;;  %2703 = vmatprep.subr.bf16.mxu0 %v3556_v20  ;;  %v497_v39 = vunpack.c.l.s4 %v3946_v38  ;;  %v3585_v42 = vld [vmem:[%s5109_s1 + $0x100] ss:$8 sps:$4 sm:$0xff]   ;;  %v3588_v44 = vld [vmem:[%s5109_s1 + $0x1f4] ss:$8 sps:$4 sm:$0xff]   ;;  %v4122_v46 = vshrl.u32 %v388_v40, 7  ;;  %v3947_v57 = vmov 0.0|0.0  }
  0x2b   : > { %2744 = vmatprep.subr.bf16.mxu1 %v3558_v21  ;;  %v3590_v47 = vld [vmem:[%s5109_s1 + $0xf0] ss:$8 sps:$4 sm:$0xff]   ;;  %v3592_v49 = vld [vmem:[%s5109_s1 + $0xe4] ss:$8 sps:$4 sm:$0xff]   ;;  %v3596_v53 = vld [vmem:[%s5109_s1 + $0xe0] ss:$8 sps:$4 sm:$0xff]  }
  0x2c   : > { %v498_v45 = vunpack.c.0.s8 %v497_v39  ;;  %v3591_v48 = vld [vmem:[%s5109_s1 + $0x1f0] ss:$8 sps:$4 sm:$0xff]   ;;  %v3594_v50 = vld [vmem:[%s5109_s1 + $0x1e4] ss:$8 sps:$4 sm:$0xff]   ;;  %v4143_v52 = vmul.u32 2, %v4122_v46  ;;  %s5129_s24 = smov (!%p343_p8, %s3209_s24), 1 }
  0x2d   : > { %2704 = vmatpush1.bf16.msra.mxu0 %v3560_v22  ;;  %v3597_v54 = vld [vmem:[%s5109_s1 + $0x1e0] ss:$8 sps:$4 sm:$0xff]   ;;  %v3598_v55 = vld [vmem:[%s5109_s1 + $0xd4] ss:$8 sps:$4 sm:$0xff]   ;;  %v3602_v60 = vld [vmem:[%s5109_s1 + $0xd0] ss:$8 sps:$4 sm:$0xff]  }
  0x2e   : > { %2745 = vmatpush1.bf16.msra.mxu1 %v3561_v23  ;;  %2705 = vmatprep.subr.bf16.mxu0 %v3562_v24  ;;  %v4138_v51 = vsub.s32 %v498_v45, %v4122_v46  ;;  %v3600_v56 = vld [vmem:[%s5109_s1 + $0x1d4] ss:$8 sps:$4 sm:$0xff]   ;;  %v4160_v59 = vadd.s32 1, %v4143_v52  ;;  %v3603_v61 = vld [vmem:[%s5109_s1 + $0x1d0] ss:$8 sps:$4 sm:$0xff]   ;;  %vm391_vm3 = vcmp.ge.s32.totalorder %v4143_v52, 1 }
  0x2f   : > { %2746 = vmatprep.subr.bf16.mxu1 %v3564_v25  ;;  %vm540_vm0 = vsmask.f32 256  ;;  %v3604_v62 = vld [vmem:[%s5109_s1 + $0xc4] ss:$8 sps:$4 sm:$0xff]   ;;  %vm541_vm1 = vsmask.f32 1284 }
  0x30   : > { %v502_v58 = vrot.slane %v3947_v57, %v4138_v51  ;;  %v3606_v63 = vld [vmem:[%s5109_s1 + $0x1c4] ss:$8 sps:$4 sm:$0xff]   ;;  %vm543_vm2 = vsmask.f32 2312  ;;  %v3608_v1 = vld [vmem:[%s5109_s1 + $0xc0] ss:$8 sps:$4 sm:$0xff]   ;;  %vm542_vm5 = vmor %vm540_vm0, %vm541_vm1 }
  0x31   : > { %2706 = vmatpush1.bf16.msra.mxu0 %v3566_v26  ;;  %v3609_v2 = vld [vmem:[%s5109_s1 + $0x1c0] ss:$8 sps:$4 sm:$0xff]   ;;  %vm545_vm4 = vsmask.f32 3340  ;;  %v3610_v3 = vld [vmem:[%s5109_s1 + $0xb4] ss:$8 sps:$4 sm:$0xff]   ;;  %vm544_vm7 = vmor %vm542_vm5, %vm543_vm2 }
  0x32   : > { %2747 = vmatpush1.bf16.msra.mxu1 %v3567_v27  ;;  %2707 = vmatprep.subr.bf16.mxu0 %v3568_v28  ;;  %v503_v0 = vcombine.high %v502_v58, %v502_v58  ;;  %v3612_v4 = vld [vmem:[%s5109_s1 + $0x1b4] ss:$8 sps:$4 sm:$0xff]   ;;  %v4190_v5 = vld [vmem:[%s5111_s3] ss:$0 sm:$0xff]  ;;  %v3223_v9 = vld [vmem:[%s4198_s9 + $0xa] sm:$0x3]  ;;  %v510_v10 = vrot.slane %v502_v58, %v4138_v51 }
  0x33   : > { %2748 = vmatprep.subr.bf16.mxu1 %v3570_v29  ;;  %v4195_v6 = vld [vmem:[%s5112_s4] ss:$0 sm:$0xff]  ;;  %vm547_vm6 = vsmask.f32 4368  ;;  %v354_v11 = vld [vmem:[%s4198_s9 + $0x2] sm:$0x3]  ;;  %v409_v12 = vunpack.c.l.bf16 %v3223_v9  ;;  %vm546_vm11 = vmor %vm544_vm7, %vm545_vm4 }
  0x34   : > { %v3222_v7 = vld [vmem:[%s4198_s9 + $0x8] sm:$0x3]  ;;  %v4207_v13 = vrot.slane %v503_v0, %v4138_v51  ;;  %vm549_vm8 = vsmask.f32 5396  ;;  %v359_v14 = vunpack.c.l.bf16 %v354_v11  ;;  %v355_v15 = vld [vmem:[%s4198_s9 + $0x4] sm:$0x3]  ;;  %vm548_vm12 = vmor %vm546_vm11, %vm547_vm6 }
  0x35   : > { %2708 = vmatpush1.bf16.msra.mxu0 %v3572_v30  ;;  %v408_v8 = vunpack.c.l.bf16 %v3222_v7  ;;  %vm426_vm9 = vcmp.ge.s32.totalorder %v4160_v59, 1  ;;  %vm429_vm10 = vcmp.lt.s32.totalorder %v4160_v59, 5  ;;  %v360_v17 = vunpack.c.l.bf16 %v355_v15  ;;  %v3614_v18 = vld [vmem:[%s5109_s1 + $0xb0] ss:$8 sps:$4 sm:$0xff]   ;;  %vm4227_vm15 = vmor %vm548_vm12, %vm549_vm8  ;;  %v3616_v26 = vld [vmem:[%s5109_s1 + $0xa4] ss:$8 sps:$4 sm:$0xff]  }
  0x36   : > { %2749 = vmatpush1.bf16.msra.mxu1 %v3573_v31  ;;  %2709 = vmatprep.subr.bf16.mxu0 %v3574_v32  ;;  %v412_v19 = vmul.f32 %v4190_v5, %v409_v12  ;;  %vm551_vm13 = vsmask.f32 6424  ;;  %v368_v20 = vmul.f32 %v4190_v5, %v359_v14  ;;  %vm394_vm14 = vcmp.lt.s32.totalorder %v4143_v52, 5  ;;  %v3615_v21 = vld [vmem:[%s5109_s1 + $0x1b0] ss:$8 sps:$4 sm:$0xff]   ;;  %vm4248_vm2 = vmand %vm426_vm9, %vm429_vm10  ;;  %s3507_s10 = sshll.u32 %s5129_s24, 2 }
  0x37   : > { %2750 = vmatprep.subr.bf16.mxu1 %v3576_v33  ;;  %v411_v16 = vmul.f32 %v4190_v5, %v408_v8  ;;  %vm553_vm0 = vsmask.f32 7452  ;;  %v556_v24 = vshrl.u32 %v510_v10, 16  ;;  %v369_v25 = vmul.f32 %v4190_v5, %v360_v17  ;;  %v3618_v27 = vld [vmem:[%s5109_s1 + $0x1a4] ss:$8 sps:$4 sm:$0xff]   ;;  %vm4259_vm5 = vmor %vm4227_vm15, %vm551_vm13  ;;  %s347_s12 = scalar_lea.vmem %s5113_s5, %s3507_s10  ;;  %s352_s14 = scalar_lea.vmem %s5114_s6, %s3507_s10 }
  0x38   : > { %v415_v28 = vadd.f32 %v4195_v6, %v412_v19  ;;  %v561_v29 = vshll.u32 %v4207_v13, 16  ;;  %v377_v30 = vadd.f32 %v4195_v6, %v368_v20  ;;  %v3620_v31 = vld [vmem:[%s5109_s1 + $0xa0] ss:$8 sps:$4 sm:$0xff]   ;;  %vm4267_vm7 = vmand %vm391_vm3, %vm394_vm14  ;;  %v3626_v58 = vld [vmem:[%s5109_s1 + $0x90] ss:$8 sps:$4 sm:$0xff]   ;;  %vm3041_vm13 = vcmask 1043456  }
  0x39   : > { %2710 = vmatpush1.bf16.msra.mxu0 %v3578_v34  ;;  %v414_v22 = vadd.f32 %v4195_v6, %v411_v16  ;;  %v378_v34 = vadd.f32 %v4195_v6, %v369_v25  ;;  %vm4291_vm3 = vmor %vm4259_vm5, %vm553_vm0  ;;  %v3627_v59 = vld [vmem:[%s5109_s1 + $0x190] ss:$8 sps:$4 sm:$0xff]   ;;  %v3630_v0 = vld [vmem:[%s5109_s1 + $0x184] ss:$8 sps:$4 sm:$0xff]   ;;  %vm3076_vm14 = vcmp.lt.s32.totalorder %v388_v40, 256 }
  0x3a   : > { %2751 = vmatpush1.bf16.msra.mxu1 %v3579_v35  ;;  %2711 = vmatprep.subr.bf16.mxu0 %v3580_v36  ;;  %v3621_v35 = vld [vmem:[%s5109_s1 + $0x1a0] ss:$8 sps:$4 sm:$0xff]   ;;  %vm418_vm4 = vcmp.ge.f32.partialorder %v415_v28, 0.0  ;;  %v421_v36 = vmul.f32 0.2, %v415_v28  ;;  %vm380_vm6 = vcmp.ge.f32.partialorder %v377_v30, 0.0 }
  0x3b   : > { %2752 = vmatprep.subr.bf16.mxu1 %v3582_v37  ;;  %vm417_vm1 = vcmp.ge.f32.partialorder %v414_v22, 0.0  ;;  %v420_v32 = vmul.f32 0.2, %v414_v22  ;;  %v383_v39 = vmul.f32 0.2, %v377_v30  ;;  %vm381_vm8 = vcmp.ge.f32.partialorder %v378_v34, 0.0 }
  0x3c   : > { %v3632_v14 = vld [vmem:[%s5109_s1 + $0x80] ss:$8 sps:$4 sm:$0xff]   ;;  %v3639_v25 = vld [vmem:[%s5109_s1 + $0x374] ss:$8 sps:$4 sm:$0xff]   ;;  %v3694_v33 = vld [vmem:[%s5109_s1 + $0x2d0] ss:$8 sps:$4 sm:$0xff]  }
  0x3d   : > { %2712 = vmatpush1.bf16.msra.mxu0 %v3584_v41  ;;  %v423_v38 = vsel %vm417_vm1, %v414_v22, %v420_v32  ;;  %v386_v52 = vsel %vm380_vm6, %v377_v30, %v383_v39  ;;  %v3633_v15 = vld [vmem:[%s5109_s1 + $0x180] ss:$8 sps:$4 sm:$0xff]   ;;  %v3702_v41 = vld [vmem:[%s5109_s1 + $0x2c4] ss:$8 sps:$4 sm:$0xff]  }
  0x3e   : > { %2753 = vmatpush1.bf16.msra.mxu1 %v3585_v42  ;;  %2713 = vmatprep.subr.bf16.mxu0 %v3586_v43  ;;  %v384_v42 = vmul.f32 0.2, %v378_v34  ;;  %v3622_v43 = vld [vmem:[%s5109_s1 + $0x94] ss:$8 sps:$4 sm:$0xff]   ;;  %v4279_v45 = vsel %vm4248_vm2, %v423_v38, 0.0 }
  0x3f   : > { %2754 = vmatprep.subr.bf16.mxu1 %v3588_v44  ;;  %v3624_v44 = vld [vmem:[%s5109_s1 + $0x194] ss:$8 sps:$4 sm:$0xff]   ;;  %v3634_v38 = vld [vmem:[%s5109_s1 + $0x270] ss:$8 sps:$4 sm:$0xff]  }
  0x41   : > { %2714 = vmatpush2.bf16.msra.mxu0 %v3590_v47  ;;  %v424_v47 = vsel %vm418_vm4, %v415_v28, %v421_v36 }
  0x42   : > { %2755 = vmatpush2.bf16.msra.mxu1 %v3591_v48  ;;  %2715 = vmatprep.subr.bf16.mxu0 %v3592_v49  ;;  %v436_v48 = vpack.c.bf16 %v4279_v45, %v4279_v45  ;;  %v4286_v49 = vsel %vm4248_vm2, %v424_v47, 0.0 }
  0x43   : > { %2756 = vmatprep.subr.bf16.mxu1 %v3594_v50  ;;  %v3720_v50 = vld [vmem:[%s5109_s1 + $0x294] ss:$8 sps:$4 sm:$0xff]  }
  0x45   : > { %2716 = vmatpush2.bf16.msra.mxu0 %v3596_v53  ;;  %v387_v53 = vsel %vm381_vm8, %v378_v34, %v384_v42 }
  0x46   : > { %2757 = vmatpush2.bf16.msra.mxu1 %v3597_v54  ;;  %2717 = vmatprep.subr.bf16.mxu0 %v3598_v55  ;;  %v437_v54 = vpack.c.bf16 %v4286_v49, %v4286_v49  ;;  %v4300_v55 = vsel %vm4267_vm7, %v386_v52, 0.0  ;;  %v3245_v52 = vpack.c.bf16 %v4286_v49, %v4279_v45  ;;  %v3730_v45 = vld [vmem:[%s5109_s1 + $0x470] ss:$8 sps:$4 sm:$0xff]  }
  0x47   : > { %2758 = vmatprep.subr.bf16.mxu1 %v3600_v56  ;;  %v4304_v56 = vsel %vm4267_vm7, %v387_v53, 0.0 }
  0x49   : > { %2718 = vmatpush2.bf16.msra.mxu0 %v3602_v60  ;;  %v603_v60 = vrot.slane %v436_v48, %v4138_v51 }
  0x4a   : > { %2759 = vmatpush2.bf16.msra.mxu1 %v3603_v61  ;;  %2719 = vmatprep.subr.bf16.mxu0 %v3604_v62  ;;  %v909_v61 = vcombine.low %v3947_v57, %v436_v48  ;;  %v401_v62 = vpack.c.bf16 %v4300_v55, %v4300_v55 }
  0x4b   : > { %2760 = vmatprep.subr.bf16.mxu1 %v3606_v63  ;;  %v3628_v63 = vld [vmem:[%s5109_s1 + $0x84] ss:$8 sps:$4 sm:$0xff]   ;;  %v611_v8 = vrot.slane %v603_v60, %v4138_v51 }
  0x4c   : > { %v916_v7 = vrot.slane %v909_v61, %v4138_v51  ;;  %v524_v9 = vrot.slane %v401_v62, %v4138_v51  ;;  %v893_v12 = vcombine.low %v3947_v57, %v401_v62 }
  0x4d   : > { %2720 = vmatpush2.bf16.msra.mxu0 %v3608_v1  ;;  %v4324_v1 = vsel %vm4291_vm3, %v556_v24, %v561_v29  ;;  %v3636_v24 = vld [vmem:[%s5109_s1 + $0x274] ss:$8 sps:$4 sm:$0xff]  }
  0x4e   : > { %2761 = vmatpush2.bf16.msra.mxu1 %v3609_v2  ;;  %2721 = vmatprep.subr.bf16.mxu0 %v3610_v3  ;;  %v804_v2 = vrot.slane %v437_v54, %v4138_v51  ;;  %v402_v3 = vpack.c.bf16 %v4304_v56, %v4304_v56  ;;  %v923_v16 = vrot.slane %v916_v7, %v4138_v51  ;;  %v3646_v7 = vld [vmem:[%s5109_s1 + $0x250] ss:$8 sps:$4 sm:$0xff]  }
  0x4f   : > { %2762 = vmatprep.subr.bf16.mxu1 %v3612_v4  ;;  %v604_v4 = vcombine.high %v603_v60, %v603_v60  ;;  %v525_v19 = vcombine.high %v524_v9, %v524_v9  ;;  %v900_v22 = vrot.slane %v893_v12, %v4138_v51  ;;  %v532_v23 = vrot.slane %v524_v9, %v4138_v51  ;;  %v3640_v60 = vld [vmem:[%s5109_s1 + $0x260] ss:$8 sps:$4 sm:$0xff]   ;;  %v3660_v12 = vld [vmem:[%s5109_s1 + $0x234] ss:$8 sps:$4 sm:$0xff]  }
  0x50   : > { %v805_v10 = vcombine.high %v804_v2, %v804_v2  ;;  %v812_v11 = vrot.slane %v804_v2, %v4138_v51  ;;  %v772_v13 = vrot.slane %v402_v3, %v4138_v51  ;;  %2729 = vmatprep.mubr.bf16.mxu0 %v923_v16  ;;  %v3637_v2 = vld [vmem:[%s5109_s1 + $0x370] ss:$8 sps:$4 sm:$0xff]   ;;  %v3643_v9 = vld [vmem:[%s5109_s1 + $0x360] ss:$8 sps:$4 sm:$0xff]   ;;  %v3666_v16 = vld [vmem:[%s5109_s1 + $0x224] ss:$8 sps:$4 sm:$0xff]  }
  0x51   : > { %2722 = vmatpush2.bf16.msra.mxu0 %v3614_v18  ;;  %v618_v17 = vrot.slane %v604_v4, %v4138_v51  ;;  %v629_v18 = vshrl.u32 %v611_v8, 16  ;;  %v565_v32 = vshrl.u32 %v532_v23, 16  ;;  %v3645_v4 = vld [vmem:[%s5109_s1 + $0x364] ss:$8 sps:$4 sm:$0xff]   ;;  %v3670_v23 = vld [vmem:[%s5109_s1 + $0x210] ss:$8 sps:$4 sm:$0xff]  }
  0x52   : > { %2763 = vmatpush2.bf16.msra.mxu1 %v3615_v21  ;;  %2723 = vmatprep.subr.bf16.mxu0 %v3616_v26  ;;  %v819_v20 = vrot.slane %v805_v10, %v4138_v51  ;;  %v821_v21 = vshrl.u32 %v812_v11, 16  ;;  %v773_v28 = vcombine.high %v772_v13, %v772_v13  ;;  %v780_v29 = vrot.slane %v772_v13, %v4138_v51  ;;  %v3654_v8 = vld [vmem:[%s5109_s1 + $0x244] ss:$8 sps:$4 sm:$0xff]   ;;  %v3651_v10 = vld [vmem:[%s5109_s1 + $0x354] ss:$8 sps:$4 sm:$0xff]  }
  0x53   : > { %2764 = vmatprep.subr.bf16.mxu1 %v3618_v27  ;;  %v634_v26 = vshll.u32 %v618_v17, 16  ;;  %v539_v27 = vrot.slane %v525_v19, %v4138_v51  ;;  %v3652_v11 = vld [vmem:[%s5109_s1 + $0x240] ss:$8 sps:$4 sm:$0xff]   ;;  %v3649_v13 = vld [vmem:[%s5109_s1 + $0x350] ss:$8 sps:$4 sm:$0xff]  }
  0x54   : > { %v826_v30 = vshll.u32 %v819_v20, 16  ;;  %v787_v36 = vrot.slane %v773_v28, %v4138_v51  ;;  %v789_v37 = vshrl.u32 %v780_v29, 16  ;;  %v3655_v17 = vld [vmem:[%s5109_s1 + $0x340] ss:$8 sps:$4 sm:$0xff]   ;;  %v3672_v20 = vld [vmem:[%s5109_s1 + $0x214] ss:$8 sps:$4 sm:$0xff]  }
  0x55   : > { %2724 = vmatpush2.bf16.msra.mxu0 %v3620_v31  ;;  %v907_v31 = vrot.slane %v900_v22, %v4138_v51  ;;  %v4357_v34 = vsel %vm4291_vm3, %v629_v18, %v634_v26  ;;  %v3663_v18 = vld [vmem:[%s5109_s1 + $0x334] ss:$8 sps:$4 sm:$0xff]   ;;  %v3664_v19 = vld [vmem:[%s5109_s1 + $0x220] ss:$8 sps:$4 sm:$0xff]   ;;  %v3669_v22 = vld [vmem:[%s5109_s1 + $0x324] ss:$8 sps:$4 sm:$0xff]  }
  0x56   : > { %2765 = vmatpush2.bf16.msra.mxu1 %v3621_v35  ;;  %2725 = vmatprep.subr.bf16.mxu0 %v3622_v43  ;;  %v570_v35 = vshll.u32 %v539_v27, 16  ;;  %v4365_v39 = vsel %vm4291_vm3, %v821_v21, %v826_v30  ;;  %v941_v42 = vcombine.low %v4324_v1, %v4357_v34  ;;  %v3642_v43 = vld [vmem:[%s5109_s1 + $0x264] ss:$8 sps:$4 sm:$0xff]   ;;  %v794_v48 = vshll.u32 %v787_v36, 16  ;;  %v3661_v21 = vld [vmem:[%s5109_s1 + $0x330] ss:$8 sps:$4 sm:$0xff]  }
  0x57   : > { %2766 = vmatprep.subr.bf16.mxu1 %v3624_v44  ;;  %v1069_v44 = vcombine.low %v4357_v34, %v4365_v39  ;;  %v3675_v26 = vld [vmem:[%s5109_s1 + $0x314] ss:$8 sps:$4 sm:$0xff]   ;;  %v3676_v27 = vld [vmem:[%s5109_s1 + $0x200] ss:$8 sps:$4 sm:$0xff]   ;;  %v3733_v39 = vld [vmem:[%s5109_s1 + $0x570] ss:$8 sps:$4 sm:$0xff]  }
  0x58   : > { %v4376_v47 = vsel %vm4291_vm3, %v565_v32, %v570_v35  ;;  %v948_v53 = vrot.slane %v941_v42, %v4138_v51  ;;  %v3227_v28 = vld [vmem:[%s4198_s9 + $0x12] sm:$0x3]  ;;  %v3228_v29 = vld [vmem:[%s4198_s9 + $0x14] sm:$0x3]  ;;  %v3225_v32 = vld [vmem:[%s4198_s9 + $0xe] sm:$0x3] }
  0x59   : > { %2726 = vmatpush2.bf16.msra.mxu0 %v3626_v58  ;;  %v925_v54 = vcombine.low %v4324_v1, %v4376_v47  ;;  %v3244_v58 = vpack.c.bf16 %v4304_v56, %v4300_v55  ;;  %v470_v30 = vunpack.c.l.bf16 %v3227_v28  ;;  %v3684_v35 = vld [vmem:[%s5109_s1 + $0x2f4] ss:$8 sps:$4 sm:$0xff]   ;;  %v471_v36 = vunpack.c.l.bf16 %v3228_v29  ;;  %v3673_v42 = vld [vmem:[%s5109_s1 + $0x310] ss:$8 sps:$4 sm:$0xff]   ;;  %v3825_v56 = vld [vmem:[%s5109_s1 + $0x584] ss:$8 sps:$4 sm:$0xff]  }
  0x5a   : > { %2767 = vmatpush2.bf16.msra.mxu1 %v3627_v59  ;;  %2727 = vmatprep.subr.bf16.mxu0 %v3628_v63  ;;  %v4387_v59 = vsel %vm4291_vm3, %v789_v37, %v794_v48  ;;  %v955_v61 = vrot.slane %v948_v53, %v4138_v51  ;;  %v3681_v48 = vld [vmem:[%s5109_s1 + $0x304] ss:$8 sps:$4 sm:$0xff]   ;;  %v3744_v34 = vld [vmem:[%s5109_s1 + $0x454] ss:$8 sps:$4 sm:$0xff]  }
  0x5b   : > { %2768 = vmatprep.subr.bf16.mxu1 %v3630_v0  ;;  %v932_v62 = vrot.slane %v925_v54, %v4138_v51  ;;  %v1053_v63 = vcombine.low %v4376_v47, %v4387_v59  ;;  %v3648_v0 = vld [vmem:[%s5109_s1 + $0x254] ss:$8 sps:$4 sm:$0xff]   ;;  %v474_v53 = vmul.f32 %v4190_v5, %v471_v36  ;;  %v3832_v47 = vld [vmem:[%s5109_s1 + $0x660] ss:$8 sps:$4 sm:$0xff]  }
  0x5c   : > { %2770 = vmatprep.mubr.bf16.mxu1 %v955_v61  ;;  %v3679_v61 = vld [vmem:[%s5109_s1 + $0x300] ss:$8 sps:$4 sm:$0xff]  }
  0x5d   : > { %2728 = vmatpush2.bf16.msra.mxu0 %v3632_v14  ;;  %v939_v3 = vrot.slane %v932_v62, %v4138_v51  ;;  %v3657_v14 = vld [vmem:[%s5109_s1 + $0x344] ss:$8 sps:$4 sm:$0xff]   ;;  %v3682_v62 = vld [vmem:[%s5109_s1 + $0x2f0] ss:$8 sps:$4 sm:$0xff]  }
  0x5e   : > { %2769 = vmatpush2.bf16.msra.mxu1 %v3633_v15  ;;  %2779 = vmatprep.subr.bf16.mxu0 %v3636_v24  ;;  %v3658_v15 = vld [vmem:[%s5109_s1 + $0x230] ss:$8 sps:$4 sm:$0xff]   ;;  %v3678_v24 = vld [vmem:[%s5109_s1 + $0x204] ss:$8 sps:$4 sm:$0xff]  }
  0x5f   : > { %2820 = vmatprep.subr.bf16.mxu1 %v3639_v25  ;;  %v3667_v25 = vld [vmem:[%s5109_s1 + $0x320] ss:$8 sps:$4 sm:$0xff]  }
  0x60   : > { %2730 = vmatmul.mubr.bf16.vlgmr.msra.gmra.mxu0 %v907_v31  ;;  %v3224_v31 = vld [vmem:[%s4198_s9 + $0xc] sm:$0x3] }
  0x61   : > { %2780 = vmatpush1.bf16.msra.mxu0 %v3634_v38  ;;  %2771 = vmatmul.mubr.bf16.vlgmr.msra.gmra.mxu1 %v939_v3  ;;  %v442_v37 = vunpack.c.l.bf16 %v3224_v31  ;;  %v443_v38 = vunpack.c.l.bf16 %v3225_v32  ;;  %v477_v3 = vadd.f32 %v4195_v6, %v474_v53  ;;  %v3691_v32 = vld [vmem:[%s5109_s1 + $0x3e0] ss:$8 sps:$4 sm:$0xff]  }
  0x62   : > { %2781 = vmatprep.subr.bf16.mxu0 %v3642_v43  ;;  %2821 = vmatpush1.bf16.msra.mxu1 %v3637_v2  ;;  %v473_v43 = vmul.f32 %v4190_v5, %v470_v30  ;;  %v3690_v2 = vld [vmem:[%s5109_s1 + $0x2e4] ss:$8 sps:$4 sm:$0xff]  }
  0x63   : > { %2822 = vmatprep.subr.bf16.mxu1 %v3645_v4  ;;  %v445_v54 = vmul.f32 %v4190_v5, %v442_v37  ;;  %vm480_vm10 = vcmp.ge.f32.partialorder %v477_v3, 0.0 }
  0x65   : > { %2782 = vmatpush1.bf16.msra.mxu0 %v3640_v60  ;;  %v446_v60 = vmul.f32 %v4190_v5, %v443_v38  ;;  %v448_v5 = vadd.f32 %v4195_v6, %v445_v54  ;;  %v3700_v54 = vld [vmem:[%s5109_s1 + $0x2c0] ss:$8 sps:$4 sm:$0xff]  }
  0x66   : > { %2783 = vmatprep.subr.bf16.mxu0 %v3648_v0  ;;  %2823 = vmatpush1.bf16.msra.mxu1 %v3643_v9  ;;  %v476_v0 = vadd.f32 %v4195_v6, %v473_v43  ;;  %v483_v9 = vmul.f32 0.2, %v477_v3 }
  0x67   : > { %2824 = vmatprep.subr.bf16.mxu1 %v3651_v10  ;;  %v449_v4 = vadd.f32 %v4195_v6, %v446_v60  ;;  %vm451_vm11 = vcmp.ge.f32.partialorder %v448_v5, 0.0  ;;  %v3688_v10 = vld [vmem:[%s5109_s1 + $0x2e0] ss:$8 sps:$4 sm:$0xff]  }
  0x68   : > { %vm479_vm9 = vcmp.ge.f32.partialorder %v476_v0, 0.0 }
  0x69   : > { %2784 = vmatpush1.bf16.msra.mxu0 %v3646_v7  ;;  %v3687_v7 = vld [vmem:[%s5109_s1 + $0x3f4] ss:$8 sps:$4 sm:$0xff]   ;;  %vm452_vm12 = vcmp.ge.f32.partialorder %v449_v4, 0.0  ;;  %v455_v6 = vmul.f32 0.2, %v449_v4 }
  0x6a   : > { %2785 = vmatprep.subr.bf16.mxu0 %v3654_v8  ;;  %2825 = vmatpush1.bf16.msra.mxu1 %v3649_v13  ;;  %v482_v8 = vmul.f32 0.2, %v476_v0  ;;  %v3696_v13 = vld [vmem:[%s5109_s1 + $0x2d4] ss:$8 sps:$4 sm:$0xff]  }
  0x6b   : > { %2826 = vmatprep.subr.bf16.mxu1 %v3657_v14  ;;  %v486_v14 = vsel %vm480_vm10, %v477_v3, %v483_v9 }
  0x6d   : > { %2786 = vmatpush1.bf16.msra.mxu0 %v3652_v11  ;;  %v485_v11 = vsel %vm479_vm9, %v476_v0, %v482_v8 }
  0x6e   : > { %2787 = vmatprep.subr.bf16.mxu0 %v3660_v12  ;;  %2827 = vmatpush1.bf16.msra.mxu1 %v3655_v17  ;;  %v454_v12 = vmul.f32 0.2, %v448_v5  ;;  %v489_v17 = vsel %vm4248_vm2, %v486_v14, 0.0  ;;  %v3706_v14 = vld [vmem:[%s5109_s1 + $0x2b0] ss:$8 sps:$4 sm:$0xff]  }
  0x6f   : > { %2828 = vmatprep.subr.bf16.mxu1 %v3663_v18 }
  0x71   : > { %2788 = vmatpush1.bf16.msra.mxu0 %v3658_v15  ;;  %v488_v15 = vsel %vm4248_vm2, %v485_v11, 0.0 }
  0x72   : > { %2789 = vmatprep.subr.bf16.mxu0 %v3666_v16  ;;  %2829 = vmatpush1.bf16.msra.mxu1 %v3661_v21  ;;  %v3685_v16 = vld [vmem:[%s5109_s1 + $0x3f0] ss:$8 sps:$4 sm:$0xff]   ;;  %v491_v18 = vpack.c.bf16 %v488_v15, %v488_v15  ;;  %v3693_v21 = vld [vmem:[%s5109_s1 + $0x3e4] ss:$8 sps:$4 sm:$0xff]  }
  0x73   : > { %2830 = vmatprep.subr.bf16.mxu1 %v3669_v22  ;;  %v4518_v22 = vpack.c.bf16 %v489_v17, %v489_v17 }
  0x75   : > { %2790 = vmatpush1.bf16.msra.mxu0 %v3664_v19  ;;  %v457_v19 = vsel %vm451_vm11, %v448_v5, %v454_v12  ;;  %v731_v30 = vrot.slane %v4518_v22, %v4138_v51  ;;  %v3705_v12 = vld [vmem:[%s5109_s1 + $0x3c4] ss:$8 sps:$4 sm:$0xff]  }
  0x76   : > { %2791 = vmatprep.subr.bf16.mxu0 %v3672_v20  ;;  %2831 = vmatpush1.bf16.msra.mxu1 %v3667_v25  ;;  %v458_v20 = vsel %vm452_vm12, %v449_v4, %v455_v6 }
  0x77   : > { %2832 = vmatprep.subr.bf16.mxu1 %v3675_v26  ;;  %v4526_v25 = vsel %vm4267_vm7, %v458_v20, 0.0  ;;  %v709_v26 = vrot.slane %v491_v18, %v4138_v51  ;;  %v732_v43 = vcombine.high %v731_v30, %v731_v30  ;;  %v739_v53 = vrot.slane %v731_v30, %v4138_v51  ;;  %v3712_v30 = vld [vmem:[%s5109_s1 + $0x2a0] ss:$8 sps:$4 sm:$0xff]  }
  0x78   : > { %v4536_v28 = vpack.c.bf16 %v4526_v25, %v4526_v25 }
  0x79   : > { %2792 = vmatpush1.bf16.msra.mxu0 %v3670_v23  ;;  %v3243_v23 = vpack.c.bf16 %v489_v17, %v488_v15  ;;  %v717_v36 = vrot.slane %v709_v26, %v4138_v51  ;;  %v746_v3 = vrot.slane %v732_v43, %v4138_v51  ;;  %v757_v5 = vshrl.u32 %v739_v53, 16  ;;  %v3723_v43 = vld [vmem:[%s5109_s1 + $0x394] ss:$8 sps:$4 sm:$0xff]   ;;  %v3724_v53 = vld [vmem:[%s5109_s1 + $0x280] ss:$8 sps:$4 sm:$0xff]  }
  0x7a   : > { %2793 = vmatprep.subr.bf16.mxu0 %v3678_v24  ;;  %2833 = vmatpush1.bf16.msra.mxu1 %v3673_v42  ;;  %v4522_v24 = vsel %vm4267_vm7, %v457_v19, 0.0  ;;  %v667_v38 = vrot.slane %v4536_v28, %v4138_v51  ;;  %v3699_v42 = vld [vmem:[%s5109_s1 + $0x3d4] ss:$8 sps:$4 sm:$0xff]   ;;  %v3714_v19 = vld [vmem:[%s5109_s1 + $0x2a4] ss:$8 sps:$4 sm:$0xff]  }
  0x7b   : > { %2834 = vmatprep.subr.bf16.mxu1 %v3681_v48  ;;  %v3242_v29 = vpack.c.bf16 %v4526_v25, %v4522_v24  ;;  %v980_v31 = vrot.slane %v3243_v23, %v4138_v51  ;;  %v762_v6 = vshll.u32 %v746_v3, 16  ;;  %v3729_v25 = vld [vmem:[%s5109_s1 + $0x384] ss:$8 sps:$4 sm:$0xff]   ;;  %v3736_v3 = vld [vmem:[%s5109_s1 + $0x460] ss:$8 sps:$4 sm:$0xff]  }
  0x7c   : > { %v668_v0 = vcombine.high %v667_v38, %v667_v38 }
  0x7d   : > { %2794 = vmatpush1.bf16.msra.mxu0 %v3676_v27  ;;  %v463_v27 = vpack.c.bf16 %v4522_v24, %v4522_v24  ;;  %v987_v48 = vrot.slane %v980_v31, %v4138_v51  ;;  %v4586_v20 = vsel %vm4291_vm3, %v757_v5, %v762_v6  ;;  %v3721_v24 = vld [vmem:[%s5109_s1 + $0x390] ss:$8 sps:$4 sm:$0xff]  }
  0x7e   : > { %2795 = vmatprep.subr.bf16.mxu0 %v3684_v35  ;;  %2835 = vmatpush1.bf16.msra.mxu1 %v3679_v61  ;;  %v710_v35 = vcombine.high %v709_v26, %v709_v26  ;;  %v748_v61 = vshrl.u32 %v717_v36, 16  ;;  %v682_v11 = vrot.slane %v668_v0, %v4138_v51  ;;  %v3717_v36 = vld [vmem:[%s5109_s1 + $0x3a4] ss:$8 sps:$4 sm:$0xff]   ;;  %v1076_v0 = vrot.slane %v1069_v44, %v4138_v51  ;;  %v3745_v6 = vld [vmem:[%s5109_s1 + $0x550] ss:$8 sps:$4 sm:$0xff]  }
  0x7f   : > { %2836 = vmatprep.subr.bf16.mxu1 %v3687_v7  ;;  %v645_v37 = vrot.slane %v463_v27, %v4138_v51  ;;  %2811 = vmatprep.mubr.bf16.mxu0 %v987_v48  ;;  %v3697_v7 = vld [vmem:[%s5109_s1 + $0x3d0] ss:$8 sps:$4 sm:$0xff]   ;;  %v3711_v27 = vld [vmem:[%s5109_s1 + $0x3b4] ss:$8 sps:$4 sm:$0xff]   ;;  %v964_v48 = vrot.slane %v3242_v29, %v4138_v51  ;;  %v1133_v55 = vcombine.low %v4586_v20, %v4324_v1 }
  0x80   : > { %v724_v60 = vrot.slane %v710_v35, %v4138_v51  ;;  %v698_v18 = vshll.u32 %v682_v11, 16  ;;  %v1083_v44 = vrot.slane %v1076_v0, %v4138_v51  ;;  %v3748_v11 = vld [vmem:[%s5109_s1 + $0x440] ss:$8 sps:$4 sm:$0xff]   ;;  %v3810_v0 = vld [vmem:[%s5109_s1 + $0x4a4] ss:$8 sps:$4 sm:$0xff]  }
  0x81   : > { %2796 = vmatpush2.bf16.msra.mxu0 %v3682_v62  ;;  %v646_v62 = vcombine.high %v645_v37, %v645_v37  ;;  %v653_v4 = vrot.slane %v645_v37, %v4138_v51  ;;  %v3718_v37 = vld [vmem:[%s5109_s1 + $0x290] ss:$8 sps:$4 sm:$0xff]   ;;  %v971_v29 = vrot.slane %v964_v48, %v4138_v51  ;;  %v3792_v48 = vld [vmem:[%s5109_s1 + $0x4d4] ss:$8 sps:$4 sm:$0xff]  }
  0x82   : > { %2797 = vmatprep.subr.bf16.mxu0 %v3690_v2  ;;  %2837 = vmatpush2.bf16.msra.mxu1 %v3685_v16  ;;  %v3708_v2 = vld [vmem:[%s5109_s1 + $0x2b4] ss:$8 sps:$4 sm:$0xff]   ;;  %v753_v8 = vshll.u32 %v724_v60, 16 }
  0x83   : > { %2838 = vmatprep.subr.bf16.mxu1 %v3693_v21  ;;  %v660_v9 = vrot.slane %v646_v62, %v4138_v51  ;;  %v3703_v21 = vld [vmem:[%s5109_s1 + $0x3c0] ss:$8 sps:$4 sm:$0xff]   ;;  %v3732_v60 = vld [vmem:[%s5109_s1 + $0x474] ss:$8 sps:$4 sm:$0xff]  }
  0x84   : > { %v755_v15 = vsel %vm4291_vm3, %v748_v61, %v753_v8  ;;  %v3738_v61 = vld [vmem:[%s5109_s1 + $0x464] ss:$8 sps:$4 sm:$0xff]   ;;  %v3727_v62 = vld [vmem:[%s5109_s1 + $0x380] ss:$8 sps:$4 sm:$0xff]  }
  0x85   : > { %2798 = vmatpush2.bf16.msra.mxu0 %v3688_v10  ;;  %v675_v10 = vrot.slane %v667_v38, %v4138_v51  ;;  %v689_v16 = vshll.u32 %v660_v9, 16  ;;  %v1005_v23 = vcombine.low %v755_v15, %v4586_v20  ;;  %v3726_v38 = vld [vmem:[%s5109_s1 + $0x284] ss:$8 sps:$4 sm:$0xff]   ;;  %v3739_v9 = vld [vmem:[%s5109_s1 + $0x560] ss:$8 sps:$4 sm:$0xff]  }
  0x86   : > { %2799 = vmatprep.subr.bf16.mxu0 %v3696_v13  ;;  %2839 = vmatpush2.bf16.msra.mxu1 %v3691_v32  ;;  %v684_v13 = vshrl.u32 %v653_v4, 16  ;;  %v3709_v32 = vld [vmem:[%s5109_s1 + $0x3b0] ss:$8 sps:$4 sm:$0xff]   ;;  %v3741_v4 = vld [vmem:[%s5109_s1 + $0x564] ss:$8 sps:$4 sm:$0xff]  }
  0x87   : > { %2840 = vmatprep.subr.bf16.mxu1 %v3699_v42  ;;  %v693_v17 = vshrl.u32 %v675_v10, 16  ;;  %v1012_v31 = vrot.slane %v1005_v23, %v4138_v51  ;;  %v3715_v42 = vld [vmem:[%s5109_s1 + $0x3a0] ss:$8 sps:$4 sm:$0xff]   ;;  %v3750_v8 = vld [vmem:[%s5109_s1 + $0x444] ss:$8 sps:$4 sm:$0xff]  }
  0x88   : > { %v3747_v10 = vld [vmem:[%s5109_s1 + $0x554] ss:$8 sps:$4 sm:$0xff]   ;;  %v3762_v15 = vld [vmem:[%s5109_s1 + $0x424] ss:$8 sps:$4 sm:$0xff]  }
  0x89   : > { %2800 = vmatpush2.bf16.msra.mxu0 %v3694_v33  ;;  %v691_v33 = vsel %vm4291_vm3, %v684_v13, %v689_v16  ;;  %v4596_v26 = vsel %vm4291_vm3, %v693_v17, %v698_v18  ;;  %v1019_v35 = vrot.slane %v1012_v31, %v4138_v51  ;;  %v3753_v13 = vld [vmem:[%s5109_s1 + $0x544] ss:$8 sps:$4 sm:$0xff]   ;;  %v3751_v16 = vld [vmem:[%s5109_s1 + $0x540] ss:$8 sps:$4 sm:$0xff]   ;;  %v3759_v17 = vld [vmem:[%s5109_s1 + $0x534] ss:$8 sps:$4 sm:$0xff]  }
  0x8a   : > { %2801 = vmatprep.subr.bf16.mxu0 %v3702_v41  ;;  %2841 = vmatpush2.bf16.msra.mxu1 %v3697_v7  ;;  %v989_v41 = vcombine.low %v691_v33, %v4596_v26  ;;  %v3742_v7 = vld [vmem:[%s5109_s1 + $0x450] ss:$8 sps:$4 sm:$0xff]   ;;  %v3760_v18 = vld [vmem:[%s5109_s1 + $0x420] ss:$8 sps:$4 sm:$0xff]   ;;  %v3765_v23 = vld [vmem:[%s5109_s1 + $0x524] ss:$8 sps:$4 sm:$0xff]  }
  0x8b   : > { %2842 = vmatprep.subr.bf16.mxu1 %v3705_v12  ;;  %2852 = vmatprep.mubr.bf16.mxu1 %v1019_v35  ;;  %v3756_v12 = vld [vmem:[%s5109_s1 + $0x434] ss:$8 sps:$4 sm:$0xff]   ;;  %v3766_v33 = vld [vmem:[%s5109_s1 + $0x410] ss:$8 sps:$4 sm:$0xff]   ;;  %v3772_v31 = vld [vmem:[%s5109_s1 + $0x400] ss:$8 sps:$4 sm:$0xff]  }
  0x8c   : > { %v3777_v35 = vld [vmem:[%s5109_s1 + $0x504] ss:$8 sps:$4 sm:$0xff]  }
  0x8d   : > { %2802 = vmatpush2.bf16.msra.mxu0 %v3700_v54  ;;  %v1044_v54 = vrot.slane %v3245_v52, %v4138_v51  ;;  %v996_v52 = vrot.slane %v989_v41, %v4138_v51  ;;  %v3763_v41 = vld [vmem:[%s5109_s1 + $0x520] ss:$8 sps:$4 sm:$0xff]   ;;  %v3834_v20 = vld [vmem:[%s5109_s1 + $0x664] ss:$8 sps:$4 sm:$0xff]  }
  0x8e   : > { %2803 = vmatprep.subr.bf16.mxu0 %v3708_v2  ;;  %2843 = vmatpush2.bf16.msra.mxu1 %v3703_v21  ;;  %v3735_v2 = vld [vmem:[%s5109_s1 + $0x574] ss:$8 sps:$4 sm:$0xff]   ;;  %v3757_v21 = vld [vmem:[%s5109_s1 + $0x530] ss:$8 sps:$4 sm:$0xff]  }
  0x8f   : > { %2844 = vmatprep.subr.bf16.mxu1 %v3711_v27  ;;  %v1051_v49 = vrot.slane %v1044_v54, %v4138_v51  ;;  %v1003_v5 = vrot.slane %v996_v52, %v4138_v51  ;;  %v3774_v27 = vld [vmem:[%s5109_s1 + $0x404] ss:$8 sps:$4 sm:$0xff]   ;;  %v3793_v52 = vld [vmem:[%s5109_s1 + $0x5d0] ss:$8 sps:$4 sm:$0xff]  }
  0x90   : > { %v3789_v54 = vld [vmem:[%s5109_s1 + $0x5e4] ss:$8 sps:$4 sm:$0xff]  }
  0x91   : > { %2804 = vmatpush2.bf16.msra.mxu0 %v3706_v14  ;;  %v3754_v14 = vld [vmem:[%s5109_s1 + $0x430] ss:$8 sps:$4 sm:$0xff]  }
  0x92   : > { %2805 = vmatprep.subr.bf16.mxu0 %v3714_v19  ;;  %2845 = vmatpush2.bf16.msra.mxu1 %v3709_v32  ;;  %v3768_v19 = vld [vmem:[%s5109_s1 + $0x414] ss:$8 sps:$4 sm:$0xff]   ;;  %v3769_v32 = vld [vmem:[%s5109_s1 + $0x510] ss:$8 sps:$4 sm:$0xff]  }
  0x93   : > { %2846 = vmatprep.subr.bf16.mxu1 %v3717_v36  ;;  %v3778_v36 = vld [vmem:[%s5109_s1 + $0x4f0] ss:$8 sps:$4 sm:$0xff]  }
  0x95   : > { %2806 = vmatpush2.bf16.msra.mxu0 %v3712_v30  ;;  %v3771_v30 = vld [vmem:[%s5109_s1 + $0x514] ss:$8 sps:$4 sm:$0xff]  }
  0x96   : > { %2807 = vmatprep.subr.bf16.mxu0 %v3720_v50  ;;  %2847 = vmatpush2.bf16.msra.mxu1 %v3715_v42  ;;  %v3780_v50 = vld [vmem:[%s5109_s1 + $0x4f4] ss:$8 sps:$4 sm:$0xff]  }
  0x97   : > { %2848 = vmatprep.subr.bf16.mxu1 %v3723_v43  ;;  %v3783_v42 = vld [vmem:[%s5109_s1 + $0x5f4] ss:$8 sps:$4 sm:$0xff]   ;;  %v3784_v43 = vld [vmem:[%s5109_s1 + $0x4e0] ss:$8 sps:$4 sm:$0xff]  }
  0x99   : > { %2808 = vmatpush2.bf16.msra.mxu0 %v3718_v37  ;;  %v3786_v37 = vld [vmem:[%s5109_s1 + $0x4e4] ss:$8 sps:$4 sm:$0xff]  }
  0x9a   : > { %2809 = vmatprep.subr.bf16.mxu0 %v3726_v38  ;;  %2849 = vmatpush2.bf16.msra.mxu1 %v3721_v24  ;;  %v3775_v38 = vld [vmem:[%s5109_s1 + $0x500] ss:$8 sps:$4 sm:$0xff]   ;;  %v3798_v24 = vld [vmem:[%s5109_s1 + $0x4c4] ss:$8 sps:$4 sm:$0xff]  }
  0x9b   : > { %2850 = vmatprep.subr.bf16.mxu1 %v3729_v25  ;;  %v3787_v25 = vld [vmem:[%s5109_s1 + $0x5e0] ss:$8 sps:$4 sm:$0xff]  }
  0x9d   : > { %2810 = vmatpush2.bf16.msra.mxu0 %v3724_v53  ;;  %v3781_v53 = vld [vmem:[%s5109_s1 + $0x5f0] ss:$8 sps:$4 sm:$0xff]  }
  0x9e   : > { %2861 = vmatprep.subr.bf16.mxu0 %v3732_v60  ;;  %2851 = vmatpush2.bf16.msra.mxu1 %v3727_v62  ;;  %v3790_v60 = vld [vmem:[%s5109_s1 + $0x4d0] ss:$8 sps:$4 sm:$0xff]  }
  0x9f   : > { %2902 = vmatprep.subr.bf16.mxu1 %v3735_v2  ;;  %v3802_v62 = vld [vmem:[%s5109_s1 + $0x4b0] ss:$8 sps:$4 sm:$0xff]   ;;  %v3799_v2 = vld [vmem:[%s5109_s1 + $0x5c0] ss:$8 sps:$4 sm:$0xff]  }
  0xa0   : > { %2812 = vmatmul.mubr.bf16.vlgmr.msra.gmra.mxu0 %v971_v29  ;;  %v3795_v29 = vld [vmem:[%s5109_s1 + $0x5d4] ss:$8 sps:$4 sm:$0xff]  }
  0xa1   : > { %2862 = vmatpush1.bf16.msra.mxu0 %v3730_v45  ;;  %2893 = vmatprep.mubr.bf16.mxu0 %v1051_v49  ;;  %v3796_v45 = vld [vmem:[%s5109_s1 + $0x4c0] ss:$8 sps:$4 sm:$0xff]   ;;  %v3804_v49 = vld [vmem:[%s5109_s1 + $0x4b4] ss:$8 sps:$4 sm:$0xff]  }
  0xa2   : > { %2863 = vmatprep.subr.bf16.mxu0 %v3738_v61  ;;  %2853 = vmatmul.mubr.bf16.vlgmr.msra.gmra.mxu1 %v1003_v5  ;;  %v3801_v61 = vld [vmem:[%s5109_s1 + $0x5c4] ss:$8 sps:$4 sm:$0xff]   ;;  %v3808_v5 = vld [vmem:[%s5109_s1 + $0x4a0] ss:$8 sps:$4 sm:$0xff]  }
  0xa3   : > { %2903 = vmatpush1.bf16.msra.mxu1 %v3733_v39  ;;  %2934 = vmatprep.mubr.bf16.mxu1 %v1083_v44  ;;  %v3805_v39 = vld [vmem:[%s5109_s1 + $0x5b0] ss:$8 sps:$4 sm:$0xff]   ;;  %v3813_v44 = vld [vmem:[%s5109_s1 + $0x5a4] ss:$8 sps:$4 sm:$0xff]  }
  0xa4   : > { %2904 = vmatprep.subr.bf16.mxu1 %v3741_v4  ;;  %v3814_v4 = vld [vmem:[%s5109_s1 + $0x490] ss:$8 sps:$4 sm:$0xff]  }
  0xa5   : > { %2864 = vmatpush1.bf16.msra.mxu0 %v3736_v3  ;;  %v3807_v3 = vld [vmem:[%s5109_s1 + $0x5b4] ss:$8 sps:$4 sm:$0xff]  }
  0xa6   : > { %2865 = vmatprep.subr.bf16.mxu0 %v3744_v34  ;;  %v3816_v34 = vld [vmem:[%s5109_s1 + $0x494] ss:$8 sps:$4 sm:$0xff]  }
  0xa7   : > { %2905 = vmatpush1.bf16.msra.mxu1 %v3739_v9  ;;  %v3811_v9 = vld [vmem:[%s5109_s1 + $0x5a0] ss:$8 sps:$4 sm:$0xff]  }
  0xa8   : > { %2906 = vmatprep.subr.bf16.mxu1 %v3747_v10  ;;  %v3819_v10 = vld [vmem:[%s5109_s1 + $0x594] ss:$8 sps:$4 sm:$0xff]  }
  0xa9   : > { %2866 = vmatpush1.bf16.msra.mxu0 %v3742_v7  ;;  %v1101_v7 = vcombine.low %v4518_v22, %v3947_v57  ;;  %v1028_v22 = vrot.slane %v3244_v58, %v4138_v51 }
  0xaa   : > { %2867 = vmatprep.subr.bf16.mxu0 %v3750_v8  ;;  %v3822_v8 = vld [vmem:[%s5109_s1 + $0x484] ss:$8 sps:$4 sm:$0xff]  }
  0xab   : > { %2907 = vmatpush1.bf16.msra.mxu1 %v3745_v6  ;;  %v3828_v6 = vld [vmem:[%s5109_s1 + $0x674] ss:$8 sps:$4 sm:$0xff]   ;;  %v1035_v58 = vrot.slane %v1028_v22, %v4138_v51  ;;  %v3892_v22 = vld [vmem:[%s5109_s1 + $0x6c0] ss:$8 sps:$4 sm:$0xff]  }
  0xac   : > { %2908 = vmatprep.subr.bf16.mxu1 %v3753_v13  ;;  %v3817_v13 = vld [vmem:[%s5109_s1 + $0x590] ss:$8 sps:$4 sm:$0xff]  }
  0xad   : > { %2868 = vmatpush1.bf16.msra.mxu0 %v3748_v11  ;;  %v3820_v11 = vld [vmem:[%s5109_s1 + $0x480] ss:$8 sps:$4 sm:$0xff]  }
  0xae   : > { %2869 = vmatprep.subr.bf16.mxu0 %v3756_v12  ;;  %v1108_v12 = vrot.slane %v1101_v7, %v4138_v51  ;;  %v3886_v7 = vld [vmem:[%s5109_s1 + $0x6d0] ss:$8 sps:$4 sm:$0xff]  }
  0xaf   : > { %2909 = vmatpush1.bf16.msra.mxu1 %v3751_v16  ;;  %v1060_v16 = vrot.slane %v1053_v63, %v4138_v51  ;;  %v3840_v63 = vld [vmem:[%s5109_s1 + $0x654] ss:$8 sps:$4 sm:$0xff]  }
  0xb0   : > { %2910 = vmatprep.subr.bf16.mxu1 %v3759_v17  ;;  %v3823_v17 = vld [vmem:[%s5109_s1 + $0x580] ss:$8 sps:$4 sm:$0xff]  }
  0xb1   : > { %2870 = vmatpush1.bf16.msra.mxu0 %v3754_v14  ;;  %v3826_v14 = vld [vmem:[%s5109_s1 + $0x670] ss:$8 sps:$4 sm:$0xff]   ;;  %v1067_v59 = vrot.slane %v1060_v16, %v4138_v51 }
  0xb2   : > { %2871 = vmatprep.subr.bf16.mxu0 %v3762_v15  ;;  %v1115_v15 = vrot.slane %v1108_v12, %v4138_v51  ;;  %v3889_v12 = vld [vmem:[%s5109_s1 + $0x7d0] ss:$8 sps:$4 sm:$0xff]  }
  0xb3   : > { %2911 = vmatpush1.bf16.msra.mxu1 %v3757_v21  ;;  %v3829_v21 = vld [vmem:[%s5109_s1 + $0x770] ss:$8 sps:$4 sm:$0xff]  }
  0xb4   : > { %2912 = vmatprep.subr.bf16.mxu1 %v3765_v23  ;;  %v3901_v16 = vld [vmem:[%s5109_s1 + $0x7b0] ss:$8 sps:$4 sm:$0xff]  }
  0xb5   : > { %2872 = vmatpush1.bf16.msra.mxu0 %v3760_v18  ;;  %v1140_v18 = vrot.slane %v1133_v55, %v4138_v51  ;;  %v3906_v55 = vld [vmem:[%s5109_s1 + $0x6a4] ss:$8 sps:$4 sm:$0xff]  }
  0xb6   : > { %2873 = vmatprep.subr.bf16.mxu0 %v3768_v19  ;;  %v3831_v19 = vld [vmem:[%s5109_s1 + $0x774] ss:$8 sps:$4 sm:$0xff]  }
  0xb7   : > { %2913 = vmatpush1.bf16.msra.mxu1 %v3763_v41  ;;  %v1147_v23 = vrot.slane %v1140_v18, %v4138_v51  ;;  %v3846_v41 = vld [vmem:[%s5109_s1 + $0x644] ss:$8 sps:$4 sm:$0xff]   ;;  %v3910_v18 = vld [vmem:[%s5109_s1 + $0x690] ss:$8 sps:$4 sm:$0xff]  }
  0xb8   : > { %2914 = vmatprep.subr.bf16.mxu1 %v3771_v30  ;;  %v3835_v30 = vld [vmem:[%s5109_s1 + $0x760] ss:$8 sps:$4 sm:$0xff]  }
  0xb9   : > { %2874 = vmatpush1.bf16.msra.mxu0 %v3766_v33  ;;  %v3837_v33 = vld [vmem:[%s5109_s1 + $0x764] ss:$8 sps:$4 sm:$0xff]  }
  0xba   : > { %2875 = vmatprep.subr.bf16.mxu0 %v3774_v27  ;;  %v3838_v27 = vld [vmem:[%s5109_s1 + $0x650] ss:$8 sps:$4 sm:$0xff]  }
  0xbb   : > { %2915 = vmatpush1.bf16.msra.mxu1 %v3769_v32  ;;  %v3852_v32 = vld [vmem:[%s5109_s1 + $0x634] ss:$8 sps:$4 sm:$0xff]  }
  0xbc   : > { %2916 = vmatprep.subr.bf16.mxu1 %v3777_v35  ;;  %v3841_v35 = vld [vmem:[%s5109_s1 + $0x750] ss:$8 sps:$4 sm:$0xff]  }
  0xbd   : > { %2876 = vmatpush1.bf16.msra.mxu0 %v3772_v31  ;;  %v3843_v31 = vld [vmem:[%s5109_s1 + $0x754] ss:$8 sps:$4 sm:$0xff]  }
  0xbe   : > { %2877 = vmatprep.subr.bf16.mxu0 %v3780_v50  ;;  %v3844_v50 = vld [vmem:[%s5109_s1 + $0x640] ss:$8 sps:$4 sm:$0xff]  }
  0xbf   : > { %2917 = vmatpush1.bf16.msra.mxu1 %v3775_v38  ;;  %v3858_v38 = vld [vmem:[%s5109_s1 + $0x624] ss:$8 sps:$4 sm:$0xff]  }
  0xc0   : > { %2918 = vmatprep.subr.bf16.mxu1 %v3783_v42  ;;  %v3847_v42 = vld [vmem:[%s5109_s1 + $0x740] ss:$8 sps:$4 sm:$0xff]  }
  0xc1   : > { %2878 = vmatpush2.bf16.msra.mxu0 %v3778_v36  ;;  %v3849_v36 = vld [vmem:[%s5109_s1 + $0x744] ss:$8 sps:$4 sm:$0xff]  }
  0xc2   : > { %2879 = vmatprep.subr.bf16.mxu0 %v3786_v37  ;;  %v3850_v37 = vld [vmem:[%s5109_s1 + $0x630] ss:$8 sps:$4 sm:$0xff]  }
  0xc3   : > { %2919 = vmatpush2.bf16.msra.mxu1 %v3781_v53  ;;  %v3864_v53 = vld [vmem:[%s5109_s1 + $0x614] ss:$8 sps:$4 sm:$0xff]  }
  0xc4   : > { %2920 = vmatprep.subr.bf16.mxu1 %v3789_v54  ;;  %v3853_v54 = vld [vmem:[%s5109_s1 + $0x730] ss:$8 sps:$4 sm:$0xff]  }
  0xc5   : > { %2880 = vmatpush2.bf16.msra.mxu0 %v3784_v43  ;;  %v3855_v43 = vld [vmem:[%s5109_s1 + $0x734] ss:$8 sps:$4 sm:$0xff]  }
  0xc6   : > { %2881 = vmatprep.subr.bf16.mxu0 %v3792_v48  ;;  %v3856_v48 = vld [vmem:[%s5109_s1 + $0x620] ss:$8 sps:$4 sm:$0xff]  }
  0xc7   : > { %2921 = vmatpush2.bf16.msra.mxu1 %v3787_v25  ;;  %v3870_v25 = vld [vmem:[%s5109_s1 + $0x604] ss:$8 sps:$4 sm:$0xff]  }
  0xc8   : > { %2922 = vmatprep.subr.bf16.mxu1 %v3795_v29  ;;  %v3859_v29 = vld [vmem:[%s5109_s1 + $0x720] ss:$8 sps:$4 sm:$0xff]  }
  0xc9   : > { %2882 = vmatpush2.bf16.msra.mxu0 %v3790_v60  ;;  %v3861_v60 = vld [vmem:[%s5109_s1 + $0x724] ss:$8 sps:$4 sm:$0xff]  }
  0xca   : > { %2883 = vmatprep.subr.bf16.mxu0 %v3798_v24  ;;  %v3862_v24 = vld [vmem:[%s5109_s1 + $0x610] ss:$8 sps:$4 sm:$0xff]  }
  0xcb   : > { %2923 = vmatpush2.bf16.msra.mxu1 %v3793_v52  ;;  %v3876_v52 = vld [vmem:[%s5109_s1 + $0x6f4] ss:$8 sps:$4 sm:$0xff]  }
  0xcc   : > { %2924 = vmatprep.subr.bf16.mxu1 %v3801_v61  ;;  %v3865_v61 = vld [vmem:[%s5109_s1 + $0x710] ss:$8 sps:$4 sm:$0xff]  }
  0xcd   : > { %2884 = vmatpush2.bf16.msra.mxu0 %v3796_v45  ;;  %v3867_v45 = vld [vmem:[%s5109_s1 + $0x714] ss:$8 sps:$4 sm:$0xff]  }
  0xce   : > { %2885 = vmatprep.subr.bf16.mxu0 %v3804_v49  ;;  %v3868_v49 = vld [vmem:[%s5109_s1 + $0x600] ss:$8 sps:$4 sm:$0xff]  }
  0xcf   : > { %2925 = vmatpush2.bf16.msra.mxu1 %v3799_v2  ;;  %v3882_v2 = vld [vmem:[%s5109_s1 + $0x6e4] ss:$8 sps:$4 sm:$0xff]  }
  0xd0   : > { %2926 = vmatprep.subr.bf16.mxu1 %v3807_v3  ;;  %v3871_v3 = vld [vmem:[%s5109_s1 + $0x700] ss:$8 sps:$4 sm:$0xff]  }
  0xd1   : > { %2886 = vmatpush2.bf16.msra.mxu0 %v3802_v62  ;;  %v3873_v62 = vld [vmem:[%s5109_s1 + $0x704] ss:$8 sps:$4 sm:$0xff]  }
  0xd2   : > { %2887 = vmatprep.subr.bf16.mxu0 %v3810_v0  ;;  %v3874_v0 = vld [vmem:[%s5109_s1 + $0x6f0] ss:$8 sps:$4 sm:$0xff]  }
  0xd3   : > { %2927 = vmatpush2.bf16.msra.mxu1 %v3805_v39  ;;  %v3888_v39 = vld [vmem:[%s5109_s1 + $0x6d4] ss:$8 sps:$4 sm:$0xff]  }
  0xd4   : > { %2928 = vmatprep.subr.bf16.mxu1 %v3813_v44  ;;  %v3877_v44 = vld [vmem:[%s5109_s1 + $0x7f0] ss:$8 sps:$4 sm:$0xff]  }
  0xd5   : > { %2888 = vmatpush2.bf16.msra.mxu0 %v3808_v5  ;;  %v3879_v5 = vld [vmem:[%s5109_s1 + $0x7f4] ss:$8 sps:$4 sm:$0xff]  }
  0xd6   : > { %2889 = vmatprep.subr.bf16.mxu0 %v3816_v34  ;;  %v3880_v34 = vld [vmem:[%s5109_s1 + $0x6e0] ss:$8 sps:$4 sm:$0xff]  }
  0xd7   : > { %2929 = vmatpush2.bf16.msra.mxu1 %v3811_v9  ;;  %v3883_v9 = vld [vmem:[%s5109_s1 + $0x7e0] ss:$8 sps:$4 sm:$0xff]  }
  0xd8   : > { %2930 = vmatprep.subr.bf16.mxu1 %v3819_v10  ;;  %v3891_v10 = vld [vmem:[%s5109_s1 + $0x7d4] ss:$8 sps:$4 sm:$0xff]  }
  0xd9   : > { %2890 = vmatpush2.bf16.msra.mxu0 %v3814_v4  ;;  %v3885_v4 = vld [vmem:[%s5109_s1 + $0x7e4] ss:$8 sps:$4 sm:$0xff]  }
  0xda   : > { %2891 = vmatprep.subr.bf16.mxu0 %v3822_v8  ;;  %v3894_v8 = vld [vmem:[%s5109_s1 + $0x6c4] ss:$8 sps:$4 sm:$0xff]  }
  0xdb   : > { %2931 = vmatpush2.bf16.msra.mxu1 %v3817_v13  ;;  %v3898_v13 = vld [vmem:[%s5109_s1 + $0x6b0] ss:$8 sps:$4 sm:$0xff]  }
  0xdc   : > { %2932 = vmatprep.subr.bf16.mxu1 %v3825_v56  ;;  %v3895_v56 = vld [vmem:[%s5109_s1 + $0x7c0] ss:$8 sps:$4 sm:$0xff]  }
  0xdd   : > { %2892 = vmatpush2.bf16.msra.mxu0 %v3820_v11  ;;  %v3900_v11 = vld [vmem:[%s5109_s1 + $0x6b4] ss:$8 sps:$4 sm:$0xff]  }
  0xde   : > { %2943 = vmatprep.subr.bf16.mxu0 %v3828_v6  ;;  %v3897_v6 = vld [vmem:[%s5109_s1 + $0x7c4] ss:$8 sps:$4 sm:$0xff]  }
  0xdf   : > { %2933 = vmatpush2.bf16.msra.mxu1 %v3823_v17  ;;  %v1085_v17 = vcombine.low %v4536_v28, %v3947_v57  ;;  %v3915_v57 = vld [vmem:[%s5109_s1 + $0x794] ss:$8 sps:$4 sm:$0xff]  }
  0xe0   : > { %2894 = vmatmul.mubr.bf16.vlgmr.msra.gmra.mxu0 %v1035_v58  ;;  %2984 = vmatprep.subr.bf16.mxu1 %v3831_v19  ;;  %v3903_v58 = vld [vmem:[%s5109_s1 + $0x7b4] ss:$8 sps:$4 sm:$0xff]   ;;  %v3918_v19 = vld [vmem:[%s5109_s1 + $0x684] ss:$8 sps:$4 sm:$0xff]  }
  0xe1   : > { %2944 = vmatpush1.bf16.msra.mxu0 %v3826_v14  ;;  %2975 = vmatprep.mubr.bf16.mxu0 %v1115_v15  ;;  %v3904_v14 = vld [vmem:[%s5109_s1 + $0x6a0] ss:$8 sps:$4 sm:$0xff]   ;;  %v3912_v15 = vld [vmem:[%s5109_s1 + $0x694] ss:$8 sps:$4 sm:$0xff]   ;;  %v1092_v28 = vrot.slane %v1085_v17, %v4138_v51 }
  0xe2   : > { %2945 = vmatprep.subr.bf16.mxu0 %v3834_v20  ;;  %2935 = vmatmul.mubr.bf16.vlgmr.msra.gmra.mxu1 %v1067_v59  ;;  %v3909_v20 = vld [vmem:[%s5109_s1 + $0x7a4] ss:$8 sps:$4 sm:$0xff]   ;;  %v3916_v59 = vld [vmem:[%s5109_s1 + $0x680] ss:$8 sps:$4 sm:$0xff]  }
  0xe3   : > { %2985 = vmatpush1.bf16.msra.mxu1 %v3829_v21  ;;  %3016 = vmatprep.mubr.bf16.mxu1 %v1147_v23  ;;  %v3913_v21 = vld [vmem:[%s5109_s1 + $0x790] ss:$8 sps:$4 sm:$0xff]   ;;  %v1409_v23 = vsub.s32 0, %v4122_v46 }
  0xe4   : > { %2986 = vmatprep.subr.bf16.mxu1 %v3837_v33  ;;  %v3921_v33 = vld [vmem:[%s5109_s1 + $0x784] ss:$8 sps:$4 sm:$0xff]  }
  0xe5   : > { %2946 = vmatpush1.bf16.msra.mxu0 %v3832_v47  ;;  %v3907_v47 = vld [vmem:[%s5109_s1 + $0x7a0] ss:$8 sps:$4 sm:$0xff]  }
  0xe6   : > { %2947 = vmatprep.subr.bf16.mxu0 %v3840_v63  ;;  %v1117_v63 = vcombine.low %v4596_v26, %v4324_v1  ;;  %v1413_v1 = vsub.s32 1, %v4122_v46 }
  0xe7   : > { %2987 = vmatpush1.bf16.msra.mxu1 %v3835_v30  ;;  %v3919_v30 = vld [vmem:[%s5109_s1 + $0x780] ss:$8 sps:$4 sm:$0xff]  }
  0xe8   : > { %2988 = vmatprep.subr.bf16.mxu1 %v3843_v31  ;;  %v1124_v26 = vrot.slane %v1117_v63, %v4138_v51 }
  0xe9   : > { %2948 = vmatpush1.bf16.msra.mxu0 %v3838_v27  ;;  %v1405_v27 = vld [vmem:[%s5110_s2] sm:$0x3] }
  0xea   : > { %2949 = vmatprep.subr.bf16.mxu0 %v3846_v41  ;;  %v1099_v41 = vrot.slane %v1092_v28, %v4138_v51  ;;  %v1410_v31 = vrot.slane %v1405_v27, %v1409_v23 }
  0xeb   : > { %2989 = vmatpush1.bf16.msra.mxu1 %v3841_v35  ;;  %v1131_v35 = vrot.slane %v1124_v26, %v4138_v51 }
  0xec   : > { %2990 = vmatprep.subr.bf16.mxu1 %v3849_v36 }
  0xed   : > { %2950 = vmatpush1.bf16.msra.mxu0 %v3844_v50 }
  0xee   : > { %2951 = vmatprep.subr.bf16.mxu0 %v3852_v32  ;;  %v1414_v32 = vrot.slane %v1405_v27, %v1413_v1 }
  0xef   : > { %2991 = vmatpush1.bf16.msra.mxu1 %v3847_v42 }
  0xf0   : > { %2992 = vmatprep.subr.bf16.mxu1 %v3855_v43 }
  0xf1   : > { %2952 = vmatpush1.bf16.msra.mxu0 %v3850_v37 }
  0xf2   : > { %2953 = vmatprep.subr.bf16.mxu0 %v3858_v38 }
  0xf3   : > { %2993 = vmatpush1.bf16.msra.mxu1 %v3853_v54 }
  0xf4   : > { %2994 = vmatprep.subr.bf16.mxu1 %v3861_v60 }
  0xf5   : > { %2954 = vmatpush1.bf16.msra.mxu0 %v3856_v48 }
  0xf6   : > { %2955 = vmatprep.subr.bf16.mxu0 %v3864_v53 }
  0xf7   : > { %2995 = vmatpush1.bf16.msra.mxu1 %v3859_v29 }
  0xf8   : > { %2996 = vmatprep.subr.bf16.mxu1 %v3867_v45 }
  0xf9   : > { %2956 = vmatpush1.bf16.msra.mxu0 %v3862_v24 }
  0xfa   : > { %2957 = vmatprep.subr.bf16.mxu0 %v3870_v25 }
  0xfb   : > { %2997 = vmatpush1.bf16.msra.mxu1 %v3865_v61 }
  0xfc   : > { %2998 = vmatprep.subr.bf16.mxu1 %v3873_v62 }
  0xfd   : > { %2958 = vmatpush1.bf16.msra.mxu0 %v3868_v49 }
  0xfe   : > { %2959 = vmatprep.subr.bf16.mxu0 %v3876_v52 }
  0xff   : > { %2999 = vmatpush1.bf16.msra.mxu1 %v3871_v3 }
 0x100   : > { %3000 = vmatprep.subr.bf16.mxu1 %v3879_v5 }
 0x101   : > { %2960 = vmatpush2.bf16.msra.mxu0 %v3874_v0 }
 0x102   : > { %2961 = vmatprep.subr.bf16.mxu0 %v3882_v2 }
 0x103   : > { %3001 = vmatpush2.bf16.msra.mxu1 %v3877_v44 }
 0x104   : > { %3002 = vmatprep.subr.bf16.mxu1 %v3885_v4 }
 0x105   : > { %2962 = vmatpush2.bf16.msra.mxu0 %v3880_v34 }
 0x106   : > { %2963 = vmatprep.subr.bf16.mxu0 %v3888_v39 }
 0x107   : > { %3003 = vmatpush2.bf16.msra.mxu1 %v3883_v9 }
 0x108   : > { %3004 = vmatprep.subr.bf16.mxu1 %v3891_v10 }
 0x109   : > { %2964 = vmatpush2.bf16.msra.mxu0 %v3886_v7 }
 0x10a   : > { %2965 = vmatprep.subr.bf16.mxu0 %v3894_v8 }
 0x10b   : > { %3005 = vmatpush2.bf16.msra.mxu1 %v3889_v12 }
 0x10c   : > { %3006 = vmatprep.subr.bf16.mxu1 %v3897_v6 }
 0x10d   : > { %2966 = vmatpush2.bf16.msra.mxu0 %v3892_v22 }
 0x10e   : > { %2967 = vmatprep.subr.bf16.mxu0 %v3900_v11 }
 0x10f   : > { %3007 = vmatpush2.bf16.msra.mxu1 %v3895_v56 }
 0x110   : > { %3008 = vmatprep.subr.bf16.mxu1 %v3903_v58 }
 0x111   : > { %2968 = vmatpush2.bf16.msra.mxu0 %v3898_v13 }
 0x112   : > { %2969 = vmatprep.subr.bf16.mxu0 %v3906_v55 }
 0x113   : > { %3009 = vmatpush2.bf16.msra.mxu1 %v3901_v16 }
 0x114   : > { %3010 = vmatprep.subr.bf16.mxu1 %v3909_v20 }
 0x115   : > { %2970 = vmatpush2.bf16.msra.mxu0 %v3904_v14 }
 0x116   : > { %2971 = vmatprep.subr.bf16.mxu0 %v3912_v15 }
 0x117   : > { %3011 = vmatpush2.bf16.msra.mxu1 %v3907_v47 }
 0x118   : > { %3012 = vmatprep.subr.bf16.mxu1 %v3915_v57 }
 0x119   : > { %2972 = vmatpush2.bf16.msra.mxu0 %v3910_v18 }
 0x11a   : > { %2973 = vmatprep.subr.bf16.mxu0 %v3918_v19 }
 0x11b   : > { %3013 = vmatpush2.bf16.msra.mxu1 %v3913_v21 }
 0x11c   : > { %3014 = vmatprep.subr.bf16.mxu1 %v3921_v33 }
 0x11d   : > { %2974 = vmatpush2.bf16.msra.mxu0 %v3916_v59 }
 0x11f   : > { %3015 = vmatpush2.bf16.msra.mxu1 %v3919_v30 }
 0x120   : > { %v2731_v50 = vpop.f32.mrf.mxu0  ;;  %2976 = vmatmul.mubr.bf16.vlgmr.msra.gmra.mxu0 %v1099_v41 }
 0x121   : > { %v2732_v37 = vadd.f32 %v2731_v50, %v1410_v31  ;;  %v2772_v46 = vpop.f32.mrf.mxu1 }
 0x122   : > { %v2733_v36 = vpop.f32.mrf.mxu0  ;;  %3017 = vmatmul.mubr.bf16.vlgmr.msra.gmra.mxu1 %v1131_v35 }
 0x123   : > { %v2734_v42 = vadd.f32 %v2733_v36, %v1414_v32  ;;  %v2773_v48 = vadd.f32 %v2772_v46, %v2732_v37  ;;  %v2774_v53 = vpop.f32.mrf.mxu1 }
 0x124   : > { %v2735_v38 = vpop.f32.mrf.mxu0 }
 0x125   : > { %v2775_v54 = vadd.f32 %v2774_v53, %v2734_v42  ;;  %v2776_v60 = vpop.f32.mrf.mxu1 }
 0x126   : > { %v2736_v43 = vpop.f32.mrf.mxu0 }
 0x127   : > { %v2777_v24 = vpop.f32.mrf.mxu1 }
 0x160   : > { %v2813_v25 = vpop.f32.mrf.mxu0 }
 0x161   : > { %v2814_v29 = vadd.f32 %v2813_v25, %v2773_v48 }
 0x162   : > { %v2815_v45 = vpop.f32.mrf.mxu0  ;;  %v2854_v61 = vpop.f32.mrf.mxu1 }
 0x163   : > { %v2816_v49 = vadd.f32 %v2815_v45, %v2775_v54  ;;  %v2855_v0 = vadd.f32 %v2854_v61, %v2814_v29 }
 0x164   : > { %v2817_v52 = vpop.f32.mrf.mxu0  ;;  %v2856_v2 = vpop.f32.mrf.mxu1 }
 0x165   : > { %v2857_v3 = vadd.f32 %v2856_v2, %v2816_v49 }
 0x166   : > { %v2818_v62 = vpop.f32.mrf.mxu0  ;;  %v2858_v5 = vpop.f32.mrf.mxu1 }
 0x168   : > { %v2859_v34 = vpop.f32.mrf.mxu1 }
 0x1a0   : > { %v2895_v39 = vpop.f32.mrf.mxu0 }
 0x1a1   : > { %v2896_v44 = vadd.f32 %v2895_v39, %v2855_v0 }
 0x1a2   : > { %v2897_v4 = vpop.f32.mrf.mxu0  ;;  %v2936_v9 = vpop.f32.mrf.mxu1 }
 0x1a3   : > { %v2898_v7 = vadd.f32 %v2897_v4, %v2857_v3  ;;  %v2937_v13 = vadd.f32 %v2936_v9, %v2896_v44 }
 0x1a4   : > { %v2899_v8 = vpop.f32.mrf.mxu0  ;;  %v2938_v22 = vpop.f32.mrf.mxu1 }
 0x1a5   : > { %v2939_v56 = vadd.f32 %v2938_v22, %v2898_v7 }
 0x1a6   : > { %v2900_v10 = vpop.f32.mrf.mxu0  ;;  %v2940_v11 = vpop.f32.mrf.mxu1 }
 0x1a8   : > { %v2941_v12 = vpop.f32.mrf.mxu1 }
 0x1e0   : > { %v2977_v6 = vpop.f32.mrf.mxu0 }
 0x1e1   : > { %v2978_v58 = vadd.f32 %v2977_v6, %v2937_v13 }
 0x1e2   : > { %v2979_v55 = vpop.f32.mrf.mxu0  ;;  %v3018_v16 = vpop.f32.mrf.mxu1 }
 0x1e3   : > { %v2980_v15 = vadd.f32 %v2979_v55, %v2939_v56  ;;  %v3019_v17 = vadd.f32 %v3018_v16, %v2978_v58 }
 0x1e4   : > { %v2981_v14 = vpop.f32.mrf.mxu0  ;;  %v3020_v18 = vpop.f32.mrf.mxu1 }
 0x1e5   : > { %v3025_v19 = vpack.c.bf16 %v3019_v17, %v3019_v17  ;;  %v3021_v47 = vadd.f32 %v3020_v18, %v2980_v15 }
 0x1e6   : > { %v2982_v20 = vpop.f32.mrf.mxu0  ;;  %v3022_v57 = vpop.f32.mrf.mxu1 }
 0x1e7   : > { %v3039_v28 = vunpack.c.l.bf16 %v3025_v19  ;;  %v3026_v59 = vpack.c.bf16 %v3021_v47, %v3021_v47  ;;  %v3502_v63 = vpack.c.bf16 %v3021_v47, %v3019_v17 }
 0x1e8   : > { %v3023_v21 = vpop.f32.mrf.mxu1 }
 0x1e9   : > { %v3042_v23 = vsel %vm3041_vm13, %v3039_v28, 0.0  ;;  %v3079_v33 = vmul.f32 %v3039_v28, %v3039_v28  ;;  %3503 = vst.sshfl [vmem:[%s347_s12] sm:$0x33 pattern:$0x76325410] %v3502_v63  ;;  %v3040_v27 = vunpack.c.l.bf16 %v3026_v59 }
 0x1ea   : > { %v3043_v41 = vrot.slane %v3042_v23, 4 }
 0x1eb   : > { %v3081_v1 = vsel %vm3041_vm13, %v3079_v33, 0.0  ;;  %v3049_v26 = vsel %vm3041_vm13, %v3040_v27, 0.0  ;;  %v3080_v30 = vmul.f32 %v3040_v27, %v3040_v27 }
 0x1ec   : > { %v3044_v31 = vadd.f32 %v3043_v41, %v3042_v23  ;;  %v3082_v50 = vrot.slane %v3081_v1, 4  ;;  %v3050_v32 = vrot.slane %v3049_v26, 4 }
 0x1ed   : > { %v3088_v35 = vsel %vm3041_vm13, %v3080_v30, 0.0 }
 0x1ee   : > { %v3045_v36 = vrot.slane %v3044_v31, 2  ;;  %v3083_v37 = vadd.f32 %v3082_v50, %v3081_v1  ;;  %v3051_v38 = vadd.f32 %v3050_v32, %v3049_v26  ;;  %v3089_v42 = vrot.slane %v3088_v35, 4 }
 0x1f0   : > { %v3046_v46 = vadd.f32 %v3045_v36, %v3044_v31  ;;  %v3084_v43 = vrot.slane %v3083_v37, 2  ;;  %v3052_v48 = vrot.slane %v3051_v38, 2  ;;  %v3090_v53 = vadd.f32 %v3089_v42, %v3088_v35 }
 0x1f2   : > { %v3047_v54 = vrot.slane %v3046_v46, 1  ;;  %v3085_v60 = vadd.f32 %v3084_v43, %v3083_v37  ;;  %v3053_v24 = vadd.f32 %v3052_v48, %v3051_v38  ;;  %v3091_v25 = vrot.slane %v3090_v53, 2 }
 0x1f4   : > { %v3086_v29 = vrot.slane %v3085_v60, 1  ;;  %v3054_v45 = vrot.slane %v3053_v24, 1  ;;  %v3092_v49 = vadd.f32 %v3091_v25, %v3090_v53  ;;  %v3048_v52 = vadd.f32 %v3047_v54, %v3046_v46 }
 0x1f6   : > { %v3055_v61 = vadd.f32 %v3054_v45, %v3053_v24  ;;  %v3093_v62 = vrot.slane %v3092_v49, 1  ;;  %v3087_v0 = vadd.f32 %v3086_v29, %v3085_v60 }
 0x1f8   : > { %v3058_v2 = vcombine.low %v3048_v52, %v3055_v61  ;;  %v3094_v3 = vadd.f32 %v3093_v62, %v3092_v49 }
 0x1fa   : > { %v3065_v5 = vrot.slane %v3058_v2, %v4138_v51  ;;  %v3097_v34 = vcombine.low %v3087_v0, %v3094_v3 }
 0x1fc   : > { %v3072_v39 = vrot.slane %v3065_v5, %v4138_v51  ;;  %v3104_v44 = vrot.slane %v3097_v34, %v4138_v51 }
 0x1fe   : > { %3078 = vst.msk [vmem:[%s352_s14] ss:$2 sm:$0x3] %vm3076_vm14, %v3072_v39  ;;  %v3111_v4 = vrot.slane %v3104_v44, %v4138_v51 }
 0x200   : > { %3504 = vst.msk [vmem:[%s352_s14 + $0x1] ss:$2 sm:$0x3] %vm3076_vm14, %v3111_v4 }
 0x201 PF: > { %p14_p9 = scmp.ge.s32.totalorder %s4000_s25, 4   ;;  %s5125_s21 = smov %s3940_s22 }
 0x202   : > { %s5126_s22 = smov %s4009_s28  ;;  %s5127_s23 = smov %s4000_s25 }
 0x203   :  { %16 = sbr.rel (!%p14_p9) target bundleno = 2 (0x2), region = 132 }

// kernel: discriminator_forward.7
= control target key start
LH: loop header
LB: loop body
LE: loop exit
PB: predicated region body
PF: predicated region fallthrough
CT: control target
= control target key end

     0   :  { %s4065_s18 = smov 0   ;;  %s4947_s0 = inlined_call_operand.vmem [shape: bf16[1,2,4,4,256], index: 0, kind: input, shape index: {}]   ;;  %s4948_s1 = inlined_call_operand.vmem [shape: bf16[4096,128], index: 1, kind: input, shape index: {}]   ;;  %s4949_s2 = inlined_call_operand.vmem [shape: f32[1,128], index: 2, kind: input, shape index: {}]   ;;  %s4950_s3 = inlined_call_operand.vmem [shape: f32[1,256], index: 3, kind: input, shape index: {}]   ;;  %s4951_s4 = inlined_call_operand.vmem [shape: f32[1,256], index: 4, kind: input, shape index: {}]   ;;  %s4952_s5 = inlined_call_operand.vmem [shape: f32[2,1,128], index: 5, kind: output, shape index: {}]  }
   0x1 LB: > { %s3125_s19 = sadd.s32 4294967295, %s4031_s18   ;;  %p3129_p0 = scmp.ge.s32.totalorder %s4031_s18, 1  ;;  %s4031_s18 = sphi %s4065_s18, %s15_s18  }
   0x2   : > { %p187_p1 = scmp.lt.s32.totalorder %s4031_s18, 3 }
   0x4   : > { %p188_p2 = pnand %p3129_p0, %p187_p1 }
   0x5   : > { %p213_p3 = scmp.lt.s32.totalorder (!%p188_p2), %s3125_s19, 1 }
   0x6   : > { %191 = sbr.rel (%p188_p2) target bundleno = 505 (0x1f9), region = 40 }
   0xb   : > { %v3765_v0 = vld [vmem:[%s4948_s1 + $0x78] sm:$0xff]   ;;  %v4033_v2 = vmov 0.0|0.0   ;;  %v4034_v4 = vmov 0   ;;  %v3769_v6 = vld [vmem:[%s4948_s1 + $0x70] sm:$0xff]   ;;  %v3773_v10 = vld [vmem:[%s4948_s1 + $0x68] sm:$0xff]   ;;  %s4958_s19 = smov (!%p213_p3, %s3125_s19), 1 }
   0xc   : > { %v3766_v1 = vld [vmem:[%s4948_s1 + $0xf8] sm:$0xff]   ;;  %2463 = vmatprep.mubr.bf16.mxu0 %v4033_v2  ;;  %3403 = vmatprep.subr.bf16.mxu0 %v3765_v0  ;;  %v3770_v7 = vld [vmem:[%s4948_s1 + $0xf0] sm:$0xff]   ;;  %v3774_v11 = vld [vmem:[%s4948_s1 + $0xe8] sm:$0xff]   ;;  %v4178_v36 = vrot.slane %v4033_v2, 1  ;;  %v4184_v38 = vrot.slane %v4034_v4, 1  ;;  %s3402_s16 = sshll.u32 %s4958_s19, 4  ;;  %s220_s17 = scalar_lea.vmem %s4952_s5, %s4958_s19 }
   0xd   : > { %v3767_v3 = vld [vmem:[%s4948_s1 + $0x38] sm:$0xff]   ;;  %2503 = vmatprep.mubr.bf16.mxu1 %v4034_v4  ;;  %3425 = vmatprep.subr.bf16.mxu1 %v3766_v1  ;;  %v3771_v8 = vld [vmem:[%s4948_s1 + $0x30] sm:$0xff]   ;;  %v3775_v12 = vld [vmem:[%s4948_s1 + $0x28] sm:$0xff]   ;;  %s4379_s27 = scalar_lea.vmem %s4947_s0, %s3402_s16 }
   0xe   : > { %v3768_v5 = vld [vmem:[%s4948_s1 + $0xb8] sm:$0xff]   ;;  %3404 = vmatpush3.bf16.msra.mxu0 %v3767_v3  ;;  %v3772_v9 = vld [vmem:[%s4948_s1 + $0xb0] sm:$0xff]   ;;  %v3776_v13 = vld [vmem:[%s4948_s1 + $0xa8] sm:$0xff]  }
   0xf   : > { %3426 = vmatpush3.bf16.msra.mxu1 %v3768_v5  ;;  %3405 = vmatprep.subr.bf16.mxu0 %v3769_v6  ;;  %v3777_v14 = vld [vmem:[%s4948_s1 + $0x60] sm:$0xff]   ;;  %v3781_v18 = vld [vmem:[%s4948_s1 + $0x58] sm:$0xff]   ;;  %v3785_v22 = vld [vmem:[%s4948_s1 + $0x50] sm:$0xff]  }
  0x10   : > { %3427 = vmatprep.subr.bf16.mxu1 %v3770_v7  ;;  %v3778_v15 = vld [vmem:[%s4948_s1 + $0xe0] sm:$0xff]   ;;  %v3782_v19 = vld [vmem:[%s4948_s1 + $0xd8] sm:$0xff]   ;;  %v3786_v23 = vld [vmem:[%s4948_s1 + $0xd0] sm:$0xff]  }
  0x11   : > { %v3779_v16 = vld [vmem:[%s4948_s1 + $0x20] sm:$0xff]   ;;  %v3783_v20 = vld [vmem:[%s4948_s1 + $0x18] sm:$0xff]   ;;  %v3787_v24 = vld [vmem:[%s4948_s1 + $0x10] sm:$0xff]  }
  0x12   : > { %3406 = vmatpush3.bf16.msra.mxu0 %v3771_v8  ;;  %v3780_v17 = vld [vmem:[%s4948_s1 + $0xa0] sm:$0xff]   ;;  %v3784_v21 = vld [vmem:[%s4948_s1 + $0x98] sm:$0xff]   ;;  %v3788_v25 = vld [vmem:[%s4948_s1 + $0x90] sm:$0xff]  }
  0x13   : > { %3428 = vmatpush3.bf16.msra.mxu1 %v3772_v9  ;;  %3407 = vmatprep.subr.bf16.mxu0 %v3773_v10  ;;  %v3789_v26 = vld [vmem:[%s4948_s1 + $0x48] sm:$0xff]   ;;  %v3793_v30 = vld [vmem:[%s4948_s1 + $0x40] sm:$0xff]   ;;  %v3797_v34 = vld [vmem:[%s4948_s1 + $0x178] sm:$0xff]  }
  0x14   : > { %3429 = vmatprep.subr.bf16.mxu1 %v3774_v11  ;;  %v3790_v27 = vld [vmem:[%s4948_s1 + $0xc8] sm:$0xff]   ;;  %v3794_v31 = vld [vmem:[%s4948_s1 + $0xc0] sm:$0xff]   ;;  %v3798_v35 = vld [vmem:[%s4948_s1 + $0x1f8] sm:$0xff]  }
  0x15   : > { %v3791_v28 = vld [vmem:[%s4948_s1 + $0x8] sm:$0xff]   ;;  %v3795_v32 = vld [vmem:[%s4948_s1] sm:$0xff]   ;;  %v3799_v37 = vld [vmem:[%s4948_s1 + $0x138] sm:$0xff]  }
  0x16   : > { %3408 = vmatpush3.bf16.msra.mxu0 %v3775_v12  ;;  %v3792_v29 = vld [vmem:[%s4948_s1 + $0x88] sm:$0xff]   ;;  %v3796_v33 = vld [vmem:[%s4948_s1 + $0x80] sm:$0xff]   ;;  %v3800_v39 = vld [vmem:[%s4948_s1 + $0x1b8] sm:$0xff]  }
  0x17   : > { %3430 = vmatpush3.bf16.msra.mxu1 %v3776_v13  ;;  %3409 = vmatprep.subr.bf16.mxu0 %v3777_v14  ;;  %v3801_v40 = vld [vmem:[%s4948_s1 + $0x170] sm:$0xff]   ;;  %v3805_v44 = vld [vmem:[%s4948_s1 + $0x168] sm:$0xff]   ;;  %v3809_v48 = vld [vmem:[%s4948_s1 + $0x160] sm:$0xff]  }
  0x18   : > { %3431 = vmatprep.subr.bf16.mxu1 %v3778_v15  ;;  %v3802_v41 = vld [vmem:[%s4948_s1 + $0x1f0] sm:$0xff]   ;;  %v3806_v45 = vld [vmem:[%s4948_s1 + $0x1e8] sm:$0xff]   ;;  %v3810_v49 = vld [vmem:[%s4948_s1 + $0x1e0] sm:$0xff]  }
  0x19   : > { %v3803_v42 = vld [vmem:[%s4948_s1 + $0x130] sm:$0xff]   ;;  %v3807_v46 = vld [vmem:[%s4948_s1 + $0x128] sm:$0xff]   ;;  %v3811_v50 = vld [vmem:[%s4948_s1 + $0x120] sm:$0xff]  }
  0x1a   : > { %3410 = vmatpush3.bf16.msra.mxu0 %v3779_v16  ;;  %v3804_v43 = vld [vmem:[%s4948_s1 + $0x1b0] sm:$0xff]   ;;  %v3808_v47 = vld [vmem:[%s4948_s1 + $0x1a8] sm:$0xff]   ;;  %v3812_v51 = vld [vmem:[%s4948_s1 + $0x1a0] sm:$0xff]  }
  0x1b   : > { %3432 = vmatpush3.bf16.msra.mxu1 %v3780_v17  ;;  %3411 = vmatprep.subr.bf16.mxu0 %v3781_v18  ;;  %v3813_v52 = vld [vmem:[%s4948_s1 + $0x158] sm:$0xff]   ;;  %v3817_v56 = vld [vmem:[%s4948_s1 + $0x150] sm:$0xff]   ;;  %v3821_v60 = vld [vmem:[%s4948_s1 + $0x148] sm:$0xff]  }
  0x1c   : > { %3433 = vmatprep.subr.bf16.mxu1 %v3782_v19  ;;  %v3814_v53 = vld [vmem:[%s4948_s1 + $0x1d8] sm:$0xff]   ;;  %v3818_v57 = vld [vmem:[%s4948_s1 + $0x1d0] sm:$0xff]   ;;  %v3822_v61 = vld [vmem:[%s4948_s1 + $0x1c8] sm:$0xff]  }
  0x1d   : > { %v3815_v54 = vld [vmem:[%s4948_s1 + $0x118] sm:$0xff]   ;;  %v3819_v58 = vld [vmem:[%s4948_s1 + $0x110] sm:$0xff]   ;;  %v3823_v62 = vld [vmem:[%s4948_s1 + $0x108] sm:$0xff]  }
  0x1e   : > { %3412 = vmatpush3.bf16.msra.mxu0 %v3783_v20  ;;  %v3816_v55 = vld [vmem:[%s4948_s1 + $0x198] sm:$0xff]   ;;  %v3820_v59 = vld [vmem:[%s4948_s1 + $0x190] sm:$0xff]   ;;  %v3824_v63 = vld [vmem:[%s4948_s1 + $0x188] sm:$0xff]  }
  0x1f   : > { %3434 = vmatpush3.bf16.msra.mxu1 %v3784_v21  ;;  %3413 = vmatprep.subr.bf16.mxu0 %v3785_v22  ;;  %v3825_v0 = vld [vmem:[%s4948_s1 + $0x140] sm:$0xff]   ;;  %v3829_v6 = vld [vmem:[%s4948_s1 + $0x278] sm:$0xff]   ;;  %v3833_v10 = vld [vmem:[%s4948_s1 + $0x270] sm:$0xff]  }
  0x20   : > { %3435 = vmatprep.subr.bf16.mxu1 %v3786_v23  ;;  %v3826_v1 = vld [vmem:[%s4948_s1 + $0x1c0] sm:$0xff]   ;;  %v3830_v7 = vld [vmem:[%s4948_s1 + $0x2f8] sm:$0xff]   ;;  %v3834_v11 = vld [vmem:[%s4948_s1 + $0x2f0] sm:$0xff]  }
  0x21   : > { %v3827_v3 = vld [vmem:[%s4948_s1 + $0x100] sm:$0xff]   ;;  %v3831_v8 = vld [vmem:[%s4948_s1 + $0x238] sm:$0xff]   ;;  %v3835_v12 = vld [vmem:[%s4948_s1 + $0x230] sm:$0xff]  }
  0x22   : > { %3414 = vmatpush3.bf16.msra.mxu0 %v3787_v24  ;;  %v3828_v5 = vld [vmem:[%s4948_s1 + $0x180] sm:$0xff]   ;;  %v3832_v9 = vld [vmem:[%s4948_s1 + $0x2b8] sm:$0xff]   ;;  %v3836_v13 = vld [vmem:[%s4948_s1 + $0x2b0] sm:$0xff]  }
  0x23   : > { %3436 = vmatpush3.bf16.msra.mxu1 %v3788_v25  ;;  %3415 = vmatprep.subr.bf16.mxu0 %v3789_v26  ;;  %v3837_v14 = vld [vmem:[%s4948_s1 + $0x268] sm:$0xff]   ;;  %v3841_v18 = vld [vmem:[%s4948_s1 + $0x260] sm:$0xff]   ;;  %v3845_v22 = vld [vmem:[%s4948_s1 + $0x258] sm:$0xff]  }
  0x24   : > { %3437 = vmatprep.subr.bf16.mxu1 %v3790_v27  ;;  %v3838_v15 = vld [vmem:[%s4948_s1 + $0x2e8] sm:$0xff]   ;;  %v3842_v19 = vld [vmem:[%s4948_s1 + $0x2e0] sm:$0xff]   ;;  %v3846_v23 = vld [vmem:[%s4948_s1 + $0x2d8] sm:$0xff]   ;;  %v233_v27 = vlaneseq }
  0x25   : > { %v3839_v16 = vld [vmem:[%s4948_s1 + $0x228] sm:$0xff]   ;;  %v3843_v20 = vld [vmem:[%s4948_s1 + $0x220] sm:$0xff]   ;;  %v3847_v24 = vld [vmem:[%s4948_s1 + $0x218] sm:$0xff]  }
  0x26   : > { %3416 = vmatpush3.bf16.msra.mxu0 %v3791_v28  ;;  %v3840_v17 = vld [vmem:[%s4948_s1 + $0x2a8] sm:$0xff]   ;;  %v3844_v21 = vld [vmem:[%s4948_s1 + $0x2a0] sm:$0xff]   ;;  %v3848_v25 = vld [vmem:[%s4948_s1 + $0x298] sm:$0xff]  }
  0x27   : > { %3438 = vmatpush3.bf16.msra.mxu1 %v3792_v29  ;;  %3417 = vmatprep.subr.bf16.mxu0 %v3793_v30  ;;  %v3849_v26 = vld [vmem:[%s4948_s1 + $0x250] sm:$0xff]  }
  0x28   : > { %3439 = vmatprep.subr.bf16.mxu1 %v3794_v31  ;;  %v3850_v28 = vld [vmem:[%s4948_s1 + $0x2d0] sm:$0xff]   ;;  %v3853_v31 = vld [vmem:[%s4948_s1 + $0x248] sm:$0xff]  }
  0x29   : > { %v3851_v29 = vld [vmem:[%s4948_s1 + $0x210] sm:$0xff]  }
  0x2a   : > { %3418 = vmatpush3.bf16.msra.mxu0 %v3795_v32  ;;  %v3852_v30 = vld [vmem:[%s4948_s1 + $0x290] sm:$0xff]   ;;  %v234_v32 = vshrl.u32 %v233_v27, 7  ;;  %v3879_v27 = vld [vmem:[%s4948_s1 + $0x318] sm:$0xff]  }
  0x2b   : > { %3440 = vmatpush3.bf16.msra.mxu1 %v3796_v33  ;;  %3447 = vmatprep.subr.bf16.mxu0 %v3797_v34  ;;  %v3854_v33 = vld [vmem:[%s4948_s1 + $0x2c8] sm:$0xff]  }
  0x2c   : > { %3469 = vmatprep.subr.bf16.mxu1 %v3798_v35  ;;  %v3855_v34 = vld [vmem:[%s4948_s1 + $0x208] sm:$0xff]   ;;  %vm276_vm0 = vcmp.ge.s32.totalorder %v234_v32, 1  ;;  %vm279_vm1 = vcmp.lt.s32.totalorder %v234_v32, 3 }
  0x2d   : > { %2464 = vmatmul.mubr.bf16.vlgmr.msra.gmra.mxu0 %v4033_v2  ;;  %v3856_v35 = vld [vmem:[%s4948_s1 + $0x288] sm:$0xff]   ;;  %vm4406_vm3 = vmand %vm276_vm0, %vm279_vm1 }
  0x2e   : > { %2504 = vmatmul.mubr.bf16.vlgmr.msra.gmra.mxu1 %v4034_v4  ;;  %3448 = vmatpush3.bf16.msra.mxu0 %v3799_v37  ;;  %v3857_v37 = vld [vmem:[%s4948_s1 + $0x240] sm:$0xff]   ;;  %vm4415_vm4 = vmpackc.low %vm4406_vm3, %vm4406_vm3 }
  0x2f   : > { %3470 = vmatpush3.bf16.msra.mxu1 %v3800_v39  ;;  %2543 = vmatprep.mubr.bf16.mxu0 %v4178_v36  ;;  %v235_v39 = vsub.s32 0, %v234_v32 }
  0x30   : > { %3449 = vmatprep.subr.bf16.mxu0 %v3801_v40  ;;  %2583 = vmatprep.mubr.bf16.mxu1 %v4184_v38  ;;  %v3858_v40 = vld [vmem:[%s4948_s1 + $0x2c0] sm:$0xff]  }
  0x31   : > { %3471 = vmatprep.subr.bf16.mxu1 %v3802_v41  ;;  %v239_v41 = vsub.s32 1, %v234_v32  ;;  %v3885_v32 = vld [vmem:[%s4948_s1 + $0x348] sm:$0xff]  }
  0x32   : > { %3450 = vmatpush3.bf16.msra.mxu0 %v3803_v42  ;;  %v3859_v42 = vld [vmem:[%s4948_s1 + $0x200] sm:$0xff]  }
  0x33   : > { %3472 = vmatpush3.bf16.msra.mxu1 %v3804_v43  ;;  %3451 = vmatprep.subr.bf16.mxu0 %v3805_v44  ;;  %v3860_v43 = vld [vmem:[%s4948_s1 + $0x280] sm:$0xff]  }
  0x34   : > { %3473 = vmatprep.subr.bf16.mxu1 %v3806_v45  ;;  %v223_v44 = vld [vmem:[%s4379_s27 + $0x4] sm:$0xf]  ;;  %v226_v45 = vld [vmem:[%s4950_s3] sm:$0x3] }
  0x36   : > { %3452 = vmatpush3.bf16.msra.mxu0 %v3807_v46  ;;  %v227_v46 = vld [vmem:[%s4951_s4] sm:$0x3] }
  0x37   : > { %3474 = vmatpush3.bf16.msra.mxu1 %v3808_v47  ;;  %3453 = vmatprep.subr.bf16.mxu0 %v3809_v48  ;;  %v229_v47 = vunpack.c.l.bf16 %v223_v44  ;;  %v236_v48 = vrot.slane %v226_v45, %v235_v39 }
  0x38   : > { %3475 = vmatprep.subr.bf16.mxu1 %v3810_v49  ;;  %v240_v49 = vrot.slane %v226_v45, %v239_v41  ;;  %v3894_v45 = vld [vmem:[%s4948_s1 + $0x4f8] sm:$0xff]  }
  0x3a   : > { %3454 = vmatpush3.bf16.msra.mxu0 %v3811_v50  ;;  %v251_v50 = vrot.slane %v227_v46, %v235_v39  ;;  %v3888_v39 = vld [vmem:[%s4948_s1 + $0x388] sm:$0xff]  }
  0x3b   : > { %3476 = vmatpush3.bf16.msra.mxu1 %v3812_v51  ;;  %3455 = vmatprep.subr.bf16.mxu0 %v3813_v52  ;;  %v255_v51 = vrot.slane %v227_v46, %v239_v41  ;;  %v3861_v52 = vld [vmem:[%s4948_s1 + $0x378] sm:$0xff]   ;;  %v3891_v41 = vld [vmem:[%s4948_s1 + $0x300] sm:$0xff]  }
  0x3c   : > { %3477 = vmatprep.subr.bf16.mxu1 %v3814_v53  ;;  %v4397_v53 = vcombine.low %v236_v48, %v240_v49  ;;  %v3895_v46 = vld [vmem:[%s4948_s1 + $0x438] sm:$0xff]  }
  0x3d   : > { %v3896_v49 = vld [vmem:[%s4948_s1 + $0x4b8] sm:$0xff]  }
  0x3e   : > { %3456 = vmatpush3.bf16.msra.mxu0 %v3815_v54  ;;  %v3862_v54 = vld [vmem:[%s4948_s1 + $0x3f8] sm:$0xff]  }
  0x3f   : > { %3478 = vmatpush3.bf16.msra.mxu1 %v3816_v55  ;;  %3457 = vmatprep.subr.bf16.mxu0 %v3817_v56  ;;  %v4402_v55 = vcombine.low %v251_v50, %v255_v51  ;;  %v244_v56 = vmul.f32 %v4397_v53, %v229_v47  ;;  %v3897_v47 = vld [vmem:[%s4948_s1 + $0x470] sm:$0xff]  }
  0x40   : > { %3479 = vmatprep.subr.bf16.mxu1 %v3818_v57  ;;  %v3898_v50 = vld [vmem:[%s4948_s1 + $0x4f0] sm:$0xff]  }
  0x41   : > { %v259_v57 = vadd.f32 %v4402_v55, %v244_v56  ;;  %v3899_v51 = vld [vmem:[%s4948_s1 + $0x430] sm:$0xff]   ;;  %v3902_v56 = vld [vmem:[%s4948_s1 + $0x4e8] sm:$0xff]  }
  0x42   : > { %3458 = vmatpush3.bf16.msra.mxu0 %v3819_v58 }
  0x43   : > { %3480 = vmatpush3.bf16.msra.mxu1 %v3820_v59  ;;  %3459 = vmatprep.subr.bf16.mxu0 %v3821_v60  ;;  %vm263_vm2 = vcmp.ge.f32.partialorder %v259_v57, 0.0  ;;  %v267_v58 = vmul.f32 0.2, %v259_v57  ;;  %v3928_v59 = vld [vmem:[%s4948_s1 + $0x5b8] sm:$0xff]  }
  0x44   : > { %3481 = vmatprep.subr.bf16.mxu1 %v3822_v61 }
  0x45   : > { %v271_v60 = vsel %vm263_vm2, %v259_v57, %v267_v58  ;;  %v3903_v57 = vld [vmem:[%s4948_s1 + $0x428] sm:$0xff]   ;;  %v3905_v58 = vld [vmem:[%s4948_s1 + $0x460] sm:$0xff]  }
  0x46   : > { %3460 = vmatpush3.bf16.msra.mxu0 %v3823_v62  ;;  %v287_v61 = vcombine.high %v271_v60, %v271_v60  ;;  %v296_v62 = vsel %vm4406_vm3, %v271_v60, 0.0 }
  0x47   : > { %3482 = vmatpush3.bf16.msra.mxu1 %v3824_v63  ;;  %3461 = vmatprep.subr.bf16.mxu0 %v3825_v0  ;;  %v3392_v0 = vpack.c.bf16 %v271_v60, %v271_v60  ;;  %v3904_v60 = vld [vmem:[%s4948_s1 + $0x4a8] sm:$0xff]   ;;  %v3932_v63 = vld [vmem:[%s4948_s1 + $0x5b0] sm:$0xff]  }
  0x48   : > { %3483 = vmatprep.subr.bf16.mxu1 %v3826_v1  ;;  %v4419_v1 = vpack.c.bf16 %v296_v62, %v296_v62  ;;  %v3907_v62 = vld [vmem:[%s4948_s1 + $0x420] sm:$0xff]  }
  0x4a   : > { %3462 = vmatpush3.bf16.msra.mxu0 %v3827_v3  ;;  %v3389_v3 = vpack.c.bf16 %v287_v61, %v287_v61  ;;  %v338_v44 = vrot.slane %v4419_v1, 1 }
  0x4b   : > { %3484 = vmatpush3.bf16.msra.mxu1 %v3828_v5  ;;  %3491 = vmatprep.subr.bf16.mxu0 %v3829_v6  ;;  %v297_v5 = vsel %vm4406_vm3, %v287_v61, 0.0  ;;  %v3863_v6 = vld [vmem:[%s4948_s1 + $0x338] sm:$0xff]   ;;  %v3906_v61 = vld [vmem:[%s4948_s1 + $0x4e0] sm:$0xff]  }
  0x4c   : > { %3513 = vmatprep.subr.bf16.mxu1 %v3830_v7  ;;  %v305_v7 = vpack.c.bf16 %v297_v5, %v297_v5  ;;  %v3911_v5 = vld [vmem:[%s4948_s1 + $0x418] sm:$0xff]  }
  0x4d   : > { %2544 = vmatmul.mubr.bf16.vlgmr.msra.gmra.mxu0 %v4178_v36 }
  0x4e   : > { %2584 = vmatmul.mubr.bf16.vlgmr.msra.gmra.mxu1 %v4184_v38  ;;  %3492 = vmatpush3.bf16.msra.mxu0 %v3831_v8  ;;  %v3865_v8 = vld [vmem:[%s4948_s1 + $0x370] sm:$0xff]  }
  0x4f   : > { %3514 = vmatpush3.bf16.msra.mxu1 %v3832_v9  ;;  %3493 = vmatprep.subr.bf16.mxu0 %v3833_v10  ;;  %v329_v9 = vshrl.u32 %v4419_v1, 16  ;;  %v3864_v10 = vld [vmem:[%s4948_s1 + $0x3b8] sm:$0xff]   ;;  %v3908_v1 = vld [vmem:[%s4948_s1 + $0x4a0] sm:$0xff]  }
  0x50   : > { %3515 = vmatprep.subr.bf16.mxu1 %v3834_v11  ;;  %3390 = vmatprep.mubr.msk.bf16.mxu0 %vm4415_vm4, %v3389_v3  ;;  %v332_v11 = vshrl.u32 %v305_v7, 16  ;;  %v3910_v3 = vld [vmem:[%s4948_s1 + $0x4d8] sm:$0xff]  }
  0x51   : > { %v342_v48 = vrot.slane %v329_v9, 1 }
  0x52   : > { %3494 = vmatpush3.bf16.msra.mxu0 %v3835_v12  ;;  %v3866_v12 = vld [vmem:[%s4948_s1 + $0x3f0] sm:$0xff]   ;;  %2663 = vmatprep.mubr.bf16.mxu1 %v332_v11 }
  0x53   : > { %3516 = vmatpush3.bf16.msra.mxu1 %v3836_v13  ;;  %3495 = vmatprep.subr.bf16.mxu0 %v3837_v14  ;;  %v3867_v13 = vld [vmem:[%s4948_s1 + $0x330] sm:$0xff]   ;;  %v339_v14 = vrot.slane %v305_v7, 1 }
  0x54   : > { %3517 = vmatprep.subr.bf16.mxu1 %v3838_v15  ;;  %v3869_v15 = vld [vmem:[%s4948_s1 + $0x368] sm:$0xff]   ;;  %v3913_v7 = vld [vmem:[%s4948_s1 + $0x450] sm:$0xff]  }
  0x56   : > { %3496 = vmatpush3.bf16.msra.mxu0 %v3839_v16  ;;  %v343_v16 = vrot.slane %v332_v11, 1  ;;  %v3917_v11 = vld [vmem:[%s4948_s1 + $0x448] sm:$0xff]  }
  0x57   : > { %3518 = vmatpush3.bf16.msra.mxu1 %v3840_v17  ;;  %3497 = vmatprep.subr.bf16.mxu0 %v3841_v18  ;;  %v3868_v17 = vld [vmem:[%s4948_s1 + $0x3b0] sm:$0xff]   ;;  %v3870_v18 = vld [vmem:[%s4948_s1 + $0x3e8] sm:$0xff]  }
  0x58   : > { %3519 = vmatprep.subr.bf16.mxu1 %v3842_v19  ;;  %v3871_v19 = vld [vmem:[%s4948_s1 + $0x328] sm:$0xff]  }
  0x5a   : > { %3498 = vmatpush3.bf16.msra.mxu0 %v3843_v20  ;;  %v3873_v20 = vld [vmem:[%s4948_s1 + $0x360] sm:$0xff]  }
  0x5b   : > { %3520 = vmatpush3.bf16.msra.mxu1 %v3844_v21  ;;  %3499 = vmatprep.subr.bf16.mxu0 %v3845_v22  ;;  %v3872_v21 = vld [vmem:[%s4948_s1 + $0x3a8] sm:$0xff]   ;;  %v3874_v22 = vld [vmem:[%s4948_s1 + $0x3e0] sm:$0xff]  }
  0x5c   : > { %3521 = vmatprep.subr.bf16.mxu1 %v3846_v23  ;;  %v3875_v23 = vld [vmem:[%s4948_s1 + $0x320] sm:$0xff]  }
  0x5e   : > { %3500 = vmatpush3.bf16.msra.mxu0 %v3847_v24  ;;  %v3877_v24 = vld [vmem:[%s4948_s1 + $0x358] sm:$0xff]  }
  0x5f   : > { %3522 = vmatpush3.bf16.msra.mxu1 %v3848_v25  ;;  %3501 = vmatprep.subr.bf16.mxu0 %v3849_v26  ;;  %v3876_v25 = vld [vmem:[%s4948_s1 + $0x3a0] sm:$0xff]   ;;  %v3878_v26 = vld [vmem:[%s4948_s1 + $0x3d8] sm:$0xff]  }
  0x60   : > { %3523 = vmatprep.subr.bf16.mxu1 %v3850_v28  ;;  %v3881_v28 = vld [vmem:[%s4948_s1 + $0x350] sm:$0xff]  }
  0x62   : > { %3502 = vmatpush3.bf16.msra.mxu0 %v3851_v29  ;;  %v3880_v29 = vld [vmem:[%s4948_s1 + $0x398] sm:$0xff]  }
  0x63   : > { %3524 = vmatpush3.bf16.msra.mxu1 %v3852_v30  ;;  %3503 = vmatprep.subr.bf16.mxu0 %v3853_v31  ;;  %v3882_v30 = vld [vmem:[%s4948_s1 + $0x3d0] sm:$0xff]  }
  0x64   : > { %3525 = vmatprep.subr.bf16.mxu1 %v3854_v33  ;;  %v3883_v31 = vld [vmem:[%s4948_s1 + $0x310] sm:$0xff]  }
  0x65   : > { %v3884_v33 = vld [vmem:[%s4948_s1 + $0x390] sm:$0xff]  }
  0x66   : > { %3504 = vmatpush3.bf16.msra.mxu0 %v3855_v34  ;;  %v3886_v34 = vld [vmem:[%s4948_s1 + $0x3c8] sm:$0xff]  }
  0x67   : > { %3526 = vmatpush3.bf16.msra.mxu1 %v3856_v35  ;;  %3505 = vmatprep.subr.bf16.mxu0 %v3857_v37  ;;  %v3887_v35 = vld [vmem:[%s4948_s1 + $0x308] sm:$0xff]   ;;  %v3889_v37 = vld [vmem:[%s4948_s1 + $0x340] sm:$0xff]  }
  0x68   : > { %3527 = vmatprep.subr.bf16.mxu1 %v3858_v40  ;;  %v3890_v40 = vld [vmem:[%s4948_s1 + $0x3c0] sm:$0xff]  }
  0x6a   : > { %3506 = vmatpush3.bf16.msra.mxu0 %v3859_v42  ;;  %v3893_v42 = vld [vmem:[%s4948_s1 + $0x478] sm:$0xff]  }
  0x6b   : > { %3528 = vmatpush3.bf16.msra.mxu1 %v3860_v43  ;;  %3535 = vmatprep.subr.bf16.mxu0 %v3861_v52  ;;  %v3892_v43 = vld [vmem:[%s4948_s1 + $0x380] sm:$0xff]   ;;  %v3901_v52 = vld [vmem:[%s4948_s1 + $0x468] sm:$0xff]  }
  0x6c   : > { %3557 = vmatprep.subr.bf16.mxu1 %v3862_v54  ;;  %v3900_v54 = vld [vmem:[%s4948_s1 + $0x4b0] sm:$0xff]  }
  0x6d   : > { %3393 = vmatmul.mubr.msk.bf16.vlgmr.msra.gmra.mxu0 %vm4415_vm4, %v3392_v0  ;;  %v3909_v0 = vld [vmem:[%s4948_s1 + $0x458] sm:$0xff]  }
  0x6e   : > { %3536 = vmatpush3.bf16.msra.mxu0 %v3863_v6  ;;  %2664 = vmatmul.mubr.bf16.vlgmr.msra.gmra.mxu1 %v329_v9  ;;  %v3912_v6 = vld [vmem:[%s4948_s1 + $0x498] sm:$0xff]   ;;  %v3915_v9 = vld [vmem:[%s4948_s1 + $0x410] sm:$0xff]  }
  0x6f   : > { %3537 = vmatprep.subr.bf16.mxu0 %v3865_v8  ;;  %2703 = vmatprep.mubr.bf16.mxu0 %v339_v14  ;;  %v3914_v8 = vld [vmem:[%s4948_s1 + $0x4d0] sm:$0xff]   ;;  %v3918_v14 = vld [vmem:[%s4948_s1 + $0x4c8] sm:$0xff]  }
  0x70   : > { %3558 = vmatpush3.bf16.msra.mxu1 %v3864_v10  ;;  %2743 = vmatprep.mubr.bf16.mxu1 %v343_v16  ;;  %v224_v10 = vld [vmem:[%s4379_s27 + $0x8] sm:$0xf] }
  0x71   : > { %3559 = vmatprep.subr.bf16.mxu1 %v3866_v12  ;;  %v230_v12 = vunpack.c.l.bf16 %v224_v10  ;;  %v3919_v16 = vld [vmem:[%s4948_s1 + $0x408] sm:$0xff]   ;;  %v3958_v10 = vld [vmem:[%s4948_s1 + $0x6f8] sm:$0xff]  }
  0x72   : > { %3538 = vmatpush3.bf16.msra.mxu0 %v3867_v13  ;;  %v3916_v13 = vld [vmem:[%s4948_s1 + $0x490] sm:$0xff]  }
  0x73   : > { %3539 = vmatprep.subr.bf16.mxu0 %v3869_v15  ;;  %v245_v15 = vmul.f32 %v4397_v53, %v230_v12  ;;  %v3922_v53 = vld [vmem:[%s4948_s1 + $0x4c0] sm:$0xff]   ;;  %v3961_v12 = vld [vmem:[%s4948_s1 + $0x670] sm:$0xff]  }
  0x74   : > { %3560 = vmatpush3.bf16.msra.mxu1 %v3868_v17  ;;  %v3921_v17 = vld [vmem:[%s4948_s1 + $0x440] sm:$0xff]  }
  0x75   : > { %3561 = vmatprep.subr.bf16.mxu1 %v3870_v18  ;;  %v260_v18 = vadd.f32 %v4402_v55, %v245_v15  ;;  %v3925_v55 = vld [vmem:[%s4948_s1 + $0x578] sm:$0xff]   ;;  %v3962_v15 = vld [vmem:[%s4948_s1 + $0x6f0] sm:$0xff]  }
  0x76   : > { %3540 = vmatpush3.bf16.msra.mxu0 %v3871_v19  ;;  %v3920_v19 = vld [vmem:[%s4948_s1 + $0x488] sm:$0xff]  }
  0x77   : > { %3541 = vmatprep.subr.bf16.mxu0 %v3873_v20  ;;  %vm264_vm5 = vcmp.ge.f32.partialorder %v260_v18, 0.0  ;;  %v268_v20 = vmul.f32 0.2, %v260_v18 }
  0x78   : > { %3562 = vmatpush3.bf16.msra.mxu1 %v3872_v21  ;;  %v3923_v21 = vld [vmem:[%s4948_s1 + $0x400] sm:$0xff]  }
  0x79   : > { %3563 = vmatprep.subr.bf16.mxu1 %v3874_v22  ;;  %v272_v22 = vsel %vm264_vm5, %v260_v18, %v268_v20  ;;  %v3964_v18 = vld [vmem:[%s4948_s1 + $0x6b0] sm:$0xff]   ;;  %v3969_v20 = vld [vmem:[%s4948_s1 + $0x660] sm:$0xff]  }
  0x7a   : > { %3542 = vmatpush3.bf16.msra.mxu0 %v3875_v23  ;;  %v3924_v23 = vld [vmem:[%s4948_s1 + $0x480] sm:$0xff]  }
  0x7b   : > { %3543 = vmatprep.subr.bf16.mxu0 %v3877_v24  ;;  %v288_v24 = vcombine.high %v272_v22, %v272_v22 }
  0x7c   : > { %3564 = vmatpush3.bf16.msra.mxu1 %v3876_v25  ;;  %v298_v25 = vsel %vm4406_vm3, %v272_v22, 0.0 }
  0x7d   : > { %3565 = vmatprep.subr.bf16.mxu1 %v3878_v26  ;;  %v3398_v26 = vpack.c.bf16 %v272_v22, %v272_v22  ;;  %v3970_v22 = vld [vmem:[%s4948_s1 + $0x6e0] sm:$0xff]  }
  0x7e   : > { %3544 = vmatpush3.bf16.msra.mxu0 %v3879_v27  ;;  %v4627_v27 = vpack.c.bf16 %v298_v25, %v298_v25  ;;  %v3974_v25 = vld [vmem:[%s4948_s1 + $0x6d8] sm:$0xff]  }
  0x7f   : > { %3545 = vmatprep.subr.bf16.mxu0 %v3881_v28  ;;  %v3926_v28 = vld [vmem:[%s4948_s1 + $0x5f8] sm:$0xff]  }
  0x80   : > { %3566 = vmatpush3.bf16.msra.mxu1 %v3880_v29  ;;  %v3395_v29 = vpack.c.bf16 %v288_v24, %v288_v24 }
  0x81   : > { %3567 = vmatprep.subr.bf16.mxu1 %v3882_v30  ;;  %v299_v30 = vsel %vm4406_vm3, %v288_v24, 0.0  ;;  %v3972_v24 = vld [vmem:[%s4948_s1 + $0x6a0] sm:$0xff]  }
  0x82   : > { %3546 = vmatpush3.bf16.msra.mxu0 %v3883_v31  ;;  %v3927_v31 = vld [vmem:[%s4948_s1 + $0x538] sm:$0xff]  }
  0x83   : > { %3547 = vmatprep.subr.bf16.mxu0 %v3885_v32  ;;  %v307_v32 = vpack.c.bf16 %v299_v30, %v299_v30  ;;  %v3979_v30 = vld [vmem:[%s4948_s1 + $0x610] sm:$0xff]  }
  0x84   : > { %3568 = vmatpush3.bf16.msra.mxu1 %v3884_v33  ;;  %v3929_v33 = vld [vmem:[%s4948_s1 + $0x570] sm:$0xff]  }
  0x85   : > { %3569 = vmatprep.subr.bf16.mxu1 %v3886_v34  ;;  %v347_v34 = vshrl.u32 %v4627_v27, 16 }
  0x86   : > { %3548 = vmatpush3.bf16.msra.mxu0 %v3887_v35  ;;  %v350_v35 = vshrl.u32 %v307_v32, 16 }
  0x87   : > { %3549 = vmatprep.subr.bf16.mxu0 %v3889_v37  ;;  %v3930_v37 = vld [vmem:[%s4948_s1 + $0x5f0] sm:$0xff]  }
  0x88   : > { %3570 = vmatpush3.bf16.msra.mxu1 %v3888_v39  ;;  %v3931_v39 = vld [vmem:[%s4948_s1 + $0x530] sm:$0xff]  }
  0x89   : > { %3571 = vmatprep.subr.bf16.mxu1 %v3890_v40  ;;  %v357_v40 = vrot.slane %v307_v32, 1 }
  0x8a   : > { %3550 = vmatpush3.bf16.msra.mxu0 %v3891_v41  ;;  %v3933_v41 = vld [vmem:[%s4948_s1 + $0x568] sm:$0xff]  }
  0x8b   : > { %3579 = vmatprep.subr.bf16.mxu0 %v3893_v42  ;;  %v361_v42 = vrot.slane %v350_v35, 1 }
  0x8c   : > { %3572 = vmatpush3.bf16.msra.mxu1 %v3892_v43  ;;  %v3934_v43 = vld [vmem:[%s4948_s1 + $0x5e8] sm:$0xff]  }
  0x8d   : > { %2704 = vmatmul.mubr.bf16.vlgmr.msra.gmra.mxu0 %v338_v44  ;;  %3601 = vmatprep.subr.bf16.mxu1 %v3894_v45  ;;  %v3935_v44 = vld [vmem:[%s4948_s1 + $0x528] sm:$0xff]   ;;  %v3937_v45 = vld [vmem:[%s4948_s1 + $0x560] sm:$0xff]  }
  0x8e   : > { %3580 = vmatpush3.bf16.msra.mxu0 %v3895_v46  ;;  %3396 = vmatprep.mubr.msk.bf16.mxu0 %vm4415_vm4, %v3395_v29  ;;  %v3936_v46 = vld [vmem:[%s4948_s1 + $0x5a8] sm:$0xff]   ;;  %v3978_v29 = vld [vmem:[%s4948_s1 + $0x6d0] sm:$0xff]  }
  0x8f   : > { %3581 = vmatprep.subr.bf16.mxu0 %v3897_v47  ;;  %2744 = vmatmul.mubr.bf16.vlgmr.msra.gmra.mxu1 %v342_v48  ;;  %v3938_v47 = vld [vmem:[%s4948_s1 + $0x5e0] sm:$0xff]  }
  0x90   : > { %3602 = vmatpush3.bf16.msra.mxu1 %v3896_v49  ;;  %2823 = vmatprep.mubr.bf16.mxu1 %v350_v35  ;;  %v3939_v48 = vld [vmem:[%s4948_s1 + $0x520] sm:$0xff]   ;;  %v3941_v49 = vld [vmem:[%s4948_s1 + $0x558] sm:$0xff]  }
  0x91   : > { %3603 = vmatprep.subr.bf16.mxu1 %v3898_v50  ;;  %v3940_v50 = vld [vmem:[%s4948_s1 + $0x5a0] sm:$0xff]  }
  0x92   : > { %3582 = vmatpush3.bf16.msra.mxu0 %v3899_v51  ;;  %v3942_v51 = vld [vmem:[%s4948_s1 + $0x5d8] sm:$0xff]  }
  0x93   : > { %3583 = vmatprep.subr.bf16.mxu0 %v3901_v52  ;;  %v3943_v52 = vld [vmem:[%s4948_s1 + $0x518] sm:$0xff]  }
  0x94   : > { %3604 = vmatpush3.bf16.msra.mxu1 %v3900_v54  ;;  %v3945_v54 = vld [vmem:[%s4948_s1 + $0x550] sm:$0xff]  }
  0x95   : > { %3605 = vmatprep.subr.bf16.mxu1 %v3902_v56  ;;  %v3944_v56 = vld [vmem:[%s4948_s1 + $0x598] sm:$0xff]  }
  0x96   : > { %3584 = vmatpush3.bf16.msra.mxu0 %v3903_v57  ;;  %v3946_v57 = vld [vmem:[%s4948_s1 + $0x5d0] sm:$0xff]  }
  0x97   : > { %3585 = vmatprep.subr.bf16.mxu0 %v3905_v58  ;;  %v3947_v58 = vld [vmem:[%s4948_s1 + $0x510] sm:$0xff]  }
  0x98   : > { %3606 = vmatpush3.bf16.msra.mxu1 %v3904_v60  ;;  %v3949_v60 = vld [vmem:[%s4948_s1 + $0x548] sm:$0xff]  }
  0x99   : > { %3607 = vmatprep.subr.bf16.mxu1 %v3906_v61  ;;  %v3948_v61 = vld [vmem:[%s4948_s1 + $0x590] sm:$0xff]  }
  0x9a   : > { %3586 = vmatpush3.bf16.msra.mxu0 %v3907_v62  ;;  %v3950_v62 = vld [vmem:[%s4948_s1 + $0x5c8] sm:$0xff]  }
  0x9b   : > { %3587 = vmatprep.subr.bf16.mxu0 %v3909_v0  ;;  %v3951_v0 = vld [vmem:[%s4948_s1 + $0x508] sm:$0xff]  }
  0x9c   : > { %3608 = vmatpush3.bf16.msra.mxu1 %v3908_v1  ;;  %v3953_v1 = vld [vmem:[%s4948_s1 + $0x540] sm:$0xff]  }
  0x9d   : > { %3609 = vmatprep.subr.bf16.mxu1 %v3910_v3  ;;  %v3952_v3 = vld [vmem:[%s4948_s1 + $0x588] sm:$0xff]  }
  0x9e   : > { %3588 = vmatpush3.bf16.msra.mxu0 %v3911_v5  ;;  %v3954_v5 = vld [vmem:[%s4948_s1 + $0x5c0] sm:$0xff]  }
  0x9f   : > { %3589 = vmatprep.subr.bf16.mxu0 %v3913_v7  ;;  %v3957_v7 = vld [vmem:[%s4948_s1 + $0x678] sm:$0xff]  }
  0xa0   : > { %3610 = vmatpush3.bf16.msra.mxu1 %v3912_v6  ;;  %v3955_v6 = vld [vmem:[%s4948_s1 + $0x500] sm:$0xff]  }
  0xa1   : > { %3611 = vmatprep.subr.bf16.mxu1 %v3914_v8  ;;  %v3956_v8 = vld [vmem:[%s4948_s1 + $0x580] sm:$0xff]  }
  0xa2   : > { %3590 = vmatpush3.bf16.msra.mxu0 %v3915_v9  ;;  %v356_v9 = vrot.slane %v4627_v27, 1  ;;  %v3977_v27 = vld [vmem:[%s4948_s1 + $0x650] sm:$0xff]  }
  0xa3   : > { %3591 = vmatprep.subr.bf16.mxu0 %v3917_v11  ;;  %v3959_v11 = vld [vmem:[%s4948_s1 + $0x638] sm:$0xff]  }
  0xa4   : > { %3612 = vmatpush3.bf16.msra.mxu1 %v3916_v13  ;;  %v360_v13 = vrot.slane %v347_v34, 1 }
  0xa5   : > { %3613 = vmatprep.subr.bf16.mxu1 %v3918_v14  ;;  %v3960_v14 = vld [vmem:[%s4948_s1 + $0x6b8] sm:$0xff]  }
  0xa6   : > { %3592 = vmatpush3.bf16.msra.mxu0 %v3919_v16  ;;  %v3963_v16 = vld [vmem:[%s4948_s1 + $0x630] sm:$0xff]  }
  0xa7   : > { %3593 = vmatprep.subr.bf16.mxu0 %v3921_v17  ;;  %v3965_v17 = vld [vmem:[%s4948_s1 + $0x668] sm:$0xff]  }
  0xa8   : > { %3614 = vmatpush3.bf16.msra.mxu1 %v3920_v19  ;;  %v3966_v19 = vld [vmem:[%s4948_s1 + $0x6e8] sm:$0xff]  }
  0xa9   : > { %3615 = vmatprep.subr.bf16.mxu1 %v3922_v53  ;;  %v3967_v53 = vld [vmem:[%s4948_s1 + $0x628] sm:$0xff]  }
  0xaa   : > { %3594 = vmatpush3.bf16.msra.mxu0 %v3923_v21  ;;  %v3968_v21 = vld [vmem:[%s4948_s1 + $0x6a8] sm:$0xff]  }
  0xab   : > { %3623 = vmatprep.subr.bf16.mxu0 %v3925_v55  ;;  %v3971_v55 = vld [vmem:[%s4948_s1 + $0x620] sm:$0xff]  }
  0xac   : > { %3616 = vmatpush3.bf16.msra.mxu1 %v3924_v23  ;;  %v3973_v23 = vld [vmem:[%s4948_s1 + $0x658] sm:$0xff]  }
  0xad   : > { %3399 = vmatmul.mubr.msk.bf16.vlgmr.msra.gmra.mxu0 %vm4415_vm4, %v3398_v26  ;;  %3645 = vmatprep.subr.bf16.mxu1 %v3926_v28  ;;  %v3975_v26 = vld [vmem:[%s4948_s1 + $0x618] sm:$0xff]  }
  0xae   : > { %3624 = vmatpush3.bf16.msra.mxu0 %v3927_v31  ;;  %2863 = vmatprep.mubr.bf16.mxu0 %v357_v40  ;;  %v3976_v28 = vld [vmem:[%s4948_s1 + $0x698] sm:$0xff]   ;;  %v3981_v31 = vld [vmem:[%s4948_s1 + $0x648] sm:$0xff]  }
  0xaf   : > { %3625 = vmatprep.subr.bf16.mxu0 %v3929_v33  ;;  %2824 = vmatmul.mubr.bf16.vlgmr.msra.gmra.mxu1 %v347_v34  ;;  %v3980_v33 = vld [vmem:[%s4948_s1 + $0x690] sm:$0xff]  }
  0xb0   : > { %3646 = vmatpush3.bf16.msra.mxu1 %v3928_v59  ;;  %2903 = vmatprep.mubr.bf16.mxu1 %v361_v42  ;;  %v3982_v59 = vld [vmem:[%s4948_s1 + $0x6c8] sm:$0xff]   ;;  %v3985_v42 = vld [vmem:[%s4948_s1 + $0x640] sm:$0xff]  }
  0xb1   : > { %3647 = vmatprep.subr.bf16.mxu1 %v3930_v37  ;;  %v3983_v37 = vld [vmem:[%s4948_s1 + $0x608] sm:$0xff]  }
  0xb2   : > { %3626 = vmatpush3.bf16.msra.mxu0 %v3931_v39  ;;  %v894_v39 = vld [vmem:[%s4949_s2] sm:$0x1] }
  0xb3   : > { %3627 = vmatprep.subr.bf16.mxu0 %v3933_v41 }
  0xb4   : > { %3648 = vmatpush3.bf16.msra.mxu1 %v3932_v63 }
  0xb5   : > { %3649 = vmatprep.subr.bf16.mxu1 %v3934_v43 }
  0xb6   : > { %3628 = vmatpush3.bf16.msra.mxu0 %v3935_v44  ;;  %v3984_v44 = vld [vmem:[%s4948_s1 + $0x688] sm:$0xff]  }
  0xb7   : > { %3629 = vmatprep.subr.bf16.mxu0 %v3937_v45 }
  0xb8   : > { %3650 = vmatpush3.bf16.msra.mxu1 %v3936_v46 }
  0xb9   : > { %3651 = vmatprep.subr.bf16.mxu1 %v3938_v47  ;;  %v3986_v47 = vld [vmem:[%s4948_s1 + $0x6c0] sm:$0xff]  }
  0xba   : > { %3630 = vmatpush3.bf16.msra.mxu0 %v3939_v48 }
  0xbb   : > { %3631 = vmatprep.subr.bf16.mxu0 %v3941_v49  ;;  %v3987_v49 = vld [vmem:[%s4948_s1 + $0x600] sm:$0xff]  }
  0xbc   : > { %3652 = vmatpush3.bf16.msra.mxu1 %v3940_v50 }
  0xbd   : > { %3653 = vmatprep.subr.bf16.mxu1 %v3942_v51 }
  0xbe   : > { %3632 = vmatpush3.bf16.msra.mxu0 %v3943_v52  ;;  %v3989_v52 = vld [vmem:[%s4948_s1 + $0x778] sm:$0xff]  }
  0xbf   : > { %3633 = vmatprep.subr.bf16.mxu0 %v3945_v54  ;;  %v3988_v54 = vld [vmem:[%s4948_s1 + $0x680] sm:$0xff]  }
  0xc0   : > { %3654 = vmatpush3.bf16.msra.mxu1 %v3944_v56  ;;  %v3990_v56 = vld [vmem:[%s4948_s1 + $0x7f8] sm:$0xff]  }
  0xc1   : > { %3655 = vmatprep.subr.bf16.mxu1 %v3946_v57  ;;  %v3991_v57 = vld [vmem:[%s4948_s1 + $0x738] sm:$0xff]  }
  0xc2   : > { %3634 = vmatpush3.bf16.msra.mxu0 %v3947_v58  ;;  %v3993_v58 = vld [vmem:[%s4948_s1 + $0x770] sm:$0xff]  }
  0xc3   : > { %3635 = vmatprep.subr.bf16.mxu0 %v3949_v60  ;;  %v3992_v60 = vld [vmem:[%s4948_s1 + $0x7b8] sm:$0xff]  }
  0xc4   : > { %3656 = vmatpush3.bf16.msra.mxu1 %v3948_v61  ;;  %v3994_v61 = vld [vmem:[%s4948_s1 + $0x7f0] sm:$0xff]  }
  0xc5   : > { %3657 = vmatprep.subr.bf16.mxu1 %v3950_v62  ;;  %v3995_v62 = vld [vmem:[%s4948_s1 + $0x730] sm:$0xff]  }
  0xc6   : > { %3636 = vmatpush3.bf16.msra.mxu0 %v3951_v0  ;;  %v3997_v0 = vld [vmem:[%s4948_s1 + $0x768] sm:$0xff]  }
  0xc7   : > { %3637 = vmatprep.subr.bf16.mxu0 %v3953_v1  ;;  %v3998_v1 = vld [vmem:[%s4948_s1 + $0x7e8] sm:$0xff]  }
  0xc8   : > { %3658 = vmatpush3.bf16.msra.mxu1 %v3952_v3  ;;  %v3999_v3 = vld [vmem:[%s4948_s1 + $0x728] sm:$0xff]  }
  0xc9   : > { %3659 = vmatprep.subr.bf16.mxu1 %v3954_v5  ;;  %v4000_v5 = vld [vmem:[%s4948_s1 + $0x7a8] sm:$0xff]  }
  0xca   : > { %3638 = vmatpush3.bf16.msra.mxu0 %v3955_v6  ;;  %v4002_v6 = vld [vmem:[%s4948_s1 + $0x7e0] sm:$0xff]  }
  0xcb   : > { %3667 = vmatprep.subr.bf16.mxu0 %v3957_v7  ;;  %v4003_v7 = vld [vmem:[%s4948_s1 + $0x720] sm:$0xff]  }
  0xcc   : > { %3660 = vmatpush3.bf16.msra.mxu1 %v3956_v8  ;;  %v4005_v8 = vld [vmem:[%s4948_s1 + $0x758] sm:$0xff]  }
  0xcd   : > { %2864 = vmatmul.mubr.bf16.vlgmr.msra.gmra.mxu0 %v356_v9  ;;  %3689 = vmatprep.subr.bf16.mxu1 %v3958_v10  ;;  %v4004_v9 = vld [vmem:[%s4948_s1 + $0x7a0] sm:$0xff]   ;;  %v4006_v10 = vld [vmem:[%s4948_s1 + $0x7d8] sm:$0xff]  }
  0xce   : > { %3668 = vmatpush3.bf16.msra.mxu0 %v3959_v11  ;;  %2943 = vmatprep.mubr.bf16.mxu0 %v4033_v2  ;;  %v4007_v11 = vld [vmem:[%s4948_s1 + $0x718] sm:$0xff]  }
  0xcf   : > { %3669 = vmatprep.subr.bf16.mxu0 %v3961_v12  ;;  %2904 = vmatmul.mubr.bf16.vlgmr.msra.gmra.mxu1 %v360_v13  ;;  %v4009_v12 = vld [vmem:[%s4948_s1 + $0x750] sm:$0xff]   ;;  %v4008_v13 = vld [vmem:[%s4948_s1 + $0x798] sm:$0xff]  }
  0xd0   : > { %3690 = vmatpush3.bf16.msra.mxu1 %v3960_v14  ;;  %2983 = vmatprep.mubr.bf16.mxu1 %v4034_v4  ;;  %v4010_v14 = vld [vmem:[%s4948_s1 + $0x7d0] sm:$0xff]  }
  0xd1   : > { %3691 = vmatprep.subr.bf16.mxu1 %v3962_v15  ;;  %v4011_v15 = vld [vmem:[%s4948_s1 + $0x710] sm:$0xff]  }
  0xd2   : > { %3670 = vmatpush3.bf16.msra.mxu0 %v3963_v16  ;;  %v4013_v16 = vld [vmem:[%s4948_s1 + $0x748] sm:$0xff]  }
  0xd3   : > { %3671 = vmatprep.subr.bf16.mxu0 %v3965_v17 }
  0xd4   : > { %3692 = vmatpush3.bf16.msra.mxu1 %v3964_v18 }
  0xd5   : > { %3693 = vmatprep.subr.bf16.mxu1 %v3966_v19  ;;  %v4012_v19 = vld [vmem:[%s4948_s1 + $0x790] sm:$0xff]  }
  0xd6   : > { %3672 = vmatpush3.bf16.msra.mxu0 %v3967_v53 }
  0xd7   : > { %3673 = vmatprep.subr.bf16.mxu0 %v3969_v20  ;;  %v4014_v20 = vld [vmem:[%s4948_s1 + $0x7c8] sm:$0xff]  }
  0xd8   : > { %3694 = vmatpush3.bf16.msra.mxu1 %v3968_v21  ;;  %v4015_v21 = vld [vmem:[%s4948_s1 + $0x708] sm:$0xff]  }
  0xd9   : > { %3695 = vmatprep.subr.bf16.mxu1 %v3970_v22 }
  0xda   : > { %3674 = vmatpush3.bf16.msra.mxu0 %v3971_v55 }
  0xdb   : > { %3675 = vmatprep.subr.bf16.mxu0 %v3973_v23  ;;  %v4017_v23 = vld [vmem:[%s4948_s1 + $0x740] sm:$0xff]  }
  0xdc   : > { %3696 = vmatpush3.bf16.msra.mxu1 %v3972_v24 }
  0xdd   : > { %3697 = vmatprep.subr.bf16.mxu1 %v3974_v25 }
  0xde   : > { %3676 = vmatpush3.bf16.msra.mxu0 %v3975_v26 }
  0xdf   : > { %3677 = vmatprep.subr.bf16.mxu0 %v3977_v27 }
  0xe0   : > { %3698 = vmatpush3.bf16.msra.mxu1 %v3976_v28  ;;  %v4016_v28 = vld [vmem:[%s4948_s1 + $0x788] sm:$0xff]  }
  0xe1   : > { %3699 = vmatprep.subr.bf16.mxu1 %v3978_v29 }
  0xe2   : > { %3678 = vmatpush3.bf16.msra.mxu0 %v3979_v30  ;;  %v4018_v30 = vld [vmem:[%s4948_s1 + $0x7c0] sm:$0xff]  }
  0xe3   : > { %3679 = vmatprep.subr.bf16.mxu0 %v3981_v31  ;;  %v4019_v31 = vld [vmem:[%s4948_s1 + $0x700] sm:$0xff]  }
  0xe4   : > { %3700 = vmatpush3.bf16.msra.mxu1 %v3980_v33 }
  0xe5   : > { %3701 = vmatprep.subr.bf16.mxu1 %v3982_v59 }
  0xe6   : > { %3680 = vmatpush3.bf16.msra.mxu0 %v3983_v37 }
  0xe7   : > { %3681 = vmatprep.subr.bf16.mxu0 %v3985_v42 }
  0xe8   : > { %3702 = vmatpush3.bf16.msra.mxu1 %v3984_v44 }
  0xe9   : > { %3703 = vmatprep.subr.bf16.mxu1 %v3986_v47 }
  0xea   : > { %3682 = vmatpush3.bf16.msra.mxu0 %v3987_v49 }
  0xeb   : > { %3711 = vmatprep.subr.bf16.mxu0 %v3989_v52 }
  0xec   : > { %3704 = vmatpush3.bf16.msra.mxu1 %v3988_v54 }
  0xed   : > { %v3419_v32 = vpop.f32.mrf.mxu0  ;;  %2944 = vmatmul.mubr.bf16.vlgmr.msra.gmra.mxu0 %v4033_v2  ;;  %3733 = vmatprep.subr.bf16.mxu1 %v3990_v56  ;;  %v3996_v2 = vld [vmem:[%s4948_s1 + $0x7b0] sm:$0xff]  }
  0xee   : > { %v3441_v34 = vpop.f32.mrf.mxu1  ;;  %3712 = vmatpush3.bf16.msra.mxu0 %v3991_v57  ;;  %3023 = vmatprep.mubr.bf16.mxu0 %v4178_v36 }
  0xef   : > { %v3420_v35 = vpop.f32.mrf.mxu0  ;;  %3713 = vmatprep.subr.bf16.mxu0 %v3993_v58  ;;  %2984 = vmatmul.mubr.bf16.vlgmr.msra.gmra.mxu1 %v4034_v4  ;;  %v4001_v4 = vld [vmem:[%s4948_s1 + $0x760] sm:$0xff]  }
  0xf0   : > { %v3421_v40 = vadd.f32 %v3420_v35, %v3419_v32  ;;  %v3442_v41 = vpop.f32.mrf.mxu1  ;;  %3734 = vmatpush3.bf16.msra.mxu1 %v3992_v60  ;;  %3063 = vmatprep.mubr.bf16.mxu1 %v4184_v38 }
  0xf1   : > { %v3443_v63 = vadd.f32 %v3442_v41, %v3441_v34  ;;  %v3422_v43 = vpop.f32.mrf.mxu0  ;;  %3735 = vmatprep.subr.bf16.mxu1 %v3994_v61  ;;  %v4020_v34 = vld [vmem:[%s4948_s1 + $0x780] sm:$0xff]  }
  0xf2   : > { %v2466_v45 = vadd.f32 %v3421_v40, %v894_v39  ;;  %v3444_v46 = vpop.f32.mrf.mxu1  ;;  %3714 = vmatpush3.bf16.msra.mxu0 %v3995_v62 }
  0xf3   : > { %v3423_v48 = vpop.f32.mrf.mxu0  ;;  %3715 = vmatprep.subr.bf16.mxu0 %v3997_v0 }
  0xf4   : > { %v4832_v50 = vadd.f32 %v3443_v63, %v2466_v45  ;;  %v3445_v51 = vpop.f32.mrf.mxu1  ;;  %3736 = vmatpush3.bf16.msra.mxu1 %v3996_v2 }
  0xf5   : > { %3737 = vmatprep.subr.bf16.mxu1 %v3998_v1 }
  0xf6   : > { %3716 = vmatpush3.bf16.msra.mxu0 %v3999_v3 }
  0xf7   : > { %3717 = vmatprep.subr.bf16.mxu0 %v4001_v4 }
  0xf8   : > { %3738 = vmatpush3.bf16.msra.mxu1 %v4000_v5 }
  0xf9   : > { %3739 = vmatprep.subr.bf16.mxu1 %v4002_v6 }
  0xfa   : > { %3718 = vmatpush3.bf16.msra.mxu0 %v4003_v7 }
  0xfb   : > { %3719 = vmatprep.subr.bf16.mxu0 %v4005_v8 }
  0xfc   : > { %3740 = vmatpush3.bf16.msra.mxu1 %v4004_v9 }
  0xfd   : > { %3741 = vmatprep.subr.bf16.mxu1 %v4006_v10 }
  0xfe   : > { %3720 = vmatpush3.bf16.msra.mxu0 %v4007_v11 }
  0xff   : > { %3721 = vmatprep.subr.bf16.mxu0 %v4009_v12 }
 0x100   : > { %3742 = vmatpush3.bf16.msra.mxu1 %v4008_v13 }
 0x101   : > { %3743 = vmatprep.subr.bf16.mxu1 %v4010_v14 }
 0x102   : > { %3722 = vmatpush3.bf16.msra.mxu0 %v4011_v15 }
 0x103   : > { %3723 = vmatprep.subr.bf16.mxu0 %v4013_v16 }
 0x104   : > { %3744 = vmatpush3.bf16.msra.mxu1 %v4012_v19 }
 0x105   : > { %3745 = vmatprep.subr.bf16.mxu1 %v4014_v20 }
 0x106   : > { %3724 = vmatpush3.bf16.msra.mxu0 %v4015_v21 }
 0x107   : > { %3725 = vmatprep.subr.bf16.mxu0 %v4017_v23 }
 0x108   : > { %3746 = vmatpush3.bf16.msra.mxu1 %v4016_v28 }
 0x109   : > { %3747 = vmatprep.subr.bf16.mxu1 %v4018_v30 }
 0x10a   : > { %3726 = vmatpush3.bf16.msra.mxu0 %v4019_v31 }
 0x10c   : > { %3748 = vmatpush3.bf16.msra.mxu1 %v4020_v34 }
 0x10d   : > { %v3463_v17 = vpop.f32.mrf.mxu0  ;;  %3024 = vmatmul.mubr.bf16.vlgmr.msra.gmra.mxu0 %v4178_v36 }
 0x10e   : > { %v3485_v18 = vpop.f32.mrf.mxu1 }
 0x10f   : > { %v3464_v53 = vpop.f32.mrf.mxu0  ;;  %3064 = vmatmul.mubr.bf16.vlgmr.msra.gmra.mxu1 %v4184_v38 }
 0x110   : > { %v3465_v22 = vadd.f32 %v3464_v53, %v3463_v17  ;;  %v3486_v55 = vpop.f32.mrf.mxu1 }
 0x111   : > { %v3487_v24 = vadd.f32 %v3486_v55, %v3485_v18  ;;  %v3466_v25 = vpop.f32.mrf.mxu0 }
 0x112   : > { %v2546_v26 = vadd.f32 %v3465_v22, %v4832_v50  ;;  %v3488_v27 = vpop.f32.mrf.mxu1 }
 0x113   : > { %v3467_v29 = vpop.f32.mrf.mxu0 }
 0x114   : > { %v2586_v32 = vadd.f32 %v3487_v24, %v2546_v26  ;;  %v3489_v33 = vpop.f32.mrf.mxu1 }
 0x12d   : > { %v3507_v59 = vpop.f32.mrf.mxu0 }
 0x12e   : > { %v3529_v37 = vpop.f32.mrf.mxu1 }
 0x12f   : > { %v3508_v35 = vpop.f32.mrf.mxu0 }
 0x130   : > { %v3509_v39 = vadd.f32 %v3508_v35, %v3507_v59  ;;  %v3530_v42 = vpop.f32.mrf.mxu1 }
 0x131   : > { %v3510_v40 = vpop.f32.mrf.mxu0  ;;  %v3531_v63 = vadd.f32 %v3530_v42, %v3529_v37 }
 0x132   : > { %v2626_v41 = vadd.f32 %v3509_v39, %v2586_v32  ;;  %v3532_v44 = vpop.f32.mrf.mxu1 }
 0x133   : > { %v3511_v43 = vpop.f32.mrf.mxu0 }
 0x134   : > { %v2666_v45 = vadd.f32 %v3531_v63, %v2626_v41  ;;  %v3533_v46 = vpop.f32.mrf.mxu1 }
 0x14d   : > { %v3551_v47 = vpop.f32.mrf.mxu0 }
 0x14f   : > { %v3552_v48 = vpop.f32.mrf.mxu0  ;;  %v3573_v49 = vpop.f32.mrf.mxu1 }
 0x150   : > { %v3553_v50 = vadd.f32 %v3552_v48, %v3551_v47 }
 0x151   : > { %v3554_v51 = vpop.f32.mrf.mxu0  ;;  %v3574_v52 = vpop.f32.mrf.mxu1 }
 0x152   : > { %v2706_v36 = vadd.f32 %v3553_v50, %v2666_v45  ;;  %v3575_v38 = vadd.f32 %v3574_v52, %v3573_v49 }
 0x153   : > { %v3555_v54 = vpop.f32.mrf.mxu0  ;;  %v3576_v56 = vpop.f32.mrf.mxu1 }
 0x154   : > { %v2746_v57 = vadd.f32 %v3575_v38, %v2706_v36 }
 0x155   : > { %v3577_v58 = vpop.f32.mrf.mxu1 }
 0x16d   : > { %v3595_v60 = vpop.f32.mrf.mxu0 }
 0x16f   : > { %v3596_v61 = vpop.f32.mrf.mxu0  ;;  %v3617_v62 = vpop.f32.mrf.mxu1 }
 0x170   : > { %v3597_v0 = vadd.f32 %v3596_v61, %v3595_v60 }
 0x171   : > { %v3598_v2 = vpop.f32.mrf.mxu0  ;;  %v3618_v3 = vpop.f32.mrf.mxu1 }
 0x172   : > { %v2786_v1 = vadd.f32 %v3597_v0, %v2746_v57  ;;  %v3619_v4 = vadd.f32 %v3618_v3, %v3617_v62 }
 0x173   : > { %v3599_v5 = vpop.f32.mrf.mxu0  ;;  %v3620_v6 = vpop.f32.mrf.mxu1 }
 0x174   : > { %v2826_v7 = vadd.f32 %v3619_v4, %v2786_v1 }
 0x175   : > { %v3621_v8 = vpop.f32.mrf.mxu1 }
 0x18d   : > { %v3639_v9 = vpop.f32.mrf.mxu0 }
 0x18f   : > { %v3640_v10 = vpop.f32.mrf.mxu0  ;;  %v3661_v11 = vpop.f32.mrf.mxu1 }
 0x190   : > { %v3641_v23 = vadd.f32 %v3640_v10, %v3639_v9 }
 0x191   : > { %v3642_v12 = vpop.f32.mrf.mxu0  ;;  %v3662_v13 = vpop.f32.mrf.mxu1 }
 0x192   : > { %v2866_v24 = vadd.f32 %v3641_v23, %v2826_v7  ;;  %v3663_v25 = vadd.f32 %v3662_v13, %v3661_v11 }
 0x193   : > { %v3643_v14 = vpop.f32.mrf.mxu0  ;;  %v3664_v15 = vpop.f32.mrf.mxu1 }
 0x194   : > { %v2906_v27 = vadd.f32 %v3663_v25, %v2866_v24 }
 0x195   : > { %v3665_v16 = vpop.f32.mrf.mxu1 }
 0x1ad   : > { %v3683_v17 = vpop.f32.mrf.mxu0 }
 0x1af   : > { %v3684_v18 = vpop.f32.mrf.mxu0  ;;  %v3705_v19 = vpop.f32.mrf.mxu1 }
 0x1b0   : > { %v3685_v26 = vadd.f32 %v3684_v18, %v3683_v17 }
 0x1b1   : > { %v3686_v53 = vpop.f32.mrf.mxu0  ;;  %v3706_v20 = vpop.f32.mrf.mxu1 }
 0x1b2   : > { %v2946_v28 = vadd.f32 %v3685_v26, %v2906_v27  ;;  %v3707_v29 = vadd.f32 %v3706_v20, %v3705_v19 }
 0x1b3   : > { %v3687_v21 = vpop.f32.mrf.mxu0  ;;  %v3708_v22 = vpop.f32.mrf.mxu1 }
 0x1b4   : > { %v2986_v32 = vadd.f32 %v3707_v29, %v2946_v28 }
 0x1b5   : > { %v3709_v55 = vpop.f32.mrf.mxu1 }
 0x1cd   : > { %v3727_v30 = vpop.f32.mrf.mxu0 }
 0x1cf   : > { %v3728_v31 = vpop.f32.mrf.mxu0  ;;  %v3749_v33 = vpop.f32.mrf.mxu1 }
 0x1d0   : > { %v3729_v34 = vadd.f32 %v3728_v31, %v3727_v30 }
 0x1d1   : > { %v3730_v59 = vpop.f32.mrf.mxu0  ;;  %v3750_v37 = vpop.f32.mrf.mxu1 }
 0x1d2   : > { %v3026_v35 = vadd.f32 %v3729_v34, %v2986_v32  ;;  %v3751_v39 = vadd.f32 %v3750_v37, %v3749_v33 }
 0x1d3   : > { %v3731_v40 = vpop.f32.mrf.mxu0  ;;  %v3752_v41 = vpop.f32.mrf.mxu1 }
 0x1d4   : > { %v3066_v42 = vadd.f32 %v3751_v39, %v3026_v35 }
 0x1d5   : > { %v3753_v63 = vpop.f32.mrf.mxu1 }
 0x1d6   : > { %v3071_v43 = vsub.f32 0.0, %v3066_v42 }
 0x1d8   : > { %v3072_v44 = vmul.f32 1.442695, %v3071_v43 }
 0x1da   : > { %4021 = vpow2.f32 %v3072_v44 }
 0x1e7   : > { %v4022_v45 = vpop.eup %4021 }
 0x1e8   : > { %v3074_v46 = vadd.f32 1.0, %v4022_v45 }
 0x1ea   : > { %4023 = vrcp.f32 %v3074_v46 }
 0x1f7   : > { %v4024_v47 = vpop.eup %4023 }
 0x1f8   : > { %3077 = vst [vmem:[%s220_s17] sm:$0x1] %v4024_v47 }
 0x1f9 PF: > { %s15_s18 = sadd.s32 1, %s4031_s18  }
 0x1fa   : > { %p12_p4 = scmp.ge.s32.totalorder %s15_s18, 4  }
 0x1fc   :  { %14 = sbr.rel (!%p12_p4) target bundleno = 1 (0x1), region = 70 }

</bundles_post_ra>
